<compile_context>
chip_gen: v6e
topology: v6e:2x2x1
jax: 0.10.0
libtpu: 0.0.40
codegen_flags: <defaults>
</compile_context>

<pallas_src>
import math

import jax
import jax.numpy as jnp
from jax.experimental import pallas as pl
from jax.experimental.pallas import tpu as pltpu

NUM_LAYERS = 3  # nn.LSTM(..., num_layers=3)


def _round_up(x, m):
    return (x + m - 1) // m * m


# ---------------------------------------------------------------------------
# LSTM kernel: grid = (batch_tiles, time_chunks); hidden/cell state in VMEM.
# ---------------------------------------------------------------------------
def _lstm_kernel(x_ref,
                 w0_ref, b0_ref, w1_ref, b1_ref, w2_ref, b2_ref,
                 y_ref, h_out_ref, c_out_ref,
                 h_scr, c_scr):
    t = pl.program_id(1)
    T_c = x_ref.shape[0]
    H = h_scr.shape[-1]

    # h_0 = c_0 = 0 (the `hidden is None` branch of PoetryModel.forward);
    # re-zeroed at the start of every batch tile since t resets to 0.
    @pl.when(t == 0)
    def _():
        h_scr[...] = jnp.zeros_like(h_scr)
        c_scr[...] = jnp.zeros_like(c_scr)

    w_refs = (w0_ref, w1_ref, w2_ref)
    b_refs = (b0_ref, b1_ref, b2_ref)

    def step(s, carry):
        inp = x_ref[s]                                     # (tb, E) f32
        for l in range(NUM_LAYERS):
            # Single fused matmul per cell: [x ; h_prev] @ [W_ih^T ; W_hh^T]
            cat = jnp.concatenate([inp, h_scr[l]], axis=-1).astype(jnp.bfloat16)
            gates = (jnp.dot(cat, w_refs[l][...],
                             preferred_element_type=jnp.float32)
                     + b_refs[l][...])
            # PyTorch gate order: i, f, g, o (elementwise math kept in f32)
            i = jax.nn.sigmoid(gates[:, 0 * H:1 * H])
            f = jax.nn.sigmoid(gates[:, 1 * H:2 * H])
            g = jnp.tanh(gates[:, 2 * H:3 * H])
            o = jax.nn.sigmoid(gates[:, 3 * H:4 * H])
            c_new = f * c_scr[l] + i * g
            h_new = o * jnp.tanh(c_new)
            h_scr[l] = h_new
            c_scr[l] = c_new
            inp = h_new
        y_ref[s] = inp                                     # top-layer output
        return carry

    jax.lax.fori_loop(0, T_c, step, 0, unroll=True)

    @pl.when(t == pl.num_programs(1) - 1)
    def _():
        h_out_ref[...] = h_scr[...]
        c_out_ref[...] = c_scr[...]


def lstm_forward(x, params, *, time_chunk=8):
    S, B, E = x.shape
    H = params['w0'].shape[1] // 4

    # Time-chunk size (must divide S) and batch-tile size (multiple of 8 or B).
    T_c = next(tc for tc in (time_chunk, 8, 4, 2, 1) if S % tc == 0)
    tb = 8 if B % 8 == 0 else B
    grid = (B // tb, S // T_c)

    # bf16 MXU operands; biases stay f32 (added to the f32 accumulator).
    w0 = params['w0'].astype(jnp.bfloat16)
    w1 = params['w1'].astype(jnp.bfloat16)
    w2 = params['w2'].astype(jnp.bfloat16)
    b0, b1, b2 = params['b0'], params['b1'], params['b2']

    in_specs = [
        pl.BlockSpec((T_c, tb, E), lambda b, t: (t, b, 0)),
        pl.BlockSpec(w0.shape, lambda b, t: (0, 0)),
        pl.BlockSpec(b0.shape, lambda b, t: (0, 0)),
        pl.BlockSpec(w1.shape, lambda b, t: (0, 0)),
        pl.BlockSpec(b1.shape, lambda b, t: (0, 0)),
        pl.BlockSpec(w2.shape, lambda b, t: (0, 0)),
        pl.BlockSpec(b2.shape, lambda b, t: (0, 0)),
    ]
    out_specs = [
        pl.BlockSpec((T_c, tb, H), lambda b, t: (t, b, 0)),
        pl.BlockSpec((NUM_LAYERS, tb, H), lambda b, t: (0, b, 0)),
        pl.BlockSpec((NUM_LAYERS, tb, H), lambda b, t: (0, b, 0)),
    ]
    out_shape = [
        jax.ShapeDtypeStruct((S, B, H), jnp.float32),
        jax.ShapeDtypeStruct((NUM_LAYERS, B, H), jnp.float32),
        jax.ShapeDtypeStruct((NUM_LAYERS, B, H), jnp.float32),
    ]

    y, h_n, c_n = pl.pallas_call(
        _lstm_kernel,
        grid=grid,
        in_specs=in_specs,
        out_specs=out_specs,
        out_shape=out_shape,
        scratch_shapes=[pltpu.VMEM((NUM_LAYERS, tb, H), jnp.float32),
                        pltpu.VMEM((NUM_LAYERS, tb, H), jnp.float32)],
        compiler_params=pltpu.CompilerParams(
            # batch tiles independent (megacore on v7x); time is sequential.
            dimension_semantics=("parallel", "arbitrary")),
    )(x, w0, b0, w1, b1, w2, b2)
    return y, h_n, c_n


# ---------------------------------------------------------------------------
# Final linear projection: tiled, pipelined (S*B, H) @ (H, V) + b
# ---------------------------------------------------------------------------
def _linear_kernel(x_ref, w_ref, b_ref, o_ref):
    o_ref[...] = (jnp.dot(x_ref[...], w_ref[...],
                          preferred_element_type=jnp.float32)
                  + b_ref[...])


def linear_forward(x, w_t, b, *, tm=256, tn=512):
    N, H = x.shape
    V = w_t.shape[1]
    tm = min(tm, _round_up(N, 8))
    tn = min(tn, _round_up(V, 128))
    Np, Vp = _round_up(N, tm), _round_up(V, tn)

    x_p = jnp.pad(x, ((0, Np - N), (0, 0))).astype(jnp.bfloat16)
    w_p = jnp.pad(w_t, ((0, 0), (0, Vp - V))).astype(jnp.bfloat16)
    b_p = jnp.pad(b, (0, Vp - V)).reshape(1, Vp).astype(jnp.float32)

    flops = 2 * Np * H * Vp
    bytes_accessed = (x_p.size + w_p.size) * 2 + b_p.size * 4 + Np * Vp * 4

    out = pl.pallas_call(
        _linear_kernel,
        grid=(Np // tm, Vp // tn),
        in_specs=[pl.BlockSpec((tm, H), lambda i, j: (i, 0)),
                  pl.BlockSpec((H, tn), lambda i, j: (0, j)),
                  pl.BlockSpec((1, tn), lambda i, j: (0, j))],
        out_specs=pl.BlockSpec((tm, tn), lambda i, j: (i, j)),
        out_shape=jax.ShapeDtypeStruct((Np, Vp), jnp.float32),
        compiler_params=pltpu.CompilerParams(
            dimension_semantics=("parallel", "parallel"),
            vmem_limit_bytes=32 * 1024 * 1024),
        cost_estimate=pl.CostEstimate(flops=flops, transcendentals=0,
                                      bytes_accessed=bytes_accessed),
    )(x_p, w_p, b_p)
    return out[:N, :V]


# ---------------------------------------------------------------------------
# PoetryModel.forward
# ---------------------------------------------------------------------------
def poetry_model_forward(tokens, params):
    # Embedding lookup (data-dependent gather) stays in plain JAX.
    embeds = params['embedding'][tokens]                       # (S, B, E)
    y, h_n, c_n = lstm_forward(embeds, params)                 # (S,B,H), (3,B,H)x2
    S, B, H = y.shape
    out = linear_forward(y.reshape(S * B, H),
                         params['lin_w_t'], params['lin_b'])   # (S*B, V)
    return out, (h_n, c_n)


# ---------------------------------------------------------------------------
# Deterministic parameter init (shapes follow PoetryModel.__init__)
# ---------------------------------------------------------------------------
def init_params(key, words_size, embedding_dim, hidden_dim):
    ks = iter(jax.random.split(key, 16))
    k = 1.0 / math.sqrt(hidden_dim)
    u = lambda shape: jax.random.uniform(next(ks), shape, jnp.float32, -k, k)

    params = {'embedding': jax.random.normal(
        next(ks), (words_size, embedding_dim), jnp.float32)}
    for l in range(NUM_LAYERS):
        in_dim = embedding_dim if l == 0 else hidden_dim
        # PyTorch stores W_ih (4H, in), W_hh (4H, H).  We keep them transposed
        # and row-concatenated: W_l = [W_ih^T ; W_hh^T] of shape (in+H, 4H),
        # so each cell is a single (B, in+H) x (in+H, 4H) MXU matmul.
        params[f'w{l}'] = u((in_dim + hidden_dim, 4 * hidden_dim))
        # combined bias b_ih + b_hh
        params[f'b{l}'] = u((1, 4 * hidden_dim)) + u((1, 4 * hidden_dim))
    # nn.Linear(hidden_dim, words_size): weight (V, H) -> stored transposed.
    params['lin_w_t'] = u((hidden_dim, words_size))
    params['lin_b'] = u((words_size,))
    return params


# ---------------------------------------------------------------------------
# Pure-JAX float32 reference for correctness check
# ---------------------------------------------------------------------------
def reference_forward(tokens, params):
    embeds = params['embedding'][tokens]
    S, B, _ = embeds.shape
    H = params['w0'].shape[1] // 4
    h = jnp.zeros((NUM_LAYERS, B, H), jnp.float32)
    c = jnp.zeros((NUM_LAYERS, B, H), jnp.float32)
    ys = []
    for t in range(S):
        inp = embeds[t]
        hs, cs = [], []
        for l in range(NUM_LAYERS):
            cat = jnp.concatenate([inp, h[l]], axis=-1)
            gates = cat @ params[f'w{l}'] + params[f'b{l}']
            i = jax.nn.sigmoid(gates[:, :H])
            f = jax.nn.sigmoid(gates[:, H:2 * H])
            g = jnp.tanh(gates[:, 2 * H:3 * H])
            o = jax.nn.sigmoid(gates[:, 3 * H:])
            cl = f * c[l] + i * g
            hl = o * jnp.tanh(cl)
            hs.append(hl); cs.append(cl)
            inp = hl
        h, c = jnp.stack(hs), jnp.stack(cs)
        ys.append(inp)
    y = jnp.stack(ys)
    out = y.reshape(S * B, H) @ params['lin_w_t'] + params['lin_b']
    return out, (h, c)


if __name__ == "__main__":
    # Small, lane/sublane-aligned stand-ins for (words_size, 100, 200).
    WORDS, EMBED, HIDDEN = 512, 128, 128
    S, B = 16, 8                          # seq_len, batch_size

    key = jax.random.PRNGKey(0)
    pkey, tkey = jax.random.split(key)
    params = init_params(pkey, WORDS, EMBED, HIDDEN)
    tokens = jax.random.randint(tkey, (S, B), 0, WORDS, dtype=jnp.int32)

    fwd = jax.jit(poetry_model_forward)
    out, (h_n, c_n) = fwd(tokens, params)
    jax.block_until_ready((out, h_n, c_n))

    ref_out, (ref_h, ref_c) = reference_forward(tokens, params)
    assert out.shape == (S * B, WORDS)
    assert h_n.shape == (NUM_LAYERS, B, HIDDEN)
    assert c_n.shape == (NUM_LAYERS, B, HIDDEN)
    # bf16 MXU operands vs f32 reference -> loosened tolerances.
    assert jnp.allclose(out, ref_out, atol=5e-2, rtol=5e-2), \
        float(jnp.max(jnp.abs(out - ref_out)))
    assert jnp.allclose(h_n, ref_h, atol=5e-2, rtol=5e-2), \
        float(jnp.max(jnp.abs(h_n - ref_h)))
    assert jnp.allclose(c_n, ref_c, atol=5e-2, rtol=5e-2), \
        float(jnp.max(jnp.abs(c_n - ref_c)))
    print("KERNEL_OK")
</pallas_src>

<mosaic_0001>
module attributes {stable_mosaic.version = 11 : i64} {
  func.func @_linear_kernel(%arg0: i32, %arg1: i32, %arg2: memref<128x128xbf16, #tpu.memory_space<vmem>>, %arg3: memref<128x512xbf16, #tpu.memory_space<vmem>>, %arg4: memref<1x512xf32, #tpu.memory_space<vmem>>, %arg5: memref<128x512xf32, #tpu.memory_space<vmem>>) attributes {dimension_semantics = [#tpu.dimension_semantics<parallel>, #tpu.dimension_semantics<parallel>], iteration_bounds = array<i64: 1, 1>, scalar_prefetch = 0 : i64, scratch_operands = 0 : i64, tpu.core_type = #tpu.core_type<tc>, window_params = [{transform_indices = @transform_0, window_bounds = array<i64: 128, 128>}, {transform_indices = @transform_1, window_bounds = array<i64: 128, 512>}, {transform_indices = @transform_2, window_bounds = array<i64: 1, 512>}, {transform_indices = @transform_3, window_bounds = array<i64: 128, 512>}]} {
    %c0 = arith.constant 0 : index
    %c0_0 = arith.constant 0 : index
    %0 = vector.load %arg2[%c0, %c0_0] : memref<128x128xbf16, #tpu.memory_space<vmem>>, vector<128x128xbf16>
    %c0_1 = arith.constant 0 : index
    %c0_2 = arith.constant 0 : index
    %1 = vector.load %arg3[%c0_1, %c0_2] : memref<128x512xbf16, #tpu.memory_space<vmem>>, vector<128x512xbf16>
    %cst = arith.constant dense<0.000000e+00> : vector<128x512xf32>
    %2 = tpu.matmul %0, %1, %cst {dimension_numbers = #tpu.dot_dimension_numbers<[1], [0], [0], [1], [0, 0, 1, 1], [], []>} : vector<128x128xbf16>, vector<128x512xbf16>, vector<128x512xf32> -> vector<128x512xf32>
    %c0_3 = arith.constant 0 : index
    %c0_4 = arith.constant 0 : index
    %3 = vector.load %arg4[%c0_3, %c0_4] : memref<1x512xf32, #tpu.memory_space<vmem>>, vector<1x512xf32>
    %4 = vector.broadcast %3 : vector<1x512xf32> to vector<128x512xf32>
    %5 = arith.addf %2, %4 : vector<128x512xf32>
    %c0_5 = arith.constant 0 : index
    %c0_6 = arith.constant 0 : index
    %6 = vector.load %arg5[%c0_5, %c0_6] : memref<128x512xf32, #tpu.memory_space<vmem>>, vector<128x512xf32>
    tpu.vector_store %arg5[%c0_5, %c0_6], %5 {strides = array<i32>} : memref<128x512xf32, #tpu.memory_space<vmem>>, vector<128x512xf32>,
    return
  }
  func.func @transform_0(%arg0: i32, %arg1: i32) -> (i32, i32) {
    %c0_i32 = arith.constant 0 : i32
    %c0_i32_0 = arith.constant 0 : i32
    return %arg0, %c0_i32 : i32, i32
  }
  func.func @transform_1(%arg0: i32, %arg1: i32) -> (i32, i32) {
    %c0_i32 = arith.constant 0 : i32
    %c0_i32_0 = arith.constant 0 : i32
    return %c0_i32, %arg1 : i32, i32
  }
  func.func @transform_2(%arg0: i32, %arg1: i32) -> (i32, i32) {
    %c0_i32 = arith.constant 0 : i32
    %c0_i32_0 = arith.constant 0 : i32
    return %c0_i32, %arg1 : i32, i32
  }
  func.func @transform_3(%arg0: i32, %arg1: i32) -> (i32, i32) {
    %c0_i32 = arith.constant 0 : i32
    return %arg0, %arg1 : i32, i32
  }
}

module attributes {stable_mosaic.version = 11 : i64} {
  func.func @_lstm_kernel(%arg0: i32, %arg1: i32, %arg2: memref<8x8x128xf32, #tpu.memory_space<vmem>>, %arg3: memref<256x512xbf16, #tpu.memory_space<vmem>>, %arg4: memref<1x512xf32, #tpu.memory_space<vmem>>, %arg5: memref<256x512xbf16, #tpu.memory_space<vmem>>, %arg6: memref<1x512xf32, #tpu.memory_space<vmem>>, %arg7: memref<256x512xbf16, #tpu.memory_space<vmem>>, %arg8: memref<1x512xf32, #tpu.memory_space<vmem>>, %arg9: memref<8x8x128xf32, #tpu.memory_space<vmem>>, %arg10: memref<3x8x128xf32, #tpu.memory_space<vmem>>, %arg11: memref<3x8x128xf32, #tpu.memory_space<vmem>>, %arg12: memref<3x8x128xf32, #tpu.memory_space<vmem>>, %arg13: memref<3x8x128xf32, #tpu.memory_space<vmem>>) attributes {dimension_semantics = [#tpu.dimension_semantics<parallel>, #tpu.dimension_semantics<arbitrary>], iteration_bounds = array<i64: 1, 2>, scalar_prefetch = 0 : i64, scratch_operands = 2 : i64, tpu.core_type = #tpu.core_type<tc>, window_params = [{transform_indices = @transform_0, window_bounds = array<i64: 8, 8, 128>}, {pipeline_mode = #tpu.pipeline_mode<synchronous>, transform_indices = @transform_1, window_bounds = array<i64: 256, 512>}, {pipeline_mode = #tpu.pipeline_mode<synchronous>, transform_indices = @transform_2, window_bounds = array<i64: 1, 512>}, {pipeline_mode = #tpu.pipeline_mode<synchronous>, transform_indices = @transform_3, window_bounds = array<i64: 256, 512>}, {pipeline_mode = #tpu.pipeline_mode<synchronous>, transform_indices = @transform_4, window_bounds = array<i64: 1, 512>}, {pipeline_mode = #tpu.pipeline_mode<synchronous>, transform_indices = @transform_5, window_bounds = array<i64: 256, 512>}, {pipeline_mode = #tpu.pipeline_mode<synchronous>, transform_indices = @transform_6, window_bounds = array<i64: 1, 512>}, {transform_indices = @transform_7, window_bounds = array<i64: 8, 8, 128>}, {transform_indices = @transform_8, window_bounds = array<i64: 3, 8, 128>}, {transform_indices = @transform_9, window_bounds = array<i64: 3, 8, 128>}]} {
    %c0_i32 = arith.constant 0 : i32
    %0 = arith.cmpi eq, %arg1, %c0_i32 : i32
    %1 = arith.extui %0 : i1 to i32
    %c0_i32_0 = arith.constant 0 : i32
    %2 = arith.cmpi ne, %1, %c0_i32_0 : i32
    scf.if %2 {
      %cst_512 = arith.constant 0.000000e+00 : f32
      %1070 = vector.broadcast %cst_512 : f32 to vector<3x8x128xf32>
      %c0_513 = arith.constant 0 : index
      %c0_514 = arith.constant 0 : index
      %c0_515 = arith.constant 0 : index
      %1071 = vector.load %arg12[%c0_513, %c0_514, %c0_515] : memref<3x8x128xf32, #tpu.memory_space<vmem>>, vector<3x8x128xf32>
      tpu.vector_store %arg12[%c0_513, %c0_514, %c0_515], %1070 {strides = array<i32>} : memref<3x8x128xf32, #tpu.memory_space<vmem>>, vector<3x8x128xf32>,
      %cst_516 = arith.constant 0.000000e+00 : f32
      %1072 = vector.broadcast %cst_516 : f32 to vector<3x8x128xf32>
      %c0_517 = arith.constant 0 : index
      %c0_518 = arith.constant 0 : index
      %c0_519 = arith.constant 0 : index
      %1073 = vector.load %arg13[%c0_517, %c0_518, %c0_519] : memref<3x8x128xf32, #tpu.memory_space<vmem>>, vector<3x8x128xf32>
      tpu.vector_store %arg13[%c0_517, %c0_518, %c0_519], %1072 {strides = array<i32>} : memref<3x8x128xf32, #tpu.memory_space<vmem>>, vector<3x8x128xf32>,
    } else {
    }
    %c0_i32_1 = arith.constant 0 : i32
    %3 = arith.index_cast %c0_i32_1 : i32 to index
    %c0 = arith.constant 0 : index
    %c0_2 = arith.constant 0 : index
    %4 = vector.load %arg2[%3, %c0, %c0_2] : memref<8x8x128xf32, #tpu.memory_space<vmem>>, vector<1x8x128xf32>
    %5 = vector.shape_cast %4 : vector<1x8x128xf32> to vector<8x128xf32>
    %c0_3 = arith.constant 0 : index
    %c0_4 = arith.constant 0 : index
    %c0_5 = arith.constant 0 : index
    %6 = vector.load %arg12[%c0_3, %c0_4, %c0_5] : memref<3x8x128xf32, #tpu.memory_space<vmem>>, vector<1x8x128xf32>
    %7 = vector.shape_cast %6 : vector<1x8x128xf32> to vector<8x128xf32>
    %8 = tpu.concatenate %5, %7 in 1 : vector<8x128xf32>, vector<8x128xf32> -> vector<8x256xf32>
    %9 = arith.truncf %8 : vector<8x256xf32> to vector<8x256xbf16>
    %c0_6 = arith.constant 0 : index
    %c0_7 = arith.constant 0 : index
    %10 = vector.load %arg3[%c0_6, %c0_7] : memref<256x512xbf16, #tpu.memory_space<vmem>>, vector<256x512xbf16>
    %cst = arith.constant dense<0.000000e+00> : vector<8x512xf32>
    %11 = tpu.matmul %9, %10, %cst {dimension_numbers = #tpu.dot_dimension_numbers<[1], [0], [0], [1], [0, 0, 1, 1], [], []>} : vector<8x256xbf16>, vector<256x512xbf16>, vector<8x512xf32> -> vector<8x512xf32>
    %c0_8 = arith.constant 0 : index
    %c0_9 = arith.constant 0 : index
    %12 = vector.load %arg4[%c0_8, %c0_9] : memref<1x512xf32, #tpu.memory_space<vmem>>, vector<1x512xf32>
    %13 = vector.broadcast %12 : vector<1x512xf32> to vector<8x512xf32>
    %14 = arith.addf %11, %13 : vector<8x512xf32>
    %15 = vector.extract_strided_slice %14 {offsets = [0, 0], sizes = [8, 128], strides = [1, 1]} : vector<8x512xf32> to vector<8x128xf32>
    %16 = arith.negf %15 : vector<8x128xf32>
    %17 = math.exp %16 : vector<8x128xf32>
    %cst_10 = arith.constant 1.000000e+00 : f32
    %18 = vector.broadcast %cst_10 : f32 to vector<8x128xf32>
    %19 = arith.addf %18, %17 : vector<8x128xf32>
    %20 = arith.divf %18, %19 : vector<8x128xf32>
    %21 = vector.extract_strided_slice %14 {offsets = [0, 128], sizes = [8, 128], strides = [1, 1]} : vector<8x512xf32> to vector<8x128xf32>
    %22 = arith.negf %21 : vector<8x128xf32>
    %23 = math.exp %22 : vector<8x128xf32>
    %cst_11 = arith.constant 1.000000e+00 : f32
    %24 = vector.broadcast %cst_11 : f32 to vector<8x128xf32>
    %25 = arith.addf %24, %23 : vector<8x128xf32>
    %26 = arith.divf %24, %25 : vector<8x128xf32>
    %27 = vector.extract_strided_slice %14 {offsets = [0, 256], sizes = [8, 128], strides = [1, 1]} : vector<8x512xf32> to vector<8x128xf32>
    %28 = math.tanh %27 : vector<8x128xf32>
    %29 = vector.extract_strided_slice %14 {offsets = [0, 384], sizes = [8, 128], strides = [1, 1]} : vector<8x512xf32> to vector<8x128xf32>
    %30 = arith.negf %29 : vector<8x128xf32>
    %31 = math.exp %30 : vector<8x128xf32>
    %cst_12 = arith.constant 1.000000e+00 : f32
    %32 = vector.broadcast %cst_12 : f32 to vector<8x128xf32>
    %33 = arith.addf %32, %31 : vector<8x128xf32>
    %34 = arith.divf %32, %33 : vector<8x128xf32>
    %c0_13 = arith.constant 0 : index
    %c0_14 = arith.constant 0 : index
    %c0_15 = arith.constant 0 : index
    %35 = vector.load %arg13[%c0_13, %c0_14, %c0_15] : memref<3x8x128xf32, #tpu.memory_space<vmem>>, vector<1x8x128xf32>
    %36 = vector.shape_cast %35 : vector<1x8x128xf32> to vector<8x128xf32>
    %37 = arith.mulf %26, %36 : vector<8x128xf32>
    %38 = arith.mulf %20, %28 : vector<8x128xf32>
    %39 = arith.addf %37, %38 : vector<8x128xf32>
    %40 = math.tanh %39 : vector<8x128xf32>
    %41 = arith.mulf %34, %40 : vector<8x128xf32>
    %c0_16 = arith.constant 0 : index
    %c0_17 = arith.constant 0 : index
    %c0_18 = arith.constant 0 : index
    %42 = vector.load %arg12[%c0_16, %c0_17, %c0_18] : memref<3x8x128xf32, #tpu.memory_space<vmem>>, vector<1x8x128xf32>
    %43 = vector.shape_cast %42 : vector<1x8x128xf32> to vector<8x128xf32>
    %44 = vector.shape_cast %41 : vector<8x128xf32> to vector<1x8x128xf32>
    tpu.vector_store %arg12[%c0_16, %c0_17, %c0_18], %44 {strides = array<i32>} : memref<3x8x128xf32, #tpu.memory_space<vmem>>, vector<1x8x128xf32>,
    %c0_19 = arith.constant 0 : index
    %c0_20 = arith.constant 0 : index
    %c0_21 = arith.constant 0 : index
    %45 = vector.load %arg13[%c0_19, %c0_20, %c0_21] : memref<3x8x128xf32, #tpu.memory_space<vmem>>, vector<1x8x128xf32>
    %46 = vector.shape_cast %45 : vector<1x8x128xf32> to vector<8x128xf32>
    %47 = vector.shape_cast %39 : vector<8x128xf32> to vector<1x8x128xf32>
    tpu.vector_store %arg13[%c0_19, %c0_20, %c0_21], %47 {strides = array<i32>} : memref<3x8x128xf32, #tpu.memory_space<vmem>>, vector<1x8x128xf32>,
    %c1 = arith.constant 1 : index
    %c0_22 = arith.constant 0 : index
    %c0_23 = arith.constant 0 : index
    %48 = vector.load %arg12[%c1, %c0_22, %c0_23] : memref<3x8x128xf32, #tpu.memory_space<vmem>>, vector<1x8x128xf32>
    %49 = vector.shape_cast %48 : vector<1x8x128xf32> to vector<8x128xf32>
    %50 = tpu.concatenate %41, %49 in 1 : vector<8x128xf32>, vector<8x128xf32> -> vector<8x256xf32>
    %51 = arith.truncf %50 : vector<8x256xf32> to vector<8x256xbf16>
    %c0_24 = arith.constant 0 : index
    %c0_25 = arith.constant 0 : index
    %52 = vector.load %arg5[%c0_24, %c0_25] : memref<256x512xbf16, #tpu.memory_space<vmem>>, vector<256x512xbf16>
    %cst_26 = arith.constant dense<0.000000e+00> : vector<8x512xf32>
    %53 = tpu.matmul %51, %52, %cst_26 {dimension_numbers = #tpu.dot_dimension_numbers<[1], [0], [0], [1], [0, 0, 1, 1], [], []>} : vector<8x256xbf16>, vector<256x512xbf16>, vector<8x512xf32> -> vector<8x512xf32>
    %c0_27 = arith.constant 0 : index
    %c0_28 = arith.constant 0 : index
    %54 = vector.load %arg6[%c0_27, %c0_28] : memref<1x512xf32, #tpu.memory_space<vmem>>, vector<1x512xf32>
    %55 = vector.broadcast %54 : vector<1x512xf32> to vector<8x512xf32>
    %56 = arith.addf %53, %55 : vector<8x512xf32>
    %57 = vector.extract_strided_slice %56 {offsets = [0, 0], sizes = [8, 128], strides = [1, 1]} : vector<8x512xf32> to vector<8x128xf32>
    %58 = arith.negf %57 : vector<8x128xf32>
    %59 = math.exp %58 : vector<8x128xf32>
    %cst_29 = arith.constant 1.000000e+00 : f32
    %60 = vector.broadcast %cst_29 : f32 to vector<8x128xf32>
    %61 = arith.addf %60, %59 : vector<8x128xf32>
    %62 = arith.divf %60, %61 : vector<8x128xf32>
    %63 = vector.extract_strided_slice %56 {offsets = [0, 128], sizes = [8, 128], strides = [1, 1]} : vector<8x512xf32> to vector<8x128xf32>
    %64 = arith.negf %63 : vector<8x128xf32>
    %65 = math.exp %64 : vector<8x128xf32>
    %cst_30 = arith.constant 1.000000e+00 : f32
    %66 = vector.broadcast %cst_30 : f32 to vector<8x128xf32>
    %67 = arith.addf %66, %65 : vector<8x128xf32>
    %68 = arith.divf %66, %67 : vector<8x128xf32>
    %69 = vector.extract_strided_slice %56 {offsets = [0, 256], sizes = [8, 128], strides = [1, 1]} : vector<8x512xf32> to vector<8x128xf32>
    %70 = math.tanh %69 : vector<8x128xf32>
    %71 = vector.extract_strided_slice %56 {offsets = [0, 384], sizes = [8, 128], strides = [1, 1]} : vector<8x512xf32> to vector<8x128xf32>
    %72 = arith.negf %71 : vector<8x128xf32>
    %73 = math.exp %72 : vector<8x128xf32>
    %cst_31 = arith.constant 1.000000e+00 : f32
    %74 = vector.broadcast %cst_31 : f32 to vector<8x128xf32>
    %75 = arith.addf %74, %73 : vector<8x128xf32>
    %76 = arith.divf %74, %75 : vector<8x128xf32>
    %c1_32 = arith.constant 1 : index
    %c0_33 = arith.constant 0 : index
    %c0_34 = arith.constant 0 : index
    %77 = vector.load %arg13[%c1_32, %c0_33, %c0_34] : memref<3x8x128xf32, #tpu.memory_space<vmem>>, vector<1x8x128xf32>
    %78 = vector.shape_cast %77 : vector<1x8x128xf32> to vector<8x128xf32>
    %79 = arith.mulf %68, %78 : vector<8x128xf32>
    %80 = arith.mulf %62, %70 : vector<8x128xf32>
    %81 = arith.addf %79, %80 : vector<8x128xf32>
    %82 = math.tanh %81 : vector<8x128xf32>
    %83 = arith.mulf %76, %82 : vector<8x128xf32>
    %c1_35 = arith.constant 1 : index
    %c0_36 = arith.constant 0 : index
    %c0_37 = arith.constant 0 : index
    %84 = vector.load %arg12[%c1_35, %c0_36, %c0_37] : memref<3x8x128xf32, #tpu.memory_space<vmem>>, vector<1x8x128xf32>
    %85 = vector.shape_cast %84 : vector<1x8x128xf32> to vector<8x128xf32>
    %86 = vector.shape_cast %83 : vector<8x128xf32> to vector<1x8x128xf32>
    tpu.vector_store %arg12[%c1_35, %c0_36, %c0_37], %86 {strides = array<i32>} : memref<3x8x128xf32, #tpu.memory_space<vmem>>, vector<1x8x128xf32>,
    %c1_38 = arith.constant 1 : index
    %c0_39 = arith.constant 0 : index
    %c0_40 = arith.constant 0 : index
    %87 = vector.load %arg13[%c1_38, %c0_39, %c0_40] : memref<3x8x128xf32, #tpu.memory_space<vmem>>, vector<1x8x128xf32>
    %88 = vector.shape_cast %87 : vector<1x8x128xf32> to vector<8x128xf32>
    %89 = vector.shape_cast %81 : vector<8x128xf32> to vector<1x8x128xf32>
    tpu.vector_store %arg13[%c1_38, %c0_39, %c0_40], %89 {strides = array<i32>} : memref<3x8x128xf32, #tpu.memory_space<vmem>>, vector<1x8x128xf32>,
    %c2 = arith.constant 2 : index
    %c0_41 = arith.constant 0 : index
    %c0_42 = arith.constant 0 : index
    %90 = vector.load %arg12[%c2, %c0_41, %c0_42] : memref<3x8x128xf32, #tpu.memory_space<vmem>>, vector<1x8x128xf32>
    %91 = vector.shape_cast %90 : vector<1x8x128xf32> to vector<8x128xf32>
    %92 = tpu.concatenate %83, %91 in 1 : vector<8x128xf32>, vector<8x128xf32> -> vector<8x256xf32>
    %93 = arith.truncf %92 : vector<8x256xf32> to vector<8x256xbf16>
    %c0_43 = arith.constant 0 : index
    %c0_44 = arith.constant 0 : index
    %94 = vector.load %arg7[%c0_43, %c0_44] : memref<256x512xbf16, #tpu.memory_space<vmem>>, vector<256x512xbf16>
    %cst_45 = arith.constant dense<0.000000e+00> : vector<8x512xf32>
    %95 = tpu.matmul %93, %94, %cst_45 {dimension_numbers = #tpu.dot_dimension_numbers<[1], [0], [0], [1], [0, 0, 1, 1], [], []>} : vector<8x256xbf16>, vector<256x512xbf16>, vector<8x512xf32> -> vector<8x512xf32>
    %c0_46 = arith.constant 0 : index
    %c0_47 = arith.constant 0 : index
    %96 = vector.load %arg8[%c0_46, %c0_47] : memref<1x512xf32, #tpu.memory_space<vmem>>, vector<1x512xf32>
    %97 = vector.broadcast %96 : vector<1x512xf32> to vector<8x512xf32>
    %98 = arith.addf %95, %97 : vector<8x512xf32>
    %99 = vector.extract_strided_slice %98 {offsets = [0, 0], sizes = [8, 128], strides = [1, 1]} : vector<8x512xf32> to vector<8x128xf32>
    %100 = arith.negf %99 : vector<8x128xf32>
    %101 = math.exp %100 : vector<8x128xf32>
    %cst_48 = arith.constant 1.000000e+00 : f32
    %102 = vector.broadcast %cst_48 : f32 to vector<8x128xf32>
    %103 = arith.addf %102, %101 : vector<8x128xf32>
    %104 = arith.divf %102, %103 : vector<8x128xf32>
    %105 = vector.extract_strided_slice %98 {offsets = [0, 128], sizes = [8, 128], strides = [1, 1]} : vector<8x512xf32> to vector<8x128xf32>
    %106 = arith.negf %105 : vector<8x128xf32>
    %107 = math.exp %106 : vector<8x128xf32>
    %cst_49 = arith.constant 1.000000e+00 : f32
    %108 = vector.broadcast %cst_49 : f32 to vector<8x128xf32>
    %109 = arith.addf %108, %107 : vector<8x128xf32>
    %110 = arith.divf %108, %109 : vector<8x128xf32>
    %111 = vector.extract_strided_slice %98 {offsets = [0, 256], sizes = [8, 128], strides = [1, 1]} : vector<8x512xf32> to vector<8x128xf32>
    %112 = math.tanh %111 : vector<8x128xf32>
    %113 = vector.extract_strided_slice %98 {offsets = [0, 384], sizes = [8, 128], strides = [1, 1]} : vector<8x512xf32> to vector<8x128xf32>
    %114 = arith.negf %113 : vector<8x128xf32>
    %115 = math.exp %114 : vector<8x128xf32>
    %cst_50 = arith.constant 1.000000e+00 : f32
    %116 = vector.broadcast %cst_50 : f32 to vector<8x128xf32>
    %117 = arith.addf %116, %115 : vector<8x128xf32>
    %118 = arith.divf %116, %117 : vector<8x128xf32>
    %c2_51 = arith.constant 2 : index
    %c0_52 = arith.constant 0 : index
    %c0_53 = arith.constant 0 : index
    %119 = vector.load %arg13[%c2_51, %c0_52, %c0_53] : memref<3x8x128xf32, #tpu.memory_space<vmem>>, vector<1x8x128xf32>
    %120 = vector.shape_cast %119 : vector<1x8x128xf32> to vector<8x128xf32>
    %121 = arith.mulf %110, %120 : vector<8x128xf32>
    %122 = arith.mulf %104, %112 : vector<8x128xf32>
    %123 = arith.addf %121, %122 : vector<8x128xf32>
    %124 = math.tanh %123 : vector<8x128xf32>
    %125 = arith.mulf %118, %124 : vector<8x128xf32>
    %c2_54 = arith.constant 2 : index
    %c0_55 = arith.constant 0 : index
    %c0_56 = arith.constant 0 : index
    %126 = vector.load %arg12[%c2_54, %c0_55, %c0_56] : memref<3x8x128xf32, #tpu.memory_space<vmem>>, vector<1x8x128xf32>
    %127 = vector.shape_cast %126 : vector<1x8x128xf32> to vector<8x128xf32>
    %128 = vector.shape_cast %125 : vector<8x128xf32> to vector<1x8x128xf32>
    tpu.vector_store %arg12[%c2_54, %c0_55, %c0_56], %128 {strides = array<i32>} : memref<3x8x128xf32, #tpu.memory_space<vmem>>, vector<1x8x128xf32>,
    %c2_57 = arith.constant 2 : index
    %c0_58 = arith.constant 0 : index
    %c0_59 = arith.constant 0 : index
    %129 = vector.load %arg13[%c2_57, %c0_58, %c0_59] : memref<3x8x128xf32, #tpu.memory_space<vmem>>, vector<1x8x128xf32>
    %130 = vector.shape_cast %129 : vector<1x8x128xf32> to vector<8x128xf32>
    %131 = vector.shape_cast %123 : vector<8x128xf32> to vector<1x8x128xf32>
    tpu.vector_store %arg13[%c2_57, %c0_58, %c0_59], %131 {strides = array<i32>} : memref<3x8x128xf32, #tpu.memory_space<vmem>>, vector<1x8x128xf32>,
    %132 = arith.index_cast %c0_i32_1 : i32 to index
    %c0_60 = arith.constant 0 : index
    %c0_61 = arith.constant 0 : index
    %133 = vector.load %arg9[%132, %c0_60, %c0_61] : memref<8x8x128xf32, #tpu.memory_space<vmem>>, vector<1x8x128xf32>
    %134 = vector.shape_cast %133 : vector<1x8x128xf32> to vector<8x128xf32>
    %135 = vector.shape_cast %125 : vector<8x128xf32> to vector<1x8x128xf32>
    tpu.vector_store %arg9[%132, %c0_60, %c0_61], %135 {strides = array<i32>} : memref<8x8x128xf32, #tpu.memory_space<vmem>>, vector<1x8x128xf32>,
    %c1_i32 = arith.constant 1 : i32
    %136 = arith.index_cast %c1_i32 : i32 to index
    %c0_62 = arith.constant 0 : index
    %c0_63 = arith.constant 0 : index
    %137 = vector.load %arg2[%136, %c0_62, %c0_63] : memref<8x8x128xf32, #tpu.memory_space<vmem>>, vector<1x8x128xf32>
    %138 = vector.shape_cast %137 : vector<1x8x128xf32> to vector<8x128xf32>
    %c0_64 = arith.constant 0 : index
    %c0_65 = arith.constant 0 : index
    %c0_66 = arith.constant 0 : index
    %139 = vector.load %arg12[%c0_64, %c0_65, %c0_66] : memref<3x8x128xf32, #tpu.memory_space<vmem>>, vector<1x8x128xf32>
    %140 = vector.shape_cast %139 : vector<1x8x128xf32> to vector<8x128xf32>
    %141 = tpu.concatenate %138, %140 in 1 : vector<8x128xf32>, vector<8x128xf32> -> vector<8x256xf32>
    %142 = arith.truncf %141 : vector<8x256xf32> to vector<8x256xbf16>
    %c0_67 = arith.constant 0 : index
    %c0_68 = arith.constant 0 : index
    %143 = vector.load %arg3[%c0_67, %c0_68] : memref<256x512xbf16, #tpu.memory_space<vmem>>, vector<256x512xbf16>
    %cst_69 = arith.constant dense<0.000000e+00> : vector<8x512xf32>
    %144 = tpu.matmul %142, %143, %cst_69 {dimension_numbers = #tpu.dot_dimension_numbers<[1], [0], [0], [1], [0, 0, 1, 1], [], []>} : vector<8x256xbf16>, vector<256x512xbf16>, vector<8x512xf32> -> vector<8x512xf32>
    %c0_70 = arith.constant 0 : index
    %c0_71 = arith.constant 0 : index
    %145 = vector.load %arg4[%c0_70, %c0_71] : memref<1x512xf32, #tpu.memory_space<vmem>>, vector<1x512xf32>
    %146 = vector.broadcast %145 : vector<1x512xf32> to vector<8x512xf32>
    %147 = arith.addf %144, %146 : vector<8x512xf32>
    %148 = vector.extract_strided_slice %147 {offsets = [0, 0], sizes = [8, 128], strides = [1, 1]} : vector<8x512xf32> to vector<8x128xf32>
    %149 = arith.negf %148 : vector<8x128xf32>
    %150 = math.exp %149 : vector<8x128xf32>
    %cst_72 = arith.constant 1.000000e+00 : f32
    %151 = vector.broadcast %cst_72 : f32 to vector<8x128xf32>
    %152 = arith.addf %151, %150 : vector<8x128xf32>
    %153 = arith.divf %151, %152 : vector<8x128xf32>
    %154 = vector.extract_strided_slice %147 {offsets = [0, 128], sizes = [8, 128], strides = [1, 1]} : vector<8x512xf32> to vector<8x128xf32>
    %155 = arith.negf %154 : vector<8x128xf32>
    %156 = math.exp %155 : vector<8x128xf32>
    %cst_73 = arith.constant 1.000000e+00 : f32
    %157 = vector.broadcast %cst_73 : f32 to vector<8x128xf32>
    %158 = arith.addf %157, %156 : vector<8x128xf32>
    %159 = arith.divf %157, %158 : vector<8x128xf32>
    %160 = vector.extract_strided_slice %147 {offsets = [0, 256], sizes = [8, 128], strides = [1, 1]} : vector<8x512xf32> to vector<8x128xf32>
    %161 = math.tanh %160 : vector<8x128xf32>
    %162 = vector.extract_strided_slice %147 {offsets = [0, 384], sizes = [8, 128], strides = [1, 1]} : vector<8x512xf32> to vector<8x128xf32>
    %163 = arith.negf %162 : vector<8x128xf32>
    %164 = math.exp %163 : vector<8x128xf32>
    %cst_74 = arith.constant 1.000000e+00 : f32
    %165 = vector.broadcast %cst_74 : f32 to vector<8x128xf32>
    %166 = arith.addf %165, %164 : vector<8x128xf32>
    %167 = arith.divf %165, %166 : vector<8x128xf32>
    %c0_75 = arith.constant 0 : index
    %c0_76 = arith.constant 0 : index
    %c0_77 = arith.constant 0 : index
    %168 = vector.load %arg13[%c0_75, %c0_76, %c0_77] : memref<3x8x128xf32, #tpu.memory_space<vmem>>, vector<1x8x128xf32>
    %169 = vector.shape_cast %168 : vector<1x8x128xf32> to vector<8x128xf32>
    %170 = arith.mulf %159, %169 : vector<8x128xf32>
    %171 = arith.mulf %153, %161 : vector<8x128xf32>
    %172 = arith.addf %170, %171 : vector<8x128xf32>
    %173 = math.tanh %172 : vector<8x128xf32>
    %174 = arith.mulf %167, %173 : vector<8x128xf32>
    %c0_78 = arith.constant 0 : index
    %c0_79 = arith.constant 0 : index
    %c0_80 = arith.constant 0 : index
    %175 = vector.load %arg12[%c0_78, %c0_79, %c0_80] : memref<3x8x128xf32, #tpu.memory_space<vmem>>, vector<1x8x128xf32>
    %176 = vector.shape_cast %175 : vector<1x8x128xf32> to vector<8x128xf32>
    %177 = vector.shape_cast %174 : vector<8x128xf32> to vector<1x8x128xf32>
    tpu.vector_store %arg12[%c0_78, %c0_79, %c0_80], %177 {strides = array<i32>} : memref<3x8x128xf32, #tpu.memory_space<vmem>>, vector<1x8x128xf32>,
    %c0_81 = arith.constant 0 : index
    %c0_82 = arith.constant 0 : index
    %c0_83 = arith.constant 0 : index
    %178 = vector.load %arg13[%c0_81, %c0_82, %c0_83] : memref<3x8x128xf32, #tpu.memory_space<vmem>>, vector<1x8x128xf32>
    %179 = vector.shape_cast %178 : vector<1x8x128xf32> to vector<8x128xf32>
    %180 = vector.shape_cast %172 : vector<8x128xf32> to vector<1x8x128xf32>
    tpu.vector_store %arg13[%c0_81, %c0_82, %c0_83], %180 {strides = array<i32>} : memref<3x8x128xf32, #tpu.memory_space<vmem>>, vector<1x8x128xf32>,
    %c1_84 = arith.constant 1 : index
    %c0_85 = arith.constant 0 : index
    %c0_86 = arith.constant 0 : index
    %181 = vector.load %arg12[%c1_84, %c0_85, %c0_86] : memref<3x8x128xf32, #tpu.memory_space<vmem>>, vector<1x8x128xf32>
    %182 = vector.shape_cast %181 : vector<1x8x128xf32> to vector<8x128xf32>
    %183 = tpu.concatenate %174, %182 in 1 : vector<8x128xf32>, vector<8x128xf32> -> vector<8x256xf32>
    %184 = arith.truncf %183 : vector<8x256xf32> to vector<8x256xbf16>
    %c0_87 = arith.constant 0 : index
    %c0_88 = arith.constant 0 : index
    %185 = vector.load %arg5[%c0_87, %c0_88] : memref<256x512xbf16, #tpu.memory_space<vmem>>, vector<256x512xbf16>
    %cst_89 = arith.constant dense<0.000000e+00> : vector<8x512xf32>
    %186 = tpu.matmul %184, %185, %cst_89 {dimension_numbers = #tpu.dot_dimension_numbers<[1], [0], [0], [1], [0, 0, 1, 1], [], []>} : vector<8x256xbf16>, vector<256x512xbf16>, vector<8x512xf32> -> vector<8x512xf32>
    %c0_90 = arith.constant 0 : index
    %c0_91 = arith.constant 0 : index
    %187 = vector.load %arg6[%c0_90, %c0_91] : memref<1x512xf32, #tpu.memory_space<vmem>>, vector<1x512xf32>
    %188 = vector.broadcast %187 : vector<1x512xf32> to vector<8x512xf32>
    %189 = arith.addf %186, %188 : vector<8x512xf32>
    %190 = vector.extract_strided_slice %189 {offsets = [0, 0], sizes = [8, 128], strides = [1, 1]} : vector<8x512xf32> to vector<8x128xf32>
    %191 = arith.negf %190 : vector<8x128xf32>
    %192 = math.exp %191 : vector<8x128xf32>
    %cst_92 = arith.constant 1.000000e+00 : f32
    %193 = vector.broadcast %cst_92 : f32 to vector<8x128xf32>
    %194 = arith.addf %193, %192 : vector<8x128xf32>
    %195 = arith.divf %193, %194 : vector<8x128xf32>
    %196 = vector.extract_strided_slice %189 {offsets = [0, 128], sizes = [8, 128], strides = [1, 1]} : vector<8x512xf32> to vector<8x128xf32>
    %197 = arith.negf %196 : vector<8x128xf32>
    %198 = math.exp %197 : vector<8x128xf32>
    %cst_93 = arith.constant 1.000000e+00 : f32
    %199 = vector.broadcast %cst_93 : f32 to vector<8x128xf32>
    %200 = arith.addf %199, %198 : vector<8x128xf32>
    %201 = arith.divf %199, %200 : vector<8x128xf32>
    %202 = vector.extract_strided_slice %189 {offsets = [0, 256], sizes = [8, 128], strides = [1, 1]} : vector<8x512xf32> to vector<8x128xf32>
    %203 = math.tanh %202 : vector<8x128xf32>
    %204 = vector.extract_strided_slice %189 {offsets = [0, 384], sizes = [8, 128], strides = [1, 1]} : vector<8x512xf32> to vector<8x128xf32>
    %205 = arith.negf %204 : vector<8x128xf32>
    %206 = math.exp %205 : vector<8x128xf32>
    %cst_94 = arith.constant 1.000000e+00 : f32
    %207 = vector.broadcast %cst_94 : f32 to vector<8x128xf32>
    %208 = arith.addf %207, %206 : vector<8x128xf32>
    %209 = arith.divf %207, %208 : vector<8x128xf32>
    %c1_95 = arith.constant 1 : index
    %c0_96 = arith.constant 0 : index
    %c0_97 = arith.constant 0 : index
    %210 = vector.load %arg13[%c1_95, %c0_96, %c0_97] : memref<3x8x128xf32, #tpu.memory_space<vmem>>, vector<1x8x128xf32>
    %211 = vector.shape_cast %210 : vector<1x8x128xf32> to vector<8x128xf32>
    %212 = arith.mulf %201, %211 : vector<8x128xf32>
    %213 = arith.mulf %195, %203 : vector<8x128xf32>
    %214 = arith.addf %212, %213 : vector<8x128xf32>
    %215 = math.tanh %214 : vector<8x128xf32>
    %216 = arith.mulf %209, %215 : vector<8x128xf32>
    %c1_98 = arith.constant 1 : index
    %c0_99 = arith.constant 0 : index
    %c0_100 = arith.constant 0 : index
    %217 = vector.load %arg12[%c1_98, %c0_99, %c0_100] : memref<3x8x128xf32, #tpu.memory_space<vmem>>, vector<1x8x128xf32>
    %218 = vector.shape_cast %217 : vector<1x8x128xf32> to vector<8x128xf32>
    %219 = vector.shape_cast %216 : vector<8x128xf32> to vector<1x8x128xf32>
    tpu.vector_store %arg12[%c1_98, %c0_99, %c0_100], %219 {strides = array<i32>} : memref<3x8x128xf32, #tpu.memory_space<vmem>>, vector<1x8x128xf32>,
    %c1_101 = arith.constant 1 : index
    %c0_102 = arith.constant 0 : index
    %c0_103 = arith.constant 0 : index
    %220 = vector.load %arg13[%c1_101, %c0_102, %c0_103] : memref<3x8x128xf32, #tpu.memory_space<vmem>>, vector<1x8x128xf32>
    %221 = vector.shape_cast %220 : vector<1x8x128xf32> to vector<8x128xf32>
    %222 = vector.shape_cast %214 : vector<8x128xf32> to vector<1x8x128xf32>
    tpu.vector_store %arg13[%c1_101, %c0_102, %c0_103], %222 {strides = array<i32>} : memref<3x8x128xf32, #tpu.memory_space<vmem>>, vector<1x8x128xf32>,
    %c2_104 = arith.constant 2 : index
    %c0_105 = arith.constant 0 : index
    %c0_106 = arith.constant 0 : index
    %223 = vector.load %arg12[%c2_104, %c0_105, %c0_106] : memref<3x8x128xf32, #tpu.memory_space<vmem>>, vector<1x8x128xf32>
    %224 = vector.shape_cast %223 : vector<1x8x128xf32> to vector<8x128xf32>
    %225 = tpu.concatenate %216, %224 in 1 : vector<8x128xf32>, vector<8x128xf32> -> vector<8x256xf32>
    %226 = arith.truncf %225 : vector<8x256xf32> to vector<8x256xbf16>
    %c0_107 = arith.constant 0 : index
    %c0_108 = arith.constant 0 : index
    %227 = vector.load %arg7[%c0_107, %c0_108] : memref<256x512xbf16, #tpu.memory_space<vmem>>, vector<256x512xbf16>
    %cst_109 = arith.constant dense<0.000000e+00> : vector<8x512xf32>
    %228 = tpu.matmul %226, %227, %cst_109 {dimension_numbers = #tpu.dot_dimension_numbers<[1], [0], [0], [1], [0, 0, 1, 1], [], []>} : vector<8x256xbf16>, vector<256x512xbf16>, vector<8x512xf32> -> vector<8x512xf32>
    %c0_110 = arith.constant 0 : index
    %c0_111 = arith.constant 0 : index
    %229 = vector.load %arg8[%c0_110, %c0_111] : memref<1x512xf32, #tpu.memory_space<vmem>>, vector<1x512xf32>
    %230 = vector.broadcast %229 : vector<1x512xf32> to vector<8x512xf32>
    %231 = arith.addf %228, %230 : vector<8x512xf32>
    %232 = vector.extract_strided_slice %231 {offsets = [0, 0], sizes = [8, 128], strides = [1, 1]} : vector<8x512xf32> to vector<8x128xf32>
    %233 = arith.negf %232 : vector<8x128xf32>
    %234 = math.exp %233 : vector<8x128xf32>
    %cst_112 = arith.constant 1.000000e+00 : f32
    %235 = vector.broadcast %cst_112 : f32 to vector<8x128xf32>
    %236 = arith.addf %235, %234 : vector<8x128xf32>
    %237 = arith.divf %235, %236 : vector<8x128xf32>
    %238 = vector.extract_strided_slice %231 {offsets = [0, 128], sizes = [8, 128], strides = [1, 1]} : vector<8x512xf32> to vector<8x128xf32>
    %239 = arith.negf %238 : vector<8x128xf32>
    %240 = math.exp %239 : vector<8x128xf32>
    %cst_113 = arith.constant 1.000000e+00 : f32
    %241 = vector.broadcast %cst_113 : f32 to vector<8x128xf32>
    %242 = arith.addf %241, %240 : vector<8x128xf32>
    %243 = arith.divf %241, %242 : vector<8x128xf32>
    %244 = vector.extract_strided_slice %231 {offsets = [0, 256], sizes = [8, 128], strides = [1, 1]} : vector<8x512xf32> to vector<8x128xf32>
    %245 = math.tanh %244 : vector<8x128xf32>
    %246 = vector.extract_strided_slice %231 {offsets = [0, 384], sizes = [8, 128], strides = [1, 1]} : vector<8x512xf32> to vector<8x128xf32>
    %247 = arith.negf %246 : vector<8x128xf32>
    %248 = math.exp %247 : vector<8x128xf32>
    %cst_114 = arith.constant 1.000000e+00 : f32
    %249 = vector.broadcast %cst_114 : f32 to vector<8x128xf32>
    %250 = arith.addf %249, %248 : vector<8x128xf32>
    %251 = arith.divf %249, %250 : vector<8x128xf32>
    %c2_115 = arith.constant 2 : index
    %c0_116 = arith.constant 0 : index
    %c0_117 = arith.constant 0 : index
    %252 = vector.load %arg13[%c2_115, %c0_116, %c0_117] : memref<3x8x128xf32, #tpu.memory_space<vmem>>, vector<1x8x128xf32>
    %253 = vector.shape_cast %252 : vector<1x8x128xf32> to vector<8x128xf32>
    %254 = arith.mulf %243, %253 : vector<8x128xf32>
    %255 = arith.mulf %237, %245 : vector<8x128xf32>
    %256 = arith.addf %254, %255 : vector<8x128xf32>
    %257 = math.tanh %256 : vector<8x128xf32>
    %258 = arith.mulf %251, %257 : vector<8x128xf32>
    %c2_118 = arith.constant 2 : index
    %c0_119 = arith.constant 0 : index
    %c0_120 = arith.constant 0 : index
    %259 = vector.load %arg12[%c2_118, %c0_119, %c0_120] : memref<3x8x128xf32, #tpu.memory_space<vmem>>, vector<1x8x128xf32>
    %260 = vector.shape_cast %259 : vector<1x8x128xf32> to vector<8x128xf32>
    %261 = vector.shape_cast %258 : vector<8x128xf32> to vector<1x8x128xf32>
    tpu.vector_store %arg12[%c2_118, %c0_119, %c0_120], %261 {strides = array<i32>} : memref<3x8x128xf32, #tpu.memory_space<vmem>>, vector<1x8x128xf32>,
    %c2_121 = arith.constant 2 : index
    %c0_122 = arith.constant 0 : index
    %c0_123 = arith.constant 0 : index
    %262 = vector.load %arg13[%c2_121, %c0_122, %c0_123] : memref<3x8x128xf32, #tpu.memory_space<vmem>>, vector<1x8x128xf32>
    %263 = vector.shape_cast %262 : vector<1x8x128xf32> to vector<8x128xf32>
    %264 = vector.shape_cast %256 : vector<8x128xf32> to vector<1x8x128xf32>
    tpu.vector_store %arg13[%c2_121, %c0_122, %c0_123], %264 {strides = array<i32>} : memref<3x8x128xf32, #tpu.memory_space<vmem>>, vector<1x8x128xf32>,
    %265 = arith.index_cast %c1_i32 : i32 to index
    %c0_124 = arith.constant 0 : index
    %c0_125 = arith.constant 0 : index
    %266 = vector.load %arg9[%265, %c0_124, %c0_125] : memref<8x8x128xf32, #tpu.memory_space<vmem>>, vector<1x8x128xf32>
    %267 = vector.shape_cast %266 : vector<1x8x128xf32> to vector<8x128xf32>
    %268 = vector.shape_cast %258 : vector<8x128xf32> to vector<1x8x128xf32>
    tpu.vector_store %arg9[%265, %c0_124, %c0_125], %268 {strides = array<i32>} : memref<8x8x128xf32, #tpu.memory_space<vmem>>, vector<1x8x128xf32>,
    %c2_i32 = arith.constant 2 : i32
    %269 = arith.index_cast %c2_i32 : i32 to index
    %c0_126 = arith.constant 0 : index
    %c0_127 = arith.constant 0 : index
    %270 = vector.load %arg2[%269, %c0_126, %c0_127] : memref<8x8x128xf32, #tpu.memory_space<vmem>>, vector<1x8x128xf32>
    %271 = vector.shape_cast %270 : vector<1x8x128xf32> to vector<8x128xf32>
    %c0_128 = arith.constant 0 : index
    %c0_129 = arith.constant 0 : index
    %c0_130 = arith.constant 0 : index
    %272 = vector.load %arg12[%c0_128, %c0_129, %c0_130] : memref<3x8x128xf32, #tpu.memory_space<vmem>>, vector<1x8x128xf32>
    %273 = vector.shape_cast %272 : vector<1x8x128xf32> to vector<8x128xf32>
    %274 = tpu.concatenate %271, %273 in 1 : vector<8x128xf32>, vector<8x128xf32> -> vector<8x256xf32>
    %275 = arith.truncf %274 : vector<8x256xf32> to vector<8x256xbf16>
    %c0_131 = arith.constant 0 : index
    %c0_132 = arith.constant 0 : index
    %276 = vector.load %arg3[%c0_131, %c0_132] : memref<256x512xbf16, #tpu.memory_space<vmem>>, vector<256x512xbf16>
    %cst_133 = arith.constant dense<0.000000e+00> : vector<8x512xf32>
    %277 = tpu.matmul %275, %276, %cst_133 {dimension_numbers = #tpu.dot_dimension_numbers<[1], [0], [0], [1], [0, 0, 1, 1], [], []>} : vector<8x256xbf16>, vector<256x512xbf16>, vector<8x512xf32> -> vector<8x512xf32>
    %c0_134 = arith.constant 0 : index
    %c0_135 = arith.constant 0 : index
    %278 = vector.load %arg4[%c0_134, %c0_135] : memref<1x512xf32, #tpu.memory_space<vmem>>, vector<1x512xf32>
    %279 = vector.broadcast %278 : vector<1x512xf32> to vector<8x512xf32>
    %280 = arith.addf %277, %279 : vector<8x512xf32>
    %281 = vector.extract_strided_slice %280 {offsets = [0, 0], sizes = [8, 128], strides = [1, 1]} : vector<8x512xf32> to vector<8x128xf32>
    %282 = arith.negf %281 : vector<8x128xf32>
    %283 = math.exp %282 : vector<8x128xf32>
    %cst_136 = arith.constant 1.000000e+00 : f32
    %284 = vector.broadcast %cst_136 : f32 to vector<8x128xf32>
    %285 = arith.addf %284, %283 : vector<8x128xf32>
    %286 = arith.divf %284, %285 : vector<8x128xf32>
    %287 = vector.extract_strided_slice %280 {offsets = [0, 128], sizes = [8, 128], strides = [1, 1]} : vector<8x512xf32> to vector<8x128xf32>
    %288 = arith.negf %287 : vector<8x128xf32>
    %289 = math.exp %288 : vector<8x128xf32>
    %cst_137 = arith.constant 1.000000e+00 : f32
    %290 = vector.broadcast %cst_137 : f32 to vector<8x128xf32>
    %291 = arith.addf %290, %289 : vector<8x128xf32>
    %292 = arith.divf %290, %291 : vector<8x128xf32>
    %293 = vector.extract_strided_slice %280 {offsets = [0, 256], sizes = [8, 128], strides = [1, 1]} : vector<8x512xf32> to vector<8x128xf32>
    %294 = math.tanh %293 : vector<8x128xf32>
    %295 = vector.extract_strided_slice %280 {offsets = [0, 384], sizes = [8, 128], strides = [1, 1]} : vector<8x512xf32> to vector<8x128xf32>
    %296 = arith.negf %295 : vector<8x128xf32>
    %297 = math.exp %296 : vector<8x128xf32>
    %cst_138 = arith.constant 1.000000e+00 : f32
    %298 = vector.broadcast %cst_138 : f32 to vector<8x128xf32>
    %299 = arith.addf %298, %297 : vector<8x128xf32>
    %300 = arith.divf %298, %299 : vector<8x128xf32>
    %c0_139 = arith.constant 0 : index
    %c0_140 = arith.constant 0 : index
    %c0_141 = arith.constant 0 : index
    %301 = vector.load %arg13[%c0_139, %c0_140, %c0_141] : memref<3x8x128xf32, #tpu.memory_space<vmem>>, vector<1x8x128xf32>
    %302 = vector.shape_cast %301 : vector<1x8x128xf32> to vector<8x128xf32>
    %303 = arith.mulf %292, %302 : vector<8x128xf32>
    %304 = arith.mulf %286, %294 : vector<8x128xf32>
    %305 = arith.addf %303, %304 : vector<8x128xf32>
    %306 = math.tanh %305 : vector<8x128xf32>
    %307 = arith.mulf %300, %306 : vector<8x128xf32>
    %c0_142 = arith.constant 0 : index
    %c0_143 = arith.constant 0 : index
    %c0_144 = arith.constant 0 : index
    %308 = vector.load %arg12[%c0_142, %c0_143, %c0_144] : memref<3x8x128xf32, #tpu.memory_space<vmem>>, vector<1x8x128xf32>
    %309 = vector.shape_cast %308 : vector<1x8x128xf32> to vector<8x128xf32>
    %310 = vector.shape_cast %307 : vector<8x128xf32> to vector<1x8x128xf32>
    tpu.vector_store %arg12[%c0_142, %c0_143, %c0_144], %310 {strides = array<i32>} : memref<3x8x128xf32, #tpu.memory_space<vmem>>, vector<1x8x128xf32>,
    %c0_145 = arith.constant 0 : index
    %c0_146 = arith.constant 0 : index
    %c0_147 = arith.constant 0 : index
    %311 = vector.load %arg13[%c0_145, %c0_146, %c0_147] : memref<3x8x128xf32, #tpu.memory_space<vmem>>, vector<1x8x128xf32>
    %312 = vector.shape_cast %311 : vector<1x8x128xf32> to vector<8x128xf32>
    %313 = vector.shape_cast %305 : vector<8x128xf32> to vector<1x8x128xf32>
    tpu.vector_store %arg13[%c0_145, %c0_146, %c0_147], %313 {strides = array<i32>} : memref<3x8x128xf32, #tpu.memory_space<vmem>>, vector<1x8x128xf32>,
    %c1_148 = arith.constant 1 : index
    %c0_149 = arith.constant 0 : index
    %c0_150 = arith.constant 0 : index
    %314 = vector.load %arg12[%c1_148, %c0_149, %c0_150] : memref<3x8x128xf32, #tpu.memory_space<vmem>>, vector<1x8x128xf32>
    %315 = vector.shape_cast %314 : vector<1x8x128xf32> to vector<8x128xf32>
    %316 = tpu.concatenate %307, %315 in 1 : vector<8x128xf32>, vector<8x128xf32> -> vector<8x256xf32>
    %317 = arith.truncf %316 : vector<8x256xf32> to vector<8x256xbf16>
    %c0_151 = arith.constant 0 : index
    %c0_152 = arith.constant 0 : index
    %318 = vector.load %arg5[%c0_151, %c0_152] : memref<256x512xbf16, #tpu.memory_space<vmem>>, vector<256x512xbf16>
    %cst_153 = arith.constant dense<0.000000e+00> : vector<8x512xf32>
    %319 = tpu.matmul %317, %318, %cst_153 {dimension_numbers = #tpu.dot_dimension_numbers<[1], [0], [0], [1], [0, 0, 1, 1], [], []>} : vector<8x256xbf16>, vector<256x512xbf16>, vector<8x512xf32> -> vector<8x512xf32>
    %c0_154 = arith.constant 0 : index
    %c0_155 = arith.constant 0 : index
    %320 = vector.load %arg6[%c0_154, %c0_155] : memref<1x512xf32, #tpu.memory_space<vmem>>, vector<1x512xf32>
    %321 = vector.broadcast %320 : vector<1x512xf32> to vector<8x512xf32>
    %322 = arith.addf %319, %321 : vector<8x512xf32>
    %323 = vector.extract_strided_slice %322 {offsets = [0, 0], sizes = [8, 128], strides = [1, 1]} : vector<8x512xf32> to vector<8x128xf32>
    %324 = arith.negf %323 : vector<8x128xf32>
    %325 = math.exp %324 : vector<8x128xf32>
    %cst_156 = arith.constant 1.000000e+00 : f32
    %326 = vector.broadcast %cst_156 : f32 to vector<8x128xf32>
    %327 = arith.addf %326, %325 : vector<8x128xf32>
    %328 = arith.divf %326, %327 : vector<8x128xf32>
    %329 = vector.extract_strided_slice %322 {offsets = [0, 128], sizes = [8, 128], strides = [1, 1]} : vector<8x512xf32> to vector<8x128xf32>
    %330 = arith.negf %329 : vector<8x128xf32>
    %331 = math.exp %330 : vector<8x128xf32>
    %cst_157 = arith.constant 1.000000e+00 : f32
    %332 = vector.broadcast %cst_157 : f32 to vector<8x128xf32>
    %333 = arith.addf %332, %331 : vector<8x128xf32>
    %334 = arith.divf %332, %333 : vector<8x128xf32>
    %335 = vector.extract_strided_slice %322 {offsets = [0, 256], sizes = [8, 128], strides = [1, 1]} : vector<8x512xf32> to vector<8x128xf32>
    %336 = math.tanh %335 : vector<8x128xf32>
    %337 = vector.extract_strided_slice %322 {offsets = [0, 384], sizes = [8, 128], strides = [1, 1]} : vector<8x512xf32> to vector<8x128xf32>
    %338 = arith.negf %337 : vector<8x128xf32>
    %339 = math.exp %338 : vector<8x128xf32>
    %cst_158 = arith.constant 1.000000e+00 : f32
    %340 = vector.broadcast %cst_158 : f32 to vector<8x128xf32>
    %341 = arith.addf %340, %339 : vector<8x128xf32>
    %342 = arith.divf %340, %341 : vector<8x128xf32>
    %c1_159 = arith.constant 1 : index
    %c0_160 = arith.constant 0 : index
    %c0_161 = arith.constant 0 : index
    %343 = vector.load %arg13[%c1_159, %c0_160, %c0_161] : memref<3x8x128xf32, #tpu.memory_space<vmem>>, vector<1x8x128xf32>
    %344 = vector.shape_cast %343 : vector<1x8x128xf32> to vector<8x128xf32>
    %345 = arith.mulf %334, %344 : vector<8x128xf32>
    %346 = arith.mulf %328, %336 : vector<8x128xf32>
    %347 = arith.addf %345, %346 : vector<8x128xf32>
    %348 = math.tanh %347 : vector<8x128xf32>
    %349 = arith.mulf %342, %348 : vector<8x128xf32>
    %c1_162 = arith.constant 1 : index
    %c0_163 = arith.constant 0 : index
    %c0_164 = arith.constant 0 : index
    %350 = vector.load %arg12[%c1_162, %c0_163, %c0_164] : memref<3x8x128xf32, #tpu.memory_space<vmem>>, vector<1x8x128xf32>
    %351 = vector.shape_cast %350 : vector<1x8x128xf32> to vector<8x128xf32>
    %352 = vector.shape_cast %349 : vector<8x128xf32> to vector<1x8x128xf32>
    tpu.vector_store %arg12[%c1_162, %c0_163, %c0_164], %352 {strides = array<i32>} : memref<3x8x128xf32, #tpu.memory_space<vmem>>, vector<1x8x128xf32>,
    %c1_165 = arith.constant 1 : index
    %c0_166 = arith.constant 0 : index
    %c0_167 = arith.constant 0 : index
    %353 = vector.load %arg13[%c1_165, %c0_166, %c0_167] : memref<3x8x128xf32, #tpu.memory_space<vmem>>, vector<1x8x128xf32>
    %354 = vector.shape_cast %353 : vector<1x8x128xf32> to vector<8x128xf32>
    %355 = vector.shape_cast %347 : vector<8x128xf32> to vector<1x8x128xf32>
    tpu.vector_store %arg13[%c1_165, %c0_166, %c0_167], %355 {strides = array<i32>} : memref<3x8x128xf32, #tpu.memory_space<vmem>>, vector<1x8x128xf32>,
    %c2_168 = arith.constant 2 : index
    %c0_169 = arith.constant 0 : index
    %c0_170 = arith.constant 0 : index
    %356 = vector.load %arg12[%c2_168, %c0_169, %c0_170] : memref<3x8x128xf32, #tpu.memory_space<vmem>>, vector<1x8x128xf32>
    %357 = vector.shape_cast %356 : vector<1x8x128xf32> to vector<8x128xf32>
    %358 = tpu.concatenate %349, %357 in 1 : vector<8x128xf32>, vector<8x128xf32> -> vector<8x256xf32>
    %359 = arith.truncf %358 : vector<8x256xf32> to vector<8x256xbf16>
    %c0_171 = arith.constant 0 : index
    %c0_172 = arith.constant 0 : index
    %360 = vector.load %arg7[%c0_171, %c0_172] : memref<256x512xbf16, #tpu.memory_space<vmem>>, vector<256x512xbf16>
    %cst_173 = arith.constant dense<0.000000e+00> : vector<8x512xf32>
    %361 = tpu.matmul %359, %360, %cst_173 {dimension_numbers = #tpu.dot_dimension_numbers<[1], [0], [0], [1], [0, 0, 1, 1], [], []>} : vector<8x256xbf16>, vector<256x512xbf16>, vector<8x512xf32> -> vector<8x512xf32>
    %c0_174 = arith.constant 0 : index
    %c0_175 = arith.constant 0 : index
    %362 = vector.load %arg8[%c0_174, %c0_175] : memref<1x512xf32, #tpu.memory_space<vmem>>, vector<1x512xf32>
    %363 = vector.broadcast %362 : vector<1x512xf32> to vector<8x512xf32>
    %364 = arith.addf %361, %363 : vector<8x512xf32>
    %365 = vector.extract_strided_slice %364 {offsets = [0, 0], sizes = [8, 128], strides = [1, 1]} : vector<8x512xf32> to vector<8x128xf32>
    %366 = arith.negf %365 : vector<8x128xf32>
    %367 = math.exp %366 : vector<8x128xf32>
    %cst_176 = arith.constant 1.000000e+00 : f32
    %368 = vector.broadcast %cst_176 : f32 to vector<8x128xf32>
    %369 = arith.addf %368, %367 : vector<8x128xf32>
    %370 = arith.divf %368, %369 : vector<8x128xf32>
    %371 = vector.extract_strided_slice %364 {offsets = [0, 128], sizes = [8, 128], strides = [1, 1]} : vector<8x512xf32> to vector<8x128xf32>
    %372 = arith.negf %371 : vector<8x128xf32>
    %373 = math.exp %372 : vector<8x128xf32>
    %cst_177 = arith.constant 1.000000e+00 : f32
    %374 = vector.broadcast %cst_177 : f32 to vector<8x128xf32>
    %375 = arith.addf %374, %373 : vector<8x128xf32>
    %376 = arith.divf %374, %375 : vector<8x128xf32>
    %377 = vector.extract_strided_slice %364 {offsets = [0, 256], sizes = [8, 128], strides = [1, 1]} : vector<8x512xf32> to vector<8x128xf32>
    %378 = math.tanh %377 : vector<8x128xf32>
    %379 = vector.extract_strided_slice %364 {offsets = [0, 384], sizes = [8, 128], strides = [1, 1]} : vector<8x512xf32> to vector<8x128xf32>
    %380 = arith.negf %379 : vector<8x128xf32>
    %381 = math.exp %380 : vector<8x128xf32>
    %cst_178 = arith.constant 1.000000e+00 : f32
    %382 = vector.broadcast %cst_178 : f32 to vector<8x128xf32>
    %383 = arith.addf %382, %381 : vector<8x128xf32>
    %384 = arith.divf %382, %383 : vector<8x128xf32>
    %c2_179 = arith.constant 2 : index
    %c0_180 = arith.constant 0 : index
    %c0_181 = arith.constant 0 : index
    %385 = vector.load %arg13[%c2_179, %c0_180, %c0_181] : memref<3x8x128xf32, #tpu.memory_space<vmem>>, vector<1x8x128xf32>
    %386 = vector.shape_cast %385 : vector<1x8x128xf32> to vector<8x128xf32>
    %387 = arith.mulf %376, %386 : vector<8x128xf32>
    %388 = arith.mulf %370, %378 : vector<8x128xf32>
    %389 = arith.addf %387, %388 : vector<8x128xf32>
    %390 = math.tanh %389 : vector<8x128xf32>
    %391 = arith.mulf %384, %390 : vector<8x128xf32>
    %c2_182 = arith.constant 2 : index
    %c0_183 = arith.constant 0 : index
    %c0_184 = arith.constant 0 : index
    %392 = vector.load %arg12[%c2_182, %c0_183, %c0_184] : memref<3x8x128xf32, #tpu.memory_space<vmem>>, vector<1x8x128xf32>
    %393 = vector.shape_cast %392 : vector<1x8x128xf32> to vector<8x128xf32>
    %394 = vector.shape_cast %391 : vector<8x128xf32> to vector<1x8x128xf32>
    tpu.vector_store %arg12[%c2_182, %c0_183, %c0_184], %394 {strides = array<i32>} : memref<3x8x128xf32, #tpu.memory_space<vmem>>, vector<1x8x128xf32>,
    %c2_185 = arith.constant 2 : index
    %c0_186 = arith.constant 0 : index
    %c0_187 = arith.constant 0 : index
    %395 = vector.load %arg13[%c2_185, %c0_186, %c0_187] : memref<3x8x128xf32, #tpu.memory_space<vmem>>, vector<1x8x128xf32>
    %396 = vector.shape_cast %395 : vector<1x8x128xf32> to vector<8x128xf32>
    %397 = vector.shape_cast %389 : vector<8x128xf32> to vector<1x8x128xf32>
    tpu.vector_store %arg13[%c2_185, %c0_186, %c0_187], %397 {strides = array<i32>} : memref<3x8x128xf32, #tpu.memory_space<vmem>>, vector<1x8x128xf32>,
    %398 = arith.index_cast %c2_i32 : i32 to index
    %c0_188 = arith.constant 0 : index
    %c0_189 = arith.constant 0 : index
    %399 = vector.load %arg9[%398, %c0_188, %c0_189] : memref<8x8x128xf32, #tpu.memory_space<vmem>>, vector<1x8x128xf32>
    %400 = vector.shape_cast %399 : vector<1x8x128xf32> to vector<8x128xf32>
    %401 = vector.shape_cast %391 : vector<8x128xf32> to vector<1x8x128xf32>
    tpu.vector_store %arg9[%398, %c0_188, %c0_189], %401 {strides = array<i32>} : memref<8x8x128xf32, #tpu.memory_space<vmem>>, vector<1x8x128xf32>,
    %c3_i32 = arith.constant 3 : i32
    %402 = arith.index_cast %c3_i32 : i32 to index
    %c0_190 = arith.constant 0 : index
    %c0_191 = arith.constant 0 : index
    %403 = vector.load %arg2[%402, %c0_190, %c0_191] : memref<8x8x128xf32, #tpu.memory_space<vmem>>, vector<1x8x128xf32>
    %404 = vector.shape_cast %403 : vector<1x8x128xf32> to vector<8x128xf32>
    %c0_192 = arith.constant 0 : index
    %c0_193 = arith.constant 0 : index
    %c0_194 = arith.constant 0 : index
    %405 = vector.load %arg12[%c0_192, %c0_193, %c0_194] : memref<3x8x128xf32, #tpu.memory_space<vmem>>, vector<1x8x128xf32>
    %406 = vector.shape_cast %405 : vector<1x8x128xf32> to vector<8x128xf32>
    %407 = tpu.concatenate %404, %406 in 1 : vector<8x128xf32>, vector<8x128xf32> -> vector<8x256xf32>
    %408 = arith.truncf %407 : vector<8x256xf32> to vector<8x256xbf16>
    %c0_195 = arith.constant 0 : index
    %c0_196 = arith.constant 0 : index
    %409 = vector.load %arg3[%c0_195, %c0_196] : memref<256x512xbf16, #tpu.memory_space<vmem>>, vector<256x512xbf16>
    %cst_197 = arith.constant dense<0.000000e+00> : vector<8x512xf32>
    %410 = tpu.matmul %408, %409, %cst_197 {dimension_numbers = #tpu.dot_dimension_numbers<[1], [0], [0], [1], [0, 0, 1, 1], [], []>} : vector<8x256xbf16>, vector<256x512xbf16>, vector<8x512xf32> -> vector<8x512xf32>
    %c0_198 = arith.constant 0 : index
    %c0_199 = arith.constant 0 : index
    %411 = vector.load %arg4[%c0_198, %c0_199] : memref<1x512xf32, #tpu.memory_space<vmem>>, vector<1x512xf32>
    %412 = vector.broadcast %411 : vector<1x512xf32> to vector<8x512xf32>
    %413 = arith.addf %410, %412 : vector<8x512xf32>
    %414 = vector.extract_strided_slice %413 {offsets = [0, 0], sizes = [8, 128], strides = [1, 1]} : vector<8x512xf32> to vector<8x128xf32>
    %415 = arith.negf %414 : vector<8x128xf32>
    %416 = math.exp %415 : vector<8x128xf32>
    %cst_200 = arith.constant 1.000000e+00 : f32
    %417 = vector.broadcast %cst_200 : f32 to vector<8x128xf32>
    %418 = arith.addf %417, %416 : vector<8x128xf32>
    %419 = arith.divf %417, %418 : vector<8x128xf32>
    %420 = vector.extract_strided_slice %413 {offsets = [0, 128], sizes = [8, 128], strides = [1, 1]} : vector<8x512xf32> to vector<8x128xf32>
    %421 = arith.negf %420 : vector<8x128xf32>
    %422 = math.exp %421 : vector<8x128xf32>
    %cst_201 = arith.constant 1.000000e+00 : f32
    %423 = vector.broadcast %cst_201 : f32 to vector<8x128xf32>
    %424 = arith.addf %423, %422 : vector<8x128xf32>
    %425 = arith.divf %423, %424 : vector<8x128xf32>
    %426 = vector.extract_strided_slice %413 {offsets = [0, 256], sizes = [8, 128], strides = [1, 1]} : vector<8x512xf32> to vector<8x128xf32>
    %427 = math.tanh %426 : vector<8x128xf32>
    %428 = vector.extract_strided_slice %413 {offsets = [0, 384], sizes = [8, 128], strides = [1, 1]} : vector<8x512xf32> to vector<8x128xf32>
    %429 = arith.negf %428 : vector<8x128xf32>
    %430 = math.exp %429 : vector<8x128xf32>
    %cst_202 = arith.constant 1.000000e+00 : f32
    %431 = vector.broadcast %cst_202 : f32 to vector<8x128xf32>
    %432 = arith.addf %431, %430 : vector<8x128xf32>
    %433 = arith.divf %431, %432 : vector<8x128xf32>
    %c0_203 = arith.constant 0 : index
    %c0_204 = arith.constant 0 : index
    %c0_205 = arith.constant 0 : index
    %434 = vector.load %arg13[%c0_203, %c0_204, %c0_205] : memref<3x8x128xf32, #tpu.memory_space<vmem>>, vector<1x8x128xf32>
    %435 = vector.shape_cast %434 : vector<1x8x128xf32> to vector<8x128xf32>
    %436 = arith.mulf %425, %435 : vector<8x128xf32>
    %437 = arith.mulf %419, %427 : vector<8x128xf32>
    %438 = arith.addf %436, %437 : vector<8x128xf32>
    %439 = math.tanh %438 : vector<8x128xf32>
    %440 = arith.mulf %433, %439 : vector<8x128xf32>
    %c0_206 = arith.constant 0 : index
    %c0_207 = arith.constant 0 : index
    %c0_208 = arith.constant 0 : index
    %441 = vector.load %arg12[%c0_206, %c0_207, %c0_208] : memref<3x8x128xf32, #tpu.memory_space<vmem>>, vector<1x8x128xf32>
    %442 = vector.shape_cast %441 : vector<1x8x128xf32> to vector<8x128xf32>
    %443 = vector.shape_cast %440 : vector<8x128xf32> to vector<1x8x128xf32>
    tpu.vector_store %arg12[%c0_206, %c0_207, %c0_208], %443 {strides = array<i32>} : memref<3x8x128xf32, #tpu.memory_space<vmem>>, vector<1x8x128xf32>,
    %c0_209 = arith.constant 0 : index
    %c0_210 = arith.constant 0 : index
    %c0_211 = arith.constant 0 : index
    %444 = vector.load %arg13[%c0_209, %c0_210, %c0_211] : memref<3x8x128xf32, #tpu.memory_space<vmem>>, vector<1x8x128xf32>
    %445 = vector.shape_cast %444 : vector<1x8x128xf32> to vector<8x128xf32>
    %446 = vector.shape_cast %438 : vector<8x128xf32> to vector<1x8x128xf32>
    tpu.vector_store %arg13[%c0_209, %c0_210, %c0_211], %446 {strides = array<i32>} : memref<3x8x128xf32, #tpu.memory_space<vmem>>, vector<1x8x128xf32>,
    %c1_212 = arith.constant 1 : index
    %c0_213 = arith.constant 0 : index
    %c0_214 = arith.constant 0 : index
    %447 = vector.load %arg12[%c1_212, %c0_213, %c0_214] : memref<3x8x128xf32, #tpu.memory_space<vmem>>, vector<1x8x128xf32>
    %448 = vector.shape_cast %447 : vector<1x8x128xf32> to vector<8x128xf32>
    %449 = tpu.concatenate %440, %448 in 1 : vector<8x128xf32>, vector<8x128xf32> -> vector<8x256xf32>
    %450 = arith.truncf %449 : vector<8x256xf32> to vector<8x256xbf16>
    %c0_215 = arith.constant 0 : index
    %c0_216 = arith.constant 0 : index
    %451 = vector.load %arg5[%c0_215, %c0_216] : memref<256x512xbf16, #tpu.memory_space<vmem>>, vector<256x512xbf16>
    %cst_217 = arith.constant dense<0.000000e+00> : vector<8x512xf32>
    %452 = tpu.matmul %450, %451, %cst_217 {dimension_numbers = #tpu.dot_dimension_numbers<[1], [0], [0], [1], [0, 0, 1, 1], [], []>} : vector<8x256xbf16>, vector<256x512xbf16>, vector<8x512xf32> -> vector<8x512xf32>
    %c0_218 = arith.constant 0 : index
    %c0_219 = arith.constant 0 : index
    %453 = vector.load %arg6[%c0_218, %c0_219] : memref<1x512xf32, #tpu.memory_space<vmem>>, vector<1x512xf32>
    %454 = vector.broadcast %453 : vector<1x512xf32> to vector<8x512xf32>
    %455 = arith.addf %452, %454 : vector<8x512xf32>
    %456 = vector.extract_strided_slice %455 {offsets = [0, 0], sizes = [8, 128], strides = [1, 1]} : vector<8x512xf32> to vector<8x128xf32>
    %457 = arith.negf %456 : vector<8x128xf32>
    %458 = math.exp %457 : vector<8x128xf32>
    %cst_220 = arith.constant 1.000000e+00 : f32
    %459 = vector.broadcast %cst_220 : f32 to vector<8x128xf32>
    %460 = arith.addf %459, %458 : vector<8x128xf32>
    %461 = arith.divf %459, %460 : vector<8x128xf32>
    %462 = vector.extract_strided_slice %455 {offsets = [0, 128], sizes = [8, 128], strides = [1, 1]} : vector<8x512xf32> to vector<8x128xf32>
    %463 = arith.negf %462 : vector<8x128xf32>
    %464 = math.exp %463 : vector<8x128xf32>
    %cst_221 = arith.constant 1.000000e+00 : f32
    %465 = vector.broadcast %cst_221 : f32 to vector<8x128xf32>
    %466 = arith.addf %465, %464 : vector<8x128xf32>
    %467 = arith.divf %465, %466 : vector<8x128xf32>
    %468 = vector.extract_strided_slice %455 {offsets = [0, 256], sizes = [8, 128], strides = [1, 1]} : vector<8x512xf32> to vector<8x128xf32>
    %469 = math.tanh %468 : vector<8x128xf32>
    %470 = vector.extract_strided_slice %455 {offsets = [0, 384], sizes = [8, 128], strides = [1, 1]} : vector<8x512xf32> to vector<8x128xf32>
    %471 = arith.negf %470 : vector<8x128xf32>
    %472 = math.exp %471 : vector<8x128xf32>
    %cst_222 = arith.constant 1.000000e+00 : f32
    %473 = vector.broadcast %cst_222 : f32 to vector<8x128xf32>
    %474 = arith.addf %473, %472 : vector<8x128xf32>
    %475 = arith.divf %473, %474 : vector<8x128xf32>
    %c1_223 = arith.constant 1 : index
    %c0_224 = arith.constant 0 : index
    %c0_225 = arith.constant 0 : index
    %476 = vector.load %arg13[%c1_223, %c0_224, %c0_225] : memref<3x8x128xf32, #tpu.memory_space<vmem>>, vector<1x8x128xf32>
    %477 = vector.shape_cast %476 : vector<1x8x128xf32> to vector<8x128xf32>
    %478 = arith.mulf %467, %477 : vector<8x128xf32>
    %479 = arith.mulf %461, %469 : vector<8x128xf32>
    %480 = arith.addf %478, %479 : vector<8x128xf32>
    %481 = math.tanh %480 : vector<8x128xf32>
    %482 = arith.mulf %475, %481 : vector<8x128xf32>
    %c1_226 = arith.constant 1 : index
    %c0_227 = arith.constant 0 : index
    %c0_228 = arith.constant 0 : index
    %483 = vector.load %arg12[%c1_226, %c0_227, %c0_228] : memref<3x8x128xf32, #tpu.memory_space<vmem>>, vector<1x8x128xf32>
    %484 = vector.shape_cast %483 : vector<1x8x128xf32> to vector<8x128xf32>
    %485 = vector.shape_cast %482 : vector<8x128xf32> to vector<1x8x128xf32>
    tpu.vector_store %arg12[%c1_226, %c0_227, %c0_228], %485 {strides = array<i32>} : memref<3x8x128xf32, #tpu.memory_space<vmem>>, vector<1x8x128xf32>,
    %c1_229 = arith.constant 1 : index
    %c0_230 = arith.constant 0 : index
    %c0_231 = arith.constant 0 : index
    %486 = vector.load %arg13[%c1_229, %c0_230, %c0_231] : memref<3x8x128xf32, #tpu.memory_space<vmem>>, vector<1x8x128xf32>
    %487 = vector.shape_cast %486 : vector<1x8x128xf32> to vector<8x128xf32>
    %488 = vector.shape_cast %480 : vector<8x128xf32> to vector<1x8x128xf32>
    tpu.vector_store %arg13[%c1_229, %c0_230, %c0_231], %488 {strides = array<i32>} : memref<3x8x128xf32, #tpu.memory_space<vmem>>, vector<1x8x128xf32>,
    %c2_232 = arith.constant 2 : index
    %c0_233 = arith.constant 0 : index
    %c0_234 = arith.constant 0 : index
    %489 = vector.load %arg12[%c2_232, %c0_233, %c0_234] : memref<3x8x128xf32, #tpu.memory_space<vmem>>, vector<1x8x128xf32>
    %490 = vector.shape_cast %489 : vector<1x8x128xf32> to vector<8x128xf32>
    %491 = tpu.concatenate %482, %490 in 1 : vector<8x128xf32>, vector<8x128xf32> -> vector<8x256xf32>
    %492 = arith.truncf %491 : vector<8x256xf32> to vector<8x256xbf16>
    %c0_235 = arith.constant 0 : index
    %c0_236 = arith.constant 0 : index
    %493 = vector.load %arg7[%c0_235, %c0_236] : memref<256x512xbf16, #tpu.memory_space<vmem>>, vector<256x512xbf16>
    %cst_237 = arith.constant dense<0.000000e+00> : vector<8x512xf32>
    %494 = tpu.matmul %492, %493, %cst_237 {dimension_numbers = #tpu.dot_dimension_numbers<[1], [0], [0], [1], [0, 0, 1, 1], [], []>} : vector<8x256xbf16>, vector<256x512xbf16>, vector<8x512xf32> -> vector<8x512xf32>
    %c0_238 = arith.constant 0 : index
    %c0_239 = arith.constant 0 : index
    %495 = vector.load %arg8[%c0_238, %c0_239] : memref<1x512xf32, #tpu.memory_space<vmem>>, vector<1x512xf32>
    %496 = vector.broadcast %495 : vector<1x512xf32> to vector<8x512xf32>
    %497 = arith.addf %494, %496 : vector<8x512xf32>
    %498 = vector.extract_strided_slice %497 {offsets = [0, 0], sizes = [8, 128], strides = [1, 1]} : vector<8x512xf32> to vector<8x128xf32>
    %499 = arith.negf %498 : vector<8x128xf32>
    %500 = math.exp %499 : vector<8x128xf32>
    %cst_240 = arith.constant 1.000000e+00 : f32
    %501 = vector.broadcast %cst_240 : f32 to vector<8x128xf32>
    %502 = arith.addf %501, %500 : vector<8x128xf32>
    %503 = arith.divf %501, %502 : vector<8x128xf32>
    %504 = vector.extract_strided_slice %497 {offsets = [0, 128], sizes = [8, 128], strides = [1, 1]} : vector<8x512xf32> to vector<8x128xf32>
    %505 = arith.negf %504 : vector<8x128xf32>
    %506 = math.exp %505 : vector<8x128xf32>
    %cst_241 = arith.constant 1.000000e+00 : f32
    %507 = vector.broadcast %cst_241 : f32 to vector<8x128xf32>
    %508 = arith.addf %507, %506 : vector<8x128xf32>
    %509 = arith.divf %507, %508 : vector<8x128xf32>
    %510 = vector.extract_strided_slice %497 {offsets = [0, 256], sizes = [8, 128], strides = [1, 1]} : vector<8x512xf32> to vector<8x128xf32>
    %511 = math.tanh %510 : vector<8x128xf32>
    %512 = vector.extract_strided_slice %497 {offsets = [0, 384], sizes = [8, 128], strides = [1, 1]} : vector<8x512xf32> to vector<8x128xf32>
    %513 = arith.negf %512 : vector<8x128xf32>
    %514 = math.exp %513 : vector<8x128xf32>
    %cst_242 = arith.constant 1.000000e+00 : f32
    %515 = vector.broadcast %cst_242 : f32 to vector<8x128xf32>
    %516 = arith.addf %515, %514 : vector<8x128xf32>
    %517 = arith.divf %515, %516 : vector<8x128xf32>
    %c2_243 = arith.constant 2 : index
    %c0_244 = arith.constant 0 : index
    %c0_245 = arith.constant 0 : index
    %518 = vector.load %arg13[%c2_243, %c0_244, %c0_245] : memref<3x8x128xf32, #tpu.memory_space<vmem>>, vector<1x8x128xf32>
    %519 = vector.shape_cast %518 : vector<1x8x128xf32> to vector<8x128xf32>
    %520 = arith.mulf %509, %519 : vector<8x128xf32>
    %521 = arith.mulf %503, %511 : vector<8x128xf32>
    %522 = arith.addf %520, %521 : vector<8x128xf32>
    %523 = math.tanh %522 : vector<8x128xf32>
    %524 = arith.mulf %517, %523 : vector<8x128xf32>
    %c2_246 = arith.constant 2 : index
    %c0_247 = arith.constant 0 : index
    %c0_248 = arith.constant 0 : index
    %525 = vector.load %arg12[%c2_246, %c0_247, %c0_248] : memref<3x8x128xf32, #tpu.memory_space<vmem>>, vector<1x8x128xf32>
    %526 = vector.shape_cast %525 : vector<1x8x128xf32> to vector<8x128xf32>
    %527 = vector.shape_cast %524 : vector<8x128xf32> to vector<1x8x128xf32>
    tpu.vector_store %arg12[%c2_246, %c0_247, %c0_248], %527 {strides = array<i32>} : memref<3x8x128xf32, #tpu.memory_space<vmem>>, vector<1x8x128xf32>,
    %c2_249 = arith.constant 2 : index
    %c0_250 = arith.constant 0 : index
    %c0_251 = arith.constant 0 : index
    %528 = vector.load %arg13[%c2_249, %c0_250, %c0_251] : memref<3x8x128xf32, #tpu.memory_space<vmem>>, vector<1x8x128xf32>
    %529 = vector.shape_cast %528 : vector<1x8x128xf32> to vector<8x128xf32>
    %530 = vector.shape_cast %522 : vector<8x128xf32> to vector<1x8x128xf32>
    tpu.vector_store %arg13[%c2_249, %c0_250, %c0_251], %530 {strides = array<i32>} : memref<3x8x128xf32, #tpu.memory_space<vmem>>, vector<1x8x128xf32>,
    %531 = arith.index_cast %c3_i32 : i32 to index
    %c0_252 = arith.constant 0 : index
    %c0_253 = arith.constant 0 : index
    %532 = vector.load %arg9[%531, %c0_252, %c0_253] : memref<8x8x128xf32, #tpu.memory_space<vmem>>, vector<1x8x128xf32>
    %533 = vector.shape_cast %532 : vector<1x8x128xf32> to vector<8x128xf32>
    %534 = vector.shape_cast %524 : vector<8x128xf32> to vector<1x8x128xf32>
    tpu.vector_store %arg9[%531, %c0_252, %c0_253], %534 {strides = array<i32>} : memref<8x8x128xf32, #tpu.memory_space<vmem>>, vector<1x8x128xf32>,
    %c4_i32 = arith.constant 4 : i32
    %535 = arith.index_cast %c4_i32 : i32 to index
    %c0_254 = arith.constant 0 : index
    %c0_255 = arith.constant 0 : index
    %536 = vector.load %arg2[%535, %c0_254, %c0_255] : memref<8x8x128xf32, #tpu.memory_space<vmem>>, vector<1x8x128xf32>
    %537 = vector.shape_cast %536 : vector<1x8x128xf32> to vector<8x128xf32>
    %c0_256 = arith.constant 0 : index
    %c0_257 = arith.constant 0 : index
    %c0_258 = arith.constant 0 : index
    %538 = vector.load %arg12[%c0_256, %c0_257, %c0_258] : memref<3x8x128xf32, #tpu.memory_space<vmem>>, vector<1x8x128xf32>
    %539 = vector.shape_cast %538 : vector<1x8x128xf32> to vector<8x128xf32>
    %540 = tpu.concatenate %537, %539 in 1 : vector<8x128xf32>, vector<8x128xf32> -> vector<8x256xf32>
    %541 = arith.truncf %540 : vector<8x256xf32> to vector<8x256xbf16>
    %c0_259 = arith.constant 0 : index
    %c0_260 = arith.constant 0 : index
    %542 = vector.load %arg3[%c0_259, %c0_260] : memref<256x512xbf16, #tpu.memory_space<vmem>>, vector<256x512xbf16>
    %cst_261 = arith.constant dense<0.000000e+00> : vector<8x512xf32>
    %543 = tpu.matmul %541, %542, %cst_261 {dimension_numbers = #tpu.dot_dimension_numbers<[1], [0], [0], [1], [0, 0, 1, 1], [], []>} : vector<8x256xbf16>, vector<256x512xbf16>, vector<8x512xf32> -> vector<8x512xf32>
    %c0_262 = arith.constant 0 : index
    %c0_263 = arith.constant 0 : index
    %544 = vector.load %arg4[%c0_262, %c0_263] : memref<1x512xf32, #tpu.memory_space<vmem>>, vector<1x512xf32>
    %545 = vector.broadcast %544 : vector<1x512xf32> to vector<8x512xf32>
    %546 = arith.addf %543, %545 : vector<8x512xf32>
    %547 = vector.extract_strided_slice %546 {offsets = [0, 0], sizes = [8, 128], strides = [1, 1]} : vector<8x512xf32> to vector<8x128xf32>
    %548 = arith.negf %547 : vector<8x128xf32>
    %549 = math.exp %548 : vector<8x128xf32>
    %cst_264 = arith.constant 1.000000e+00 : f32
    %550 = vector.broadcast %cst_264 : f32 to vector<8x128xf32>
    %551 = arith.addf %550, %549 : vector<8x128xf32>
    %552 = arith.divf %550, %551 : vector<8x128xf32>
    %553 = vector.extract_strided_slice %546 {offsets = [0, 128], sizes = [8, 128], strides = [1, 1]} : vector<8x512xf32> to vector<8x128xf32>
    %554 = arith.negf %553 : vector<8x128xf32>
    %555 = math.exp %554 : vector<8x128xf32>
    %cst_265 = arith.constant 1.000000e+00 : f32
    %556 = vector.broadcast %cst_265 : f32 to vector<8x128xf32>
    %557 = arith.addf %556, %555 : vector<8x128xf32>
    %558 = arith.divf %556, %557 : vector<8x128xf32>
    %559 = vector.extract_strided_slice %546 {offsets = [0, 256], sizes = [8, 128], strides = [1, 1]} : vector<8x512xf32> to vector<8x128xf32>
    %560 = math.tanh %559 : vector<8x128xf32>
    %561 = vector.extract_strided_slice %546 {offsets = [0, 384], sizes = [8, 128], strides = [1, 1]} : vector<8x512xf32> to vector<8x128xf32>
    %562 = arith.negf %561 : vector<8x128xf32>
    %563 = math.exp %562 : vector<8x128xf32>
    %cst_266 = arith.constant 1.000000e+00 : f32
    %564 = vector.broadcast %cst_266 : f32 to vector<8x128xf32>
    %565 = arith.addf %564, %563 : vector<8x128xf32>
    %566 = arith.divf %564, %565 : vector<8x128xf32>
    %c0_267 = arith.constant 0 : index
    %c0_268 = arith.constant 0 : index
    %c0_269 = arith.constant 0 : index
    %567 = vector.load %arg13[%c0_267, %c0_268, %c0_269] : memref<3x8x128xf32, #tpu.memory_space<vmem>>, vector<1x8x128xf32>
    %568 = vector.shape_cast %567 : vector<1x8x128xf32> to vector<8x128xf32>
    %569 = arith.mulf %558, %568 : vector<8x128xf32>
    %570 = arith.mulf %552, %560 : vector<8x128xf32>
    %571 = arith.addf %569, %570 : vector<8x128xf32>
    %572 = math.tanh %571 : vector<8x128xf32>
    %573 = arith.mulf %566, %572 : vector<8x128xf32>
    %c0_270 = arith.constant 0 : index
    %c0_271 = arith.constant 0 : index
    %c0_272 = arith.constant 0 : index
    %574 = vector.load %arg12[%c0_270, %c0_271, %c0_272] : memref<3x8x128xf32, #tpu.memory_space<vmem>>, vector<1x8x128xf32>
    %575 = vector.shape_cast %574 : vector<1x8x128xf32> to vector<8x128xf32>
    %576 = vector.shape_cast %573 : vector<8x128xf32> to vector<1x8x128xf32>
    tpu.vector_store %arg12[%c0_270, %c0_271, %c0_272], %576 {strides = array<i32>} : memref<3x8x128xf32, #tpu.memory_space<vmem>>, vector<1x8x128xf32>,
    %c0_273 = arith.constant 0 : index
    %c0_274 = arith.constant 0 : index
    %c0_275 = arith.constant 0 : index
    %577 = vector.load %arg13[%c0_273, %c0_274, %c0_275] : memref<3x8x128xf32, #tpu.memory_space<vmem>>, vector<1x8x128xf32>
    %578 = vector.shape_cast %577 : vector<1x8x128xf32> to vector<8x128xf32>
    %579 = vector.shape_cast %571 : vector<8x128xf32> to vector<1x8x128xf32>
    tpu.vector_store %arg13[%c0_273, %c0_274, %c0_275], %579 {strides = array<i32>} : memref<3x8x128xf32, #tpu.memory_space<vmem>>, vector<1x8x128xf32>,
    %c1_276 = arith.constant 1 : index
    %c0_277 = arith.constant 0 : index
    %c0_278 = arith.constant 0 : index
    %580 = vector.load %arg12[%c1_276, %c0_277, %c0_278] : memref<3x8x128xf32, #tpu.memory_space<vmem>>, vector<1x8x128xf32>
    %581 = vector.shape_cast %580 : vector<1x8x128xf32> to vector<8x128xf32>
    %582 = tpu.concatenate %573, %581 in 1 : vector<8x128xf32>, vector<8x128xf32> -> vector<8x256xf32>
    %583 = arith.truncf %582 : vector<8x256xf32> to vector<8x256xbf16>
    %c0_279 = arith.constant 0 : index
    %c0_280 = arith.constant 0 : index
    %584 = vector.load %arg5[%c0_279, %c0_280] : memref<256x512xbf16, #tpu.memory_space<vmem>>, vector<256x512xbf16>
    %cst_281 = arith.constant dense<0.000000e+00> : vector<8x512xf32>
    %585 = tpu.matmul %583, %584, %cst_281 {dimension_numbers = #tpu.dot_dimension_numbers<[1], [0], [0], [1], [0, 0, 1, 1], [], []>} : vector<8x256xbf16>, vector<256x512xbf16>, vector<8x512xf32> -> vector<8x512xf32>
    %c0_282 = arith.constant 0 : index
    %c0_283 = arith.constant 0 : index
    %586 = vector.load %arg6[%c0_282, %c0_283] : memref<1x512xf32, #tpu.memory_space<vmem>>, vector<1x512xf32>
    %587 = vector.broadcast %586 : vector<1x512xf32> to vector<8x512xf32>
    %588 = arith.addf %585, %587 : vector<8x512xf32>
    %589 = vector.extract_strided_slice %588 {offsets = [0, 0], sizes = [8, 128], strides = [1, 1]} : vector<8x512xf32> to vector<8x128xf32>
    %590 = arith.negf %589 : vector<8x128xf32>
    %591 = math.exp %590 : vector<8x128xf32>
    %cst_284 = arith.constant 1.000000e+00 : f32
    %592 = vector.broadcast %cst_284 : f32 to vector<8x128xf32>
    %593 = arith.addf %592, %591 : vector<8x128xf32>
    %594 = arith.divf %592, %593 : vector<8x128xf32>
    %595 = vector.extract_strided_slice %588 {offsets = [0, 128], sizes = [8, 128], strides = [1, 1]} : vector<8x512xf32> to vector<8x128xf32>
    %596 = arith.negf %595 : vector<8x128xf32>
    %597 = math.exp %596 : vector<8x128xf32>
    %cst_285 = arith.constant 1.000000e+00 : f32
    %598 = vector.broadcast %cst_285 : f32 to vector<8x128xf32>
    %599 = arith.addf %598, %597 : vector<8x128xf32>
    %600 = arith.divf %598, %599 : vector<8x128xf32>
    %601 = vector.extract_strided_slice %588 {offsets = [0, 256], sizes = [8, 128], strides = [1, 1]} : vector<8x512xf32> to vector<8x128xf32>
    %602 = math.tanh %601 : vector<8x128xf32>
    %603 = vector.extract_strided_slice %588 {offsets = [0, 384], sizes = [8, 128], strides = [1, 1]} : vector<8x512xf32> to vector<8x128xf32>
    %604 = arith.negf %603 : vector<8x128xf32>
    %605 = math.exp %604 : vector<8x128xf32>
    %cst_286 = arith.constant 1.000000e+00 : f32
    %606 = vector.broadcast %cst_286 : f32 to vector<8x128xf32>
    %607 = arith.addf %606, %605 : vector<8x128xf32>
    %608 = arith.divf %606, %607 : vector<8x128xf32>
    %c1_287 = arith.constant 1 : index
    %c0_288 = arith.constant 0 : index
    %c0_289 = arith.constant 0 : index
    %609 = vector.load %arg13[%c1_287, %c0_288, %c0_289] : memref<3x8x128xf32, #tpu.memory_space<vmem>>, vector<1x8x128xf32>
    %610 = vector.shape_cast %609 : vector<1x8x128xf32> to vector<8x128xf32>
    %611 = arith.mulf %600, %610 : vector<8x128xf32>
    %612 = arith.mulf %594, %602 : vector<8x128xf32>
    %613 = arith.addf %611, %612 : vector<8x128xf32>
    %614 = math.tanh %613 : vector<8x128xf32>
    %615 = arith.mulf %608, %614 : vector<8x128xf32>
    %c1_290 = arith.constant 1 : index
    %c0_291 = arith.constant 0 : index
    %c0_292 = arith.constant 0 : index
    %616 = vector.load %arg12[%c1_290, %c0_291, %c0_292] : memref<3x8x128xf32, #tpu.memory_space<vmem>>, vector<1x8x128xf32>
    %617 = vector.shape_cast %616 : vector<1x8x128xf32> to vector<8x128xf32>
    %618 = vector.shape_cast %615 : vector<8x128xf32> to vector<1x8x128xf32>
    tpu.vector_store %arg12[%c1_290, %c0_291, %c0_292], %618 {strides = array<i32>} : memref<3x8x128xf32, #tpu.memory_space<vmem>>, vector<1x8x128xf32>,
    %c1_293 = arith.constant 1 : index
    %c0_294 = arith.constant 0 : index
    %c0_295 = arith.constant 0 : index
    %619 = vector.load %arg13[%c1_293, %c0_294, %c0_295] : memref<3x8x128xf32, #tpu.memory_space<vmem>>, vector<1x8x128xf32>
    %620 = vector.shape_cast %619 : vector<1x8x128xf32> to vector<8x128xf32>
    %621 = vector.shape_cast %613 : vector<8x128xf32> to vector<1x8x128xf32>
    tpu.vector_store %arg13[%c1_293, %c0_294, %c0_295], %621 {strides = array<i32>} : memref<3x8x128xf32, #tpu.memory_space<vmem>>, vector<1x8x128xf32>,
    %c2_296 = arith.constant 2 : index
    %c0_297 = arith.constant 0 : index
    %c0_298 = arith.constant 0 : index
    %622 = vector.load %arg12[%c2_296, %c0_297, %c0_298] : memref<3x8x128xf32, #tpu.memory_space<vmem>>, vector<1x8x128xf32>
    %623 = vector.shape_cast %622 : vector<1x8x128xf32> to vector<8x128xf32>
    %624 = tpu.concatenate %615, %623 in 1 : vector<8x128xf32>, vector<8x128xf32> -> vector<8x256xf32>
    %625 = arith.truncf %624 : vector<8x256xf32> to vector<8x256xbf16>
    %c0_299 = arith.constant 0 : index
    %c0_300 = arith.constant 0 : index
    %626 = vector.load %arg7[%c0_299, %c0_300] : memref<256x512xbf16, #tpu.memory_space<vmem>>, vector<256x512xbf16>
    %cst_301 = arith.constant dense<0.000000e+00> : vector<8x512xf32>
    %627 = tpu.matmul %625, %626, %cst_301 {dimension_numbers = #tpu.dot_dimension_numbers<[1], [0], [0], [1], [0, 0, 1, 1], [], []>} : vector<8x256xbf16>, vector<256x512xbf16>, vector<8x512xf32> -> vector<8x512xf32>
    %c0_302 = arith.constant 0 : index
    %c0_303 = arith.constant 0 : index
    %628 = vector.load %arg8[%c0_302, %c0_303] : memref<1x512xf32, #tpu.memory_space<vmem>>, vector<1x512xf32>
    %629 = vector.broadcast %628 : vector<1x512xf32> to vector<8x512xf32>
    %630 = arith.addf %627, %629 : vector<8x512xf32>
    %631 = vector.extract_strided_slice %630 {offsets = [0, 0], sizes = [8, 128], strides = [1, 1]} : vector<8x512xf32> to vector<8x128xf32>
    %632 = arith.negf %631 : vector<8x128xf32>
    %633 = math.exp %632 : vector<8x128xf32>
    %cst_304 = arith.constant 1.000000e+00 : f32
    %634 = vector.broadcast %cst_304 : f32 to vector<8x128xf32>
    %635 = arith.addf %634, %633 : vector<8x128xf32>
    %636 = arith.divf %634, %635 : vector<8x128xf32>
    %637 = vector.extract_strided_slice %630 {offsets = [0, 128], sizes = [8, 128], strides = [1, 1]} : vector<8x512xf32> to vector<8x128xf32>
    %638 = arith.negf %637 : vector<8x128xf32>
    %639 = math.exp %638 : vector<8x128xf32>
    %cst_305 = arith.constant 1.000000e+00 : f32
    %640 = vector.broadcast %cst_305 : f32 to vector<8x128xf32>
    %641 = arith.addf %640, %639 : vector<8x128xf32>
    %642 = arith.divf %640, %641 : vector<8x128xf32>
    %643 = vector.extract_strided_slice %630 {offsets = [0, 256], sizes = [8, 128], strides = [1, 1]} : vector<8x512xf32> to vector<8x128xf32>
    %644 = math.tanh %643 : vector<8x128xf32>
    %645 = vector.extract_strided_slice %630 {offsets = [0, 384], sizes = [8, 128], strides = [1, 1]} : vector<8x512xf32> to vector<8x128xf32>
    %646 = arith.negf %645 : vector<8x128xf32>
    %647 = math.exp %646 : vector<8x128xf32>
    %cst_306 = arith.constant 1.000000e+00 : f32
    %648 = vector.broadcast %cst_306 : f32 to vector<8x128xf32>
    %649 = arith.addf %648, %647 : vector<8x128xf32>
    %650 = arith.divf %648, %649 : vector<8x128xf32>
    %c2_307 = arith.constant 2 : index
    %c0_308 = arith.constant 0 : index
    %c0_309 = arith.constant 0 : index
    %651 = vector.load %arg13[%c2_307, %c0_308, %c0_309] : memref<3x8x128xf32, #tpu.memory_space<vmem>>, vector<1x8x128xf32>
    %652 = vector.shape_cast %651 : vector<1x8x128xf32> to vector<8x128xf32>
    %653 = arith.mulf %642, %652 : vector<8x128xf32>
    %654 = arith.mulf %636, %644 : vector<8x128xf32>
    %655 = arith.addf %653, %654 : vector<8x128xf32>
    %656 = math.tanh %655 : vector<8x128xf32>
    %657 = arith.mulf %650, %656 : vector<8x128xf32>
    %c2_310 = arith.constant 2 : index
    %c0_311 = arith.constant 0 : index
    %c0_312 = arith.constant 0 : index
    %658 = vector.load %arg12[%c2_310, %c0_311, %c0_312] : memref<3x8x128xf32, #tpu.memory_space<vmem>>, vector<1x8x128xf32>
    %659 = vector.shape_cast %658 : vector<1x8x128xf32> to vector<8x128xf32>
    %660 = vector.shape_cast %657 : vector<8x128xf32> to vector<1x8x128xf32>
    tpu.vector_store %arg12[%c2_310, %c0_311, %c0_312], %660 {strides = array<i32>} : memref<3x8x128xf32, #tpu.memory_space<vmem>>, vector<1x8x128xf32>,
    %c2_313 = arith.constant 2 : index
    %c0_314 = arith.constant 0 : index
    %c0_315 = arith.constant 0 : index
    %661 = vector.load %arg13[%c2_313, %c0_314, %c0_315] : memref<3x8x128xf32, #tpu.memory_space<vmem>>, vector<1x8x128xf32>
    %662 = vector.shape_cast %661 : vector<1x8x128xf32> to vector<8x128xf32>
    %663 = vector.shape_cast %655 : vector<8x128xf32> to vector<1x8x128xf32>
    tpu.vector_store %arg13[%c2_313, %c0_314, %c0_315], %663 {strides = array<i32>} : memref<3x8x128xf32, #tpu.memory_space<vmem>>, vector<1x8x128xf32>,
    %664 = arith.index_cast %c4_i32 : i32 to index
    %c0_316 = arith.constant 0 : index
    %c0_317 = arith.constant 0 : index
    %665 = vector.load %arg9[%664, %c0_316, %c0_317] : memref<8x8x128xf32, #tpu.memory_space<vmem>>, vector<1x8x128xf32>
    %666 = vector.shape_cast %665 : vector<1x8x128xf32> to vector<8x128xf32>
    %667 = vector.shape_cast %657 : vector<8x128xf32> to vector<1x8x128xf32>
    tpu.vector_store %arg9[%664, %c0_316, %c0_317], %667 {strides = array<i32>} : memref<8x8x128xf32, #tpu.memory_space<vmem>>, vector<1x8x128xf32>,
    %c5_i32 = arith.constant 5 : i32
    %668 = arith.index_cast %c5_i32 : i32 to index
    %c0_318 = arith.constant 0 : index
    %c0_319 = arith.constant 0 : index
    %669 = vector.load %arg2[%668, %c0_318, %c0_319] : memref<8x8x128xf32, #tpu.memory_space<vmem>>, vector<1x8x128xf32>
    %670 = vector.shape_cast %669 : vector<1x8x128xf32> to vector<8x128xf32>
    %c0_320 = arith.constant 0 : index
    %c0_321 = arith.constant 0 : index
    %c0_322 = arith.constant 0 : index
    %671 = vector.load %arg12[%c0_320, %c0_321, %c0_322] : memref<3x8x128xf32, #tpu.memory_space<vmem>>, vector<1x8x128xf32>
    %672 = vector.shape_cast %671 : vector<1x8x128xf32> to vector<8x128xf32>
    %673 = tpu.concatenate %670, %672 in 1 : vector<8x128xf32>, vector<8x128xf32> -> vector<8x256xf32>
    %674 = arith.truncf %673 : vector<8x256xf32> to vector<8x256xbf16>
    %c0_323 = arith.constant 0 : index
    %c0_324 = arith.constant 0 : index
    %675 = vector.load %arg3[%c0_323, %c0_324] : memref<256x512xbf16, #tpu.memory_space<vmem>>, vector<256x512xbf16>
    %cst_325 = arith.constant dense<0.000000e+00> : vector<8x512xf32>
    %676 = tpu.matmul %674, %675, %cst_325 {dimension_numbers = #tpu.dot_dimension_numbers<[1], [0], [0], [1], [0, 0, 1, 1], [], []>} : vector<8x256xbf16>, vector<256x512xbf16>, vector<8x512xf32> -> vector<8x512xf32>
    %c0_326 = arith.constant 0 : index
    %c0_327 = arith.constant 0 : index
    %677 = vector.load %arg4[%c0_326, %c0_327] : memref<1x512xf32, #tpu.memory_space<vmem>>, vector<1x512xf32>
    %678 = vector.broadcast %677 : vector<1x512xf32> to vector<8x512xf32>
    %679 = arith.addf %676, %678 : vector<8x512xf32>
    %680 = vector.extract_strided_slice %679 {offsets = [0, 0], sizes = [8, 128], strides = [1, 1]} : vector<8x512xf32> to vector<8x128xf32>
    %681 = arith.negf %680 : vector<8x128xf32>
    %682 = math.exp %681 : vector<8x128xf32>
    %cst_328 = arith.constant 1.000000e+00 : f32
    %683 = vector.broadcast %cst_328 : f32 to vector<8x128xf32>
    %684 = arith.addf %683, %682 : vector<8x128xf32>
    %685 = arith.divf %683, %684 : vector<8x128xf32>
    %686 = vector.extract_strided_slice %679 {offsets = [0, 128], sizes = [8, 128], strides = [1, 1]} : vector<8x512xf32> to vector<8x128xf32>
    %687 = arith.negf %686 : vector<8x128xf32>
    %688 = math.exp %687 : vector<8x128xf32>
    %cst_329 = arith.constant 1.000000e+00 : f32
    %689 = vector.broadcast %cst_329 : f32 to vector<8x128xf32>
    %690 = arith.addf %689, %688 : vector<8x128xf32>
    %691 = arith.divf %689, %690 : vector<8x128xf32>
    %692 = vector.extract_strided_slice %679 {offsets = [0, 256], sizes = [8, 128], strides = [1, 1]} : vector<8x512xf32> to vector<8x128xf32>
    %693 = math.tanh %692 : vector<8x128xf32>
    %694 = vector.extract_strided_slice %679 {offsets = [0, 384], sizes = [8, 128], strides = [1, 1]} : vector<8x512xf32> to vector<8x128xf32>
    %695 = arith.negf %694 : vector<8x128xf32>
    %696 = math.exp %695 : vector<8x128xf32>
    %cst_330 = arith.constant 1.000000e+00 : f32
    %697 = vector.broadcast %cst_330 : f32 to vector<8x128xf32>
    %698 = arith.addf %697, %696 : vector<8x128xf32>
    %699 = arith.divf %697, %698 : vector<8x128xf32>
    %c0_331 = arith.constant 0 : index
    %c0_332 = arith.constant 0 : index
    %c0_333 = arith.constant 0 : index
    %700 = vector.load %arg13[%c0_331, %c0_332, %c0_333] : memref<3x8x128xf32, #tpu.memory_space<vmem>>, vector<1x8x128xf32>
    %701 = vector.shape_cast %700 : vector<1x8x128xf32> to vector<8x128xf32>
    %702 = arith.mulf %691, %701 : vector<8x128xf32>
    %703 = arith.mulf %685, %693 : vector<8x128xf32>
    %704 = arith.addf %702, %703 : vector<8x128xf32>
    %705 = math.tanh %704 : vector<8x128xf32>
    %706 = arith.mulf %699, %705 : vector<8x128xf32>
    %c0_334 = arith.constant 0 : index
    %c0_335 = arith.constant 0 : index
    %c0_336 = arith.constant 0 : index
    %707 = vector.load %arg12[%c0_334, %c0_335, %c0_336] : memref<3x8x128xf32, #tpu.memory_space<vmem>>, vector<1x8x128xf32>
    %708 = vector.shape_cast %707 : vector<1x8x128xf32> to vector<8x128xf32>
    %709 = vector.shape_cast %706 : vector<8x128xf32> to vector<1x8x128xf32>
    tpu.vector_store %arg12[%c0_334, %c0_335, %c0_336], %709 {strides = array<i32>} : memref<3x8x128xf32, #tpu.memory_space<vmem>>, vector<1x8x128xf32>,
    %c0_337 = arith.constant 0 : index
    %c0_338 = arith.constant 0 : index
    %c0_339 = arith.constant 0 : index
    %710 = vector.load %arg13[%c0_337, %c0_338, %c0_339] : memref<3x8x128xf32, #tpu.memory_space<vmem>>, vector<1x8x128xf32>
    %711 = vector.shape_cast %710 : vector<1x8x128xf32> to vector<8x128xf32>
    %712 = vector.shape_cast %704 : vector<8x128xf32> to vector<1x8x128xf32>
    tpu.vector_store %arg13[%c0_337, %c0_338, %c0_339], %712 {strides = array<i32>} : memref<3x8x128xf32, #tpu.memory_space<vmem>>, vector<1x8x128xf32>,
    %c1_340 = arith.constant 1 : index
    %c0_341 = arith.constant 0 : index
    %c0_342 = arith.constant 0 : index
    %713 = vector.load %arg12[%c1_340, %c0_341, %c0_342] : memref<3x8x128xf32, #tpu.memory_space<vmem>>, vector<1x8x128xf32>
    %714 = vector.shape_cast %713 : vector<1x8x128xf32> to vector<8x128xf32>
    %715 = tpu.concatenate %706, %714 in 1 : vector<8x128xf32>, vector<8x128xf32> -> vector<8x256xf32>
    %716 = arith.truncf %715 : vector<8x256xf32> to vector<8x256xbf16>
    %c0_343 = arith.constant 0 : index
    %c0_344 = arith.constant 0 : index
    %717 = vector.load %arg5[%c0_343, %c0_344] : memref<256x512xbf16, #tpu.memory_space<vmem>>, vector<256x512xbf16>
    %cst_345 = arith.constant dense<0.000000e+00> : vector<8x512xf32>
    %718 = tpu.matmul %716, %717, %cst_345 {dimension_numbers = #tpu.dot_dimension_numbers<[1], [0], [0], [1], [0, 0, 1, 1], [], []>} : vector<8x256xbf16>, vector<256x512xbf16>, vector<8x512xf32> -> vector<8x512xf32>
    %c0_346 = arith.constant 0 : index
    %c0_347 = arith.constant 0 : index
    %719 = vector.load %arg6[%c0_346, %c0_347] : memref<1x512xf32, #tpu.memory_space<vmem>>, vector<1x512xf32>
    %720 = vector.broadcast %719 : vector<1x512xf32> to vector<8x512xf32>
    %721 = arith.addf %718, %720 : vector<8x512xf32>
    %722 = vector.extract_strided_slice %721 {offsets = [0, 0], sizes = [8, 128], strides = [1, 1]} : vector<8x512xf32> to vector<8x128xf32>
    %723 = arith.negf %722 : vector<8x128xf32>
    %724 = math.exp %723 : vector<8x128xf32>
    %cst_348 = arith.constant 1.000000e+00 : f32
    %725 = vector.broadcast %cst_348 : f32 to vector<8x128xf32>
    %726 = arith.addf %725, %724 : vector<8x128xf32>
    %727 = arith.divf %725, %726 : vector<8x128xf32>
    %728 = vector.extract_strided_slice %721 {offsets = [0, 128], sizes = [8, 128], strides = [1, 1]} : vector<8x512xf32> to vector<8x128xf32>
    %729 = arith.negf %728 : vector<8x128xf32>
    %730 = math.exp %729 : vector<8x128xf32>
    %cst_349 = arith.constant 1.000000e+00 : f32
    %731 = vector.broadcast %cst_349 : f32 to vector<8x128xf32>
    %732 = arith.addf %731, %730 : vector<8x128xf32>
    %733 = arith.divf %731, %732 : vector<8x128xf32>
    %734 = vector.extract_strided_slice %721 {offsets = [0, 256], sizes = [8, 128], strides = [1, 1]} : vector<8x512xf32> to vector<8x128xf32>
    %735 = math.tanh %734 : vector<8x128xf32>
    %736 = vector.extract_strided_slice %721 {offsets = [0, 384], sizes = [8, 128], strides = [1, 1]} : vector<8x512xf32> to vector<8x128xf32>
    %737 = arith.negf %736 : vector<8x128xf32>
    %738 = math.exp %737 : vector<8x128xf32>
    %cst_350 = arith.constant 1.000000e+00 : f32
    %739 = vector.broadcast %cst_350 : f32 to vector<8x128xf32>
    %740 = arith.addf %739, %738 : vector<8x128xf32>
    %741 = arith.divf %739, %740 : vector<8x128xf32>
    %c1_351 = arith.constant 1 : index
    %c0_352 = arith.constant 0 : index
    %c0_353 = arith.constant 0 : index
    %742 = vector.load %arg13[%c1_351, %c0_352, %c0_353] : memref<3x8x128xf32, #tpu.memory_space<vmem>>, vector<1x8x128xf32>
    %743 = vector.shape_cast %742 : vector<1x8x128xf32> to vector<8x128xf32>
    %744 = arith.mulf %733, %743 : vector<8x128xf32>
    %745 = arith.mulf %727, %735 : vector<8x128xf32>
    %746 = arith.addf %744, %745 : vector<8x128xf32>
    %747 = math.tanh %746 : vector<8x128xf32>
    %748 = arith.mulf %741, %747 : vector<8x128xf32>
    %c1_354 = arith.constant 1 : index
    %c0_355 = arith.constant 0 : index
    %c0_356 = arith.constant 0 : index
    %749 = vector.load %arg12[%c1_354, %c0_355, %c0_356] : memref<3x8x128xf32, #tpu.memory_space<vmem>>, vector<1x8x128xf32>
    %750 = vector.shape_cast %749 : vector<1x8x128xf32> to vector<8x128xf32>
    %751 = vector.shape_cast %748 : vector<8x128xf32> to vector<1x8x128xf32>
    tpu.vector_store %arg12[%c1_354, %c0_355, %c0_356], %751 {strides = array<i32>} : memref<3x8x128xf32, #tpu.memory_space<vmem>>, vector<1x8x128xf32>,
    %c1_357 = arith.constant 1 : index
    %c0_358 = arith.constant 0 : index
    %c0_359 = arith.constant 0 : index
    %752 = vector.load %arg13[%c1_357, %c0_358, %c0_359] : memref<3x8x128xf32, #tpu.memory_space<vmem>>, vector<1x8x128xf32>
    %753 = vector.shape_cast %752 : vector<1x8x128xf32> to vector<8x128xf32>
    %754 = vector.shape_cast %746 : vector<8x128xf32> to vector<1x8x128xf32>
    tpu.vector_store %arg13[%c1_357, %c0_358, %c0_359], %754 {strides = array<i32>} : memref<3x8x128xf32, #tpu.memory_space<vmem>>, vector<1x8x128xf32>,
    %c2_360 = arith.constant 2 : index
    %c0_361 = arith.constant 0 : index
    %c0_362 = arith.constant 0 : index
    %755 = vector.load %arg12[%c2_360, %c0_361, %c0_362] : memref<3x8x128xf32, #tpu.memory_space<vmem>>, vector<1x8x128xf32>
    %756 = vector.shape_cast %755 : vector<1x8x128xf32> to vector<8x128xf32>
    %757 = tpu.concatenate %748, %756 in 1 : vector<8x128xf32>, vector<8x128xf32> -> vector<8x256xf32>
    %758 = arith.truncf %757 : vector<8x256xf32> to vector<8x256xbf16>
    %c0_363 = arith.constant 0 : index
    %c0_364 = arith.constant 0 : index
    %759 = vector.load %arg7[%c0_363, %c0_364] : memref<256x512xbf16, #tpu.memory_space<vmem>>, vector<256x512xbf16>
    %cst_365 = arith.constant dense<0.000000e+00> : vector<8x512xf32>
    %760 = tpu.matmul %758, %759, %cst_365 {dimension_numbers = #tpu.dot_dimension_numbers<[1], [0], [0], [1], [0, 0, 1, 1], [], []>} : vector<8x256xbf16>, vector<256x512xbf16>, vector<8x512xf32> -> vector<8x512xf32>
    %c0_366 = arith.constant 0 : index
    %c0_367 = arith.constant 0 : index
    %761 = vector.load %arg8[%c0_366, %c0_367] : memref<1x512xf32, #tpu.memory_space<vmem>>, vector<1x512xf32>
    %762 = vector.broadcast %761 : vector<1x512xf32> to vector<8x512xf32>
    %763 = arith.addf %760, %762 : vector<8x512xf32>
    %764 = vector.extract_strided_slice %763 {offsets = [0, 0], sizes = [8, 128], strides = [1, 1]} : vector<8x512xf32> to vector<8x128xf32>
    %765 = arith.negf %764 : vector<8x128xf32>
    %766 = math.exp %765 : vector<8x128xf32>
    %cst_368 = arith.constant 1.000000e+00 : f32
    %767 = vector.broadcast %cst_368 : f32 to vector<8x128xf32>
    %768 = arith.addf %767, %766 : vector<8x128xf32>
    %769 = arith.divf %767, %768 : vector<8x128xf32>
    %770 = vector.extract_strided_slice %763 {offsets = [0, 128], sizes = [8, 128], strides = [1, 1]} : vector<8x512xf32> to vector<8x128xf32>
    %771 = arith.negf %770 : vector<8x128xf32>
    %772 = math.exp %771 : vector<8x128xf32>
    %cst_369 = arith.constant 1.000000e+00 : f32
    %773 = vector.broadcast %cst_369 : f32 to vector<8x128xf32>
    %774 = arith.addf %773, %772 : vector<8x128xf32>
    %775 = arith.divf %773, %774 : vector<8x128xf32>
    %776 = vector.extract_strided_slice %763 {offsets = [0, 256], sizes = [8, 128], strides = [1, 1]} : vector<8x512xf32> to vector<8x128xf32>
    %777 = math.tanh %776 : vector<8x128xf32>
    %778 = vector.extract_strided_slice %763 {offsets = [0, 384], sizes = [8, 128], strides = [1, 1]} : vector<8x512xf32> to vector<8x128xf32>
    %779 = arith.negf %778 : vector<8x128xf32>
    %780 = math.exp %779 : vector<8x128xf32>
    %cst_370 = arith.constant 1.000000e+00 : f32
    %781 = vector.broadcast %cst_370 : f32 to vector<8x128xf32>
    %782 = arith.addf %781, %780 : vector<8x128xf32>
    %783 = arith.divf %781, %782 : vector<8x128xf32>
    %c2_371 = arith.constant 2 : index
    %c0_372 = arith.constant 0 : index
    %c0_373 = arith.constant 0 : index
    %784 = vector.load %arg13[%c2_371, %c0_372, %c0_373] : memref<3x8x128xf32, #tpu.memory_space<vmem>>, vector<1x8x128xf32>
    %785 = vector.shape_cast %784 : vector<1x8x128xf32> to vector<8x128xf32>
    %786 = arith.mulf %775, %785 : vector<8x128xf32>
    %787 = arith.mulf %769, %777 : vector<8x128xf32>
    %788 = arith.addf %786, %787 : vector<8x128xf32>
    %789 = math.tanh %788 : vector<8x128xf32>
    %790 = arith.mulf %783, %789 : vector<8x128xf32>
    %c2_374 = arith.constant 2 : index
    %c0_375 = arith.constant 0 : index
    %c0_376 = arith.constant 0 : index
    %791 = vector.load %arg12[%c2_374, %c0_375, %c0_376] : memref<3x8x128xf32, #tpu.memory_space<vmem>>, vector<1x8x128xf32>
    %792 = vector.shape_cast %791 : vector<1x8x128xf32> to vector<8x128xf32>
    %793 = vector.shape_cast %790 : vector<8x128xf32> to vector<1x8x128xf32>
    tpu.vector_store %arg12[%c2_374, %c0_375, %c0_376], %793 {strides = array<i32>} : memref<3x8x128xf32, #tpu.memory_space<vmem>>, vector<1x8x128xf32>,
    %c2_377 = arith.constant 2 : index
    %c0_378 = arith.constant 0 : index
    %c0_379 = arith.constant 0 : index
    %794 = vector.load %arg13[%c2_377, %c0_378, %c0_379] : memref<3x8x128xf32, #tpu.memory_space<vmem>>, vector<1x8x128xf32>
    %795 = vector.shape_cast %794 : vector<1x8x128xf32> to vector<8x128xf32>
    %796 = vector.shape_cast %788 : vector<8x128xf32> to vector<1x8x128xf32>
    tpu.vector_store %arg13[%c2_377, %c0_378, %c0_379], %796 {strides = array<i32>} : memref<3x8x128xf32, #tpu.memory_space<vmem>>, vector<1x8x128xf32>,
    %797 = arith.index_cast %c5_i32 : i32 to index
    %c0_380 = arith.constant 0 : index
    %c0_381 = arith.constant 0 : index
    %798 = vector.load %arg9[%797, %c0_380, %c0_381] : memref<8x8x128xf32, #tpu.memory_space<vmem>>, vector<1x8x128xf32>
    %799 = vector.shape_cast %798 : vector<1x8x128xf32> to vector<8x128xf32>
    %800 = vector.shape_cast %790 : vector<8x128xf32> to vector<1x8x128xf32>
    tpu.vector_store %arg9[%797, %c0_380, %c0_381], %800 {strides = array<i32>} : memref<8x8x128xf32, #tpu.memory_space<vmem>>, vector<1x8x128xf32>,
    %c6_i32 = arith.constant 6 : i32
    %801 = arith.index_cast %c6_i32 : i32 to index
    %c0_382 = arith.constant 0 : index
    %c0_383 = arith.constant 0 : index
    %802 = vector.load %arg2[%801, %c0_382, %c0_383] : memref<8x8x128xf32, #tpu.memory_space<vmem>>, vector<1x8x128xf32>
    %803 = vector.shape_cast %802 : vector<1x8x128xf32> to vector<8x128xf32>
    %c0_384 = arith.constant 0 : index
    %c0_385 = arith.constant 0 : index
    %c0_386 = arith.constant 0 : index
    %804 = vector.load %arg12[%c0_384, %c0_385, %c0_386] : memref<3x8x128xf32, #tpu.memory_space<vmem>>, vector<1x8x128xf32>
    %805 = vector.shape_cast %804 : vector<1x8x128xf32> to vector<8x128xf32>
    %806 = tpu.concatenate %803, %805 in 1 : vector<8x128xf32>, vector<8x128xf32> -> vector<8x256xf32>
    %807 = arith.truncf %806 : vector<8x256xf32> to vector<8x256xbf16>
    %c0_387 = arith.constant 0 : index
    %c0_388 = arith.constant 0 : index
    %808 = vector.load %arg3[%c0_387, %c0_388] : memref<256x512xbf16, #tpu.memory_space<vmem>>, vector<256x512xbf16>
    %cst_389 = arith.constant dense<0.000000e+00> : vector<8x512xf32>
    %809 = tpu.matmul %807, %808, %cst_389 {dimension_numbers = #tpu.dot_dimension_numbers<[1], [0], [0], [1], [0, 0, 1, 1], [], []>} : vector<8x256xbf16>, vector<256x512xbf16>, vector<8x512xf32> -> vector<8x512xf32>
    %c0_390 = arith.constant 0 : index
    %c0_391 = arith.constant 0 : index
    %810 = vector.load %arg4[%c0_390, %c0_391] : memref<1x512xf32, #tpu.memory_space<vmem>>, vector<1x512xf32>
    %811 = vector.broadcast %810 : vector<1x512xf32> to vector<8x512xf32>
    %812 = arith.addf %809, %811 : vector<8x512xf32>
    %813 = vector.extract_strided_slice %812 {offsets = [0, 0], sizes = [8, 128], strides = [1, 1]} : vector<8x512xf32> to vector<8x128xf32>
    %814 = arith.negf %813 : vector<8x128xf32>
    %815 = math.exp %814 : vector<8x128xf32>
    %cst_392 = arith.constant 1.000000e+00 : f32
    %816 = vector.broadcast %cst_392 : f32 to vector<8x128xf32>
    %817 = arith.addf %816, %815 : vector<8x128xf32>
    %818 = arith.divf %816, %817 : vector<8x128xf32>
    %819 = vector.extract_strided_slice %812 {offsets = [0, 128], sizes = [8, 128], strides = [1, 1]} : vector<8x512xf32> to vector<8x128xf32>
    %820 = arith.negf %819 : vector<8x128xf32>
    %821 = math.exp %820 : vector<8x128xf32>
    %cst_393 = arith.constant 1.000000e+00 : f32
    %822 = vector.broadcast %cst_393 : f32 to vector<8x128xf32>
    %823 = arith.addf %822, %821 : vector<8x128xf32>
    %824 = arith.divf %822, %823 : vector<8x128xf32>
    %825 = vector.extract_strided_slice %812 {offsets = [0, 256], sizes = [8, 128], strides = [1, 1]} : vector<8x512xf32> to vector<8x128xf32>
    %826 = math.tanh %825 : vector<8x128xf32>
    %827 = vector.extract_strided_slice %812 {offsets = [0, 384], sizes = [8, 128], strides = [1, 1]} : vector<8x512xf32> to vector<8x128xf32>
    %828 = arith.negf %827 : vector<8x128xf32>
    %829 = math.exp %828 : vector<8x128xf32>
    %cst_394 = arith.constant 1.000000e+00 : f32
    %830 = vector.broadcast %cst_394 : f32 to vector<8x128xf32>
    %831 = arith.addf %830, %829 : vector<8x128xf32>
    %832 = arith.divf %830, %831 : vector<8x128xf32>
    %c0_395 = arith.constant 0 : index
    %c0_396 = arith.constant 0 : index
    %c0_397 = arith.constant 0 : index
    %833 = vector.load %arg13[%c0_395, %c0_396, %c0_397] : memref<3x8x128xf32, #tpu.memory_space<vmem>>, vector<1x8x128xf32>
    %834 = vector.shape_cast %833 : vector<1x8x128xf32> to vector<8x128xf32>
    %835 = arith.mulf %824, %834 : vector<8x128xf32>
    %836 = arith.mulf %818, %826 : vector<8x128xf32>
    %837 = arith.addf %835, %836 : vector<8x128xf32>
    %838 = math.tanh %837 : vector<8x128xf32>
    %839 = arith.mulf %832, %838 : vector<8x128xf32>
    %c0_398 = arith.constant 0 : index
    %c0_399 = arith.constant 0 : index
    %c0_400 = arith.constant 0 : index
    %840 = vector.load %arg12[%c0_398, %c0_399, %c0_400] : memref<3x8x128xf32, #tpu.memory_space<vmem>>, vector<1x8x128xf32>
    %841 = vector.shape_cast %840 : vector<1x8x128xf32> to vector<8x128xf32>
    %842 = vector.shape_cast %839 : vector<8x128xf32> to vector<1x8x128xf32>
    tpu.vector_store %arg12[%c0_398, %c0_399, %c0_400], %842 {strides = array<i32>} : memref<3x8x128xf32, #tpu.memory_space<vmem>>, vector<1x8x128xf32>,
    %c0_401 = arith.constant 0 : index
    %c0_402 = arith.constant 0 : index
    %c0_403 = arith.constant 0 : index
    %843 = vector.load %arg13[%c0_401, %c0_402, %c0_403] : memref<3x8x128xf32, #tpu.memory_space<vmem>>, vector<1x8x128xf32>
    %844 = vector.shape_cast %843 : vector<1x8x128xf32> to vector<8x128xf32>
    %845 = vector.shape_cast %837 : vector<8x128xf32> to vector<1x8x128xf32>
    tpu.vector_store %arg13[%c0_401, %c0_402, %c0_403], %845 {strides = array<i32>} : memref<3x8x128xf32, #tpu.memory_space<vmem>>, vector<1x8x128xf32>,
    %c1_404 = arith.constant 1 : index
    %c0_405 = arith.constant 0 : index
    %c0_406 = arith.constant 0 : index
    %846 = vector.load %arg12[%c1_404, %c0_405, %c0_406] : memref<3x8x128xf32, #tpu.memory_space<vmem>>, vector<1x8x128xf32>
    %847 = vector.shape_cast %846 : vector<1x8x128xf32> to vector<8x128xf32>
    %848 = tpu.concatenate %839, %847 in 1 : vector<8x128xf32>, vector<8x128xf32> -> vector<8x256xf32>
    %849 = arith.truncf %848 : vector<8x256xf32> to vector<8x256xbf16>
    %c0_407 = arith.constant 0 : index
    %c0_408 = arith.constant 0 : index
    %850 = vector.load %arg5[%c0_407, %c0_408] : memref<256x512xbf16, #tpu.memory_space<vmem>>, vector<256x512xbf16>
    %cst_409 = arith.constant dense<0.000000e+00> : vector<8x512xf32>
    %851 = tpu.matmul %849, %850, %cst_409 {dimension_numbers = #tpu.dot_dimension_numbers<[1], [0], [0], [1], [0, 0, 1, 1], [], []>} : vector<8x256xbf16>, vector<256x512xbf16>, vector<8x512xf32> -> vector<8x512xf32>
    %c0_410 = arith.constant 0 : index
    %c0_411 = arith.constant 0 : index
    %852 = vector.load %arg6[%c0_410, %c0_411] : memref<1x512xf32, #tpu.memory_space<vmem>>, vector<1x512xf32>
    %853 = vector.broadcast %852 : vector<1x512xf32> to vector<8x512xf32>
    %854 = arith.addf %851, %853 : vector<8x512xf32>
    %855 = vector.extract_strided_slice %854 {offsets = [0, 0], sizes = [8, 128], strides = [1, 1]} : vector<8x512xf32> to vector<8x128xf32>
    %856 = arith.negf %855 : vector<8x128xf32>
    %857 = math.exp %856 : vector<8x128xf32>
    %cst_412 = arith.constant 1.000000e+00 : f32
    %858 = vector.broadcast %cst_412 : f32 to vector<8x128xf32>
    %859 = arith.addf %858, %857 : vector<8x128xf32>
    %860 = arith.divf %858, %859 : vector<8x128xf32>
    %861 = vector.extract_strided_slice %854 {offsets = [0, 128], sizes = [8, 128], strides = [1, 1]} : vector<8x512xf32> to vector<8x128xf32>
    %862 = arith.negf %861 : vector<8x128xf32>
    %863 = math.exp %862 : vector<8x128xf32>
    %cst_413 = arith.constant 1.000000e+00 : f32
    %864 = vector.broadcast %cst_413 : f32 to vector<8x128xf32>
    %865 = arith.addf %864, %863 : vector<8x128xf32>
    %866 = arith.divf %864, %865 : vector<8x128xf32>
    %867 = vector.extract_strided_slice %854 {offsets = [0, 256], sizes = [8, 128], strides = [1, 1]} : vector<8x512xf32> to vector<8x128xf32>
    %868 = math.tanh %867 : vector<8x128xf32>
    %869 = vector.extract_strided_slice %854 {offsets = [0, 384], sizes = [8, 128], strides = [1, 1]} : vector<8x512xf32> to vector<8x128xf32>
    %870 = arith.negf %869 : vector<8x128xf32>
    %871 = math.exp %870 : vector<8x128xf32>
    %cst_414 = arith.constant 1.000000e+00 : f32
    %872 = vector.broadcast %cst_414 : f32 to vector<8x128xf32>
    %873 = arith.addf %872, %871 : vector<8x128xf32>
    %874 = arith.divf %872, %873 : vector<8x128xf32>
    %c1_415 = arith.constant 1 : index
    %c0_416 = arith.constant 0 : index
    %c0_417 = arith.constant 0 : index
    %875 = vector.load %arg13[%c1_415, %c0_416, %c0_417] : memref<3x8x128xf32, #tpu.memory_space<vmem>>, vector<1x8x128xf32>
    %876 = vector.shape_cast %875 : vector<1x8x128xf32> to vector<8x128xf32>
    %877 = arith.mulf %866, %876 : vector<8x128xf32>
    %878 = arith.mulf %860, %868 : vector<8x128xf32>
    %879 = arith.addf %877, %878 : vector<8x128xf32>
    %880 = math.tanh %879 : vector<8x128xf32>
    %881 = arith.mulf %874, %880 : vector<8x128xf32>
    %c1_418 = arith.constant 1 : index
    %c0_419 = arith.constant 0 : index
    %c0_420 = arith.constant 0 : index
    %882 = vector.load %arg12[%c1_418, %c0_419, %c0_420] : memref<3x8x128xf32, #tpu.memory_space<vmem>>, vector<1x8x128xf32>
    %883 = vector.shape_cast %882 : vector<1x8x128xf32> to vector<8x128xf32>
    %884 = vector.shape_cast %881 : vector<8x128xf32> to vector<1x8x128xf32>
    tpu.vector_store %arg12[%c1_418, %c0_419, %c0_420], %884 {strides = array<i32>} : memref<3x8x128xf32, #tpu.memory_space<vmem>>, vector<1x8x128xf32>,
    %c1_421 = arith.constant 1 : index
    %c0_422 = arith.constant 0 : index
    %c0_423 = arith.constant 0 : index
    %885 = vector.load %arg13[%c1_421, %c0_422, %c0_423] : memref<3x8x128xf32, #tpu.memory_space<vmem>>, vector<1x8x128xf32>
    %886 = vector.shape_cast %885 : vector<1x8x128xf32> to vector<8x128xf32>
    %887 = vector.shape_cast %879 : vector<8x128xf32> to vector<1x8x128xf32>
    tpu.vector_store %arg13[%c1_421, %c0_422, %c0_423], %887 {strides = array<i32>} : memref<3x8x128xf32, #tpu.memory_space<vmem>>, vector<1x8x128xf32>,
    %c2_424 = arith.constant 2 : index
    %c0_425 = arith.constant 0 : index
    %c0_426 = arith.constant 0 : index
    %888 = vector.load %arg12[%c2_424, %c0_425, %c0_426] : memref<3x8x128xf32, #tpu.memory_space<vmem>>, vector<1x8x128xf32>
    %889 = vector.shape_cast %888 : vector<1x8x128xf32> to vector<8x128xf32>
    %890 = tpu.concatenate %881, %889 in 1 : vector<8x128xf32>, vector<8x128xf32> -> vector<8x256xf32>
    %891 = arith.truncf %890 : vector<8x256xf32> to vector<8x256xbf16>
    %c0_427 = arith.constant 0 : index
    %c0_428 = arith.constant 0 : index
    %892 = vector.load %arg7[%c0_427, %c0_428] : memref<256x512xbf16, #tpu.memory_space<vmem>>, vector<256x512xbf16>
    %cst_429 = arith.constant dense<0.000000e+00> : vector<8x512xf32>
    %893 = tpu.matmul %891, %892, %cst_429 {dimension_numbers = #tpu.dot_dimension_numbers<[1], [0], [0], [1], [0, 0, 1, 1], [], []>} : vector<8x256xbf16>, vector<256x512xbf16>, vector<8x512xf32> -> vector<8x512xf32>
    %c0_430 = arith.constant 0 : index
    %c0_431 = arith.constant 0 : index
    %894 = vector.load %arg8[%c0_430, %c0_431] : memref<1x512xf32, #tpu.memory_space<vmem>>, vector<1x512xf32>
    %895 = vector.broadcast %894 : vector<1x512xf32> to vector<8x512xf32>
    %896 = arith.addf %893, %895 : vector<8x512xf32>
    %897 = vector.extract_strided_slice %896 {offsets = [0, 0], sizes = [8, 128], strides = [1, 1]} : vector<8x512xf32> to vector<8x128xf32>
    %898 = arith.negf %897 : vector<8x128xf32>
    %899 = math.exp %898 : vector<8x128xf32>
    %cst_432 = arith.constant 1.000000e+00 : f32
    %900 = vector.broadcast %cst_432 : f32 to vector<8x128xf32>
    %901 = arith.addf %900, %899 : vector<8x128xf32>
    %902 = arith.divf %900, %901 : vector<8x128xf32>
    %903 = vector.extract_strided_slice %896 {offsets = [0, 128], sizes = [8, 128], strides = [1, 1]} : vector<8x512xf32> to vector<8x128xf32>
    %904 = arith.negf %903 : vector<8x128xf32>
    %905 = math.exp %904 : vector<8x128xf32>
    %cst_433 = arith.constant 1.000000e+00 : f32
    %906 = vector.broadcast %cst_433 : f32 to vector<8x128xf32>
    %907 = arith.addf %906, %905 : vector<8x128xf32>
    %908 = arith.divf %906, %907 : vector<8x128xf32>
    %909 = vector.extract_strided_slice %896 {offsets = [0, 256], sizes = [8, 128], strides = [1, 1]} : vector<8x512xf32> to vector<8x128xf32>
    %910 = math.tanh %909 : vector<8x128xf32>
    %911 = vector.extract_strided_slice %896 {offsets = [0, 384], sizes = [8, 128], strides = [1, 1]} : vector<8x512xf32> to vector<8x128xf32>
    %912 = arith.negf %911 : vector<8x128xf32>
    %913 = math.exp %912 : vector<8x128xf32>
    %cst_434 = arith.constant 1.000000e+00 : f32
    %914 = vector.broadcast %cst_434 : f32 to vector<8x128xf32>
    %915 = arith.addf %914, %913 : vector<8x128xf32>
    %916 = arith.divf %914, %915 : vector<8x128xf32>
    %c2_435 = arith.constant 2 : index
    %c0_436 = arith.constant 0 : index
    %c0_437 = arith.constant 0 : index
    %917 = vector.load %arg13[%c2_435, %c0_436, %c0_437] : memref<3x8x128xf32, #tpu.memory_space<vmem>>, vector<1x8x128xf32>
    %918 = vector.shape_cast %917 : vector<1x8x128xf32> to vector<8x128xf32>
    %919 = arith.mulf %908, %918 : vector<8x128xf32>
    %920 = arith.mulf %902, %910 : vector<8x128xf32>
    %921 = arith.addf %919, %920 : vector<8x128xf32>
    %922 = math.tanh %921 : vector<8x128xf32>
    %923 = arith.mulf %916, %922 : vector<8x128xf32>
    %c2_438 = arith.constant 2 : index
    %c0_439 = arith.constant 0 : index
    %c0_440 = arith.constant 0 : index
    %924 = vector.load %arg12[%c2_438, %c0_439, %c0_440] : memref<3x8x128xf32, #tpu.memory_space<vmem>>, vector<1x8x128xf32>
    %925 = vector.shape_cast %924 : vector<1x8x128xf32> to vector<8x128xf32>
    %926 = vector.shape_cast %923 : vector<8x128xf32> to vector<1x8x128xf32>
    tpu.vector_store %arg12[%c2_438, %c0_439, %c0_440], %926 {strides = array<i32>} : memref<3x8x128xf32, #tpu.memory_space<vmem>>, vector<1x8x128xf32>,
    %c2_441 = arith.constant 2 : index
    %c0_442 = arith.constant 0 : index
    %c0_443 = arith.constant 0 : index
    %927 = vector.load %arg13[%c2_441, %c0_442, %c0_443] : memref<3x8x128xf32, #tpu.memory_space<vmem>>, vector<1x8x128xf32>
    %928 = vector.shape_cast %927 : vector<1x8x128xf32> to vector<8x128xf32>
    %929 = vector.shape_cast %921 : vector<8x128xf32> to vector<1x8x128xf32>
    tpu.vector_store %arg13[%c2_441, %c0_442, %c0_443], %929 {strides = array<i32>} : memref<3x8x128xf32, #tpu.memory_space<vmem>>, vector<1x8x128xf32>,
    %930 = arith.index_cast %c6_i32 : i32 to index
    %c0_444 = arith.constant 0 : index
    %c0_445 = arith.constant 0 : index
    %931 = vector.load %arg9[%930, %c0_444, %c0_445] : memref<8x8x128xf32, #tpu.memory_space<vmem>>, vector<1x8x128xf32>
    %932 = vector.shape_cast %931 : vector<1x8x128xf32> to vector<8x128xf32>
    %933 = vector.shape_cast %923 : vector<8x128xf32> to vector<1x8x128xf32>
    tpu.vector_store %arg9[%930, %c0_444, %c0_445], %933 {strides = array<i32>} : memref<8x8x128xf32, #tpu.memory_space<vmem>>, vector<1x8x128xf32>,
    %c7_i32 = arith.constant 7 : i32
    %934 = arith.index_cast %c7_i32 : i32 to index
    %c0_446 = arith.constant 0 : index
    %c0_447 = arith.constant 0 : index
    %935 = vector.load %arg2[%934, %c0_446, %c0_447] : memref<8x8x128xf32, #tpu.memory_space<vmem>>, vector<1x8x128xf32>
    %936 = vector.shape_cast %935 : vector<1x8x128xf32> to vector<8x128xf32>
    %c0_448 = arith.constant 0 : index
    %c0_449 = arith.constant 0 : index
    %c0_450 = arith.constant 0 : index
    %937 = vector.load %arg12[%c0_448, %c0_449, %c0_450] : memref<3x8x128xf32, #tpu.memory_space<vmem>>, vector<1x8x128xf32>
    %938 = vector.shape_cast %937 : vector<1x8x128xf32> to vector<8x128xf32>
    %939 = tpu.concatenate %936, %938 in 1 : vector<8x128xf32>, vector<8x128xf32> -> vector<8x256xf32>
    %940 = arith.truncf %939 : vector<8x256xf32> to vector<8x256xbf16>
    %c0_451 = arith.constant 0 : index
    %c0_452 = arith.constant 0 : index
    %941 = vector.load %arg3[%c0_451, %c0_452] : memref<256x512xbf16, #tpu.memory_space<vmem>>, vector<256x512xbf16>
    %cst_453 = arith.constant dense<0.000000e+00> : vector<8x512xf32>
    %942 = tpu.matmul %940, %941, %cst_453 {dimension_numbers = #tpu.dot_dimension_numbers<[1], [0], [0], [1], [0, 0, 1, 1], [], []>} : vector<8x256xbf16>, vector<256x512xbf16>, vector<8x512xf32> -> vector<8x512xf32>
    %c0_454 = arith.constant 0 : index
    %c0_455 = arith.constant 0 : index
    %943 = vector.load %arg4[%c0_454, %c0_455] : memref<1x512xf32, #tpu.memory_space<vmem>>, vector<1x512xf32>
    %944 = vector.broadcast %943 : vector<1x512xf32> to vector<8x512xf32>
    %945 = arith.addf %942, %944 : vector<8x512xf32>
    %946 = vector.extract_strided_slice %945 {offsets = [0, 0], sizes = [8, 128], strides = [1, 1]} : vector<8x512xf32> to vector<8x128xf32>
    %947 = arith.negf %946 : vector<8x128xf32>
    %948 = math.exp %947 : vector<8x128xf32>
    %cst_456 = arith.constant 1.000000e+00 : f32
    %949 = vector.broadcast %cst_456 : f32 to vector<8x128xf32>
    %950 = arith.addf %949, %948 : vector<8x128xf32>
    %951 = arith.divf %949, %950 : vector<8x128xf32>
    %952 = vector.extract_strided_slice %945 {offsets = [0, 128], sizes = [8, 128], strides = [1, 1]} : vector<8x512xf32> to vector<8x128xf32>
    %953 = arith.negf %952 : vector<8x128xf32>
    %954 = math.exp %953 : vector<8x128xf32>
    %cst_457 = arith.constant 1.000000e+00 : f32
    %955 = vector.broadcast %cst_457 : f32 to vector<8x128xf32>
    %956 = arith.addf %955, %954 : vector<8x128xf32>
    %957 = arith.divf %955, %956 : vector<8x128xf32>
    %958 = vector.extract_strided_slice %945 {offsets = [0, 256], sizes = [8, 128], strides = [1, 1]} : vector<8x512xf32> to vector<8x128xf32>
    %959 = math.tanh %958 : vector<8x128xf32>
    %960 = vector.extract_strided_slice %945 {offsets = [0, 384], sizes = [8, 128], strides = [1, 1]} : vector<8x512xf32> to vector<8x128xf32>
    %961 = arith.negf %960 : vector<8x128xf32>
    %962 = math.exp %961 : vector<8x128xf32>
    %cst_458 = arith.constant 1.000000e+00 : f32
    %963 = vector.broadcast %cst_458 : f32 to vector<8x128xf32>
    %964 = arith.addf %963, %962 : vector<8x128xf32>
    %965 = arith.divf %963, %964 : vector<8x128xf32>
    %c0_459 = arith.constant 0 : index
    %c0_460 = arith.constant 0 : index
    %c0_461 = arith.constant 0 : index
    %966 = vector.load %arg13[%c0_459, %c0_460, %c0_461] : memref<3x8x128xf32, #tpu.memory_space<vmem>>, vector<1x8x128xf32>
    %967 = vector.shape_cast %966 : vector<1x8x128xf32> to vector<8x128xf32>
    %968 = arith.mulf %957, %967 : vector<8x128xf32>
    %969 = arith.mulf %951, %959 : vector<8x128xf32>
    %970 = arith.addf %968, %969 : vector<8x128xf32>
    %971 = math.tanh %970 : vector<8x128xf32>
    %972 = arith.mulf %965, %971 : vector<8x128xf32>
    %c0_462 = arith.constant 0 : index
    %c0_463 = arith.constant 0 : index
    %c0_464 = arith.constant 0 : index
    %973 = vector.load %arg12[%c0_462, %c0_463, %c0_464] : memref<3x8x128xf32, #tpu.memory_space<vmem>>, vector<1x8x128xf32>
    %974 = vector.shape_cast %973 : vector<1x8x128xf32> to vector<8x128xf32>
    %975 = vector.shape_cast %972 : vector<8x128xf32> to vector<1x8x128xf32>
    tpu.vector_store %arg12[%c0_462, %c0_463, %c0_464], %975 {strides = array<i32>} : memref<3x8x128xf32, #tpu.memory_space<vmem>>, vector<1x8x128xf32>,
    %c0_465 = arith.constant 0 : index
    %c0_466 = arith.constant 0 : index
    %c0_467 = arith.constant 0 : index
    %976 = vector.load %arg13[%c0_465, %c0_466, %c0_467] : memref<3x8x128xf32, #tpu.memory_space<vmem>>, vector<1x8x128xf32>
    %977 = vector.shape_cast %976 : vector<1x8x128xf32> to vector<8x128xf32>
    %978 = vector.shape_cast %970 : vector<8x128xf32> to vector<1x8x128xf32>
    tpu.vector_store %arg13[%c0_465, %c0_466, %c0_467], %978 {strides = array<i32>} : memref<3x8x128xf32, #tpu.memory_space<vmem>>, vector<1x8x128xf32>,
    %c1_468 = arith.constant 1 : index
    %c0_469 = arith.constant 0 : index
    %c0_470 = arith.constant 0 : index
    %979 = vector.load %arg12[%c1_468, %c0_469, %c0_470] : memref<3x8x128xf32, #tpu.memory_space<vmem>>, vector<1x8x128xf32>
    %980 = vector.shape_cast %979 : vector<1x8x128xf32> to vector<8x128xf32>
    %981 = tpu.concatenate %972, %980 in 1 : vector<8x128xf32>, vector<8x128xf32> -> vector<8x256xf32>
    %982 = arith.truncf %981 : vector<8x256xf32> to vector<8x256xbf16>
    %c0_471 = arith.constant 0 : index
    %c0_472 = arith.constant 0 : index
    %983 = vector.load %arg5[%c0_471, %c0_472] : memref<256x512xbf16, #tpu.memory_space<vmem>>, vector<256x512xbf16>
    %cst_473 = arith.constant dense<0.000000e+00> : vector<8x512xf32>
    %984 = tpu.matmul %982, %983, %cst_473 {dimension_numbers = #tpu.dot_dimension_numbers<[1], [0], [0], [1], [0, 0, 1, 1], [], []>} : vector<8x256xbf16>, vector<256x512xbf16>, vector<8x512xf32> -> vector<8x512xf32>
    %c0_474 = arith.constant 0 : index
    %c0_475 = arith.constant 0 : index
    %985 = vector.load %arg6[%c0_474, %c0_475] : memref<1x512xf32, #tpu.memory_space<vmem>>, vector<1x512xf32>
    %986 = vector.broadcast %985 : vector<1x512xf32> to vector<8x512xf32>
    %987 = arith.addf %984, %986 : vector<8x512xf32>
    %988 = vector.extract_strided_slice %987 {offsets = [0, 0], sizes = [8, 128], strides = [1, 1]} : vector<8x512xf32> to vector<8x128xf32>
    %989 = arith.negf %988 : vector<8x128xf32>
    %990 = math.exp %989 : vector<8x128xf32>
    %cst_476 = arith.constant 1.000000e+00 : f32
    %991 = vector.broadcast %cst_476 : f32 to vector<8x128xf32>
    %992 = arith.addf %991, %990 : vector<8x128xf32>
    %993 = arith.divf %991, %992 : vector<8x128xf32>
    %994 = vector.extract_strided_slice %987 {offsets = [0, 128], sizes = [8, 128], strides = [1, 1]} : vector<8x512xf32> to vector<8x128xf32>
    %995 = arith.negf %994 : vector<8x128xf32>
    %996 = math.exp %995 : vector<8x128xf32>
    %cst_477 = arith.constant 1.000000e+00 : f32
    %997 = vector.broadcast %cst_477 : f32 to vector<8x128xf32>
    %998 = arith.addf %997, %996 : vector<8x128xf32>
    %999 = arith.divf %997, %998 : vector<8x128xf32>
    %1000 = vector.extract_strided_slice %987 {offsets = [0, 256], sizes = [8, 128], strides = [1, 1]} : vector<8x512xf32> to vector<8x128xf32>
    %1001 = math.tanh %1000 : vector<8x128xf32>
    %1002 = vector.extract_strided_slice %987 {offsets = [0, 384], sizes = [8, 128], strides = [1, 1]} : vector<8x512xf32> to vector<8x128xf32>
    %1003 = arith.negf %1002 : vector<8x128xf32>
    %1004 = math.exp %1003 : vector<8x128xf32>
    %cst_478 = arith.constant 1.000000e+00 : f32
    %1005 = vector.broadcast %cst_478 : f32 to vector<8x128xf32>
    %1006 = arith.addf %1005, %1004 : vector<8x128xf32>
    %1007 = arith.divf %1005, %1006 : vector<8x128xf32>
    %c1_479 = arith.constant 1 : index
    %c0_480 = arith.constant 0 : index
    %c0_481 = arith.constant 0 : index
    %1008 = vector.load %arg13[%c1_479, %c0_480, %c0_481] : memref<3x8x128xf32, #tpu.memory_space<vmem>>, vector<1x8x128xf32>
    %1009 = vector.shape_cast %1008 : vector<1x8x128xf32> to vector<8x128xf32>
    %1010 = arith.mulf %999, %1009 : vector<8x128xf32>
    %1011 = arith.mulf %993, %1001 : vector<8x128xf32>
    %1012 = arith.addf %1010, %1011 : vector<8x128xf32>
    %1013 = math.tanh %1012 : vector<8x128xf32>
    %1014 = arith.mulf %1007, %1013 : vector<8x128xf32>
    %c1_482 = arith.constant 1 : index
    %c0_483 = arith.constant 0 : index
    %c0_484 = arith.constant 0 : index
    %1015 = vector.load %arg12[%c1_482, %c0_483, %c0_484] : memref<3x8x128xf32, #tpu.memory_space<vmem>>, vector<1x8x128xf32>
    %1016 = vector.shape_cast %1015 : vector<1x8x128xf32> to vector<8x128xf32>
    %1017 = vector.shape_cast %1014 : vector<8x128xf32> to vector<1x8x128xf32>
    tpu.vector_store %arg12[%c1_482, %c0_483, %c0_484], %1017 {strides = array<i32>} : memref<3x8x128xf32, #tpu.memory_space<vmem>>, vector<1x8x128xf32>,
    %c1_485 = arith.constant 1 : index
    %c0_486 = arith.constant 0 : index
    %c0_487 = arith.constant 0 : index
    %1018 = vector.load %arg13[%c1_485, %c0_486, %c0_487] : memref<3x8x128xf32, #tpu.memory_space<vmem>>, vector<1x8x128xf32>
    %1019 = vector.shape_cast %1018 : vector<1x8x128xf32> to vector<8x128xf32>
    %1020 = vector.shape_cast %1012 : vector<8x128xf32> to vector<1x8x128xf32>
    tpu.vector_store %arg13[%c1_485, %c0_486, %c0_487], %1020 {strides = array<i32>} : memref<3x8x128xf32, #tpu.memory_space<vmem>>, vector<1x8x128xf32>,
    %c2_488 = arith.constant 2 : index
    %c0_489 = arith.constant 0 : index
    %c0_490 = arith.constant 0 : index
    %1021 = vector.load %arg12[%c2_488, %c0_489, %c0_490] : memref<3x8x128xf32, #tpu.memory_space<vmem>>, vector<1x8x128xf32>
    %1022 = vector.shape_cast %1021 : vector<1x8x128xf32> to vector<8x128xf32>
    %1023 = tpu.concatenate %1014, %1022 in 1 : vector<8x128xf32>, vector<8x128xf32> -> vector<8x256xf32>
    %1024 = arith.truncf %1023 : vector<8x256xf32> to vector<8x256xbf16>
    %c0_491 = arith.constant 0 : index
    %c0_492 = arith.constant 0 : index
    %1025 = vector.load %arg7[%c0_491, %c0_492] : memref<256x512xbf16, #tpu.memory_space<vmem>>, vector<256x512xbf16>
    %cst_493 = arith.constant dense<0.000000e+00> : vector<8x512xf32>
    %1026 = tpu.matmul %1024, %1025, %cst_493 {dimension_numbers = #tpu.dot_dimension_numbers<[1], [0], [0], [1], [0, 0, 1, 1], [], []>} : vector<8x256xbf16>, vector<256x512xbf16>, vector<8x512xf32> -> vector<8x512xf32>
    %c0_494 = arith.constant 0 : index
    %c0_495 = arith.constant 0 : index
    %1027 = vector.load %arg8[%c0_494, %c0_495] : memref<1x512xf32, #tpu.memory_space<vmem>>, vector<1x512xf32>
    %1028 = vector.broadcast %1027 : vector<1x512xf32> to vector<8x512xf32>
    %1029 = arith.addf %1026, %1028 : vector<8x512xf32>
    %1030 = vector.extract_strided_slice %1029 {offsets = [0, 0], sizes = [8, 128], strides = [1, 1]} : vector<8x512xf32> to vector<8x128xf32>
    %1031 = arith.negf %1030 : vector<8x128xf32>
    %1032 = math.exp %1031 : vector<8x128xf32>
    %cst_496 = arith.constant 1.000000e+00 : f32
    %1033 = vector.broadcast %cst_496 : f32 to vector<8x128xf32>
    %1034 = arith.addf %1033, %1032 : vector<8x128xf32>
    %1035 = arith.divf %1033, %1034 : vector<8x128xf32>
    %1036 = vector.extract_strided_slice %1029 {offsets = [0, 128], sizes = [8, 128], strides = [1, 1]} : vector<8x512xf32> to vector<8x128xf32>
    %1037 = arith.negf %1036 : vector<8x128xf32>
    %1038 = math.exp %1037 : vector<8x128xf32>
    %cst_497 = arith.constant 1.000000e+00 : f32
    %1039 = vector.broadcast %cst_497 : f32 to vector<8x128xf32>
    %1040 = arith.addf %1039, %1038 : vector<8x128xf32>
    %1041 = arith.divf %1039, %1040 : vector<8x128xf32>
    %1042 = vector.extract_strided_slice %1029 {offsets = [0, 256], sizes = [8, 128], strides = [1, 1]} : vector<8x512xf32> to vector<8x128xf32>
    %1043 = math.tanh %1042 : vector<8x128xf32>
    %1044 = vector.extract_strided_slice %1029 {offsets = [0, 384], sizes = [8, 128], strides = [1, 1]} : vector<8x512xf32> to vector<8x128xf32>
    %1045 = arith.negf %1044 : vector<8x128xf32>
    %1046 = math.exp %1045 : vector<8x128xf32>
    %cst_498 = arith.constant 1.000000e+00 : f32
    %1047 = vector.broadcast %cst_498 : f32 to vector<8x128xf32>
    %1048 = arith.addf %1047, %1046 : vector<8x128xf32>
    %1049 = arith.divf %1047, %1048 : vector<8x128xf32>
    %c2_499 = arith.constant 2 : index
    %c0_500 = arith.constant 0 : index
    %c0_501 = arith.constant 0 : index
    %1050 = vector.load %arg13[%c2_499, %c0_500, %c0_501] : memref<3x8x128xf32, #tpu.memory_space<vmem>>, vector<1x8x128xf32>
    %1051 = vector.shape_cast %1050 : vector<1x8x128xf32> to vector<8x128xf32>
    %1052 = arith.mulf %1041, %1051 : vector<8x128xf32>
    %1053 = arith.mulf %1035, %1043 : vector<8x128xf32>
    %1054 = arith.addf %1052, %1053 : vector<8x128xf32>
    %1055 = math.tanh %1054 : vector<8x128xf32>
    %1056 = arith.mulf %1049, %1055 : vector<8x128xf32>
    %c2_502 = arith.constant 2 : index
    %c0_503 = arith.constant 0 : index
    %c0_504 = arith.constant 0 : index
    %1057 = vector.load %arg12[%c2_502, %c0_503, %c0_504] : memref<3x8x128xf32, #tpu.memory_space<vmem>>, vector<1x8x128xf32>
    %1058 = vector.shape_cast %1057 : vector<1x8x128xf32> to vector<8x128xf32>
    %1059 = vector.shape_cast %1056 : vector<8x128xf32> to vector<1x8x128xf32>
    tpu.vector_store %arg12[%c2_502, %c0_503, %c0_504], %1059 {strides = array<i32>} : memref<3x8x128xf32, #tpu.memory_space<vmem>>, vector<1x8x128xf32>,
    %c2_505 = arith.constant 2 : index
    %c0_506 = arith.constant 0 : index
    %c0_507 = arith.constant 0 : index
    %1060 = vector.load %arg13[%c2_505, %c0_506, %c0_507] : memref<3x8x128xf32, #tpu.memory_space<vmem>>, vector<1x8x128xf32>
    %1061 = vector.shape_cast %1060 : vector<1x8x128xf32> to vector<8x128xf32>
    %1062 = vector.shape_cast %1054 : vector<8x128xf32> to vector<1x8x128xf32>
    tpu.vector_store %arg13[%c2_505, %c0_506, %c0_507], %1062 {strides = array<i32>} : memref<3x8x128xf32, #tpu.memory_space<vmem>>, vector<1x8x128xf32>,
    %1063 = arith.index_cast %c7_i32 : i32 to index
    %c0_508 = arith.constant 0 : index
    %c0_509 = arith.constant 0 : index
    %1064 = vector.load %arg9[%1063, %c0_508, %c0_509] : memref<8x8x128xf32, #tpu.memory_space<vmem>>, vector<1x8x128xf32>
    %1065 = vector.shape_cast %1064 : vector<1x8x128xf32> to vector<8x128xf32>
    %1066 = vector.shape_cast %1056 : vector<8x128xf32> to vector<1x8x128xf32>
    tpu.vector_store %arg9[%1063, %c0_508, %c0_509], %1066 {strides = array<i32>} : memref<8x8x128xf32, #tpu.memory_space<vmem>>, vector<1x8x128xf32>,
    %c8_i32 = arith.constant 8 : i32
    %c1_i32_510 = arith.constant 1 : i32
    %1067 = arith.cmpi eq, %arg1, %c1_i32_510 : i32
    %1068 = arith.extui %1067 : i1 to i32
    %c0_i32_511 = arith.constant 0 : i32
    %1069 = arith.cmpi ne, %1068, %c0_i32_511 : i32
    scf.if %1069 {
      %c0_512 = arith.constant 0 : index
      %c0_513 = arith.constant 0 : index
      %c0_514 = arith.constant 0 : index
      %1070 = vector.load %arg12[%c0_512, %c0_513, %c0_514] : memref<3x8x128xf32, #tpu.memory_space<vmem>>, vector<3x8x128xf32>
      %c0_515 = arith.constant 0 : index
      %c0_516 = arith.constant 0 : index
      %c0_517 = arith.constant 0 : index
      %1071 = vector.load %arg10[%c0_515, %c0_516, %c0_517] : memref<3x8x128xf32, #tpu.memory_space<vmem>>, vector<3x8x128xf32>
      tpu.vector_store %arg10[%c0_515, %c0_516, %c0_517], %1070 {strides = array<i32>} : memref<3x8x128xf32, #tpu.memory_space<vmem>>, vector<3x8x128xf32>,
      %c0_518 = arith.constant 0 : index
      %c0_519 = arith.constant 0 : index
      %c0_520 = arith.constant 0 : index
      %1072 = vector.load %arg13[%c0_518, %c0_519, %c0_520] : memref<3x8x128xf32, #tpu.memory_space<vmem>>, vector<3x8x128xf32>
      %c0_521 = arith.constant 0 : index
      %c0_522 = arith.constant 0 : index
      %c0_523 = arith.constant 0 : index
      %1073 = vector.load %arg11[%c0_521, %c0_522, %c0_523] : memref<3x8x128xf32, #tpu.memory_space<vmem>>, vector<3x8x128xf32>
      tpu.vector_store %arg11[%c0_521, %c0_522, %c0_523], %1072 {strides = array<i32>} : memref<3x8x128xf32, #tpu.memory_space<vmem>>, vector<3x8x128xf32>,
    } else {
    }
    return
  }
  func.func @transform_0(%arg0: i32, %arg1: i32) -> (i32, i32, i32) {
    %c0_i32 = arith.constant 0 : i32
    %c0_i32_0 = arith.constant 0 : i32
    return %arg1, %arg0, %c0_i32 : i32, i32, i32
  }
  func.func @transform_1(%arg0: i32, %arg1: i32) -> (i32, i32) {
    %c0_i32 = arith.constant 0 : i32
    %c0_i32_0 = arith.constant 0 : i32
    %c0_i32_1 = arith.constant 0 : i32
    return %c0_i32, %c0_i32_0 : i32, i32
  }
  func.func @transform_2(%arg0: i32, %arg1: i32) -> (i32, i32) {
    %c0_i32 = arith.constant 0 : i32
    %c0_i32_0 = arith.constant 0 : i32
    %c0_i32_1 = arith.constant 0 : i32
    return %c0_i32, %c0_i32_0 : i32, i32
  }
  func.func @transform_3(%arg0: i32, %arg1: i32) -> (i32, i32) {
    %c0_i32 = arith.constant 0 : i32
    %c0_i32_0 = arith.constant 0 : i32
    %c0_i32_1 = arith.constant 0 : i32
    return %c0_i32, %c0_i32_0 : i32, i32
  }
  func.func @transform_4(%arg0: i32, %arg1: i32) -> (i32, i32) {
    %c0_i32 = arith.constant 0 : i32
    %c0_i32_0 = arith.constant 0 : i32
    %c0_i32_1 = arith.constant 0 : i32
    return %c0_i32, %c0_i32_0 : i32, i32
  }
  func.func @transform_5(%arg0: i32, %arg1: i32) -> (i32, i32) {
    %c0_i32 = arith.constant 0 : i32
    %c0_i32_0 = arith.constant 0 : i32
    %c0_i32_1 = arith.constant 0 : i32
    return %c0_i32, %c0_i32_0 : i32, i32
  }
  func.func @transform_6(%arg0: i32, %arg1: i32) -> (i32, i32) {
    %c0_i32 = arith.constant 0 : i32
    %c0_i32_0 = arith.constant 0 : i32
    %c0_i32_1 = arith.constant 0 : i32
    return %c0_i32, %c0_i32_0 : i32, i32
  }
  func.func @transform_7(%arg0: i32, %arg1: i32) -> (i32, i32, i32) {
    %c0_i32 = arith.constant 0 : i32
    %c0_i32_0 = arith.constant 0 : i32
    return %arg1, %arg0, %c0_i32 : i32, i32, i32
  }
  func.func @transform_8(%arg0: i32, %arg1: i32) -> (i32, i32, i32) {
    %c0_i32 = arith.constant 0 : i32
    %c0_i32_0 = arith.constant 0 : i32
    %c0_i32_1 = arith.constant 0 : i32
    return %c0_i32, %arg0, %c0_i32_0 : i32, i32, i32
  }
  func.func @transform_9(%arg0: i32, %arg1: i32) -> (i32, i32, i32) {
    %c0_i32 = arith.constant 0 : i32
    %c0_i32_0 = arith.constant 0 : i32
    %c0_i32_1 = arith.constant 0 : i32
    return %c0_i32, %arg0, %c0_i32_0 : i32, i32, i32
  }
}

</mosaic_0001>

<bundles_post_ra>
// kernel: poetry_model_forward.3
= control target key start
LH: loop header
LB: loop body
LE: loop exit
PB: predicated region body
PF: predicated region fallthrough
CT: control target
= control target key end

     0   :  { %v722_v2 = vmov 0   ;;  %s960_s0 = inlined_call_operand.vmem [shape: bf16[128,128], index: 0, kind: input, shape index: {}]   ;;  %s961_s1 = inlined_call_operand.vmem [shape: bf16[128,512], index: 1, kind: input, shape index: {}]   ;;  %s962_s2 = inlined_call_operand.vmem [shape: f32[1,512], index: 2, kind: input, shape index: {}]   ;;  %s963_s3 = inlined_call_operand.hbm [shape: f32[128,512], index: 3, kind: output, shape index: {}]  }
   0x1   :  { %v644_v0 = vld [vmem:[%s961_s1 + $0xe4] ss:$16 sps:$4 sm:$0xff]   ;;  %v646_v1 = vld [vmem:[%s961_s1 + $0xec] ss:$16 sps:$4 sm:$0xff]   ;;  %326 = vmatprep.mubr.bf16.mxu0 %v722_v2  ;;  %439 = vmatprep.mubr.bf16.mxu1 %v722_v2  ;;  %v648_v3 = vld [vmem:[%s961_s1 + $0xe0] ss:$16 sps:$4 sm:$0xff]  }
   0x2   :  { %294 = vmatprep.subr.bf16.mxu0 %v644_v0  ;;  %v649_v4 = vld [vmem:[%s961_s1 + $0xe8] ss:$16 sps:$4 sm:$0xff]   ;;  %407 = vmatprep.subr.bf16.mxu1 %v646_v1  ;;  %v650_v5 = vld [vmem:[%s961_s1 + $0xc4] ss:$16 sps:$4 sm:$0xff]   ;;  %v652_v6 = vld [vmem:[%s961_s1 + $0xcc] ss:$16 sps:$4 sm:$0xff]  }
   0x3   :  { %295 = vmatpush1.bf16.msra.mxu0 %v648_v3  ;;  %408 = vmatpush1.bf16.msra.mxu1 %v649_v4  ;;  %v654_v7 = vld [vmem:[%s961_s1 + $0xc0] ss:$16 sps:$4 sm:$0xff]   ;;  %v655_v8 = vld [vmem:[%s961_s1 + $0xc8] ss:$16 sps:$4 sm:$0xff]   ;;  %v656_v9 = vld [vmem:[%s961_s1 + $0xa4] ss:$16 sps:$4 sm:$0xff]  }
   0x4   :  { %296 = vmatprep.subr.bf16.mxu0 %v650_v5  ;;  %409 = vmatprep.subr.bf16.mxu1 %v652_v6  ;;  %v658_v10 = vld [vmem:[%s961_s1 + $0xac] ss:$16 sps:$4 sm:$0xff]   ;;  %v660_v11 = vld [vmem:[%s961_s1 + $0xa0] ss:$16 sps:$4 sm:$0xff]   ;;  %v661_v12 = vld [vmem:[%s961_s1 + $0xa8] ss:$16 sps:$4 sm:$0xff]  }
   0x5   :  { %v662_v13 = vld [vmem:[%s961_s1 + $0x84] ss:$16 sps:$4 sm:$0xff]   ;;  %v664_v14 = vld [vmem:[%s961_s1 + $0x8c] ss:$16 sps:$4 sm:$0xff]   ;;  %v666_v15 = vld [vmem:[%s961_s1 + $0x80] ss:$16 sps:$4 sm:$0xff]  }
   0x6   :  { %v667_v16 = vld [vmem:[%s961_s1 + $0x88] ss:$16 sps:$4 sm:$0xff]   ;;  %v668_v17 = vld [vmem:[%s961_s1 + $0x64] ss:$16 sps:$4 sm:$0xff]   ;;  %v670_v18 = vld [vmem:[%s961_s1 + $0x6c] ss:$16 sps:$4 sm:$0xff]  }
   0x7   :  { %297 = vmatpush1.bf16.msra.mxu0 %v654_v7  ;;  %410 = vmatpush1.bf16.msra.mxu1 %v655_v8  ;;  %v672_v19 = vld [vmem:[%s961_s1 + $0x60] ss:$16 sps:$4 sm:$0xff]   ;;  %v673_v20 = vld [vmem:[%s961_s1 + $0x68] ss:$16 sps:$4 sm:$0xff]   ;;  %v674_v21 = vld [vmem:[%s961_s1 + $0x44] ss:$16 sps:$4 sm:$0xff]  }
   0x8   :  { %298 = vmatprep.subr.bf16.mxu0 %v656_v9  ;;  %411 = vmatprep.subr.bf16.mxu1 %v658_v10  ;;  %v676_v22 = vld [vmem:[%s961_s1 + $0x4c] ss:$16 sps:$4 sm:$0xff]   ;;  %v678_v23 = vld [vmem:[%s961_s1 + $0x40] ss:$16 sps:$4 sm:$0xff]   ;;  %v679_v24 = vld [vmem:[%s961_s1 + $0x48] ss:$16 sps:$4 sm:$0xff]  }
   0x9   :  { %v680_v25 = vld [vmem:[%s961_s1 + $0x24] ss:$16 sps:$4 sm:$0xff]   ;;  %v682_v26 = vld [vmem:[%s961_s1 + $0x2c] ss:$16 sps:$4 sm:$0xff]   ;;  %v684_v27 = vld [vmem:[%s961_s1 + $0x20] ss:$16 sps:$4 sm:$0xff]  }
   0xa   :  { %v685_v28 = vld [vmem:[%s961_s1 + $0x28] ss:$16 sps:$4 sm:$0xff]   ;;  %v686_v29 = vld [vmem:[%s961_s1 + $0x4] ss:$16 sps:$4 sm:$0xff]   ;;  %v688_v30 = vld [vmem:[%s961_s1 + $0xc] ss:$16 sps:$4 sm:$0xff]  }
   0xb   :  { %299 = vmatpush1.bf16.msra.mxu0 %v660_v11  ;;  %412 = vmatpush1.bf16.msra.mxu1 %v661_v12  ;;  %v690_v31 = vld [vmem:[%s961_s1] ss:$16 sps:$4 sm:$0xff]   ;;  %v691_v32 = vld [vmem:[%s961_s1 + $0x8] ss:$16 sps:$4 sm:$0xff]  }
   0xc   :  { %300 = vmatprep.subr.bf16.mxu0 %v662_v13  ;;  %413 = vmatprep.subr.bf16.mxu1 %v664_v14 }
   0xf   :  { %301 = vmatpush1.bf16.msra.mxu0 %v666_v15  ;;  %414 = vmatpush1.bf16.msra.mxu1 %v667_v16 }
  0x10   :  { %302 = vmatprep.subr.bf16.mxu0 %v668_v17  ;;  %415 = vmatprep.subr.bf16.mxu1 %v670_v18 }
  0x13   :  { %303 = vmatpush1.bf16.msra.mxu0 %v672_v19  ;;  %416 = vmatpush1.bf16.msra.mxu1 %v673_v20 }
  0x14   :  { %304 = vmatprep.subr.bf16.mxu0 %v674_v21  ;;  %417 = vmatprep.subr.bf16.mxu1 %v676_v22 }
  0x17   :  { %305 = vmatpush1.bf16.msra.mxu0 %v678_v23  ;;  %418 = vmatpush1.bf16.msra.mxu1 %v679_v24 }
  0x18   :  { %306 = vmatprep.subr.bf16.mxu0 %v680_v25  ;;  %419 = vmatprep.subr.bf16.mxu1 %v682_v26 }
  0x1b   :  { %307 = vmatpush1.bf16.msra.mxu0 %v684_v27  ;;  %420 = vmatpush1.bf16.msra.mxu1 %v685_v28 }
  0x1c   :  { %308 = vmatprep.subr.bf16.mxu0 %v686_v29  ;;  %421 = vmatprep.subr.bf16.mxu1 %v688_v30 }
  0x1d   :  { %8 = vsyncpa [#allocation3], 0  ;;  %v692_v33 = vld [vmem:[%s960_s0] sm:$0xff]   ;;  %v693_v34 = vld [vmem:[%s960_s0 + $0x8] sm:$0xff]   ;;  %v66_v41 = vlaneseq }
  0x1e   :  { %v694_v35 = vld [vmem:[%s960_s0 + $0x10] sm:$0xff]   ;;  %v695_v36 = vld [vmem:[%s960_s0 + $0x18] sm:$0xff]   ;;  %v696_v37 = vld [vmem:[%s960_s0 + $0x20] sm:$0xff]  }
  0x1f   :  { %309 = vmatpush1.bf16.msra.mxu0 %v690_v31  ;;  %422 = vmatpush1.bf16.msra.mxu1 %v691_v32  ;;  %v697_v38 = vld [vmem:[%s960_s0 + $0x28] sm:$0xff]   ;;  %v698_v39 = vld [vmem:[%s960_s0 + $0x30] sm:$0xff]   ;;  %v699_v40 = vld [vmem:[%s960_s0 + $0x38] sm:$0xff]   ;;  %v67_v42 = vshrl.u32 %v66_v41, 7  ;;  %s723_s0 = smov [#allocation2]  }
  0x20   :  { %v64_v45 = vld [vmem:[%s962_s2] sm:$0xf]  ;;  %s589_s2 = sshll.u32 %s723_s0, 4  ;;  %s590_s2 = int_to_ptr.vmem [resolvable:$true] %s589_s2 }
  0x21   :  { %v68_v43 = vsub.s32 0, %v67_v42  ;;  %v76_v44 = vsub.s32 2, %v67_v42  ;;  %v72_v46 = vsub.s32 1, %v67_v42  ;;  %v80_v47 = vsub.s32 3, %v67_v42  ;;  %s700_s12 = scalar_lea.vmem %s590_s2, 8192  ;;  %p705_p1 = scmp.lt.s32.totalorder %s590_s2, %s590_s2 }
  0x22   :  { %327 = vmatmul.mubr.bf16.vlgmr.msra.gmra.mxu0 %v692_v33  ;;  %440 = vmatmul.mubr.bf16.vlgmr.msra.gmra.mxu1 %v692_v33  ;;  %p701_p0 = scmp.ne.s32.totalorder %s590_s2, %s700_s12  ;;  %p706_p2 = scmp.lt.s32.totalorder %s700_s12, %s700_s12 }
  0x23   :  { %336 = vmatprep.mubr.bf16.mxu0 %v722_v2  ;;  %449 = vmatprep.mubr.bf16.mxu1 %v722_v2  ;;  %v885_v48 = vrot.slane %v64_v45, %v68_v43  ;;  %v887_v49 = vrot.slane %v64_v45, %v76_v44  ;;  %v889_v50 = vrot.slane %v64_v45, %v72_v46 }
  0x24   :  { %v891_v51 = vrot.slane %v64_v45, %v80_v47  ;;  %p707_p3 = por %p706_p2, %p705_p1 }
  0x26   :  { %p708_p4 = pnand %p707_p3, %p701_p0 }
  0x2a   :  { %337 = vmatmul.mubr.bf16.gmra.mxu0 %v693_v34  ;;  %450 = vmatmul.mubr.bf16.gmra.mxu1 %v693_v34 }
  0x2b   :  { %346 = vmatprep.mubr.bf16.mxu0 %v722_v2  ;;  %459 = vmatprep.mubr.bf16.mxu1 %v722_v2 }
  0x32   :  { %347 = vmatmul.mubr.bf16.gmra.mxu0 %v694_v35  ;;  %460 = vmatmul.mubr.bf16.gmra.mxu1 %v694_v35 }
  0x33   :  { %356 = vmatprep.mubr.bf16.mxu0 %v722_v2  ;;  %469 = vmatprep.mubr.bf16.mxu1 %v722_v2 }
  0x3a   :  { %357 = vmatmul.mubr.bf16.gmra.mxu0 %v695_v36  ;;  %470 = vmatmul.mubr.bf16.gmra.mxu1 %v695_v36 }
  0x3b   :  { %366 = vmatprep.mubr.bf16.mxu0 %v722_v2  ;;  %479 = vmatprep.mubr.bf16.mxu1 %v722_v2 }
  0x42   :  { %367 = vmatmul.mubr.bf16.gmra.mxu0 %v696_v37  ;;  %480 = vmatmul.mubr.bf16.gmra.mxu1 %v696_v37 }
  0x43   :  { %376 = vmatprep.mubr.bf16.mxu0 %v722_v2  ;;  %489 = vmatprep.mubr.bf16.mxu1 %v722_v2 }
  0x4a   :  { %377 = vmatmul.mubr.bf16.gmra.mxu0 %v697_v38  ;;  %490 = vmatmul.mubr.bf16.gmra.mxu1 %v697_v38 }
  0x4b   :  { %386 = vmatprep.mubr.bf16.mxu0 %v722_v2  ;;  %499 = vmatprep.mubr.bf16.mxu1 %v722_v2 }
  0x52   :  { %387 = vmatmul.mubr.bf16.gmra.mxu0 %v698_v39  ;;  %500 = vmatmul.mubr.bf16.gmra.mxu1 %v698_v39 }
  0x53   :  { %396 = vmatprep.mubr.bf16.mxu0 %v722_v2  ;;  %509 = vmatprep.mubr.bf16.mxu1 %v722_v2 }
  0x5a   :  { %397 = vmatmul.mubr.bf16.gmra.mxu0 %v699_v40  ;;  %510 = vmatmul.mubr.bf16.gmra.mxu1 %v699_v40 }
  0xe2   :  { %v328_v52 = vpop.f32.mrf.mxu0  ;;  %v441_v53 = vpop.f32.mrf.mxu1 }
  0xe3   :  { %v329_v54 = vadd.f32 %v328_v52, %v885_v48  ;;  %v442_v55 = vadd.f32 %v441_v53, %v887_v49 }
  0xe4   :  { %v330_v56 = vpop.f32.mrf.mxu0  ;;  %v443_v57 = vpop.f32.mrf.mxu1 }
  0xe5   :  { %520 = vst [vmem:[#allocation2] sm:$0xff] %v329_v54  ;;  %522 = vst [vmem:[#allocation2 + $0x10] sm:$0xff] %v442_v55  ;;  %v331_v58 = vadd.f32 %v330_v56, %v889_v50  ;;  %v444_v59 = vadd.f32 %v443_v57, %v891_v51 }
  0xe6   :  { %v332_v60 = vpop.f32.mrf.mxu0  ;;  %v445_v61 = vpop.f32.mrf.mxu1 }
  0xe7   :  { %521 = vst [vmem:[#allocation2 + $0x8] sm:$0xff] %v331_v58  ;;  %523 = vst [vmem:[#allocation2 + $0x18] sm:$0xff] %v444_v59  ;;  %v333_v62 = vadd.f32 %v332_v60, %v885_v48  ;;  %v446_v63 = vadd.f32 %v445_v61, %v887_v49 }
  0xe8   :  { %v334_v0 = vpop.f32.mrf.mxu0  ;;  %v447_v1 = vpop.f32.mrf.mxu1 }
  0xe9   :  { %524 = vst [vmem:[#allocation2 + $0x20] sm:$0xff] %v333_v62  ;;  %526 = vst [vmem:[#allocation2 + $0x30] sm:$0xff] %v446_v63  ;;  %v335_v2 = vadd.f32 %v334_v0, %v889_v50  ;;  %v448_v3 = vadd.f32 %v447_v1, %v891_v51 }
  0xea   :  { %v338_v4 = vpop.f32.mrf.mxu0  ;;  %v451_v5 = vpop.f32.mrf.mxu1 }
  0xeb   :  { %525 = vst [vmem:[#allocation2 + $0x28] sm:$0xff] %v335_v2  ;;  %527 = vst [vmem:[#allocation2 + $0x38] sm:$0xff] %v448_v3  ;;  %v339_v6 = vadd.f32 %v338_v4, %v885_v48  ;;  %v452_v7 = vadd.f32 %v451_v5, %v887_v49 }
  0xec   :  { %v340_v8 = vpop.f32.mrf.mxu0  ;;  %v453_v9 = vpop.f32.mrf.mxu1 }
  0xed   :  { %528 = vst [vmem:[#allocation2 + $0x40] sm:$0xff] %v339_v6  ;;  %530 = vst [vmem:[#allocation2 + $0x50] sm:$0xff] %v452_v7  ;;  %v341_v10 = vadd.f32 %v340_v8, %v889_v50  ;;  %v454_v11 = vadd.f32 %v453_v9, %v891_v51 }
  0xee   :  { %v342_v12 = vpop.f32.mrf.mxu0  ;;  %v455_v13 = vpop.f32.mrf.mxu1 }
  0xef   :  { %529 = vst [vmem:[#allocation2 + $0x48] sm:$0xff] %v341_v10  ;;  %531 = vst [vmem:[#allocation2 + $0x58] sm:$0xff] %v454_v11  ;;  %v343_v14 = vadd.f32 %v342_v12, %v885_v48  ;;  %v456_v15 = vadd.f32 %v455_v13, %v887_v49 }
  0xf0   :  { %v344_v16 = vpop.f32.mrf.mxu0  ;;  %v457_v17 = vpop.f32.mrf.mxu1 }
  0xf1   :  { %532 = vst [vmem:[#allocation2 + $0x60] sm:$0xff] %v343_v14  ;;  %534 = vst [vmem:[#allocation2 + $0x70] sm:$0xff] %v456_v15  ;;  %v345_v18 = vadd.f32 %v344_v16, %v889_v50  ;;  %v458_v19 = vadd.f32 %v457_v17, %v891_v51 }
  0xf2   :  { %v348_v20 = vpop.f32.mrf.mxu0  ;;  %v461_v21 = vpop.f32.mrf.mxu1 }
  0xf3   :  { %533 = vst [vmem:[#allocation2 + $0x68] sm:$0xff] %v345_v18  ;;  %535 = vst [vmem:[#allocation2 + $0x78] sm:$0xff] %v458_v19  ;;  %v349_v22 = vadd.f32 %v348_v20, %v885_v48  ;;  %v462_v23 = vadd.f32 %v461_v21, %v887_v49 }
  0xf4   :  { %v350_v24 = vpop.f32.mrf.mxu0  ;;  %v463_v25 = vpop.f32.mrf.mxu1 }
  0xf5   :  { %536 = vst [vmem:[#allocation2 + $0x80] sm:$0xff] %v349_v22  ;;  %538 = vst [vmem:[#allocation2 + $0x90] sm:$0xff] %v462_v23  ;;  %v351_v26 = vadd.f32 %v350_v24, %v889_v50  ;;  %v464_v27 = vadd.f32 %v463_v25, %v891_v51 }
  0xf6   :  { %v352_v28 = vpop.f32.mrf.mxu0  ;;  %v465_v29 = vpop.f32.mrf.mxu1 }
  0xf7   :  { %537 = vst [vmem:[#allocation2 + $0x88] sm:$0xff] %v351_v26  ;;  %539 = vst [vmem:[#allocation2 + $0x98] sm:$0xff] %v464_v27  ;;  %v353_v30 = vadd.f32 %v352_v28, %v885_v48  ;;  %v466_v31 = vadd.f32 %v465_v29, %v887_v49 }
  0xf8   :  { %v354_v32 = vpop.f32.mrf.mxu0  ;;  %v467_v33 = vpop.f32.mrf.mxu1 }
  0xf9   :  { %540 = vst [vmem:[#allocation2 + $0xa0] sm:$0xff] %v353_v30  ;;  %542 = vst [vmem:[#allocation2 + $0xb0] sm:$0xff] %v466_v31  ;;  %v355_v34 = vadd.f32 %v354_v32, %v889_v50  ;;  %v468_v35 = vadd.f32 %v467_v33, %v891_v51 }
  0xfa   :  { %v358_v36 = vpop.f32.mrf.mxu0  ;;  %v471_v37 = vpop.f32.mrf.mxu1 }
  0xfb   :  { %541 = vst [vmem:[#allocation2 + $0xa8] sm:$0xff] %v355_v34  ;;  %543 = vst [vmem:[#allocation2 + $0xb8] sm:$0xff] %v468_v35  ;;  %v359_v38 = vadd.f32 %v358_v36, %v885_v48  ;;  %v472_v39 = vadd.f32 %v471_v37, %v887_v49 }
  0xfc   :  { %v360_v40 = vpop.f32.mrf.mxu0  ;;  %v473_v41 = vpop.f32.mrf.mxu1 }
  0xfd   :  { %544 = vst [vmem:[#allocation2 + $0xc0] sm:$0xff] %v359_v38  ;;  %546 = vst [vmem:[#allocation2 + $0xd0] sm:$0xff] %v472_v39  ;;  %v361_v42 = vadd.f32 %v360_v40, %v889_v50  ;;  %v474_v43 = vadd.f32 %v473_v41, %v891_v51 }
  0xfe   :  { %v362_v44 = vpop.f32.mrf.mxu0  ;;  %v475_v45 = vpop.f32.mrf.mxu1 }
  0xff   :  { %545 = vst [vmem:[#allocation2 + $0xc8] sm:$0xff] %v361_v42  ;;  %547 = vst [vmem:[#allocation2 + $0xd8] sm:$0xff] %v474_v43  ;;  %v363_v46 = vadd.f32 %v362_v44, %v885_v48  ;;  %v476_v47 = vadd.f32 %v475_v45, %v887_v49 }
 0x100   :  { %v364_v52 = vpop.f32.mrf.mxu0  ;;  %v477_v53 = vpop.f32.mrf.mxu1 }
 0x101   :  { %548 = vst [vmem:[#allocation2 + $0xe0] sm:$0xff] %v363_v46  ;;  %550 = vst [vmem:[#allocation2 + $0xf0] sm:$0xff] %v476_v47  ;;  %v365_v54 = vadd.f32 %v364_v52, %v889_v50  ;;  %v478_v55 = vadd.f32 %v477_v53, %v891_v51 }
 0x102   :  { %v368_v56 = vpop.f32.mrf.mxu0  ;;  %v481_v57 = vpop.f32.mrf.mxu1 }
 0x103   :  { %549 = vst [vmem:[#allocation2 + $0xe8] sm:$0xff] %v365_v54  ;;  %551 = vst [vmem:[#allocation2 + $0xf8] sm:$0xff] %v478_v55  ;;  %v369_v58 = vadd.f32 %v368_v56, %v885_v48  ;;  %v482_v59 = vadd.f32 %v481_v57, %v887_v49 }
 0x104   :  { %v370_v60 = vpop.f32.mrf.mxu0  ;;  %v483_v61 = vpop.f32.mrf.mxu1 }
 0x105   :  { %552 = vst [vmem:[#allocation2 + $0x100] sm:$0xff] %v369_v58  ;;  %554 = vst [vmem:[#allocation2 + $0x110] sm:$0xff] %v482_v59  ;;  %v371_v62 = vadd.f32 %v370_v60, %v889_v50  ;;  %v484_v63 = vadd.f32 %v483_v61, %v891_v51 }
 0x106   :  { %v372_v0 = vpop.f32.mrf.mxu0  ;;  %v485_v1 = vpop.f32.mrf.mxu1 }
 0x107   :  { %553 = vst [vmem:[#allocation2 + $0x108] sm:$0xff] %v371_v62  ;;  %555 = vst [vmem:[#allocation2 + $0x118] sm:$0xff] %v484_v63  ;;  %v373_v2 = vadd.f32 %v372_v0, %v885_v48  ;;  %v486_v3 = vadd.f32 %v485_v1, %v887_v49 }
 0x108   :  { %v374_v4 = vpop.f32.mrf.mxu0  ;;  %v487_v5 = vpop.f32.mrf.mxu1 }
 0x109   :  { %556 = vst [vmem:[#allocation2 + $0x120] sm:$0xff] %v373_v2  ;;  %558 = vst [vmem:[#allocation2 + $0x130] sm:$0xff] %v486_v3  ;;  %v375_v6 = vadd.f32 %v374_v4, %v889_v50  ;;  %v488_v7 = vadd.f32 %v487_v5, %v891_v51 }
 0x10a   :  { %v378_v8 = vpop.f32.mrf.mxu0  ;;  %v491_v9 = vpop.f32.mrf.mxu1 }
 0x10b   :  { %557 = vst [vmem:[#allocation2 + $0x128] sm:$0xff] %v375_v6  ;;  %559 = vst [vmem:[#allocation2 + $0x138] sm:$0xff] %v488_v7  ;;  %v379_v10 = vadd.f32 %v378_v8, %v885_v48  ;;  %v492_v11 = vadd.f32 %v491_v9, %v887_v49 }
 0x10c   :  { %v380_v12 = vpop.f32.mrf.mxu0  ;;  %v493_v13 = vpop.f32.mrf.mxu1 }
 0x10d   :  { %560 = vst [vmem:[#allocation2 + $0x140] sm:$0xff] %v379_v10  ;;  %562 = vst [vmem:[#allocation2 + $0x150] sm:$0xff] %v492_v11  ;;  %v381_v14 = vadd.f32 %v380_v12, %v889_v50  ;;  %v494_v15 = vadd.f32 %v493_v13, %v891_v51 }
 0x10e   :  { %v382_v16 = vpop.f32.mrf.mxu0  ;;  %v495_v17 = vpop.f32.mrf.mxu1 }
 0x10f   :  { %561 = vst [vmem:[#allocation2 + $0x148] sm:$0xff] %v381_v14  ;;  %563 = vst [vmem:[#allocation2 + $0x158] sm:$0xff] %v494_v15  ;;  %v383_v18 = vadd.f32 %v382_v16, %v885_v48  ;;  %v496_v19 = vadd.f32 %v495_v17, %v887_v49 }
 0x110   :  { %v384_v20 = vpop.f32.mrf.mxu0  ;;  %v497_v21 = vpop.f32.mrf.mxu1 }
 0x111   :  { %564 = vst [vmem:[#allocation2 + $0x160] sm:$0xff] %v383_v18  ;;  %566 = vst [vmem:[#allocation2 + $0x170] sm:$0xff] %v496_v19  ;;  %v385_v22 = vadd.f32 %v384_v20, %v889_v50  ;;  %v498_v23 = vadd.f32 %v497_v21, %v891_v51 }
 0x112   :  { %v388_v24 = vpop.f32.mrf.mxu0  ;;  %v501_v25 = vpop.f32.mrf.mxu1 }
 0x113   :  { %565 = vst [vmem:[#allocation2 + $0x168] sm:$0xff] %v385_v22  ;;  %567 = vst [vmem:[#allocation2 + $0x178] sm:$0xff] %v498_v23  ;;  %v389_v26 = vadd.f32 %v388_v24, %v885_v48  ;;  %v502_v27 = vadd.f32 %v501_v25, %v887_v49 }
 0x114   :  { %v390_v28 = vpop.f32.mrf.mxu0  ;;  %v503_v29 = vpop.f32.mrf.mxu1 }
 0x115   :  { %568 = vst [vmem:[#allocation2 + $0x180] sm:$0xff] %v389_v26  ;;  %570 = vst [vmem:[#allocation2 + $0x190] sm:$0xff] %v502_v27  ;;  %v391_v30 = vadd.f32 %v390_v28, %v889_v50  ;;  %v504_v31 = vadd.f32 %v503_v29, %v891_v51 }
 0x116   :  { %v392_v32 = vpop.f32.mrf.mxu0  ;;  %v505_v33 = vpop.f32.mrf.mxu1 }
 0x117   :  { %569 = vst [vmem:[#allocation2 + $0x188] sm:$0xff] %v391_v30  ;;  %571 = vst [vmem:[#allocation2 + $0x198] sm:$0xff] %v504_v31  ;;  %v393_v34 = vadd.f32 %v392_v32, %v885_v48  ;;  %v506_v35 = vadd.f32 %v505_v33, %v887_v49 }
 0x118   :  { %v394_v36 = vpop.f32.mrf.mxu0  ;;  %v507_v37 = vpop.f32.mrf.mxu1 }
 0x119   :  { %572 = vst [vmem:[#allocation2 + $0x1a0] sm:$0xff] %v393_v34  ;;  %574 = vst [vmem:[#allocation2 + $0x1b0] sm:$0xff] %v506_v35  ;;  %v395_v38 = vadd.f32 %v394_v36, %v889_v50  ;;  %v508_v39 = vadd.f32 %v507_v37, %v891_v51 }
 0x11a   :  { %v398_v40 = vpop.f32.mrf.mxu0  ;;  %v511_v41 = vpop.f32.mrf.mxu1 }
 0x11b   :  { %573 = vst [vmem:[#allocation2 + $0x1a8] sm:$0xff] %v395_v38  ;;  %575 = vst [vmem:[#allocation2 + $0x1b8] sm:$0xff] %v508_v39  ;;  %v399_v42 = vadd.f32 %v398_v40, %v885_v48  ;;  %v512_v43 = vadd.f32 %v511_v41, %v887_v49 }
 0x11c   :  { %v400_v44 = vpop.f32.mrf.mxu0  ;;  %v513_v45 = vpop.f32.mrf.mxu1 }
 0x11d   :  { %576 = vst [vmem:[#allocation2 + $0x1c0] sm:$0xff] %v399_v42  ;;  %578 = vst [vmem:[#allocation2 + $0x1d0] sm:$0xff] %v512_v43  ;;  %v401_v46 = vadd.f32 %v400_v44, %v889_v50  ;;  %v514_v47 = vadd.f32 %v513_v45, %v891_v51 }
 0x11e   :  { %v402_v52 = vpop.f32.mrf.mxu0  ;;  %v515_v53 = vpop.f32.mrf.mxu1 }
 0x11f   :  { %577 = vst [vmem:[#allocation2 + $0x1c8] sm:$0xff] %v401_v46  ;;  %579 = vst [vmem:[#allocation2 + $0x1d8] sm:$0xff] %v514_v47  ;;  %v403_v54 = vadd.f32 %v402_v52, %v885_v48  ;;  %v516_v55 = vadd.f32 %v515_v53, %v887_v49 }
 0x120   :  { %v404_v56 = vpop.f32.mrf.mxu0  ;;  %v517_v57 = vpop.f32.mrf.mxu1 }
 0x121   :  { %580 = vst [vmem:[#allocation2 + $0x1e0] sm:$0xff] %v403_v54  ;;  %582 = vst [vmem:[#allocation2 + $0x1f0] sm:$0xff] %v516_v55  ;;  %v405_v58 = vadd.f32 %v404_v56, %v889_v50  ;;  %v518_v59 = vadd.f32 %v517_v57, %v891_v51 }
 0x123   :  { %581 = vst [vmem:[#allocation2 + $0x1e8] sm:$0xff] %v405_v58  ;;  %583 = vst [vmem:[#allocation2 + $0x1f8] sm:$0xff] %v518_v59 }
 0x124   :  { %711 = shalt.err (!%p708_p4)
}
 0x125   :  { %s724_s13 = smov 512   ;;  %s725_s14 = smov 32  }
 0x126   :  { %595 = dma.vmem_to_hbm [thread:$0]  %s590_s2, 8192, %s963_s3, [#allocation3], %s724_s13, %s724_s13, %s725_s14  }
 0x127   :  { %720 = dma.done.wait [#allocation3], 8192  }
 0x128   :  { %721 = vsyncadd [#allocation3], 4294959104 }
 0x129   :  { %599 = vsyncpa [#allocation3], 1 }

// kernel: poetry_model_forward.2
= control target key start
LH: loop header
LB: loop body
LE: loop exit
PB: predicated region body
PF: predicated region fallthrough
CT: control target
= control target key end

     0   :  { %15 = vsyncpa [#allocation5], 0  ;;  %s22464_s0 = inlined_call_operand.vmem [shape: f32[16,8,128], index: 0, kind: input, shape index: {}]   ;;  %s22465_s1 = inlined_call_operand.vmem [shape: bf16[256,512], index: 1, kind: input, shape index: {}]   ;;  %s22466_s2 = inlined_call_operand.vmem [shape: f32[1,512], index: 2, kind: input, shape index: {}]   ;;  %s22467_s3 = inlined_call_operand.vmem [shape: bf16[256,512], index: 3, kind: input, shape index: {}]   ;;  %s22468_s4 = inlined_call_operand.vmem [shape: f32[1,512], index: 4, kind: input, shape index: {}]   ;;  %s22469_s5 = inlined_call_operand.vmem [shape: bf16[256,512], index: 5, kind: input, shape index: {}]   ;;  %s22470_s6 = inlined_call_operand.vmem [shape: f32[1,512], index: 6, kind: input, shape index: {}]   ;;  %s22471_s7 = inlined_call_operand.vmem [shape: f32[16,8,128], index: 7, kind: output, shape index: {0}]   ;;  %s22472_s8 = inlined_call_operand.hbm [shape: f32[3,8,128], index: 8, kind: output, shape index: {1}]   ;;  %s22473_s9 = inlined_call_operand.hbm [shape: f32[3,8,128], index: 9, kind: output, shape index: {2}]  }
   0x1   :  { %16 = vsyncpa [#allocation7], 0  ;;  %s17505_s30 = smov 0   ;;  %s17507_s10 = smov 0  }
   0x2   :  { %s17509_s11 = smov 0  }
   0x3 LB: > { %s13002_s12 = sadd.s32 4294967295, %s17448_s11   ;;  %s31_s13 = sadd.s32 1, %s17444_s10  ;;  %s17448_s11 = sphi %s17509_s11, %s22_s11   ;;  %s17444_s10 = sphi %s17507_s10, %s22476_s10   ;;  %s17440_s30 = sphi %s17505_s30, %s22475_s30  }
   0x4   : > { %p32_p0 = scmp.ge.s32.totalorder %s31_s13, 2  ;;  %p13006_p1 = scmp.ge.s32.totalorder %s17448_s11, 1 }
   0x5   : > { %p314_p2 = scmp.lt.s32.totalorder %s17448_s11, 3 }
   0x6   : > { %s22478_s13 = smov (%p32_p0, %s31_s13), 0 }
   0x7   : > { %p315_p3 = pnand %p13006_p1, %p314_p2 }
   0x8   : > { %s13007_s14 = sshll.u32 (!%p315_p3), %s17440_s30, 3  ;;  %p13011_p5 = scmp.ne.s32.totalorder (!%p315_p3), %s17440_s30, 0 }
   0x9   : > { %318 = sbr.rel (%p315_p3) target bundleno = 4841 (0x12e9), region = 48  ;;  %p357_p4 = scmp.lt.s32.totalorder (!%p315_p3), %s13007_s14, 15 }
   0xe   : > { %s22480_s14 = smov (!%p357_p4, %s13007_s14), 15  ;;  %377 = sbr.rel (%p13011_p5) target bundleno = 23 (0x17), region = 52 }
   0xf   : > { %s13008_s15 = sshll.u32 %s22480_s14, 3 }
  0x10   : > { %s17530_s18 = scalar_lea.vmem %s22464_s0, %s13008_s15  ;;  %s17535_s21 = scalar_lea.vmem %s22471_s7, %s13008_s15 }
  0x13   : > { %v17450_v0 = vmov 0.0  }
  0x14   : > { %378 = vst [vmem:[#allocation2 + $0x10] sm:$0xff] %v17450_v0  ;;  %379 = vst [vmem:[#allocation2] sm:$0xff] %v17450_v0 }
  0x15   : > { %380 = vst [vmem:[#allocation2 + $0x8] sm:$0xff] %v17450_v0  ;;  %381 = vst [vmem:[#allocation3 + $0x8] sm:$0xff] %v17450_v0 }
  0x16   : > { %382 = vst [vmem:[#allocation3] sm:$0xff] %v17450_v0  ;;  %383 = vst [vmem:[#allocation3 + $0x10] sm:$0xff] %v17450_v0 }
  0x17 PF: > { %v14682_v1 = vld [vmem:[%s22465_s1 + $0xe4] ss:$16 sps:$4 sm:$0xff]   ;;  %v14684_v2 = vld [vmem:[%s22465_s1 + $0xe0] ss:$16 sps:$4 sm:$0xff]   ;;  %v14693_v6 = vld [vmem:[%s22465_s1 + $0xec] ss:$16 sps:$4 sm:$0xff]  }
  0x18   : > { %794 = vmatprep.subr.bf16.mxu0 %v14682_v1  ;;  %v14685_v3 = vld [vmem:[%s22465_s1 + $0xc4] ss:$16 sps:$4 sm:$0xff]   ;;  %v14687_v4 = vld [vmem:[%s22465_s1 + $0xc0] ss:$16 sps:$4 sm:$0xff]   ;;  %v14696_v7 = vld [vmem:[%s22465_s1 + $0xe8] ss:$16 sps:$4 sm:$0xff]   ;;  %835 = vmatprep.subr.bf16.mxu1 %v14693_v6 }
  0x19   : > { %795 = vmatpush1.bf16.msra.mxu0 %v14684_v2  ;;  %v14688_v5 = vld [vmem:[%s22465_s1 + $0xa4] ss:$16 sps:$4 sm:$0xff]   ;;  %v14690_v8 = vld [vmem:[%s22465_s1 + $0xa0] ss:$16 sps:$4 sm:$0xff]   ;;  %836 = vmatpush1.bf16.msra.mxu1 %v14696_v7  ;;  %v14699_v10 = vld [vmem:[%s22465_s1 + $0xcc] ss:$16 sps:$4 sm:$0xff]  }
  0x1a   : > { %796 = vmatprep.subr.bf16.mxu0 %v14685_v3  ;;  %v14691_v9 = vld [vmem:[%s22465_s1 + $0x84] ss:$16 sps:$4 sm:$0xff]   ;;  %v14702_v11 = vld [vmem:[%s22465_s1 + $0xc8] ss:$16 sps:$4 sm:$0xff]   ;;  %837 = vmatprep.subr.bf16.mxu1 %v14699_v10  ;;  %v14695_v12 = vld [vmem:[%s22465_s1 + $0x80] ss:$16 sps:$4 sm:$0xff]  }
  0x1b   : > { %v14697_v13 = vld [vmem:[%s22465_s1 + $0x64] ss:$16 sps:$4 sm:$0xff]   ;;  %v14705_v14 = vld [vmem:[%s22465_s1 + $0xac] ss:$16 sps:$4 sm:$0xff]   ;;  %v14708_v15 = vld [vmem:[%s22465_s1 + $0xa8] ss:$16 sps:$4 sm:$0xff]  }
  0x1c   : > { %v14711_v16 = vld [vmem:[%s22465_s1 + $0x8c] ss:$16 sps:$4 sm:$0xff]   ;;  %v14701_v17 = vld [vmem:[%s22465_s1 + $0x60] ss:$16 sps:$4 sm:$0xff]   ;;  %v14703_v18 = vld [vmem:[%s22465_s1 + $0x44] ss:$16 sps:$4 sm:$0xff]  }
  0x1d   : > { %797 = vmatpush1.bf16.msra.mxu0 %v14687_v4  ;;  %838 = vmatpush1.bf16.msra.mxu1 %v14702_v11  ;;  %v14714_v19 = vld [vmem:[%s22465_s1 + $0x88] ss:$16 sps:$4 sm:$0xff]   ;;  %v14717_v20 = vld [vmem:[%s22465_s1 + $0x6c] ss:$16 sps:$4 sm:$0xff]   ;;  %v14707_v21 = vld [vmem:[%s22465_s1 + $0x40] ss:$16 sps:$4 sm:$0xff]  }
  0x1e   : > { %798 = vmatprep.subr.bf16.mxu0 %v14688_v5  ;;  %839 = vmatprep.subr.bf16.mxu1 %v14705_v14  ;;  %v14709_v22 = vld [vmem:[%s22465_s1 + $0x24] ss:$16 sps:$4 sm:$0xff]   ;;  %v14720_v23 = vld [vmem:[%s22465_s1 + $0x68] ss:$16 sps:$4 sm:$0xff]   ;;  %v14723_v24 = vld [vmem:[%s22465_s1 + $0x4c] ss:$16 sps:$4 sm:$0xff]  }
  0x1f   : > { %v14713_v25 = vld [vmem:[%s22465_s1 + $0x20] ss:$16 sps:$4 sm:$0xff]   ;;  %v14715_v26 = vld [vmem:[%s22465_s1 + $0x4] ss:$16 sps:$4 sm:$0xff]   ;;  %v14726_v27 = vld [vmem:[%s22465_s1 + $0x48] ss:$16 sps:$4 sm:$0xff]  }
  0x20   : > { %v14729_v28 = vld [vmem:[%s22465_s1 + $0x2c] ss:$16 sps:$4 sm:$0xff]   ;;  %v14719_v29 = vld [vmem:[%s22465_s1] ss:$16 sps:$4 sm:$0xff]   ;;  %v14721_v30 = vld [vmem:[%s22465_s1 + $0x1e4] ss:$16 sps:$4 sm:$0xff]  }
  0x21   : > { %799 = vmatpush1.bf16.msra.mxu0 %v14690_v8  ;;  %840 = vmatpush1.bf16.msra.mxu1 %v14708_v15  ;;  %v14732_v31 = vld [vmem:[%s22465_s1 + $0x28] ss:$16 sps:$4 sm:$0xff]   ;;  %v14735_v32 = vld [vmem:[%s22465_s1 + $0xc] ss:$16 sps:$4 sm:$0xff]   ;;  %v14725_v33 = vld [vmem:[%s22465_s1 + $0x1e0] ss:$16 sps:$4 sm:$0xff]  }
  0x22   : > { %800 = vmatprep.subr.bf16.mxu0 %v14691_v9  ;;  %841 = vmatprep.subr.bf16.mxu1 %v14711_v16  ;;  %v14727_v34 = vld [vmem:[%s22465_s1 + $0x1c4] ss:$16 sps:$4 sm:$0xff]   ;;  %v14738_v35 = vld [vmem:[%s22465_s1 + $0x8] ss:$16 sps:$4 sm:$0xff]   ;;  %v14741_v36 = vld [vmem:[%s22465_s1 + $0x1ec] ss:$16 sps:$4 sm:$0xff]  }
  0x23   : > { %v14731_v37 = vld [vmem:[%s22465_s1 + $0x1c0] ss:$16 sps:$4 sm:$0xff]   ;;  %v14733_v38 = vld [vmem:[%s22465_s1 + $0x1a4] ss:$16 sps:$4 sm:$0xff]   ;;  %v14744_v39 = vld [vmem:[%s22465_s1 + $0x1e8] ss:$16 sps:$4 sm:$0xff]  }
  0x24   : > { %v14747_v40 = vld [vmem:[%s22465_s1 + $0x1cc] ss:$16 sps:$4 sm:$0xff]   ;;  %v385_v41 = vld [vmem:[#allocation2 + $0x10] sm:$0xff]  ;;  %v14750_v45 = vld [vmem:[%s22465_s1 + $0x1c8] ss:$16 sps:$4 sm:$0xff]   ;;  %p14634_p6 = scmp.ne.s32.totalorder %s17440_s30, 1 }
  0x25   : > { %801 = vmatpush1.bf16.msra.mxu0 %v14695_v12  ;;  %842 = vmatpush1.bf16.msra.mxu1 %v14714_v19  ;;  %v14737_v42 = vld [vmem:[%s22465_s1 + $0x1a0] ss:$16 sps:$4 sm:$0xff]   ;;  %v387_v43 = vpack.c.bf16 %v385_v41, %v385_v41  ;;  %v14739_v44 = vld [vmem:[%s22465_s1 + $0x184] ss:$16 sps:$4 sm:$0xff]   ;;  %v14753_v46 = vld [vmem:[%s22465_s1 + $0x1ac] ss:$16 sps:$4 sm:$0xff]  }
  0x26   : > { %802 = vmatprep.subr.bf16.mxu0 %v14697_v13  ;;  %843 = vmatprep.subr.bf16.mxu1 %v14717_v20  ;;  %v14743_v47 = vld [vmem:[%s22465_s1 + $0x180] ss:$16 sps:$4 sm:$0xff]   ;;  %v14745_v48 = vld [vmem:[%s22465_s1 + $0x164] ss:$16 sps:$4 sm:$0xff]   ;;  %v14756_v49 = vld [vmem:[%s22465_s1 + $0x1a8] ss:$16 sps:$4 sm:$0xff]  }
  0x27   : > { %826 = vmatprep.mubr.bf16.mxu0 %v387_v43  ;;  %867 = vmatprep.mubr.bf16.mxu1 %v387_v43  ;;  %v14759_v50 = vld [vmem:[%s22465_s1 + $0x18c] ss:$16 sps:$4 sm:$0xff]   ;;  %v14749_v51 = vld [vmem:[%s22465_s1 + $0x160] ss:$16 sps:$4 sm:$0xff]   ;;  %v14751_v52 = vld [vmem:[%s22465_s1 + $0x144] ss:$16 sps:$4 sm:$0xff]  }
  0x28   : > { %v14762_v53 = vld [vmem:[%s22465_s1 + $0x188] ss:$16 sps:$4 sm:$0xff]   ;;  %v14765_v54 = vld [vmem:[%s22465_s1 + $0x16c] ss:$16 sps:$4 sm:$0xff]   ;;  %v14755_v55 = vld [vmem:[%s22465_s1 + $0x140] ss:$16 sps:$4 sm:$0xff]  }
  0x29   : > { %803 = vmatpush1.bf16.msra.mxu0 %v14701_v17  ;;  %844 = vmatpush1.bf16.msra.mxu1 %v14720_v23  ;;  %v14757_v56 = vld [vmem:[%s22465_s1 + $0x124] ss:$16 sps:$4 sm:$0xff]   ;;  %v14768_v57 = vld [vmem:[%s22465_s1 + $0x168] ss:$16 sps:$4 sm:$0xff]   ;;  %v14769_v58 = vld [vmem:[%s22465_s1 + $0x14c] ss:$16 sps:$4 sm:$0xff]  }
  0x2a   : > { %804 = vmatprep.subr.bf16.mxu0 %v14703_v18  ;;  %845 = vmatprep.subr.bf16.mxu1 %v14723_v24  ;;  %v14761_v59 = vld [vmem:[%s22465_s1 + $0x120] ss:$16 sps:$4 sm:$0xff]   ;;  %v14763_v60 = vld [vmem:[%s22465_s1 + $0x104] ss:$16 sps:$4 sm:$0xff]   ;;  %v14771_v61 = vld [vmem:[%s22465_s1 + $0x148] ss:$16 sps:$4 sm:$0xff]  }
  0x2b   : > { %v14772_v62 = vld [vmem:[%s22465_s1 + $0x12c] ss:$16 sps:$4 sm:$0xff]   ;;  %v14767_v63 = vld [vmem:[%s22465_s1 + $0x100] ss:$16 sps:$4 sm:$0xff]   ;;  %v14774_v1 = vld [vmem:[%s22465_s1 + $0x128] ss:$16 sps:$4 sm:$0xff]  }
  0x2c   : > { %v384_v0 = vld [vmem:[%s17530_s18] sm:$0xff]  ;;  %v14775_v3 = vld [vmem:[%s22465_s1 + $0x10c] ss:$16 sps:$4 sm:$0xff]   ;;  %v14777_v6 = vld [vmem:[%s22465_s1 + $0x108] ss:$16 sps:$4 sm:$0xff]  }
  0x2d   : > { %805 = vmatpush1.bf16.msra.mxu0 %v14707_v21  ;;  %846 = vmatpush1.bf16.msra.mxu1 %v14726_v27  ;;  %v14780_v2 = vld [vmem:[%s22467_s3 + $0xe4] ss:$16 sps:$4 sm:$0xff]   ;;  %v14778_v4 = vld [vmem:[%s22467_s3 + $0xe0] ss:$16 sps:$4 sm:$0xff]   ;;  %v386_v5 = vpack.c.bf16 %v384_v0, %v384_v0  ;;  %v14783_v8 = vld [vmem:[%s22467_s3 + $0xec] ss:$16 sps:$4 sm:$0xff]  }
  0x2e   : > { %806 = vmatprep.subr.bf16.mxu0 %v14709_v22  ;;  %847 = vmatprep.subr.bf16.mxu1 %v14729_v28  ;;  %v14786_v7 = vld [vmem:[%s22467_s3 + $0xc4] ss:$16 sps:$4 sm:$0xff]   ;;  %v14784_v9 = vld [vmem:[%s22467_s3 + $0xc0] ss:$16 sps:$4 sm:$0xff]   ;;  %v14781_v10 = vld [vmem:[%s22467_s3 + $0xe8] ss:$16 sps:$4 sm:$0xff]  }
  0x2f   : > { %v14789_v11 = vld [vmem:[%s22467_s3 + $0xcc] ss:$16 sps:$4 sm:$0xff]   ;;  %v14787_v12 = vld [vmem:[%s22467_s3 + $0xc8] ss:$16 sps:$4 sm:$0xff]   ;;  %v14792_v13 = vld [vmem:[%s22467_s3 + $0xa4] ss:$16 sps:$4 sm:$0xff]  }
  0x30   : > { %v14795_v14 = vld [vmem:[%s22467_s3 + $0xac] ss:$16 sps:$4 sm:$0xff]   ;;  %v14790_v15 = vld [vmem:[%s22467_s3 + $0xa0] ss:$16 sps:$4 sm:$0xff]   ;;  %v14793_v16 = vld [vmem:[%s22467_s3 + $0xa8] ss:$16 sps:$4 sm:$0xff]  }
  0x31   : > { %807 = vmatpush1.bf16.msra.mxu0 %v14713_v25  ;;  %848 = vmatpush1.bf16.msra.mxu1 %v14732_v31  ;;  %v14798_v17 = vld [vmem:[%s22467_s3 + $0x84] ss:$16 sps:$4 sm:$0xff]   ;;  %v14801_v18 = vld [vmem:[%s22467_s3 + $0x8c] ss:$16 sps:$4 sm:$0xff]   ;;  %v14796_v19 = vld [vmem:[%s22467_s3 + $0x80] ss:$16 sps:$4 sm:$0xff]  }
  0x32   : > { %808 = vmatprep.subr.bf16.mxu0 %v14715_v26  ;;  %849 = vmatprep.subr.bf16.mxu1 %v14735_v32  ;;  %v14799_v20 = vld [vmem:[%s22467_s3 + $0x88] ss:$16 sps:$4 sm:$0xff]   ;;  %v14804_v21 = vld [vmem:[%s22467_s3 + $0x64] ss:$16 sps:$4 sm:$0xff]   ;;  %v14807_v22 = vld [vmem:[%s22467_s3 + $0x6c] ss:$16 sps:$4 sm:$0xff]  }
  0x33   : > { %v14802_v23 = vld [vmem:[%s22467_s3 + $0x60] ss:$16 sps:$4 sm:$0xff]   ;;  %v14805_v24 = vld [vmem:[%s22467_s3 + $0x68] ss:$16 sps:$4 sm:$0xff]   ;;  %v14810_v25 = vld [vmem:[%s22467_s3 + $0x44] ss:$16 sps:$4 sm:$0xff]  }
  0x34   : > { %v14813_v26 = vld [vmem:[%s22467_s3 + $0x4c] ss:$16 sps:$4 sm:$0xff]   ;;  %v14808_v27 = vld [vmem:[%s22467_s3 + $0x40] ss:$16 sps:$4 sm:$0xff]   ;;  %v14811_v28 = vld [vmem:[%s22467_s3 + $0x48] ss:$16 sps:$4 sm:$0xff]  }
  0x35   : > { %809 = vmatpush1.bf16.msra.mxu0 %v14719_v29  ;;  %850 = vmatpush1.bf16.msra.mxu1 %v14738_v35  ;;  %v14816_v29 = vld [vmem:[%s22467_s3 + $0x24] ss:$16 sps:$4 sm:$0xff]   ;;  %v14814_v31 = vld [vmem:[%s22467_s3 + $0x20] ss:$16 sps:$4 sm:$0xff]   ;;  %v14817_v32 = vld [vmem:[%s22467_s3 + $0x28] ss:$16 sps:$4 sm:$0xff]  }
  0x36   : > { %810 = vmatprep.subr.bf16.mxu0 %v14721_v30  ;;  %851 = vmatprep.subr.bf16.mxu1 %v14741_v36  ;;  %v14819_v30 = vld [vmem:[%s22467_s3 + $0x2c] ss:$16 sps:$4 sm:$0xff]   ;;  %v14820_v35 = vld [vmem:[%s22467_s3] ss:$16 sps:$4 sm:$0xff]   ;;  %v14823_v36 = vld [vmem:[%s22467_s3 + $0x8] ss:$16 sps:$4 sm:$0xff]  }
  0x37   : > { %v14834_v41 = vld [vmem:[%s22467_s3 + $0x1c4] ss:$16 sps:$4 sm:$0xff]   ;;  %v14832_v43 = vld [vmem:[%s22467_s3 + $0x1c0] ss:$16 sps:$4 sm:$0xff]  }
  0x38   : > { %v904_v0 = vld [vmem:[#allocation2] sm:$0xff] }
  0x39   : > { %811 = vmatpush2.bf16.msra.mxu0 %v14725_v33  ;;  %852 = vmatpush2.bf16.msra.mxu1 %v14744_v39  ;;  %v14822_v33 = vld [vmem:[%s22467_s3 + $0x4] ss:$16 sps:$4 sm:$0xff]   ;;  %v14826_v39 = vld [vmem:[%s22467_s3 + $0x1e0] ss:$16 sps:$4 sm:$0xff]  }
  0x3a   : > { %812 = vmatprep.subr.bf16.mxu0 %v14727_v34  ;;  %853 = vmatprep.subr.bf16.mxu1 %v14747_v40  ;;  %v14825_v34 = vld [vmem:[%s22467_s3 + $0xc] ss:$16 sps:$4 sm:$0xff]   ;;  %v14829_v40 = vld [vmem:[%s22467_s3 + $0x1e8] ss:$16 sps:$4 sm:$0xff]  }
  0x3d   : > { %813 = vmatpush2.bf16.msra.mxu0 %v14731_v37  ;;  %854 = vmatpush2.bf16.msra.mxu1 %v14750_v45  ;;  %v14828_v37 = vld [vmem:[%s22467_s3 + $0x1e4] ss:$16 sps:$4 sm:$0xff]  }
  0x3e   : > { %814 = vmatprep.subr.bf16.mxu0 %v14733_v38  ;;  %855 = vmatprep.subr.bf16.mxu1 %v14753_v46  ;;  %v14831_v38 = vld [vmem:[%s22467_s3 + $0x1ec] ss:$16 sps:$4 sm:$0xff]   ;;  %v14840_v45 = vld [vmem:[%s22467_s3 + $0x1a4] ss:$16 sps:$4 sm:$0xff]  }
  0x3f   : > { %v14843_v46 = vld [vmem:[%s22467_s3 + $0x1ac] ss:$16 sps:$4 sm:$0xff]  }
  0x41   : > { %815 = vmatpush2.bf16.msra.mxu0 %v14737_v42  ;;  %856 = vmatpush2.bf16.msra.mxu1 %v14756_v49  ;;  %v14837_v42 = vld [vmem:[%s22467_s3 + $0x1cc] ss:$16 sps:$4 sm:$0xff]   ;;  %v14846_v49 = vld [vmem:[%s22467_s3 + $0x184] ss:$16 sps:$4 sm:$0xff]  }
  0x42   : > { %816 = vmatprep.subr.bf16.mxu0 %v14739_v44  ;;  %857 = vmatprep.subr.bf16.mxu1 %v14759_v50  ;;  %v14835_v44 = vld [vmem:[%s22467_s3 + $0x1c8] ss:$16 sps:$4 sm:$0xff]   ;;  %v14849_v50 = vld [vmem:[%s22467_s3 + $0x18c] ss:$16 sps:$4 sm:$0xff]  }
  0x45   : > { %817 = vmatpush2.bf16.msra.mxu0 %v14743_v47  ;;  %858 = vmatpush2.bf16.msra.mxu1 %v14762_v53  ;;  %v14838_v47 = vld [vmem:[%s22467_s3 + $0x1a0] ss:$16 sps:$4 sm:$0xff]  }
  0x46   : > { %818 = vmatprep.subr.bf16.mxu0 %v14745_v48  ;;  %859 = vmatprep.subr.bf16.mxu1 %v14765_v54  ;;  %v14841_v48 = vld [vmem:[%s22467_s3 + $0x1a8] ss:$16 sps:$4 sm:$0xff]   ;;  %v14850_v53 = vld [vmem:[%s22467_s3 + $0x160] ss:$16 sps:$4 sm:$0xff]   ;;  %v14852_v54 = vld [vmem:[%s22467_s3 + $0x164] ss:$16 sps:$4 sm:$0xff]  }
  0x49   : > { %819 = vmatpush2.bf16.msra.mxu0 %v14749_v51  ;;  %860 = vmatpush2.bf16.msra.mxu1 %v14768_v57  ;;  %v14844_v51 = vld [vmem:[%s22467_s3 + $0x180] ss:$16 sps:$4 sm:$0xff]   ;;  %v14858_v57 = vld [vmem:[%s22467_s3 + $0x144] ss:$16 sps:$4 sm:$0xff]  }
  0x4a   : > { %820 = vmatprep.subr.bf16.mxu0 %v14751_v52  ;;  %861 = vmatprep.subr.bf16.mxu1 %v14769_v58  ;;  %v14847_v52 = vld [vmem:[%s22467_s3 + $0x188] ss:$16 sps:$4 sm:$0xff]   ;;  %v14861_v58 = vld [vmem:[%s22467_s3 + $0x14c] ss:$16 sps:$4 sm:$0xff]  }
  0x4d   : > { %821 = vmatpush2.bf16.msra.mxu0 %v14755_v55  ;;  %862 = vmatpush2.bf16.msra.mxu1 %v14771_v61  ;;  %v14853_v55 = vld [vmem:[%s22467_s3 + $0x168] ss:$16 sps:$4 sm:$0xff]   ;;  %v14864_v61 = vld [vmem:[%s22467_s3 + $0x124] ss:$16 sps:$4 sm:$0xff]  }
  0x4e   : > { %822 = vmatprep.subr.bf16.mxu0 %v14757_v56  ;;  %863 = vmatprep.subr.bf16.mxu1 %v14772_v62  ;;  %v14855_v56 = vld [vmem:[%s22467_s3 + $0x16c] ss:$16 sps:$4 sm:$0xff]   ;;  %v14862_v62 = vld [vmem:[%s22467_s3 + $0x120] ss:$16 sps:$4 sm:$0xff]  }
  0x51   : > { %823 = vmatpush2.bf16.msra.mxu0 %v14761_v59  ;;  %864 = vmatpush2.bf16.msra.mxu1 %v14774_v1  ;;  %v14856_v59 = vld [vmem:[%s22467_s3 + $0x140] ss:$16 sps:$4 sm:$0xff]   ;;  %v14865_v1 = vld [vmem:[%s22467_s3 + $0x128] ss:$16 sps:$4 sm:$0xff]  }
  0x52   : > { %824 = vmatprep.subr.bf16.mxu0 %v14763_v60  ;;  %865 = vmatprep.subr.bf16.mxu1 %v14775_v3  ;;  %v14859_v60 = vld [vmem:[%s22467_s3 + $0x148] ss:$16 sps:$4 sm:$0xff]   ;;  %v906_v3 = vpack.c.bf16 %v904_v0, %v904_v0  ;;  %v14892_v0 = vld [vmem:[%s22469_s5 + $0x80] ss:$16 sps:$4 sm:$0xff]  }
  0x55   : > { %825 = vmatpush2.bf16.msra.mxu0 %v14767_v63  ;;  %866 = vmatpush2.bf16.msra.mxu1 %v14777_v6  ;;  %v14867_v63 = vld [vmem:[%s22467_s3 + $0x12c] ss:$16 sps:$4 sm:$0xff]   ;;  %v14871_v6 = vld [vmem:[%s22467_s3 + $0x108] ss:$16 sps:$4 sm:$0xff]  }
  0x56   : > { %1313 = vmatprep.subr.bf16.mxu0 %v14780_v2  ;;  %1354 = vmatprep.subr.bf16.mxu1 %v14783_v8  ;;  %v14870_v2 = vld [vmem:[%s22467_s3 + $0x104] ss:$16 sps:$4 sm:$0xff]   ;;  %v14879_v8 = vld [vmem:[%s22469_s5 + $0xec] ss:$16 sps:$4 sm:$0xff]  }
  0x58   : > { %827 = vmatmul.mubr.bf16.vlgmr.msra.gmra.mxu0 %v386_v5  ;;  %868 = vmatmul.mubr.bf16.vlgmr.msra.gmra.mxu1 %v386_v5  ;;  %v14868_v5 = vld [vmem:[%s22467_s3 + $0x100] ss:$16 sps:$4 sm:$0xff]  }
  0x59   : > { %1314 = vmatpush1.bf16.msra.mxu0 %v14778_v4  ;;  %1355 = vmatpush1.bf16.msra.mxu1 %v14781_v10  ;;  %v14873_v4 = vld [vmem:[%s22467_s3 + $0x10c] ss:$16 sps:$4 sm:$0xff]  }
  0x5a   : > { %1315 = vmatprep.subr.bf16.mxu0 %v14786_v7  ;;  %1356 = vmatprep.subr.bf16.mxu1 %v14789_v11  ;;  %v14876_v7 = vld [vmem:[%s22469_s5 + $0xe4] ss:$16 sps:$4 sm:$0xff]   ;;  %v452_v11 = vld [vmem:[%s22466_s2] sm:$0xf] }
  0x5b   : > { %1345 = vmatprep.mubr.bf16.mxu0 %v906_v3  ;;  %1386 = vmatprep.mubr.bf16.mxu1 %v906_v3  ;;  %v14903_v3 = vld [vmem:[%s22469_s5 + $0x6c] ss:$16 sps:$4 sm:$0xff]  }
  0x5d   : > { %1316 = vmatpush1.bf16.msra.mxu0 %v14784_v9  ;;  %1357 = vmatpush1.bf16.msra.mxu1 %v14787_v12  ;;  %v454_v9 = vlaneseq }
  0x5e   : > { %1317 = vmatprep.subr.bf16.mxu0 %v14792_v13  ;;  %1358 = vmatprep.subr.bf16.mxu1 %v14795_v14 }
  0x5f   : > { %v455_v10 = vshrl.u32 %v454_v9, 7  ;;  %v14907_v9 = vld [vmem:[%s22469_s5 + $0x48] ss:$16 sps:$4 sm:$0xff]  }
  0x61   : > { %1318 = vmatpush1.bf16.msra.mxu0 %v14790_v15  ;;  %1359 = vmatpush1.bf16.msra.mxu1 %v14793_v16  ;;  %v17932_v12 = vsub.s32 0, %v455_v10  ;;  %v17934_v13 = vsub.s32 1, %v455_v10 }
  0x62   : > { %1319 = vmatprep.subr.bf16.mxu0 %v14798_v17  ;;  %1360 = vmatprep.subr.bf16.mxu1 %v14801_v18 }
  0x63   : > { %v457_v14 = vrot.slane %v452_v11, %v17932_v12  ;;  %v461_v15 = vrot.slane %v452_v11, %v17934_v13 }
  0x65   : > { %1320 = vmatpush1.bf16.msra.mxu0 %v14796_v19  ;;  %1361 = vmatpush1.bf16.msra.mxu1 %v14799_v20 }
  0x66   : > { %1321 = vmatprep.subr.bf16.mxu0 %v14804_v21  ;;  %1362 = vmatprep.subr.bf16.mxu1 %v14807_v22  ;;  %v17938_v22 = vsub.s32 3, %v455_v10 }
  0x69   : > { %1322 = vmatpush1.bf16.msra.mxu0 %v14802_v23  ;;  %1363 = vmatpush1.bf16.msra.mxu1 %v14805_v24 }
  0x6a   : > { %1323 = vmatprep.subr.bf16.mxu0 %v14810_v25  ;;  %1364 = vmatprep.subr.bf16.mxu1 %v14813_v26  ;;  %v17940_v26 = vsub.s32 2, %v455_v10  ;;  %v14912_v10 = vld [vmem:[%s22469_s5 + $0x24] ss:$16 sps:$4 sm:$0xff]  }
  0x6d   : > { %1324 = vmatpush1.bf16.msra.mxu0 %v14808_v27  ;;  %1365 = vmatpush1.bf16.msra.mxu1 %v14811_v28  ;;  %v469_v28 = vrot.slane %v452_v11, %v17938_v22 }
  0x6e   : > { %1325 = vmatprep.subr.bf16.mxu0 %v14816_v29  ;;  %1366 = vmatprep.subr.bf16.mxu1 %v14819_v30  ;;  %v465_v30 = vrot.slane %v452_v11, %v17940_v26  ;;  %v14915_v11 = vld [vmem:[%s22469_s5 + $0x2c] ss:$16 sps:$4 sm:$0xff]  }
  0x71   : > { %1326 = vmatpush1.bf16.msra.mxu0 %v14814_v31  ;;  %1367 = vmatpush1.bf16.msra.mxu1 %v14817_v32 }
  0x72   : > { %1327 = vmatprep.subr.bf16.mxu0 %v14822_v33  ;;  %1368 = vmatprep.subr.bf16.mxu1 %v14825_v34 }
  0x75   : > { %1328 = vmatpush1.bf16.msra.mxu0 %v14820_v35  ;;  %1369 = vmatpush1.bf16.msra.mxu1 %v14823_v36 }
  0x76   : > { %1329 = vmatprep.subr.bf16.mxu0 %v14828_v37  ;;  %1370 = vmatprep.subr.bf16.mxu1 %v14831_v38 }
  0x79   : > { %1330 = vmatpush2.bf16.msra.mxu0 %v14826_v39  ;;  %1371 = vmatpush2.bf16.msra.mxu1 %v14829_v40  ;;  %v895_v40 = vld [vmem:[#allocation3 + $0x8] sm:$0xff] }
  0x7a   : > { %1331 = vmatprep.subr.bf16.mxu0 %v14834_v41  ;;  %1372 = vmatprep.subr.bf16.mxu1 %v14837_v42 }
  0x7d   : > { %1332 = vmatpush2.bf16.msra.mxu0 %v14832_v43  ;;  %1373 = vmatpush2.bf16.msra.mxu1 %v14835_v44 }
  0x7e   : > { %1333 = vmatprep.subr.bf16.mxu0 %v14840_v45  ;;  %1374 = vmatprep.subr.bf16.mxu1 %v14843_v46 }
  0x81   : > { %1334 = vmatpush2.bf16.msra.mxu0 %v14838_v47  ;;  %1375 = vmatpush2.bf16.msra.mxu1 %v14841_v48 }
  0x82   : > { %1335 = vmatprep.subr.bf16.mxu0 %v14846_v49  ;;  %1376 = vmatprep.subr.bf16.mxu1 %v14849_v50  ;;  %v14874_v50 = vld [vmem:[%s22469_s5 + $0xe0] ss:$16 sps:$4 sm:$0xff]  }
  0x85   : > { %1336 = vmatpush2.bf16.msra.mxu0 %v14844_v51  ;;  %1377 = vmatpush2.bf16.msra.mxu1 %v14847_v52  ;;  %v14877_v51 = vld [vmem:[%s22469_s5 + $0xe8] ss:$16 sps:$4 sm:$0xff]  }
  0x86   : > { %1337 = vmatprep.subr.bf16.mxu0 %v14852_v54  ;;  %1378 = vmatprep.subr.bf16.mxu1 %v14855_v56  ;;  %v14885_v54 = vld [vmem:[%s22469_s5 + $0xcc] ss:$16 sps:$4 sm:$0xff]   ;;  %v14880_v56 = vld [vmem:[%s22469_s5 + $0xc0] ss:$16 sps:$4 sm:$0xff]  }
  0x89   : > { %1338 = vmatpush2.bf16.msra.mxu0 %v14850_v53  ;;  %1379 = vmatpush2.bf16.msra.mxu1 %v14853_v55  ;;  %v14882_v53 = vld [vmem:[%s22469_s5 + $0xc4] ss:$16 sps:$4 sm:$0xff]  }
  0x8a   : > { %1339 = vmatprep.subr.bf16.mxu0 %v14858_v57  ;;  %1380 = vmatprep.subr.bf16.mxu1 %v14861_v58  ;;  %v14883_v57 = vld [vmem:[%s22469_s5 + $0xc8] ss:$16 sps:$4 sm:$0xff]   ;;  %v14888_v58 = vld [vmem:[%s22469_s5 + $0xa4] ss:$16 sps:$4 sm:$0xff]  }
  0x8d   : > { %1340 = vmatpush2.bf16.msra.mxu0 %v14856_v59  ;;  %1381 = vmatpush2.bf16.msra.mxu1 %v14859_v60  ;;  %v14891_v59 = vld [vmem:[%s22469_s5 + $0xac] ss:$16 sps:$4 sm:$0xff]   ;;  %v14886_v60 = vld [vmem:[%s22469_s5 + $0xa0] ss:$16 sps:$4 sm:$0xff]  }
  0x8e   : > { %1341 = vmatprep.subr.bf16.mxu0 %v14864_v61  ;;  %1382 = vmatprep.subr.bf16.mxu1 %v14867_v63  ;;  %v14889_v61 = vld [vmem:[%s22469_s5 + $0xa8] ss:$16 sps:$4 sm:$0xff]   ;;  %v14897_v63 = vld [vmem:[%s22469_s5 + $0x8c] ss:$16 sps:$4 sm:$0xff]  }
  0x91   : > { %1342 = vmatpush2.bf16.msra.mxu0 %v14862_v62  ;;  %1383 = vmatpush2.bf16.msra.mxu1 %v14865_v1  ;;  %v14894_v62 = vld [vmem:[%s22469_s5 + $0x84] ss:$16 sps:$4 sm:$0xff]   ;;  %v14895_v1 = vld [vmem:[%s22469_s5 + $0x88] ss:$16 sps:$4 sm:$0xff]  }
  0x92   : > { %1343 = vmatprep.subr.bf16.mxu0 %v14870_v2  ;;  %1384 = vmatprep.subr.bf16.mxu1 %v14873_v4  ;;  %v14900_v2 = vld [vmem:[%s22469_s5 + $0x64] ss:$16 sps:$4 sm:$0xff]   ;;  %v14898_v4 = vld [vmem:[%s22469_s5 + $0x60] ss:$16 sps:$4 sm:$0xff]  }
  0x95   : > { %1344 = vmatpush2.bf16.msra.mxu0 %v14868_v5  ;;  %1385 = vmatpush2.bf16.msra.mxu1 %v14871_v6  ;;  %v14901_v5 = vld [vmem:[%s22469_s5 + $0x68] ss:$16 sps:$4 sm:$0xff]   ;;  %v14906_v6 = vld [vmem:[%s22469_s5 + $0x44] ss:$16 sps:$4 sm:$0xff]  }
  0x96   : > { %1833 = vmatprep.subr.bf16.mxu0 %v14876_v7  ;;  %1874 = vmatprep.subr.bf16.mxu1 %v14879_v8  ;;  %v14909_v7 = vld [vmem:[%s22469_s5 + $0x4c] ss:$16 sps:$4 sm:$0xff]   ;;  %v14904_v8 = vld [vmem:[%s22469_s5 + $0x40] ss:$16 sps:$4 sm:$0xff]  }
 0x118   : > { %v828_v16 = vpop.f32.mrf.mxu0  ;;  %v869_v24 = vpop.f32.mrf.mxu1 }
 0x119   : > { %v829_v17 = vadd.f32 %v828_v16, %v457_v14  ;;  %v870_v33 = vadd.f32 %v869_v24, %v465_v30  ;;  %v14910_v14 = vld [vmem:[%s22469_s5 + $0x20] ss:$16 sps:$4 sm:$0xff]   ;;  %v14918_v16 = vld [vmem:[%s22469_s5 + $0x4] ss:$16 sps:$4 sm:$0xff]   ;;  %v14925_v24 = vld [vmem:[%s22469_s5 + $0x1e8] ss:$16 sps:$4 sm:$0xff]  }
 0x11a   : > { %v830_v18 = vpop.f32.mrf.mxu0  ;;  %v871_v27 = vpop.f32.mrf.mxu1  ;;  %v14936_v30 = vld [vmem:[%s22469_s5 + $0x1a4] ss:$16 sps:$4 sm:$0xff]  }
 0x11b   : > { %v13076_v19 = vmul.f32 -1.442695, %v829_v17  ;;  %v831_v20 = vadd.f32 %v830_v18, %v461_v15  ;;  %v872_v32 = vadd.f32 %v871_v27, %v469_v28  ;;  %v14913_v15 = vld [vmem:[%s22469_s5 + $0x28] ss:$16 sps:$4 sm:$0xff]   ;;  %v14921_v17 = vld [vmem:[%s22469_s5 + $0xc] ss:$16 sps:$4 sm:$0xff]  }
 0x11c   : > { %v832_v21 = vpop.f32.mrf.mxu0  ;;  %v873_v29 = vpop.f32.mrf.mxu1  ;;  %v14916_v18 = vld [vmem:[%s22469_s5] ss:$16 sps:$4 sm:$0xff]   ;;  %v14933_v27 = vld [vmem:[%s22469_s5 + $0x1cc] ss:$16 sps:$4 sm:$0xff]  }
 0x11d   : > { %16986 = vpow2.f32 %v13076_v19  ;;  %v13077_v23 = vmul.f32 -1.442695, %v831_v20  ;;  %v13078_v34 = vmul.f32 -1.442695, %v872_v32  ;;  %v14919_v19 = vld [vmem:[%s22469_s5 + $0x8] ss:$16 sps:$4 sm:$0xff]  }
 0x11e   : > { %v833_v25 = vpop.f32.mrf.mxu0  ;;  %v874_v31 = vpop.f32.mrf.mxu1  ;;  %v14924_v20 = vld [vmem:[%s22469_s5 + $0x1e4] ss:$16 sps:$4 sm:$0xff]   ;;  %v14927_v21 = vld [vmem:[%s22469_s5 + $0x1ec] ss:$16 sps:$4 sm:$0xff]   ;;  %v14928_v28 = vld [vmem:[%s22469_s5 + $0x1c0] ss:$16 sps:$4 sm:$0xff]  }
 0x11f   : > { %16988 = vpow2.f32 %v13077_v23  ;;  %v14922_v23 = vld [vmem:[%s22469_s5 + $0x1e0] ss:$16 sps:$4 sm:$0xff]   ;;  %v14930_v25 = vld [vmem:[%s22469_s5 + $0x1c4] ss:$16 sps:$4 sm:$0xff]   ;;  %v14931_v29 = vld [vmem:[%s22469_s5 + $0x1c8] ss:$16 sps:$4 sm:$0xff]  }
 0x120   : > { %16990 = vtanh.f32 %v870_v33  ;;  %v14939_v31 = vld [vmem:[%s22469_s5 + $0x1ac] ss:$16 sps:$4 sm:$0xff]   ;;  %v14934_v32 = vld [vmem:[%s22469_s5 + $0x1a0] ss:$16 sps:$4 sm:$0xff]   ;;  %v14937_v33 = vld [vmem:[%s22469_s5 + $0x1a8] ss:$16 sps:$4 sm:$0xff]  }
 0x121   : > { %16992 = vpow2.f32 %v13078_v34  ;;  %v14942_v34 = vld [vmem:[%s22469_s5 + $0x184] ss:$16 sps:$4 sm:$0xff]  }
 0x12a   : > { %v16987_v35 = vpop.eup %16986 }
 0x12b   : > { %v879_v36 = vadd.f32 1.0, %v16987_v35  ;;  %v14945_v35 = vld [vmem:[%s22469_s5 + $0x18c] ss:$16 sps:$4 sm:$0xff]  }
 0x12c   : > { %v16989_v37 = vpop.eup %16988 }
 0x12d   : > { %16994 = vrcp.f32 %v879_v36  ;;  %v885_v38 = vadd.f32 1.0, %v16989_v37  ;;  %v16991_v39 = vpop.eup %16990  ;;  %v14940_v36 = vld [vmem:[%s22469_s5 + $0x180] ss:$16 sps:$4 sm:$0xff]   ;;  %v14943_v37 = vld [vmem:[%s22469_s5 + $0x188] ss:$16 sps:$4 sm:$0xff]  }
 0x12e   : > { %v16993_v41 = vpop.eup %16992 }
 0x12f   : > { %16996 = vrcp.f32 %v885_v38  ;;  %v892_v44 = vadd.f32 1.0, %v16993_v41  ;;  %v14946_v38 = vld [vmem:[%s22469_s5 + $0x160] ss:$16 sps:$4 sm:$0xff]   ;;  %v14951_v41 = vld [vmem:[%s22469_s5 + $0x16c] ss:$16 sps:$4 sm:$0xff]  }
 0x131   : > { %16998 = vrcp.f32 %v892_v44  ;;  %v14952_v44 = vld [vmem:[%s22469_s5 + $0x140] ss:$16 sps:$4 sm:$0xff]  }
 0x13a   : > { %v16995_v42 = vpop.eup %16994 }
 0x13b   : > { %v897_v46 = vmul.f32 %v16995_v42, %v16991_v39  ;;  %v14948_v39 = vld [vmem:[%s22469_s5 + $0x164] ss:$16 sps:$4 sm:$0xff]  }
 0x13c   : > { %v16997_v43 = vpop.eup %16996  ;;  %v14954_v42 = vld [vmem:[%s22469_s5 + $0x144] ss:$16 sps:$4 sm:$0xff]  }
 0x13d   : > { %v896_v45 = vmul.f32 %v16997_v43, %v895_v40  ;;  %v14949_v40 = vld [vmem:[%s22469_s5 + $0x168] ss:$16 sps:$4 sm:$0xff]   ;;  %v14957_v43 = vld [vmem:[%s22469_s5 + $0x14c] ss:$16 sps:$4 sm:$0xff]  }
 0x13e   : > { %v16999_v48 = vpop.eup %16998 }
 0x13f   : > { %v898_v47 = vadd.f32 %v897_v46, %v896_v45  ;;  %v14955_v45 = vld [vmem:[%s22469_s5 + $0x148] ss:$16 sps:$4 sm:$0xff]   ;;  %v14960_v46 = vld [vmem:[%s22469_s5 + $0x124] ss:$16 sps:$4 sm:$0xff]  }
 0x141   : > { %17000 = vtanh.f32 %v898_v47  ;;  %902 = vst [vmem:[#allocation3 + $0x8] sm:$0xff] %v898_v47  ;;  %v14963_v47 = vld [vmem:[%s22469_s5 + $0x12c] ss:$16 sps:$4 sm:$0xff]  }
 0x14e   : > { %v17001_v49 = vpop.eup %17000 }
 0x14f   : > { %v900_v52 = vmul.f32 %v17001_v49, %v16999_v48  ;;  %v1424_v48 = vld [vmem:[#allocation2 + $0x8] sm:$0xff]  ;;  %v14958_v49 = vld [vmem:[%s22469_s5 + $0x120] ss:$16 sps:$4 sm:$0xff]  }
 0x151   : > { %v17956_v55 = vpack.c.bf16 %v900_v52, %v900_v52  ;;  %v1426_v52 = vpack.c.bf16 %v1424_v48, %v1424_v48  ;;  %v14991_v48 = vld [vmem:[%s22465_s1 + $0x88] ss:$16 sps:$4 sm:$0xff]  }
 0x153   : > { %1346 = vmatmul.mubr.bf16.vlgmr.msra.gmra.mxu0 %v17956_v55  ;;  %1387 = vmatmul.mubr.bf16.vlgmr.msra.gmra.mxu1 %v17956_v55 }
 0x154   : > { %1834 = vmatpush1.bf16.msra.mxu0 %v14874_v50  ;;  %1875 = vmatpush1.bf16.msra.mxu1 %v14877_v51  ;;  %v14961_v50 = vld [vmem:[%s22469_s5 + $0x128] ss:$16 sps:$4 sm:$0xff]   ;;  %v14966_v51 = vld [vmem:[%s22469_s5 + $0x104] ss:$16 sps:$4 sm:$0xff]  }
 0x155   : > { %1835 = vmatprep.subr.bf16.mxu0 %v14882_v53  ;;  %1876 = vmatprep.subr.bf16.mxu1 %v14885_v54  ;;  %v14969_v53 = vld [vmem:[%s22469_s5 + $0x10c] ss:$16 sps:$4 sm:$0xff]   ;;  %v14964_v54 = vld [vmem:[%s22469_s5 + $0x100] ss:$16 sps:$4 sm:$0xff]  }
 0x156   : > { %1865 = vmatprep.mubr.bf16.mxu0 %v1426_v52  ;;  %1906 = vmatprep.mubr.bf16.mxu1 %v1426_v52  ;;  %v14997_v52 = vld [vmem:[%s22465_s1 + $0x68] ss:$16 sps:$4 sm:$0xff]  }
 0x158   : > { %1836 = vmatpush1.bf16.msra.mxu0 %v14880_v56  ;;  %1877 = vmatpush1.bf16.msra.mxu1 %v14883_v57  ;;  %v14967_v56 = vld [vmem:[%s22469_s5 + $0x108] ss:$16 sps:$4 sm:$0xff]   ;;  %v14972_v57 = vld [vmem:[%s22465_s1 + $0xe4] ss:$16 sps:$4 sm:$0xff]  }
 0x159   : > { %1837 = vmatprep.subr.bf16.mxu0 %v14888_v58  ;;  %1878 = vmatprep.subr.bf16.mxu1 %v14891_v59  ;;  %v14975_v58 = vld [vmem:[%s22465_s1 + $0xec] ss:$16 sps:$4 sm:$0xff]   ;;  %v971_v59 = vld [vmem:[%s22468_s4] sm:$0xf] }
 0x15c   : > { %1838 = vmatpush1.bf16.msra.mxu0 %v14886_v60  ;;  %1879 = vmatpush1.bf16.msra.mxu1 %v14889_v61  ;;  %v976_v60 = vrot.slane %v971_v59, %v17932_v12  ;;  %v980_v61 = vrot.slane %v971_v59, %v17934_v13 }
 0x15d   : > { %1839 = vmatprep.subr.bf16.mxu0 %v14894_v62  ;;  %1880 = vmatprep.subr.bf16.mxu1 %v14897_v63 }
 0x160   : > { %1840 = vmatpush1.bf16.msra.mxu0 %v14892_v0  ;;  %1881 = vmatpush1.bf16.msra.mxu1 %v14895_v1 }
 0x161   : > { %1841 = vmatprep.subr.bf16.mxu0 %v14900_v2  ;;  %1882 = vmatprep.subr.bf16.mxu1 %v14903_v3 }
 0x164   : > { %1842 = vmatpush1.bf16.msra.mxu0 %v14898_v4  ;;  %1883 = vmatpush1.bf16.msra.mxu1 %v14901_v5 }
 0x165   : > { %1843 = vmatprep.subr.bf16.mxu0 %v14906_v6  ;;  %1884 = vmatprep.subr.bf16.mxu1 %v14909_v7 }
 0x168   : > { %1844 = vmatpush1.bf16.msra.mxu0 %v14904_v8  ;;  %1885 = vmatpush1.bf16.msra.mxu1 %v14907_v9 }
 0x169   : > { %1845 = vmatprep.subr.bf16.mxu0 %v14912_v10  ;;  %1886 = vmatprep.subr.bf16.mxu1 %v14915_v11  ;;  %v988_v10 = vrot.slane %v971_v59, %v17938_v22 }
 0x16c   : > { %1846 = vmatpush1.bf16.msra.mxu0 %v14910_v14  ;;  %1887 = vmatpush1.bf16.msra.mxu1 %v14913_v15  ;;  %v984_v14 = vrot.slane %v971_v59, %v17940_v26  ;;  %v15011_v59 = vld [vmem:[%s22465_s1 + $0x2c] ss:$16 sps:$4 sm:$0xff]  }
 0x16d   : > { %1847 = vmatprep.subr.bf16.mxu0 %v14918_v16  ;;  %1888 = vmatprep.subr.bf16.mxu1 %v14921_v17 }
 0x170   : > { %1848 = vmatpush1.bf16.msra.mxu0 %v14916_v18  ;;  %1889 = vmatpush1.bf16.msra.mxu1 %v14919_v19 }
 0x171   : > { %1849 = vmatprep.subr.bf16.mxu0 %v14924_v20  ;;  %1890 = vmatprep.subr.bf16.mxu1 %v14927_v21  ;;  %v1415_v21 = vld [vmem:[#allocation3] sm:$0xff] }
 0x174   : > { %1850 = vmatpush2.bf16.msra.mxu0 %v14922_v23  ;;  %1891 = vmatpush2.bf16.msra.mxu1 %v14925_v24 }
 0x175   : > { %1851 = vmatprep.subr.bf16.mxu0 %v14930_v25  ;;  %1892 = vmatprep.subr.bf16.mxu1 %v14933_v27 }
 0x178   : > { %1852 = vmatpush2.bf16.msra.mxu0 %v14928_v28  ;;  %1893 = vmatpush2.bf16.msra.mxu1 %v14931_v29 }
 0x179   : > { %1853 = vmatprep.subr.bf16.mxu0 %v14936_v30  ;;  %1894 = vmatprep.subr.bf16.mxu1 %v14939_v31 }
 0x17c   : > { %1854 = vmatpush2.bf16.msra.mxu0 %v14934_v32  ;;  %1895 = vmatpush2.bf16.msra.mxu1 %v14937_v33 }
 0x17d   : > { %1855 = vmatprep.subr.bf16.mxu0 %v14942_v34  ;;  %1896 = vmatprep.subr.bf16.mxu1 %v14945_v35  ;;  %v14970_v34 = vld [vmem:[%s22465_s1 + $0xe0] ss:$16 sps:$4 sm:$0xff]   ;;  %v14973_v35 = vld [vmem:[%s22465_s1 + $0xe8] ss:$16 sps:$4 sm:$0xff]  }
 0x180   : > { %1856 = vmatpush2.bf16.msra.mxu0 %v14940_v36  ;;  %1897 = vmatpush2.bf16.msra.mxu1 %v14943_v37  ;;  %v14978_v37 = vld [vmem:[%s22465_s1 + $0xc4] ss:$16 sps:$4 sm:$0xff]  }
 0x181   : > { %1857 = vmatprep.subr.bf16.mxu0 %v14948_v39  ;;  %1898 = vmatprep.subr.bf16.mxu1 %v14951_v41  ;;  %v14979_v41 = vld [vmem:[%s22465_s1 + $0xc8] ss:$16 sps:$4 sm:$0xff]  }
 0x184   : > { %1858 = vmatpush2.bf16.msra.mxu0 %v14946_v38  ;;  %1899 = vmatpush2.bf16.msra.mxu1 %v14949_v40  ;;  %v14981_v38 = vld [vmem:[%s22465_s1 + $0xcc] ss:$16 sps:$4 sm:$0xff]   ;;  %v14976_v40 = vld [vmem:[%s22465_s1 + $0xc0] ss:$16 sps:$4 sm:$0xff]  }
 0x185   : > { %1859 = vmatprep.subr.bf16.mxu0 %v14954_v42  ;;  %1900 = vmatprep.subr.bf16.mxu1 %v14957_v43  ;;  %v14984_v42 = vld [vmem:[%s22465_s1 + $0xa4] ss:$16 sps:$4 sm:$0xff]   ;;  %v14987_v43 = vld [vmem:[%s22465_s1 + $0xac] ss:$16 sps:$4 sm:$0xff]  }
 0x188   : > { %1860 = vmatpush2.bf16.msra.mxu0 %v14952_v44  ;;  %1901 = vmatpush2.bf16.msra.mxu1 %v14955_v45  ;;  %v14982_v44 = vld [vmem:[%s22465_s1 + $0xa0] ss:$16 sps:$4 sm:$0xff]   ;;  %v14985_v45 = vld [vmem:[%s22465_s1 + $0xa8] ss:$16 sps:$4 sm:$0xff]  }
 0x189   : > { %1861 = vmatprep.subr.bf16.mxu0 %v14960_v46  ;;  %1902 = vmatprep.subr.bf16.mxu1 %v14963_v47  ;;  %v14990_v46 = vld [vmem:[%s22465_s1 + $0x84] ss:$16 sps:$4 sm:$0xff]   ;;  %v14993_v47 = vld [vmem:[%s22465_s1 + $0x8c] ss:$16 sps:$4 sm:$0xff]  }
 0x18c   : > { %1862 = vmatpush2.bf16.msra.mxu0 %v14958_v49  ;;  %1903 = vmatpush2.bf16.msra.mxu1 %v14961_v50  ;;  %v14996_v49 = vld [vmem:[%s22465_s1 + $0x64] ss:$16 sps:$4 sm:$0xff]   ;;  %v14999_v50 = vld [vmem:[%s22465_s1 + $0x6c] ss:$16 sps:$4 sm:$0xff]  }
 0x18d   : > { %1863 = vmatprep.subr.bf16.mxu0 %v14966_v51  ;;  %1904 = vmatprep.subr.bf16.mxu1 %v14969_v53  ;;  %v14994_v51 = vld [vmem:[%s22465_s1 + $0x60] ss:$16 sps:$4 sm:$0xff]   ;;  %v15002_v53 = vld [vmem:[%s22465_s1 + $0x44] ss:$16 sps:$4 sm:$0xff]  }
 0x190   : > { %1864 = vmatpush2.bf16.msra.mxu0 %v14964_v54  ;;  %1905 = vmatpush2.bf16.msra.mxu1 %v14967_v56  ;;  %v15005_v54 = vld [vmem:[%s22465_s1 + $0x4c] ss:$16 sps:$4 sm:$0xff]   ;;  %v15000_v56 = vld [vmem:[%s22465_s1 + $0x40] ss:$16 sps:$4 sm:$0xff]  }
 0x191   : > { %2355 = vmatprep.subr.bf16.mxu0 %v14972_v57  ;;  %2396 = vmatprep.subr.bf16.mxu1 %v14975_v58  ;;  %v15003_v57 = vld [vmem:[%s22465_s1 + $0x48] ss:$16 sps:$4 sm:$0xff]   ;;  %v15008_v58 = vld [vmem:[%s22465_s1 + $0x24] ss:$16 sps:$4 sm:$0xff]  }
 0x213   : > { %v1347_v62 = vpop.f32.mrf.mxu0  ;;  %v1388_v63 = vpop.f32.mrf.mxu1 }
 0x214   : > { %v1348_v0 = vadd.f32 %v1347_v62, %v976_v60  ;;  %v1389_v17 = vadd.f32 %v1388_v63, %v984_v14  ;;  %v15006_v60 = vld [vmem:[%s22465_s1 + $0x20] ss:$16 sps:$4 sm:$0xff]   ;;  %v15014_v62 = vld [vmem:[%s22465_s1 + $0x4] ss:$16 sps:$4 sm:$0xff]   ;;  %v15017_v63 = vld [vmem:[%s22465_s1 + $0xc] ss:$16 sps:$4 sm:$0xff]  }
 0x215   : > { %v1349_v1 = vpop.f32.mrf.mxu0  ;;  %v1390_v2 = vpop.f32.mrf.mxu1  ;;  %v15030_v14 = vld [vmem:[%s22465_s1 + $0x1a0] ss:$16 sps:$4 sm:$0xff]  }
 0x216   : > { %v13143_v3 = vmul.f32 -1.442695, %v1348_v0  ;;  %v1350_v4 = vadd.f32 %v1349_v1, %v980_v61  ;;  %v1391_v11 = vadd.f32 %v1390_v2, %v988_v10  ;;  %v15009_v61 = vld [vmem:[%s22465_s1 + $0x28] ss:$16 sps:$4 sm:$0xff]   ;;  %v15012_v0 = vld [vmem:[%s22465_s1] ss:$16 sps:$4 sm:$0xff]  }
 0x217   : > { %v1351_v5 = vpop.f32.mrf.mxu0  ;;  %v1392_v6 = vpop.f32.mrf.mxu1  ;;  %v15015_v1 = vld [vmem:[%s22465_s1 + $0x8] ss:$16 sps:$4 sm:$0xff]   ;;  %v15020_v2 = vld [vmem:[%s22465_s1 + $0x1e4] ss:$16 sps:$4 sm:$0xff]  }
 0x218   : > { %17002 = vpow2.f32 %v13143_v3  ;;  %v13144_v7 = vmul.f32 -1.442695, %v1350_v4  ;;  %v13145_v15 = vmul.f32 -1.442695, %v1391_v11  ;;  %v15023_v3 = vld [vmem:[%s22465_s1 + $0x1ec] ss:$16 sps:$4 sm:$0xff]  }
 0x219   : > { %v1352_v8 = vpop.f32.mrf.mxu0  ;;  %v1393_v9 = vpop.f32.mrf.mxu1  ;;  %v15018_v4 = vld [vmem:[%s22465_s1 + $0x1e0] ss:$16 sps:$4 sm:$0xff]   ;;  %v15021_v5 = vld [vmem:[%s22465_s1 + $0x1e8] ss:$16 sps:$4 sm:$0xff]   ;;  %v15026_v6 = vld [vmem:[%s22465_s1 + $0x1c4] ss:$16 sps:$4 sm:$0xff]  }
 0x21a   : > { %17004 = vpow2.f32 %v13144_v7  ;;  %v15029_v7 = vld [vmem:[%s22465_s1 + $0x1cc] ss:$16 sps:$4 sm:$0xff]   ;;  %v15024_v8 = vld [vmem:[%s22465_s1 + $0x1c0] ss:$16 sps:$4 sm:$0xff]   ;;  %v15027_v9 = vld [vmem:[%s22465_s1 + $0x1c8] ss:$16 sps:$4 sm:$0xff]  }
 0x21b   : > { %17006 = vpow2.f32 %v13145_v15  ;;  %v15032_v10 = vld [vmem:[%s22465_s1 + $0x1a4] ss:$16 sps:$4 sm:$0xff]   ;;  %v15035_v11 = vld [vmem:[%s22465_s1 + $0x1ac] ss:$16 sps:$4 sm:$0xff]   ;;  %v15033_v15 = vld [vmem:[%s22465_s1 + $0x1a8] ss:$16 sps:$4 sm:$0xff]  }
 0x225   : > { %v17003_v16 = vpop.eup %17002 }
 0x226   : > { %v1398_v18 = vadd.f32 1.0, %v17003_v16  ;;  %v15038_v16 = vld [vmem:[%s22465_s1 + $0x184] ss:$16 sps:$4 sm:$0xff]  }
 0x227   : > { %v17005_v19 = vpop.eup %17004 }
 0x228   : > { %17008 = vrcp.f32 %v1398_v18  ;;  %v1404_v20 = vadd.f32 1.0, %v17005_v19  ;;  %v17007_v23 = vpop.eup %17006  ;;  %v15036_v18 = vld [vmem:[%s22465_s1 + $0x180] ss:$16 sps:$4 sm:$0xff]   ;;  %v15039_v19 = vld [vmem:[%s22465_s1 + $0x188] ss:$16 sps:$4 sm:$0xff]  }
 0x229   : > { %17010 = vtanh.f32 %v1389_v17  ;;  %v1411_v28 = vadd.f32 1.0, %v17007_v23  ;;  %v15041_v17 = vld [vmem:[%s22465_s1 + $0x18c] ss:$16 sps:$4 sm:$0xff]   ;;  %v15042_v23 = vld [vmem:[%s22465_s1 + $0x160] ss:$16 sps:$4 sm:$0xff]  }
 0x22a   : > { %17012 = vrcp.f32 %v1404_v20  ;;  %v15044_v20 = vld [vmem:[%s22465_s1 + $0x164] ss:$16 sps:$4 sm:$0xff]  }
 0x22b   : > { %17014 = vrcp.f32 %v1411_v28  ;;  %v15048_v28 = vld [vmem:[%s22465_s1 + $0x140] ss:$16 sps:$4 sm:$0xff]  }
 0x235   : > { %v17009_v24 = vpop.eup %17008 }
 0x236   : > { %v17011_v25 = vpop.eup %17010 }
 0x237   : > { %v17013_v27 = vpop.eup %17012  ;;  %v1417_v29 = vmul.f32 %v17011_v25, %v17009_v24  ;;  %v15045_v24 = vld [vmem:[%s22465_s1 + $0x168] ss:$16 sps:$4 sm:$0xff]   ;;  %v15050_v25 = vld [vmem:[%s22465_s1 + $0x144] ss:$16 sps:$4 sm:$0xff]  }
 0x238   : > { %v1416_v30 = vmul.f32 %v17013_v27, %v1415_v21  ;;  %v17015_v32 = vpop.eup %17014  ;;  %v15047_v21 = vld [vmem:[%s22465_s1 + $0x16c] ss:$16 sps:$4 sm:$0xff]  }
 0x239   : > { %v15053_v27 = vld [vmem:[%s22465_s1 + $0x14c] ss:$16 sps:$4 sm:$0xff]  }
 0x23a   : > { %v1418_v31 = vadd.f32 %v1417_v29, %v1416_v30  ;;  %v15051_v29 = vld [vmem:[%s22465_s1 + $0x148] ss:$16 sps:$4 sm:$0xff]   ;;  %v15056_v30 = vld [vmem:[%s22465_s1 + $0x124] ss:$16 sps:$4 sm:$0xff]  }
 0x23c   : > { %1422 = vst [vmem:[#allocation3] sm:$0xff] %v1418_v31  ;;  %17016 = vtanh.f32 %v1418_v31  ;;  %v15059_v31 = vld [vmem:[%s22465_s1 + $0x12c] ss:$16 sps:$4 sm:$0xff]  }
 0x249   : > { %v17017_v33 = vpop.eup %17016 }
 0x24a   : > { %v1420_v36 = vmul.f32 %v17017_v33, %v17015_v32  ;;  %v15054_v32 = vld [vmem:[%s22465_s1 + $0x120] ss:$16 sps:$4 sm:$0xff]   ;;  %v15057_v33 = vld [vmem:[%s22465_s1 + $0x128] ss:$16 sps:$4 sm:$0xff]  }
 0x24c   : > { %v18159_v39 = vpack.c.bf16 %v1420_v36, %v1420_v36  ;;  %v15060_v36 = vld [vmem:[%s22465_s1 + $0x100] ss:$16 sps:$4 sm:$0xff]  }
 0x24e   : > { %1866 = vmatmul.mubr.bf16.vlgmr.msra.gmra.mxu0 %v18159_v39  ;;  %1907 = vmatmul.mubr.bf16.vlgmr.msra.gmra.mxu1 %v18159_v39 }
 0x24f   : > { %2356 = vmatpush1.bf16.msra.mxu0 %v14970_v34  ;;  %2397 = vmatpush1.bf16.msra.mxu1 %v14973_v35  ;;  %v15062_v34 = vld [vmem:[%s22465_s1 + $0x104] ss:$16 sps:$4 sm:$0xff]   ;;  %v15065_v35 = vld [vmem:[%s22465_s1 + $0x10c] ss:$16 sps:$4 sm:$0xff]  }
 0x250   : > { %2387 = vmatprep.mubr.bf16.mxu0 %v17956_v55  ;;  %2428 = vmatprep.mubr.bf16.mxu1 %v17956_v55  ;;  %v14988_v55 = vld [vmem:[%s22465_s1 + $0x80] ss:$16 sps:$4 sm:$0xff]  }
 0x251   : > { %2357 = vmatprep.subr.bf16.mxu0 %v14978_v37  ;;  %2398 = vmatprep.subr.bf16.mxu1 %v14981_v38  ;;  %v15063_v37 = vld [vmem:[%s22465_s1 + $0x108] ss:$16 sps:$4 sm:$0xff]  }
 0x252   : > { %v13213_v38 = vld [vmem:[%s17530_s18 + $0x8] sm:$0xff] }
 0x253   : > { %2358 = vmatpush1.bf16.msra.mxu0 %v14976_v40  ;;  %2399 = vmatpush1.bf16.msra.mxu1 %v14979_v41  ;;  %v1947_v40 = vpack.c.bf16 %v13213_v38, %v13213_v38  ;;  %v15066_v41 = vld [vmem:[%s22467_s3 + $0xe0] ss:$16 sps:$4 sm:$0xff]  }
 0x254   : > { %2359 = vmatprep.subr.bf16.mxu0 %v14984_v42  ;;  %2400 = vmatprep.subr.bf16.mxu1 %v14987_v43  ;;  %v15068_v42 = vld [vmem:[%s22467_s3 + $0xe4] ss:$16 sps:$4 sm:$0xff]   ;;  %v15069_v43 = vld [vmem:[%s22467_s3 + $0xe8] ss:$16 sps:$4 sm:$0xff]   ;;  %v15150_v38 = vld [vmem:[%s22467_s3 + $0x120] ss:$16 sps:$4 sm:$0xff]  }
 0x257   : > { %2360 = vmatpush1.bf16.msra.mxu0 %v14982_v44  ;;  %2401 = vmatpush1.bf16.msra.mxu1 %v14985_v45  ;;  %v15071_v44 = vld [vmem:[%s22467_s3 + $0xec] ss:$16 sps:$4 sm:$0xff]  }
 0x258   : > { %2361 = vmatprep.subr.bf16.mxu0 %v14990_v46  ;;  %2402 = vmatprep.subr.bf16.mxu1 %v14993_v47  ;;  %v15077_v45 = vld [vmem:[%s22467_s3 + $0xcc] ss:$16 sps:$4 sm:$0xff]   ;;  %v15072_v46 = vld [vmem:[%s22467_s3 + $0xc0] ss:$16 sps:$4 sm:$0xff]   ;;  %v15075_v47 = vld [vmem:[%s22467_s3 + $0xc8] ss:$16 sps:$4 sm:$0xff]  }
 0x25b   : > { %2362 = vmatpush1.bf16.msra.mxu0 %v14988_v55  ;;  %2403 = vmatpush1.bf16.msra.mxu1 %v14991_v48  ;;  %v15080_v55 = vld [vmem:[%s22467_s3 + $0xa4] ss:$16 sps:$4 sm:$0xff]   ;;  %v15083_v48 = vld [vmem:[%s22467_s3 + $0xac] ss:$16 sps:$4 sm:$0xff]  }
 0x25c   : > { %2363 = vmatprep.subr.bf16.mxu0 %v14996_v49  ;;  %2404 = vmatprep.subr.bf16.mxu1 %v14999_v50  ;;  %v15078_v49 = vld [vmem:[%s22467_s3 + $0xa0] ss:$16 sps:$4 sm:$0xff]   ;;  %v15081_v50 = vld [vmem:[%s22467_s3 + $0xa8] ss:$16 sps:$4 sm:$0xff]  }
 0x25f   : > { %2364 = vmatpush1.bf16.msra.mxu0 %v14994_v51  ;;  %2405 = vmatpush1.bf16.msra.mxu1 %v14997_v52  ;;  %v15086_v51 = vld [vmem:[%s22467_s3 + $0x84] ss:$16 sps:$4 sm:$0xff]   ;;  %v15089_v52 = vld [vmem:[%s22467_s3 + $0x8c] ss:$16 sps:$4 sm:$0xff]  }
 0x260   : > { %2365 = vmatprep.subr.bf16.mxu0 %v15002_v53  ;;  %2406 = vmatprep.subr.bf16.mxu1 %v15005_v54  ;;  %v15084_v53 = vld [vmem:[%s22467_s3 + $0x80] ss:$16 sps:$4 sm:$0xff]   ;;  %v15087_v54 = vld [vmem:[%s22467_s3 + $0x88] ss:$16 sps:$4 sm:$0xff]  }
 0x263   : > { %2366 = vmatpush1.bf16.msra.mxu0 %v15000_v56  ;;  %2407 = vmatpush1.bf16.msra.mxu1 %v15003_v57  ;;  %v15092_v56 = vld [vmem:[%s22467_s3 + $0x64] ss:$16 sps:$4 sm:$0xff]   ;;  %v15095_v57 = vld [vmem:[%s22467_s3 + $0x6c] ss:$16 sps:$4 sm:$0xff]  }
 0x264   : > { %2367 = vmatprep.subr.bf16.mxu0 %v15008_v58  ;;  %2408 = vmatprep.subr.bf16.mxu1 %v15011_v59  ;;  %v15090_v58 = vld [vmem:[%s22467_s3 + $0x60] ss:$16 sps:$4 sm:$0xff]   ;;  %v15093_v59 = vld [vmem:[%s22467_s3 + $0x68] ss:$16 sps:$4 sm:$0xff]  }
 0x267   : > { %2368 = vmatpush1.bf16.msra.mxu0 %v15006_v60  ;;  %2409 = vmatpush1.bf16.msra.mxu1 %v15009_v61  ;;  %v15098_v60 = vld [vmem:[%s22467_s3 + $0x44] ss:$16 sps:$4 sm:$0xff]   ;;  %v15101_v61 = vld [vmem:[%s22467_s3 + $0x4c] ss:$16 sps:$4 sm:$0xff]  }
 0x268   : > { %2369 = vmatprep.subr.bf16.mxu0 %v15014_v62  ;;  %2410 = vmatprep.subr.bf16.mxu1 %v15017_v63  ;;  %v15096_v62 = vld [vmem:[%s22467_s3 + $0x40] ss:$16 sps:$4 sm:$0xff]   ;;  %v15099_v63 = vld [vmem:[%s22467_s3 + $0x48] ss:$16 sps:$4 sm:$0xff]  }
 0x26b   : > { %2370 = vmatpush1.bf16.msra.mxu0 %v15012_v0  ;;  %2411 = vmatpush1.bf16.msra.mxu1 %v15015_v1  ;;  %v15104_v0 = vld [vmem:[%s22467_s3 + $0x24] ss:$16 sps:$4 sm:$0xff]   ;;  %v15107_v1 = vld [vmem:[%s22467_s3 + $0x2c] ss:$16 sps:$4 sm:$0xff]  }
 0x26c   : > { %2371 = vmatprep.subr.bf16.mxu0 %v15020_v2  ;;  %2412 = vmatprep.subr.bf16.mxu1 %v15023_v3  ;;  %v15102_v2 = vld [vmem:[%s22467_s3 + $0x20] ss:$16 sps:$4 sm:$0xff]   ;;  %v15105_v3 = vld [vmem:[%s22467_s3 + $0x28] ss:$16 sps:$4 sm:$0xff]  }
 0x26f   : > { %2372 = vmatpush2.bf16.msra.mxu0 %v15018_v4  ;;  %2413 = vmatpush2.bf16.msra.mxu1 %v15021_v5  ;;  %v15110_v4 = vld [vmem:[%s22467_s3 + $0x4] ss:$16 sps:$4 sm:$0xff]   ;;  %v15113_v5 = vld [vmem:[%s22467_s3 + $0xc] ss:$16 sps:$4 sm:$0xff]  }
 0x270   : > { %2373 = vmatprep.subr.bf16.mxu0 %v15026_v6  ;;  %2414 = vmatprep.subr.bf16.mxu1 %v15029_v7  ;;  %v15108_v6 = vld [vmem:[%s22467_s3] ss:$16 sps:$4 sm:$0xff]   ;;  %v15111_v7 = vld [vmem:[%s22467_s3 + $0x8] ss:$16 sps:$4 sm:$0xff]  }
 0x273   : > { %2374 = vmatpush2.bf16.msra.mxu0 %v15024_v8  ;;  %2415 = vmatpush2.bf16.msra.mxu1 %v15027_v9  ;;  %v15116_v8 = vld [vmem:[%s22467_s3 + $0x1e4] ss:$16 sps:$4 sm:$0xff]   ;;  %v15119_v9 = vld [vmem:[%s22467_s3 + $0x1ec] ss:$16 sps:$4 sm:$0xff]  }
 0x274   : > { %2375 = vmatprep.subr.bf16.mxu0 %v15032_v10  ;;  %2416 = vmatprep.subr.bf16.mxu1 %v15035_v11  ;;  %v15114_v10 = vld [vmem:[%s22467_s3 + $0x1e0] ss:$16 sps:$4 sm:$0xff]   ;;  %v15117_v11 = vld [vmem:[%s22467_s3 + $0x1e8] ss:$16 sps:$4 sm:$0xff]  }
 0x277   : > { %2376 = vmatpush2.bf16.msra.mxu0 %v15030_v14  ;;  %2417 = vmatpush2.bf16.msra.mxu1 %v15033_v15  ;;  %v15122_v14 = vld [vmem:[%s22467_s3 + $0x1c4] ss:$16 sps:$4 sm:$0xff]   ;;  %v15125_v15 = vld [vmem:[%s22467_s3 + $0x1cc] ss:$16 sps:$4 sm:$0xff]  }
 0x278   : > { %2377 = vmatprep.subr.bf16.mxu0 %v15038_v16  ;;  %2418 = vmatprep.subr.bf16.mxu1 %v15041_v17  ;;  %v15120_v16 = vld [vmem:[%s22467_s3 + $0x1c0] ss:$16 sps:$4 sm:$0xff]   ;;  %v15123_v17 = vld [vmem:[%s22467_s3 + $0x1c8] ss:$16 sps:$4 sm:$0xff]  }
 0x27b   : > { %2378 = vmatpush2.bf16.msra.mxu0 %v15036_v18  ;;  %2419 = vmatpush2.bf16.msra.mxu1 %v15039_v19  ;;  %v15128_v18 = vld [vmem:[%s22467_s3 + $0x1a4] ss:$16 sps:$4 sm:$0xff]   ;;  %v15131_v19 = vld [vmem:[%s22467_s3 + $0x1ac] ss:$16 sps:$4 sm:$0xff]  }
 0x27c   : > { %2379 = vmatprep.subr.bf16.mxu0 %v15044_v20  ;;  %2420 = vmatprep.subr.bf16.mxu1 %v15047_v21  ;;  %v15126_v20 = vld [vmem:[%s22467_s3 + $0x1a0] ss:$16 sps:$4 sm:$0xff]   ;;  %v15129_v21 = vld [vmem:[%s22467_s3 + $0x1a8] ss:$16 sps:$4 sm:$0xff]  }
 0x27f   : > { %2380 = vmatpush2.bf16.msra.mxu0 %v15042_v23  ;;  %2421 = vmatpush2.bf16.msra.mxu1 %v15045_v24  ;;  %v15134_v23 = vld [vmem:[%s22467_s3 + $0x184] ss:$16 sps:$4 sm:$0xff]   ;;  %v15137_v24 = vld [vmem:[%s22467_s3 + $0x18c] ss:$16 sps:$4 sm:$0xff]  }
 0x280   : > { %2381 = vmatprep.subr.bf16.mxu0 %v15050_v25  ;;  %2422 = vmatprep.subr.bf16.mxu1 %v15053_v27  ;;  %v15132_v25 = vld [vmem:[%s22467_s3 + $0x180] ss:$16 sps:$4 sm:$0xff]   ;;  %v15135_v27 = vld [vmem:[%s22467_s3 + $0x188] ss:$16 sps:$4 sm:$0xff]  }
 0x283   : > { %2382 = vmatpush2.bf16.msra.mxu0 %v15048_v28  ;;  %2423 = vmatpush2.bf16.msra.mxu1 %v15051_v29  ;;  %v15138_v28 = vld [vmem:[%s22467_s3 + $0x160] ss:$16 sps:$4 sm:$0xff]   ;;  %v15140_v29 = vld [vmem:[%s22467_s3 + $0x164] ss:$16 sps:$4 sm:$0xff]  }
 0x284   : > { %2383 = vmatprep.subr.bf16.mxu0 %v15056_v30  ;;  %2424 = vmatprep.subr.bf16.mxu1 %v15059_v31  ;;  %v15141_v30 = vld [vmem:[%s22467_s3 + $0x168] ss:$16 sps:$4 sm:$0xff]   ;;  %v15143_v31 = vld [vmem:[%s22467_s3 + $0x16c] ss:$16 sps:$4 sm:$0xff]  }
 0x287   : > { %2384 = vmatpush2.bf16.msra.mxu0 %v15054_v32  ;;  %2425 = vmatpush2.bf16.msra.mxu1 %v15057_v33  ;;  %v15146_v32 = vld [vmem:[%s22467_s3 + $0x144] ss:$16 sps:$4 sm:$0xff]   ;;  %v15149_v33 = vld [vmem:[%s22467_s3 + $0x14c] ss:$16 sps:$4 sm:$0xff]  }
 0x288   : > { %2385 = vmatprep.subr.bf16.mxu0 %v15062_v34  ;;  %2426 = vmatprep.subr.bf16.mxu1 %v15065_v35  ;;  %v15144_v34 = vld [vmem:[%s22467_s3 + $0x140] ss:$16 sps:$4 sm:$0xff]   ;;  %v15147_v35 = vld [vmem:[%s22467_s3 + $0x148] ss:$16 sps:$4 sm:$0xff]  }
 0x28b   : > { %2386 = vmatpush2.bf16.msra.mxu0 %v15060_v36  ;;  %2427 = vmatpush2.bf16.msra.mxu1 %v15063_v37  ;;  %v15152_v36 = vld [vmem:[%s22467_s3 + $0x124] ss:$16 sps:$4 sm:$0xff]   ;;  %v15155_v37 = vld [vmem:[%s22467_s3 + $0x12c] ss:$16 sps:$4 sm:$0xff]  }
 0x28c   : > { %2873 = vmatprep.subr.bf16.mxu0 %v15068_v42  ;;  %2914 = vmatprep.subr.bf16.mxu1 %v15071_v44  ;;  %v15161_v42 = vld [vmem:[%s22467_s3 + $0x10c] ss:$16 sps:$4 sm:$0xff]   ;;  %v15159_v44 = vld [vmem:[%s22467_s3 + $0x108] ss:$16 sps:$4 sm:$0xff]  }
 0x28e   : > { %2388 = vmatmul.mubr.bf16.vlgmr.msra.gmra.mxu0 %v1947_v40  ;;  %2429 = vmatmul.mubr.bf16.vlgmr.msra.gmra.mxu1 %v1947_v40  ;;  %v15153_v40 = vld [vmem:[%s22467_s3 + $0x128] ss:$16 sps:$4 sm:$0xff]  }
 0x28f   : > { %2905 = vmatprep.mubr.bf16.mxu0 %v18159_v39  ;;  %2946 = vmatprep.mubr.bf16.mxu1 %v18159_v39  ;;  %v15074_v39 = vld [vmem:[%s22467_s3 + $0xc4] ss:$16 sps:$4 sm:$0xff]  }
 0x290   : > { %2874 = vmatpush1.bf16.msra.mxu0 %v15066_v41  ;;  %2915 = vmatpush1.bf16.msra.mxu1 %v15069_v43  ;;  %v15158_v41 = vld [vmem:[%s22467_s3 + $0x104] ss:$16 sps:$4 sm:$0xff]   ;;  %v15156_v43 = vld [vmem:[%s22467_s3 + $0x100] ss:$16 sps:$4 sm:$0xff]  }
 0x291   : > { %2875 = vmatprep.subr.bf16.mxu0 %v15074_v39  ;;  %2916 = vmatprep.subr.bf16.mxu1 %v15077_v45  ;;  %v1491_v39 = vld [vmem:[%s22470_s6] sm:$0xf]  ;;  %v15164_v45 = vld [vmem:[%s22469_s5 + $0xe4] ss:$16 sps:$4 sm:$0xff]  }
 0x294   : > { %2876 = vmatpush1.bf16.msra.mxu0 %v15072_v46  ;;  %2917 = vmatpush1.bf16.msra.mxu1 %v15075_v47  ;;  %v1496_v46 = vrot.slane %v1491_v39, %v17932_v12  ;;  %v15167_v47 = vld [vmem:[%s22469_s5 + $0xec] ss:$16 sps:$4 sm:$0xff]  }
 0x295   : > { %2877 = vmatprep.subr.bf16.mxu0 %v15080_v55  ;;  %2918 = vmatprep.subr.bf16.mxu1 %v15083_v48  ;;  %v1500_v55 = vrot.slane %v1491_v39, %v17934_v13 }
 0x298   : > { %2878 = vmatpush1.bf16.msra.mxu0 %v15078_v49  ;;  %2919 = vmatpush1.bf16.msra.mxu1 %v15081_v50 }
 0x299   : > { %2879 = vmatprep.subr.bf16.mxu0 %v15086_v51  ;;  %2920 = vmatprep.subr.bf16.mxu1 %v15089_v52 }
 0x29c   : > { %2880 = vmatpush1.bf16.msra.mxu0 %v15084_v53  ;;  %2921 = vmatpush1.bf16.msra.mxu1 %v15087_v54 }
 0x29d   : > { %2881 = vmatprep.subr.bf16.mxu0 %v15092_v56  ;;  %2922 = vmatprep.subr.bf16.mxu1 %v15095_v57 }
 0x2a0   : > { %2882 = vmatpush1.bf16.msra.mxu0 %v15090_v58  ;;  %2923 = vmatpush1.bf16.msra.mxu1 %v15093_v59 }
 0x2a1   : > { %2883 = vmatprep.subr.bf16.mxu0 %v15098_v60  ;;  %2924 = vmatprep.subr.bf16.mxu1 %v15101_v61  ;;  %v1508_v61 = vrot.slane %v1491_v39, %v17938_v22 }
 0x2a4   : > { %2884 = vmatpush1.bf16.msra.mxu0 %v15096_v62  ;;  %2925 = vmatpush1.bf16.msra.mxu1 %v15099_v63  ;;  %v1504_v63 = vrot.slane %v1491_v39, %v17940_v26 }
 0x2a5   : > { %2885 = vmatprep.subr.bf16.mxu0 %v15104_v0  ;;  %2926 = vmatprep.subr.bf16.mxu1 %v15107_v1 }
 0x2a8   : > { %2886 = vmatpush1.bf16.msra.mxu0 %v15102_v2  ;;  %2927 = vmatpush1.bf16.msra.mxu1 %v15105_v3 }
 0x2a9   : > { %2887 = vmatprep.subr.bf16.mxu0 %v15110_v4  ;;  %2928 = vmatprep.subr.bf16.mxu1 %v15113_v5 }
 0x2ac   : > { %2888 = vmatpush1.bf16.msra.mxu0 %v15108_v6  ;;  %2929 = vmatpush1.bf16.msra.mxu1 %v15111_v7 }
 0x2ad   : > { %2889 = vmatprep.subr.bf16.mxu0 %v15116_v8  ;;  %2930 = vmatprep.subr.bf16.mxu1 %v15119_v9  ;;  %v1935_v8 = vld [vmem:[#allocation3 + $0x10] sm:$0xff] }
 0x2b0   : > { %2890 = vmatpush2.bf16.msra.mxu0 %v15114_v10  ;;  %2931 = vmatpush2.bf16.msra.mxu1 %v15117_v11 }
 0x2b1   : > { %2891 = vmatprep.subr.bf16.mxu0 %v15122_v14  ;;  %2932 = vmatprep.subr.bf16.mxu1 %v15125_v15 }
 0x2b4   : > { %2892 = vmatpush2.bf16.msra.mxu0 %v15120_v16  ;;  %2933 = vmatpush2.bf16.msra.mxu1 %v15123_v17 }
 0x2b5   : > { %2893 = vmatprep.subr.bf16.mxu0 %v15128_v18  ;;  %2934 = vmatprep.subr.bf16.mxu1 %v15131_v19 }
 0x2b8   : > { %2894 = vmatpush2.bf16.msra.mxu0 %v15126_v20  ;;  %2935 = vmatpush2.bf16.msra.mxu1 %v15129_v21  ;;  %v2013_v20 = vld [vmem:[%s22466_s2] sm:$0xf] }
 0x2b9   : > { %2895 = vmatprep.subr.bf16.mxu0 %v15134_v23  ;;  %2936 = vmatprep.subr.bf16.mxu1 %v15137_v24  ;;  %v2018_v21 = vrot.slane %v2013_v20, %v17932_v12  ;;  %v2022_v23 = vrot.slane %v2013_v20, %v17934_v13 }
 0x2bc   : > { %2896 = vmatpush2.bf16.msra.mxu0 %v15132_v25  ;;  %2937 = vmatpush2.bf16.msra.mxu1 %v15135_v27 }
 0x2bd   : > { %2897 = vmatprep.subr.bf16.mxu0 %v15140_v29  ;;  %2938 = vmatprep.subr.bf16.mxu1 %v15143_v31 }
 0x2c0   : > { %2898 = vmatpush2.bf16.msra.mxu0 %v15138_v28  ;;  %2939 = vmatpush2.bf16.msra.mxu1 %v15141_v30 }
 0x2c1   : > { %2899 = vmatprep.subr.bf16.mxu0 %v15146_v32  ;;  %2940 = vmatprep.subr.bf16.mxu1 %v15149_v33 }
 0x2c4   : > { %2900 = vmatpush2.bf16.msra.mxu0 %v15144_v34  ;;  %2941 = vmatpush2.bf16.msra.mxu1 %v15147_v35 }
 0x2c5   : > { %2901 = vmatprep.subr.bf16.mxu0 %v15152_v36  ;;  %2942 = vmatprep.subr.bf16.mxu1 %v15155_v37  ;;  %v2030_v37 = vrot.slane %v2013_v20, %v17938_v22 }
 0x2c8   : > { %2902 = vmatpush2.bf16.msra.mxu0 %v15150_v38  ;;  %2943 = vmatpush2.bf16.msra.mxu1 %v15153_v40  ;;  %v2026_v38 = vrot.slane %v2013_v20, %v17940_v26  ;;  %v15200_v20 = vld [vmem:[%s22469_s5 + $0x24] ss:$16 sps:$4 sm:$0xff]  }
 0x2c9   : > { %2903 = vmatprep.subr.bf16.mxu0 %v15158_v41  ;;  %2944 = vmatprep.subr.bf16.mxu1 %v15161_v42 }
 0x2cc   : > { %2904 = vmatpush2.bf16.msra.mxu0 %v15156_v43  ;;  %2945 = vmatpush2.bf16.msra.mxu1 %v15159_v44 }
 0x2cd   : > { %3391 = vmatprep.subr.bf16.mxu0 %v15164_v45  ;;  %3432 = vmatprep.subr.bf16.mxu1 %v15167_v47 }
 0x30e   : > { %v1867_v48 = vpop.f32.mrf.mxu0  ;;  %v1908_v49 = vpop.f32.mrf.mxu1 }
 0x30f   : > { %v1868_v50 = vadd.f32 %v1867_v48, %v1496_v46  ;;  %v1909_v2 = vadd.f32 %v1908_v49, %v1504_v63  ;;  %v2456_v49 = vld [vmem:[#allocation3 + $0x8] sm:$0xff]  ;;  %v15173_v63 = vld [vmem:[%s22469_s5 + $0xcc] ss:$16 sps:$4 sm:$0xff]  }
 0x310   : > { %v1869_v51 = vpop.f32.mrf.mxu0  ;;  %v1910_v52 = vpop.f32.mrf.mxu1 }
 0x311   : > { %v13210_v53 = vmul.f32 -1.442695, %v1868_v50  ;;  %v1870_v54 = vadd.f32 %v1869_v51, %v1500_v55  ;;  %v1911_v62 = vadd.f32 %v1910_v52, %v1508_v61 }
 0x312   : > { %v1871_v56 = vpop.f32.mrf.mxu0  ;;  %v1912_v57 = vpop.f32.mrf.mxu1 }
 0x313   : > { %17018 = vpow2.f32 %v13210_v53  ;;  %v13211_v58 = vmul.f32 -1.442695, %v1870_v54  ;;  %v13212_v0 = vmul.f32 -1.442695, %v1911_v62  ;;  %v15170_v62 = vld [vmem:[%s22469_s5 + $0xc4] ss:$16 sps:$4 sm:$0xff]  }
 0x314   : > { %v1872_v59 = vpop.f32.mrf.mxu0  ;;  %v1913_v60 = vpop.f32.mrf.mxu1 }
 0x315   : > { %17020 = vpow2.f32 %v13211_v58  ;;  %v15162_v59 = vld [vmem:[%s22469_s5 + $0xe0] ss:$16 sps:$4 sm:$0xff]   ;;  %v15165_v60 = vld [vmem:[%s22469_s5 + $0xe8] ss:$16 sps:$4 sm:$0xff]  }
 0x316   : > { %17022 = vpow2.f32 %v13212_v0  ;;  %v15168_v0 = vld [vmem:[%s22469_s5 + $0xc0] ss:$16 sps:$4 sm:$0xff]  }
 0x320   : > { %v17019_v1 = vpop.eup %17018 }
 0x321   : > { %v1918_v3 = vadd.f32 1.0, %v17019_v1  ;;  %v15171_v1 = vld [vmem:[%s22469_s5 + $0xc8] ss:$16 sps:$4 sm:$0xff]  }
 0x322   : > { %v17021_v4 = vpop.eup %17020 }
 0x323   : > { %17024 = vrcp.f32 %v1918_v3  ;;  %v1924_v5 = vadd.f32 1.0, %v17021_v4  ;;  %v17023_v6 = vpop.eup %17022  ;;  %v15179_v3 = vld [vmem:[%s22469_s5 + $0xac] ss:$16 sps:$4 sm:$0xff]   ;;  %v15174_v4 = vld [vmem:[%s22469_s5 + $0xa0] ss:$16 sps:$4 sm:$0xff]  }
 0x324   : > { %17026 = vtanh.f32 %v1909_v2  ;;  %v1931_v11 = vadd.f32 1.0, %v17023_v6  ;;  %v15176_v2 = vld [vmem:[%s22469_s5 + $0xa4] ss:$16 sps:$4 sm:$0xff]  }
 0x325   : > { %17028 = vrcp.f32 %v1924_v5  ;;  %v15177_v5 = vld [vmem:[%s22469_s5 + $0xa8] ss:$16 sps:$4 sm:$0xff]   ;;  %v15182_v6 = vld [vmem:[%s22469_s5 + $0x84] ss:$16 sps:$4 sm:$0xff]  }
 0x326   : > { %17030 = vrcp.f32 %v1931_v11  ;;  %v15191_v11 = vld [vmem:[%s22469_s5 + $0x6c] ss:$16 sps:$4 sm:$0xff]  }
 0x330   : > { %v17025_v7 = vpop.eup %17024 }
 0x331   : > { %v17027_v9 = vpop.eup %17026 }
 0x332   : > { %v17029_v10 = vpop.eup %17028  ;;  %v1937_v14 = vmul.f32 %v17027_v9, %v17025_v7  ;;  %v15185_v7 = vld [vmem:[%s22469_s5 + $0x8c] ss:$16 sps:$4 sm:$0xff]   ;;  %v15183_v9 = vld [vmem:[%s22469_s5 + $0x88] ss:$16 sps:$4 sm:$0xff]  }
 0x333   : > { %v1936_v15 = vmul.f32 %v17029_v10, %v1935_v8  ;;  %v17031_v17 = vpop.eup %17030  ;;  %v15180_v8 = vld [vmem:[%s22469_s5 + $0x80] ss:$16 sps:$4 sm:$0xff]   ;;  %v15188_v10 = vld [vmem:[%s22469_s5 + $0x64] ss:$16 sps:$4 sm:$0xff]  }
 0x335   : > { %v1938_v16 = vadd.f32 %v1937_v14, %v1936_v15  ;;  %v15186_v14 = vld [vmem:[%s22469_s5 + $0x60] ss:$16 sps:$4 sm:$0xff]   ;;  %v15189_v15 = vld [vmem:[%s22469_s5 + $0x68] ss:$16 sps:$4 sm:$0xff]  }
 0x337   : > { %17032 = vtanh.f32 %v1938_v16  ;;  %1942 = vst [vmem:[#allocation3 + $0x10] sm:$0xff] %v1938_v16  ;;  %v15194_v16 = vld [vmem:[%s22469_s5 + $0x44] ss:$16 sps:$4 sm:$0xff]  }
 0x344   : > { %v17033_v18 = vpop.eup %17032 }
 0x345   : > { %v1940_v19 = vmul.f32 %v17033_v18, %v17031_v17  ;;  %v15197_v17 = vld [vmem:[%s22469_s5 + $0x4c] ss:$16 sps:$4 sm:$0xff]   ;;  %v15192_v18 = vld [vmem:[%s22469_s5 + $0x40] ss:$16 sps:$4 sm:$0xff]  }
 0x347   : > { %1943 = vst [vmem:[%s17535_s21] sm:$0xff] %v1940_v19  ;;  %v2984_v61 = vpack.c.bf16 %v1940_v19, %v1940_v19  ;;  %v15195_v19 = vld [vmem:[%s22469_s5 + $0x48] ss:$16 sps:$4 sm:$0xff]  }
 0x34e   : > { %v2389_v24 = vpop.f32.mrf.mxu0  ;;  %v2430_v25 = vpop.f32.mrf.mxu1 }
 0x34f   : > { %v2390_v27 = vadd.f32 %v2389_v24, %v2018_v21  ;;  %v2431_v41 = vadd.f32 %v2430_v25, %v2026_v38  ;;  %v15203_v21 = vld [vmem:[%s22469_s5 + $0x2c] ss:$16 sps:$4 sm:$0xff]   ;;  %v15201_v24 = vld [vmem:[%s22469_s5 + $0x28] ss:$16 sps:$4 sm:$0xff]   ;;  %v15206_v25 = vld [vmem:[%s22469_s5 + $0x4] ss:$16 sps:$4 sm:$0xff]  }
 0x350   : > { %v2391_v28 = vpop.f32.mrf.mxu0  ;;  %v2432_v29 = vpop.f32.mrf.mxu1  ;;  %v15224_v38 = vld [vmem:[%s22469_s5 + $0x1a4] ss:$16 sps:$4 sm:$0xff]  }
 0x351   : > { %v13278_v30 = vmul.f32 -1.442695, %v2390_v27  ;;  %v2392_v31 = vadd.f32 %v2391_v28, %v2022_v23  ;;  %v2433_v40 = vadd.f32 %v2432_v29, %v2030_v37  ;;  %v15198_v23 = vld [vmem:[%s22469_s5 + $0x20] ss:$16 sps:$4 sm:$0xff]   ;;  %v15209_v27 = vld [vmem:[%s22469_s5 + $0xc] ss:$16 sps:$4 sm:$0xff]  }
 0x352   : > { %v2393_v32 = vpop.f32.mrf.mxu0  ;;  %v2434_v33 = vpop.f32.mrf.mxu1  ;;  %v15204_v28 = vld [vmem:[%s22469_s5] ss:$16 sps:$4 sm:$0xff]   ;;  %v15207_v29 = vld [vmem:[%s22469_s5 + $0x8] ss:$16 sps:$4 sm:$0xff]  }
 0x353   : > { %17034 = vpow2.f32 %v13278_v30  ;;  %v13279_v34 = vmul.f32 -1.442695, %v2392_v31  ;;  %v13280_v42 = vmul.f32 -1.442695, %v2433_v40  ;;  %v15212_v30 = vld [vmem:[%s22469_s5 + $0x1e4] ss:$16 sps:$4 sm:$0xff]  }
 0x354   : > { %v2394_v35 = vpop.f32.mrf.mxu0  ;;  %v2435_v36 = vpop.f32.mrf.mxu1  ;;  %v15215_v31 = vld [vmem:[%s22469_s5 + $0x1ec] ss:$16 sps:$4 sm:$0xff]   ;;  %v15210_v32 = vld [vmem:[%s22469_s5 + $0x1e0] ss:$16 sps:$4 sm:$0xff]   ;;  %v15213_v33 = vld [vmem:[%s22469_s5 + $0x1e8] ss:$16 sps:$4 sm:$0xff]  }
 0x355   : > { %17036 = vpow2.f32 %v13279_v34  ;;  %v15218_v34 = vld [vmem:[%s22469_s5 + $0x1c4] ss:$16 sps:$4 sm:$0xff]   ;;  %v15221_v35 = vld [vmem:[%s22469_s5 + $0x1cc] ss:$16 sps:$4 sm:$0xff]   ;;  %v15216_v36 = vld [vmem:[%s22469_s5 + $0x1c0] ss:$16 sps:$4 sm:$0xff]  }
 0x356   : > { %17038 = vtanh.f32 %v2431_v41  ;;  %v15219_v37 = vld [vmem:[%s22469_s5 + $0x1c8] ss:$16 sps:$4 sm:$0xff]   ;;  %v15227_v40 = vld [vmem:[%s22469_s5 + $0x1ac] ss:$16 sps:$4 sm:$0xff]   ;;  %v15222_v41 = vld [vmem:[%s22469_s5 + $0x1a0] ss:$16 sps:$4 sm:$0xff]  }
 0x357   : > { %17040 = vpow2.f32 %v13280_v42  ;;  %v15225_v42 = vld [vmem:[%s22469_s5 + $0x1a8] ss:$16 sps:$4 sm:$0xff]  }
 0x360   : > { %v17035_v43 = vpop.eup %17034 }
 0x361   : > { %v2440_v44 = vadd.f32 1.0, %v17035_v43  ;;  %v15230_v43 = vld [vmem:[%s22469_s5 + $0x184] ss:$16 sps:$4 sm:$0xff]  }
 0x362   : > { %v17037_v39 = vpop.eup %17036 }
 0x363   : > { %17042 = vrcp.f32 %v2440_v44  ;;  %v2446_v45 = vadd.f32 1.0, %v17037_v39  ;;  %v17039_v46 = vpop.eup %17038  ;;  %v15233_v44 = vld [vmem:[%s22469_s5 + $0x18c] ss:$16 sps:$4 sm:$0xff]   ;;  %v15228_v39 = vld [vmem:[%s22469_s5 + $0x180] ss:$16 sps:$4 sm:$0xff]  }
 0x364   : > { %v17041_v47 = vpop.eup %17040 }
 0x365   : > { %17044 = vrcp.f32 %v2446_v45  ;;  %v2453_v50 = vadd.f32 1.0, %v17041_v47  ;;  %v15231_v45 = vld [vmem:[%s22469_s5 + $0x188] ss:$16 sps:$4 sm:$0xff]   ;;  %v15236_v47 = vld [vmem:[%s22469_s5 + $0x164] ss:$16 sps:$4 sm:$0xff]  }
 0x367   : > { %17046 = vrcp.f32 %v2453_v50  ;;  %v15245_v50 = vld [vmem:[%s22469_s5 + $0x14c] ss:$16 sps:$4 sm:$0xff]  }
 0x370   : > { %v17043_v55 = vpop.eup %17042 }
 0x371   : > { %v2458_v52 = vmul.f32 %v17043_v55, %v17039_v46  ;;  %v15234_v46 = vld [vmem:[%s22469_s5 + $0x160] ss:$16 sps:$4 sm:$0xff]   ;;  %v15237_v55 = vld [vmem:[%s22469_s5 + $0x168] ss:$16 sps:$4 sm:$0xff]  }
 0x372   : > { %v17045_v48 = vpop.eup %17044 }
 0x373   : > { %v2457_v51 = vmul.f32 %v17045_v48, %v2456_v49  ;;  %v15239_v48 = vld [vmem:[%s22469_s5 + $0x16c] ss:$16 sps:$4 sm:$0xff]   ;;  %v15242_v49 = vld [vmem:[%s22469_s5 + $0x144] ss:$16 sps:$4 sm:$0xff]  }
 0x374   : > { %v17047_v54 = vpop.eup %17046 }
 0x375   : > { %v2459_v53 = vadd.f32 %v2458_v52, %v2457_v51  ;;  %v15240_v51 = vld [vmem:[%s22469_s5 + $0x140] ss:$16 sps:$4 sm:$0xff]   ;;  %v15243_v52 = vld [vmem:[%s22469_s5 + $0x148] ss:$16 sps:$4 sm:$0xff]  }
 0x377   : > { %17048 = vtanh.f32 %v2459_v53  ;;  %2463 = vst [vmem:[#allocation3 + $0x8] sm:$0xff] %v2459_v53  ;;  %v15248_v53 = vld [vmem:[%s22469_s5 + $0x124] ss:$16 sps:$4 sm:$0xff]  }
 0x384   : > { %v17049_v56 = vpop.eup %17048 }
 0x385   : > { %v2461_v57 = vmul.f32 %v17049_v56, %v17047_v54  ;;  %v15251_v54 = vld [vmem:[%s22469_s5 + $0x12c] ss:$16 sps:$4 sm:$0xff]   ;;  %v15246_v56 = vld [vmem:[%s22469_s5 + $0x120] ss:$16 sps:$4 sm:$0xff]  }
 0x387   : > { %v18555_v58 = vpack.c.bf16 %v2461_v57, %v2461_v57  ;;  %v15249_v57 = vld [vmem:[%s22469_s5 + $0x128] ss:$16 sps:$4 sm:$0xff]  }
 0x389   : > { %2906 = vmatmul.mubr.bf16.vlgmr.msra.gmra.mxu0 %v18555_v58  ;;  %2947 = vmatmul.mubr.bf16.vlgmr.msra.gmra.mxu1 %v18555_v58 }
 0x38a   : > { %3423 = vmatprep.mubr.bf16.mxu0 %v2984_v61  ;;  %3464 = vmatprep.mubr.bf16.mxu1 %v2984_v61  ;;  %v15252_v61 = vld [vmem:[%s22469_s5 + $0x100] ss:$16 sps:$4 sm:$0xff]  }
 0x38b   : > { %3392 = vmatpush1.bf16.msra.mxu0 %v15162_v59  ;;  %3433 = vmatpush1.bf16.msra.mxu1 %v15165_v60  ;;  %v15254_v59 = vld [vmem:[%s22469_s5 + $0x104] ss:$16 sps:$4 sm:$0xff]   ;;  %v15257_v60 = vld [vmem:[%s22469_s5 + $0x10c] ss:$16 sps:$4 sm:$0xff]  }
 0x38c   : > { %3393 = vmatprep.subr.bf16.mxu0 %v15170_v62  ;;  %3434 = vmatprep.subr.bf16.mxu1 %v15173_v63  ;;  %v15255_v62 = vld [vmem:[%s22469_s5 + $0x108] ss:$16 sps:$4 sm:$0xff]   ;;  %v15260_v63 = vld [vmem:[%s22465_s1 + $0xe4] ss:$16 sps:$4 sm:$0xff]  }
 0x38f   : > { %3394 = vmatpush1.bf16.msra.mxu0 %v15168_v0  ;;  %3435 = vmatpush1.bf16.msra.mxu1 %v15171_v1  ;;  %v15263_v0 = vld [vmem:[%s22465_s1 + $0xec] ss:$16 sps:$4 sm:$0xff]   ;;  %v2531_v1 = vld [vmem:[%s22468_s4] sm:$0xf] }
 0x390   : > { %3395 = vmatprep.subr.bf16.mxu0 %v15176_v2  ;;  %3436 = vmatprep.subr.bf16.mxu1 %v15179_v3  ;;  %v2536_v2 = vrot.slane %v2531_v1, %v17932_v12  ;;  %v2540_v3 = vrot.slane %v2531_v1, %v17934_v13 }
 0x393   : > { %3396 = vmatpush1.bf16.msra.mxu0 %v15174_v4  ;;  %3437 = vmatpush1.bf16.msra.mxu1 %v15177_v5 }
 0x394   : > { %3397 = vmatprep.subr.bf16.mxu0 %v15182_v6  ;;  %3438 = vmatprep.subr.bf16.mxu1 %v15185_v7 }
 0x397   : > { %3398 = vmatpush1.bf16.msra.mxu0 %v15180_v8  ;;  %3439 = vmatpush1.bf16.msra.mxu1 %v15183_v9 }
 0x398   : > { %3399 = vmatprep.subr.bf16.mxu0 %v15188_v10  ;;  %3440 = vmatprep.subr.bf16.mxu1 %v15191_v11 }
 0x39b   : > { %3400 = vmatpush1.bf16.msra.mxu0 %v15186_v14  ;;  %3441 = vmatpush1.bf16.msra.mxu1 %v15189_v15 }
 0x39c   : > { %3401 = vmatprep.subr.bf16.mxu0 %v15194_v16  ;;  %3442 = vmatprep.subr.bf16.mxu1 %v15197_v17 }
 0x39f   : > { %3402 = vmatpush1.bf16.msra.mxu0 %v15192_v18  ;;  %3443 = vmatpush1.bf16.msra.mxu1 %v15195_v19  ;;  %v2548_v18 = vrot.slane %v2531_v1, %v17938_v22 }
 0x3a0   : > { %3403 = vmatprep.subr.bf16.mxu0 %v15200_v20  ;;  %3444 = vmatprep.subr.bf16.mxu1 %v15203_v21  ;;  %v2544_v20 = vrot.slane %v2531_v1, %v17940_v26  ;;  %v15299_v1 = vld [vmem:[%s22465_s1 + $0x2c] ss:$16 sps:$4 sm:$0xff]  }
 0x3a3   : > { %3404 = vmatpush1.bf16.msra.mxu0 %v15198_v23  ;;  %3445 = vmatpush1.bf16.msra.mxu1 %v15201_v24 }
 0x3a4   : > { %3405 = vmatprep.subr.bf16.mxu0 %v15206_v25  ;;  %3446 = vmatprep.subr.bf16.mxu1 %v15209_v27 }
 0x3a7   : > { %3406 = vmatpush1.bf16.msra.mxu0 %v15204_v28  ;;  %3447 = vmatpush1.bf16.msra.mxu1 %v15207_v29 }
 0x3a8   : > { %3407 = vmatprep.subr.bf16.mxu0 %v15212_v30  ;;  %3448 = vmatprep.subr.bf16.mxu1 %v15215_v31 }
 0x3ab   : > { %3408 = vmatpush2.bf16.msra.mxu0 %v15210_v32  ;;  %3449 = vmatpush2.bf16.msra.mxu1 %v15213_v33  ;;  %v2974_v33 = vld [vmem:[#allocation3] sm:$0xff] }
 0x3ac   : > { %3409 = vmatprep.subr.bf16.mxu0 %v15218_v34  ;;  %3450 = vmatprep.subr.bf16.mxu1 %v15221_v35 }
 0x3af   : > { %3410 = vmatpush2.bf16.msra.mxu0 %v15216_v36  ;;  %3451 = vmatpush2.bf16.msra.mxu1 %v15219_v37 }
 0x3b0   : > { %3411 = vmatprep.subr.bf16.mxu0 %v15224_v38  ;;  %3452 = vmatprep.subr.bf16.mxu1 %v15227_v40 }
 0x3b3   : > { %3412 = vmatpush2.bf16.msra.mxu0 %v15222_v41  ;;  %3453 = vmatpush2.bf16.msra.mxu1 %v15225_v42  ;;  %v15258_v42 = vld [vmem:[%s22465_s1 + $0xe0] ss:$16 sps:$4 sm:$0xff]  }
 0x3b4   : > { %3413 = vmatprep.subr.bf16.mxu0 %v15230_v43  ;;  %3454 = vmatprep.subr.bf16.mxu1 %v15233_v44  ;;  %v15261_v43 = vld [vmem:[%s22465_s1 + $0xe8] ss:$16 sps:$4 sm:$0xff]  }
 0x3b7   : > { %3414 = vmatpush2.bf16.msra.mxu0 %v15228_v39  ;;  %3455 = vmatpush2.bf16.msra.mxu1 %v15231_v45  ;;  %v15266_v39 = vld [vmem:[%s22465_s1 + $0xc4] ss:$16 sps:$4 sm:$0xff]   ;;  %v15269_v45 = vld [vmem:[%s22465_s1 + $0xcc] ss:$16 sps:$4 sm:$0xff]  }
 0x3b8   : > { %3415 = vmatprep.subr.bf16.mxu0 %v15236_v47  ;;  %3456 = vmatprep.subr.bf16.mxu1 %v15239_v48  ;;  %v15267_v47 = vld [vmem:[%s22465_s1 + $0xc8] ss:$16 sps:$4 sm:$0xff]   ;;  %v15275_v48 = vld [vmem:[%s22465_s1 + $0xac] ss:$16 sps:$4 sm:$0xff]  }
 0x3bb   : > { %3416 = vmatpush2.bf16.msra.mxu0 %v15234_v46  ;;  %3457 = vmatpush2.bf16.msra.mxu1 %v15237_v55  ;;  %v15264_v46 = vld [vmem:[%s22465_s1 + $0xc0] ss:$16 sps:$4 sm:$0xff]   ;;  %v15272_v55 = vld [vmem:[%s22465_s1 + $0xa4] ss:$16 sps:$4 sm:$0xff]  }
 0x3bc   : > { %3417 = vmatprep.subr.bf16.mxu0 %v15242_v49  ;;  %3458 = vmatprep.subr.bf16.mxu1 %v15245_v50  ;;  %v15270_v49 = vld [vmem:[%s22465_s1 + $0xa0] ss:$16 sps:$4 sm:$0xff]   ;;  %v15278_v50 = vld [vmem:[%s22465_s1 + $0x84] ss:$16 sps:$4 sm:$0xff]  }
 0x3bf   : > { %3418 = vmatpush2.bf16.msra.mxu0 %v15240_v51  ;;  %3459 = vmatpush2.bf16.msra.mxu1 %v15243_v52  ;;  %v15281_v51 = vld [vmem:[%s22465_s1 + $0x8c] ss:$16 sps:$4 sm:$0xff]   ;;  %v15276_v52 = vld [vmem:[%s22465_s1 + $0x80] ss:$16 sps:$4 sm:$0xff]  }
 0x3c0   : > { %3419 = vmatprep.subr.bf16.mxu0 %v15248_v53  ;;  %3460 = vmatprep.subr.bf16.mxu1 %v15251_v54  ;;  %v15279_v53 = vld [vmem:[%s22465_s1 + $0x88] ss:$16 sps:$4 sm:$0xff]   ;;  %v15284_v54 = vld [vmem:[%s22465_s1 + $0x64] ss:$16 sps:$4 sm:$0xff]  }
 0x3c3   : > { %3420 = vmatpush2.bf16.msra.mxu0 %v15246_v56  ;;  %3461 = vmatpush2.bf16.msra.mxu1 %v15249_v57  ;;  %v15287_v56 = vld [vmem:[%s22465_s1 + $0x6c] ss:$16 sps:$4 sm:$0xff]   ;;  %v15282_v57 = vld [vmem:[%s22465_s1 + $0x60] ss:$16 sps:$4 sm:$0xff]  }
 0x3c4   : > { %3421 = vmatprep.subr.bf16.mxu0 %v15254_v59  ;;  %3462 = vmatprep.subr.bf16.mxu1 %v15257_v60  ;;  %v15285_v59 = vld [vmem:[%s22465_s1 + $0x68] ss:$16 sps:$4 sm:$0xff]   ;;  %v15290_v60 = vld [vmem:[%s22465_s1 + $0x44] ss:$16 sps:$4 sm:$0xff]  }
 0x3c7   : > { %3422 = vmatpush2.bf16.msra.mxu0 %v15252_v61  ;;  %3463 = vmatpush2.bf16.msra.mxu1 %v15255_v62  ;;  %v15293_v61 = vld [vmem:[%s22465_s1 + $0x4c] ss:$16 sps:$4 sm:$0xff]   ;;  %v15288_v62 = vld [vmem:[%s22465_s1 + $0x40] ss:$16 sps:$4 sm:$0xff]  }
 0x3c8   : > { %3913 = vmatprep.subr.bf16.mxu0 %v15260_v63  ;;  %3954 = vmatprep.subr.bf16.mxu1 %v15263_v0  ;;  %v15291_v63 = vld [vmem:[%s22465_s1 + $0x48] ss:$16 sps:$4 sm:$0xff]   ;;  %v15296_v0 = vld [vmem:[%s22465_s1 + $0x24] ss:$16 sps:$4 sm:$0xff]  }
 0x449   : > { %v2907_v4 = vpop.f32.mrf.mxu0  ;;  %v2948_v5 = vpop.f32.mrf.mxu1 }
 0x44a   : > { %v2908_v6 = vadd.f32 %v2907_v4, %v2536_v2  ;;  %v2949_v24 = vadd.f32 %v2948_v5, %v2544_v20  ;;  %v15294_v2 = vld [vmem:[%s22465_s1 + $0x20] ss:$16 sps:$4 sm:$0xff]   ;;  %v15302_v4 = vld [vmem:[%s22465_s1 + $0x4] ss:$16 sps:$4 sm:$0xff]   ;;  %v15305_v5 = vld [vmem:[%s22465_s1 + $0xc] ss:$16 sps:$4 sm:$0xff]  }
 0x44b   : > { %v2909_v7 = vpop.f32.mrf.mxu0  ;;  %v2950_v8 = vpop.f32.mrf.mxu1  ;;  %v15318_v20 = vld [vmem:[%s22465_s1 + $0x1a0] ss:$16 sps:$4 sm:$0xff]  }
 0x44c   : > { %v13345_v9 = vmul.f32 -1.442695, %v2908_v6  ;;  %v2910_v10 = vadd.f32 %v2909_v7, %v2540_v3  ;;  %v2951_v19 = vadd.f32 %v2950_v8, %v2548_v18  ;;  %v15297_v3 = vld [vmem:[%s22465_s1 + $0x28] ss:$16 sps:$4 sm:$0xff]   ;;  %v15300_v6 = vld [vmem:[%s22465_s1] ss:$16 sps:$4 sm:$0xff]  }
 0x44d   : > { %v2911_v11 = vpop.f32.mrf.mxu0  ;;  %v2952_v14 = vpop.f32.mrf.mxu1  ;;  %v15303_v7 = vld [vmem:[%s22465_s1 + $0x8] ss:$16 sps:$4 sm:$0xff]   ;;  %v15308_v8 = vld [vmem:[%s22465_s1 + $0x1e4] ss:$16 sps:$4 sm:$0xff]  }
 0x44e   : > { %17050 = vpow2.f32 %v13345_v9  ;;  %v13346_v15 = vmul.f32 -1.442695, %v2910_v10  ;;  %v13347_v21 = vmul.f32 -1.442695, %v2951_v19  ;;  %v15311_v9 = vld [vmem:[%s22465_s1 + $0x1ec] ss:$16 sps:$4 sm:$0xff]  }
 0x44f   : > { %v2912_v16 = vpop.f32.mrf.mxu0  ;;  %v2953_v17 = vpop.f32.mrf.mxu1  ;;  %v15306_v10 = vld [vmem:[%s22465_s1 + $0x1e0] ss:$16 sps:$4 sm:$0xff]   ;;  %v15309_v11 = vld [vmem:[%s22465_s1 + $0x1e8] ss:$16 sps:$4 sm:$0xff]   ;;  %v15314_v14 = vld [vmem:[%s22465_s1 + $0x1c4] ss:$16 sps:$4 sm:$0xff]  }
 0x450   : > { %17052 = vpow2.f32 %v13346_v15  ;;  %v15317_v15 = vld [vmem:[%s22465_s1 + $0x1cc] ss:$16 sps:$4 sm:$0xff]   ;;  %v15312_v16 = vld [vmem:[%s22465_s1 + $0x1c0] ss:$16 sps:$4 sm:$0xff]   ;;  %v15315_v17 = vld [vmem:[%s22465_s1 + $0x1c8] ss:$16 sps:$4 sm:$0xff]  }
 0x451   : > { %17054 = vpow2.f32 %v13347_v21  ;;  %v15320_v18 = vld [vmem:[%s22465_s1 + $0x1a4] ss:$16 sps:$4 sm:$0xff]   ;;  %v15323_v19 = vld [vmem:[%s22465_s1 + $0x1ac] ss:$16 sps:$4 sm:$0xff]   ;;  %v15321_v21 = vld [vmem:[%s22465_s1 + $0x1a8] ss:$16 sps:$4 sm:$0xff]  }
 0x45b   : > { %v17051_v23 = vpop.eup %17050 }
 0x45c   : > { %v2958_v25 = vadd.f32 1.0, %v17051_v23  ;;  %v15326_v23 = vld [vmem:[%s22465_s1 + $0x184] ss:$16 sps:$4 sm:$0xff]  }
 0x45d   : > { %v17053_v27 = vpop.eup %17052 }
 0x45e   : > { %17056 = vrcp.f32 %v2958_v25  ;;  %v2964_v28 = vadd.f32 1.0, %v17053_v27  ;;  %v17055_v29 = vpop.eup %17054  ;;  %v15324_v25 = vld [vmem:[%s22465_s1 + $0x180] ss:$16 sps:$4 sm:$0xff]   ;;  %v15327_v27 = vld [vmem:[%s22465_s1 + $0x188] ss:$16 sps:$4 sm:$0xff]  }
 0x45f   : > { %17058 = vtanh.f32 %v2949_v24  ;;  %v2971_v34 = vadd.f32 1.0, %v17055_v29  ;;  %v15329_v24 = vld [vmem:[%s22465_s1 + $0x18c] ss:$16 sps:$4 sm:$0xff]  }
 0x460   : > { %17060 = vrcp.f32 %v2964_v28  ;;  %v15332_v28 = vld [vmem:[%s22465_s1 + $0x164] ss:$16 sps:$4 sm:$0xff]   ;;  %v15335_v29 = vld [vmem:[%s22465_s1 + $0x16c] ss:$16 sps:$4 sm:$0xff]  }
 0x461   : > { %17062 = vrcp.f32 %v2971_v34  ;;  %v15336_v34 = vld [vmem:[%s22465_s1 + $0x140] ss:$16 sps:$4 sm:$0xff]  }
 0x46b   : > { %v17057_v30 = vpop.eup %17056 }
 0x46c   : > { %v17059_v31 = vpop.eup %17058 }
 0x46d   : > { %v17061_v32 = vpop.eup %17060  ;;  %v2976_v35 = vmul.f32 %v17059_v31, %v17057_v30  ;;  %v15330_v30 = vld [vmem:[%s22465_s1 + $0x160] ss:$16 sps:$4 sm:$0xff]   ;;  %v15333_v31 = vld [vmem:[%s22465_s1 + $0x168] ss:$16 sps:$4 sm:$0xff]  }
 0x46e   : > { %v2975_v36 = vmul.f32 %v17061_v32, %v2974_v33  ;;  %v17063_v38 = vpop.eup %17062  ;;  %v15338_v32 = vld [vmem:[%s22465_s1 + $0x144] ss:$16 sps:$4 sm:$0xff]   ;;  %v15341_v33 = vld [vmem:[%s22465_s1 + $0x14c] ss:$16 sps:$4 sm:$0xff]  }
 0x470   : > { %v2977_v37 = vadd.f32 %v2976_v35, %v2975_v36  ;;  %v15339_v35 = vld [vmem:[%s22465_s1 + $0x148] ss:$16 sps:$4 sm:$0xff]   ;;  %v15344_v36 = vld [vmem:[%s22465_s1 + $0x124] ss:$16 sps:$4 sm:$0xff]  }
 0x472   : > { %2981 = vst [vmem:[#allocation3] sm:$0xff] %v2977_v37  ;;  %17064 = vtanh.f32 %v2977_v37  ;;  %v15347_v37 = vld [vmem:[%s22465_s1 + $0x12c] ss:$16 sps:$4 sm:$0xff]  }
 0x47f   : > { %v17065_v40 = vpop.eup %17064 }
 0x480   : > { %v2979_v41 = vmul.f32 %v17065_v40, %v17063_v38  ;;  %v15342_v38 = vld [vmem:[%s22465_s1 + $0x120] ss:$16 sps:$4 sm:$0xff]   ;;  %v15345_v40 = vld [vmem:[%s22465_s1 + $0x128] ss:$16 sps:$4 sm:$0xff]  }
 0x482   : > { %v18764_v44 = vpack.c.bf16 %v2979_v41, %v2979_v41  ;;  %v15350_v41 = vld [vmem:[%s22465_s1 + $0x104] ss:$16 sps:$4 sm:$0xff]  }
 0x484   : > { %3424 = vmatmul.mubr.bf16.vlgmr.msra.gmra.mxu0 %v18764_v44  ;;  %3465 = vmatmul.mubr.bf16.vlgmr.msra.gmra.mxu1 %v18764_v44 }
 0x485   : > { %3914 = vmatpush1.bf16.msra.mxu0 %v15258_v42  ;;  %3955 = vmatpush1.bf16.msra.mxu1 %v15261_v43  ;;  %v15353_v42 = vld [vmem:[%s22465_s1 + $0x10c] ss:$16 sps:$4 sm:$0xff]   ;;  %v15348_v43 = vld [vmem:[%s22465_s1 + $0x100] ss:$16 sps:$4 sm:$0xff]  }
 0x486   : > { %3945 = vmatprep.mubr.bf16.mxu0 %v18555_v58  ;;  %3986 = vmatprep.mubr.bf16.mxu1 %v18555_v58  ;;  %v15273_v58 = vld [vmem:[%s22465_s1 + $0xa8] ss:$16 sps:$4 sm:$0xff]  }
 0x487   : > { %3915 = vmatprep.subr.bf16.mxu0 %v15266_v39  ;;  %3956 = vmatprep.subr.bf16.mxu1 %v15269_v45  ;;  %v15351_v39 = vld [vmem:[%s22465_s1 + $0x108] ss:$16 sps:$4 sm:$0xff]   ;;  %v13416_v45 = vld [vmem:[%s17530_s18 + $0x10] sm:$0xff] }
 0x489   : > { %3916 = vmatpush1.bf16.msra.mxu0 %v15264_v46  ;;  %3957 = vmatpush1.bf16.msra.mxu1 %v15267_v47  ;;  %v3505_v46 = vpack.c.bf16 %v13416_v45, %v13416_v45  ;;  %v15354_v47 = vld [vmem:[%s22467_s3 + $0xe0] ss:$16 sps:$4 sm:$0xff]  }
 0x48a   : > { %3917 = vmatprep.subr.bf16.mxu0 %v15272_v55  ;;  %3958 = vmatprep.subr.bf16.mxu1 %v15275_v48  ;;  %v15356_v55 = vld [vmem:[%s22467_s3 + $0xe4] ss:$16 sps:$4 sm:$0xff]   ;;  %v15357_v48 = vld [vmem:[%s22467_s3 + $0xe8] ss:$16 sps:$4 sm:$0xff]   ;;  %v15438_v45 = vld [vmem:[%s22467_s3 + $0x120] ss:$16 sps:$4 sm:$0xff]  }
 0x48d   : > { %3918 = vmatpush1.bf16.msra.mxu0 %v15270_v49  ;;  %3959 = vmatpush1.bf16.msra.mxu1 %v15273_v58  ;;  %v15359_v49 = vld [vmem:[%s22467_s3 + $0xec] ss:$16 sps:$4 sm:$0xff]  }
 0x48e   : > { %3919 = vmatprep.subr.bf16.mxu0 %v15278_v50  ;;  %3960 = vmatprep.subr.bf16.mxu1 %v15281_v51  ;;  %v15365_v58 = vld [vmem:[%s22467_s3 + $0xcc] ss:$16 sps:$4 sm:$0xff]   ;;  %v15360_v50 = vld [vmem:[%s22467_s3 + $0xc0] ss:$16 sps:$4 sm:$0xff]   ;;  %v15363_v51 = vld [vmem:[%s22467_s3 + $0xc8] ss:$16 sps:$4 sm:$0xff]  }
 0x491   : > { %3920 = vmatpush1.bf16.msra.mxu0 %v15276_v52  ;;  %3961 = vmatpush1.bf16.msra.mxu1 %v15279_v53  ;;  %v15368_v52 = vld [vmem:[%s22467_s3 + $0xa4] ss:$16 sps:$4 sm:$0xff]   ;;  %v15371_v53 = vld [vmem:[%s22467_s3 + $0xac] ss:$16 sps:$4 sm:$0xff]  }
 0x492   : > { %3921 = vmatprep.subr.bf16.mxu0 %v15284_v54  ;;  %3962 = vmatprep.subr.bf16.mxu1 %v15287_v56  ;;  %v15366_v54 = vld [vmem:[%s22467_s3 + $0xa0] ss:$16 sps:$4 sm:$0xff]   ;;  %v15369_v56 = vld [vmem:[%s22467_s3 + $0xa8] ss:$16 sps:$4 sm:$0xff]  }
 0x495   : > { %3922 = vmatpush1.bf16.msra.mxu0 %v15282_v57  ;;  %3963 = vmatpush1.bf16.msra.mxu1 %v15285_v59  ;;  %v15374_v57 = vld [vmem:[%s22467_s3 + $0x84] ss:$16 sps:$4 sm:$0xff]   ;;  %v15377_v59 = vld [vmem:[%s22467_s3 + $0x8c] ss:$16 sps:$4 sm:$0xff]  }
 0x496   : > { %3923 = vmatprep.subr.bf16.mxu0 %v15290_v60  ;;  %3964 = vmatprep.subr.bf16.mxu1 %v15293_v61  ;;  %v15372_v60 = vld [vmem:[%s22467_s3 + $0x80] ss:$16 sps:$4 sm:$0xff]   ;;  %v15375_v61 = vld [vmem:[%s22467_s3 + $0x88] ss:$16 sps:$4 sm:$0xff]  }
 0x499   : > { %3924 = vmatpush1.bf16.msra.mxu0 %v15288_v62  ;;  %3965 = vmatpush1.bf16.msra.mxu1 %v15291_v63  ;;  %v15380_v62 = vld [vmem:[%s22467_s3 + $0x64] ss:$16 sps:$4 sm:$0xff]   ;;  %v15383_v63 = vld [vmem:[%s22467_s3 + $0x6c] ss:$16 sps:$4 sm:$0xff]  }
 0x49a   : > { %3925 = vmatprep.subr.bf16.mxu0 %v15296_v0  ;;  %3966 = vmatprep.subr.bf16.mxu1 %v15299_v1  ;;  %v15378_v0 = vld [vmem:[%s22467_s3 + $0x60] ss:$16 sps:$4 sm:$0xff]   ;;  %v15381_v1 = vld [vmem:[%s22467_s3 + $0x68] ss:$16 sps:$4 sm:$0xff]  }
 0x49d   : > { %3926 = vmatpush1.bf16.msra.mxu0 %v15294_v2  ;;  %3967 = vmatpush1.bf16.msra.mxu1 %v15297_v3  ;;  %v15386_v2 = vld [vmem:[%s22467_s3 + $0x44] ss:$16 sps:$4 sm:$0xff]   ;;  %v15389_v3 = vld [vmem:[%s22467_s3 + $0x4c] ss:$16 sps:$4 sm:$0xff]  }
 0x49e   : > { %3927 = vmatprep.subr.bf16.mxu0 %v15302_v4  ;;  %3968 = vmatprep.subr.bf16.mxu1 %v15305_v5  ;;  %v15384_v4 = vld [vmem:[%s22467_s3 + $0x40] ss:$16 sps:$4 sm:$0xff]   ;;  %v15387_v5 = vld [vmem:[%s22467_s3 + $0x48] ss:$16 sps:$4 sm:$0xff]  }
 0x4a1   : > { %3928 = vmatpush1.bf16.msra.mxu0 %v15300_v6  ;;  %3969 = vmatpush1.bf16.msra.mxu1 %v15303_v7  ;;  %v15392_v6 = vld [vmem:[%s22467_s3 + $0x24] ss:$16 sps:$4 sm:$0xff]   ;;  %v15395_v7 = vld [vmem:[%s22467_s3 + $0x2c] ss:$16 sps:$4 sm:$0xff]  }
 0x4a2   : > { %3929 = vmatprep.subr.bf16.mxu0 %v15308_v8  ;;  %3970 = vmatprep.subr.bf16.mxu1 %v15311_v9  ;;  %v15390_v8 = vld [vmem:[%s22467_s3 + $0x20] ss:$16 sps:$4 sm:$0xff]   ;;  %v15393_v9 = vld [vmem:[%s22467_s3 + $0x28] ss:$16 sps:$4 sm:$0xff]  }
 0x4a5   : > { %3930 = vmatpush2.bf16.msra.mxu0 %v15306_v10  ;;  %3971 = vmatpush2.bf16.msra.mxu1 %v15309_v11  ;;  %v15398_v10 = vld [vmem:[%s22467_s3 + $0x4] ss:$16 sps:$4 sm:$0xff]   ;;  %v15401_v11 = vld [vmem:[%s22467_s3 + $0xc] ss:$16 sps:$4 sm:$0xff]  }
 0x4a6   : > { %3931 = vmatprep.subr.bf16.mxu0 %v15314_v14  ;;  %3972 = vmatprep.subr.bf16.mxu1 %v15317_v15  ;;  %v15396_v14 = vld [vmem:[%s22467_s3] ss:$16 sps:$4 sm:$0xff]   ;;  %v15399_v15 = vld [vmem:[%s22467_s3 + $0x8] ss:$16 sps:$4 sm:$0xff]  }
 0x4a9   : > { %3932 = vmatpush2.bf16.msra.mxu0 %v15312_v16  ;;  %3973 = vmatpush2.bf16.msra.mxu1 %v15315_v17  ;;  %v15404_v16 = vld [vmem:[%s22467_s3 + $0x1e4] ss:$16 sps:$4 sm:$0xff]   ;;  %v15407_v17 = vld [vmem:[%s22467_s3 + $0x1ec] ss:$16 sps:$4 sm:$0xff]  }
 0x4aa   : > { %3933 = vmatprep.subr.bf16.mxu0 %v15320_v18  ;;  %3974 = vmatprep.subr.bf16.mxu1 %v15323_v19  ;;  %v15402_v18 = vld [vmem:[%s22467_s3 + $0x1e0] ss:$16 sps:$4 sm:$0xff]   ;;  %v15405_v19 = vld [vmem:[%s22467_s3 + $0x1e8] ss:$16 sps:$4 sm:$0xff]  }
 0x4ad   : > { %3934 = vmatpush2.bf16.msra.mxu0 %v15318_v20  ;;  %3975 = vmatpush2.bf16.msra.mxu1 %v15321_v21  ;;  %v15410_v20 = vld [vmem:[%s22467_s3 + $0x1c4] ss:$16 sps:$4 sm:$0xff]   ;;  %v15413_v21 = vld [vmem:[%s22467_s3 + $0x1cc] ss:$16 sps:$4 sm:$0xff]  }
 0x4ae   : > { %3935 = vmatprep.subr.bf16.mxu0 %v15326_v23  ;;  %3976 = vmatprep.subr.bf16.mxu1 %v15329_v24  ;;  %v15408_v23 = vld [vmem:[%s22467_s3 + $0x1c0] ss:$16 sps:$4 sm:$0xff]   ;;  %v15411_v24 = vld [vmem:[%s22467_s3 + $0x1c8] ss:$16 sps:$4 sm:$0xff]  }
 0x4b1   : > { %3936 = vmatpush2.bf16.msra.mxu0 %v15324_v25  ;;  %3977 = vmatpush2.bf16.msra.mxu1 %v15327_v27  ;;  %v15416_v25 = vld [vmem:[%s22467_s3 + $0x1a4] ss:$16 sps:$4 sm:$0xff]   ;;  %v15419_v27 = vld [vmem:[%s22467_s3 + $0x1ac] ss:$16 sps:$4 sm:$0xff]  }
 0x4b2   : > { %3937 = vmatprep.subr.bf16.mxu0 %v15332_v28  ;;  %3978 = vmatprep.subr.bf16.mxu1 %v15335_v29  ;;  %v15414_v28 = vld [vmem:[%s22467_s3 + $0x1a0] ss:$16 sps:$4 sm:$0xff]   ;;  %v15417_v29 = vld [vmem:[%s22467_s3 + $0x1a8] ss:$16 sps:$4 sm:$0xff]  }
 0x4b5   : > { %3938 = vmatpush2.bf16.msra.mxu0 %v15330_v30  ;;  %3979 = vmatpush2.bf16.msra.mxu1 %v15333_v31  ;;  %v15422_v30 = vld [vmem:[%s22467_s3 + $0x184] ss:$16 sps:$4 sm:$0xff]   ;;  %v15425_v31 = vld [vmem:[%s22467_s3 + $0x18c] ss:$16 sps:$4 sm:$0xff]  }
 0x4b6   : > { %3939 = vmatprep.subr.bf16.mxu0 %v15338_v32  ;;  %3980 = vmatprep.subr.bf16.mxu1 %v15341_v33  ;;  %v15420_v32 = vld [vmem:[%s22467_s3 + $0x180] ss:$16 sps:$4 sm:$0xff]   ;;  %v15423_v33 = vld [vmem:[%s22467_s3 + $0x188] ss:$16 sps:$4 sm:$0xff]  }
 0x4b9   : > { %3940 = vmatpush2.bf16.msra.mxu0 %v15336_v34  ;;  %3981 = vmatpush2.bf16.msra.mxu1 %v15339_v35  ;;  %v15426_v34 = vld [vmem:[%s22467_s3 + $0x160] ss:$16 sps:$4 sm:$0xff]   ;;  %v15428_v35 = vld [vmem:[%s22467_s3 + $0x164] ss:$16 sps:$4 sm:$0xff]  }
 0x4ba   : > { %3941 = vmatprep.subr.bf16.mxu0 %v15344_v36  ;;  %3982 = vmatprep.subr.bf16.mxu1 %v15347_v37  ;;  %v15429_v36 = vld [vmem:[%s22467_s3 + $0x168] ss:$16 sps:$4 sm:$0xff]   ;;  %v15431_v37 = vld [vmem:[%s22467_s3 + $0x16c] ss:$16 sps:$4 sm:$0xff]  }
 0x4bd   : > { %3942 = vmatpush2.bf16.msra.mxu0 %v15342_v38  ;;  %3983 = vmatpush2.bf16.msra.mxu1 %v15345_v40  ;;  %v15434_v38 = vld [vmem:[%s22467_s3 + $0x144] ss:$16 sps:$4 sm:$0xff]   ;;  %v15437_v40 = vld [vmem:[%s22467_s3 + $0x14c] ss:$16 sps:$4 sm:$0xff]  }
 0x4be   : > { %3943 = vmatprep.subr.bf16.mxu0 %v15350_v41  ;;  %3984 = vmatprep.subr.bf16.mxu1 %v15353_v42  ;;  %v15432_v41 = vld [vmem:[%s22467_s3 + $0x140] ss:$16 sps:$4 sm:$0xff]   ;;  %v15435_v42 = vld [vmem:[%s22467_s3 + $0x148] ss:$16 sps:$4 sm:$0xff]  }
 0x4c1   : > { %3944 = vmatpush2.bf16.msra.mxu0 %v15348_v43  ;;  %3985 = vmatpush2.bf16.msra.mxu1 %v15351_v39  ;;  %v15440_v43 = vld [vmem:[%s22467_s3 + $0x124] ss:$16 sps:$4 sm:$0xff]   ;;  %v15443_v39 = vld [vmem:[%s22467_s3 + $0x12c] ss:$16 sps:$4 sm:$0xff]  }
 0x4c2   : > { %4431 = vmatprep.subr.bf16.mxu0 %v15356_v55  ;;  %4472 = vmatprep.subr.bf16.mxu1 %v15359_v49  ;;  %v15449_v55 = vld [vmem:[%s22467_s3 + $0x10c] ss:$16 sps:$4 sm:$0xff]   ;;  %v15447_v49 = vld [vmem:[%s22467_s3 + $0x108] ss:$16 sps:$4 sm:$0xff]  }
 0x4c4   : > { %3946 = vmatmul.mubr.bf16.vlgmr.msra.gmra.mxu0 %v3505_v46  ;;  %3987 = vmatmul.mubr.bf16.vlgmr.msra.gmra.mxu1 %v3505_v46  ;;  %v15441_v46 = vld [vmem:[%s22467_s3 + $0x128] ss:$16 sps:$4 sm:$0xff]  }
 0x4c5   : > { %4463 = vmatprep.mubr.bf16.mxu0 %v18764_v44  ;;  %4504 = vmatprep.mubr.bf16.mxu1 %v18764_v44  ;;  %v15362_v44 = vld [vmem:[%s22467_s3 + $0xc4] ss:$16 sps:$4 sm:$0xff]  }
 0x4c6   : > { %4432 = vmatpush1.bf16.msra.mxu0 %v15354_v47  ;;  %4473 = vmatpush1.bf16.msra.mxu1 %v15357_v48  ;;  %v15446_v47 = vld [vmem:[%s22467_s3 + $0x104] ss:$16 sps:$4 sm:$0xff]   ;;  %v15444_v48 = vld [vmem:[%s22467_s3 + $0x100] ss:$16 sps:$4 sm:$0xff]  }
 0x4c7   : > { %4433 = vmatprep.subr.bf16.mxu0 %v15362_v44  ;;  %4474 = vmatprep.subr.bf16.mxu1 %v15365_v58  ;;  %v3049_v44 = vld [vmem:[%s22470_s6] sm:$0xf]  ;;  %v15452_v58 = vld [vmem:[%s22469_s5 + $0xe4] ss:$16 sps:$4 sm:$0xff]  }
 0x4ca   : > { %4434 = vmatpush1.bf16.msra.mxu0 %v15360_v50  ;;  %4475 = vmatpush1.bf16.msra.mxu1 %v15363_v51  ;;  %v3054_v50 = vrot.slane %v3049_v44, %v17932_v12  ;;  %v15455_v51 = vld [vmem:[%s22469_s5 + $0xec] ss:$16 sps:$4 sm:$0xff]  }
 0x4cb   : > { %4435 = vmatprep.subr.bf16.mxu0 %v15368_v52  ;;  %4476 = vmatprep.subr.bf16.mxu1 %v15371_v53  ;;  %v3058_v52 = vrot.slane %v3049_v44, %v17934_v13 }
 0x4ce   : > { %4436 = vmatpush1.bf16.msra.mxu0 %v15366_v54  ;;  %4477 = vmatpush1.bf16.msra.mxu1 %v15369_v56 }
 0x4cf   : > { %4437 = vmatprep.subr.bf16.mxu0 %v15374_v57  ;;  %4478 = vmatprep.subr.bf16.mxu1 %v15377_v59 }
 0x4d2   : > { %4438 = vmatpush1.bf16.msra.mxu0 %v15372_v60  ;;  %4479 = vmatpush1.bf16.msra.mxu1 %v15375_v61 }
 0x4d3   : > { %4439 = vmatprep.subr.bf16.mxu0 %v15380_v62  ;;  %4480 = vmatprep.subr.bf16.mxu1 %v15383_v63 }
 0x4d6   : > { %4440 = vmatpush1.bf16.msra.mxu0 %v15378_v0  ;;  %4481 = vmatpush1.bf16.msra.mxu1 %v15381_v1 }
 0x4d7   : > { %4441 = vmatprep.subr.bf16.mxu0 %v15386_v2  ;;  %4482 = vmatprep.subr.bf16.mxu1 %v15389_v3  ;;  %v3066_v3 = vrot.slane %v3049_v44, %v17938_v22 }
 0x4da   : > { %4442 = vmatpush1.bf16.msra.mxu0 %v15384_v4  ;;  %4483 = vmatpush1.bf16.msra.mxu1 %v15387_v5  ;;  %v3062_v5 = vrot.slane %v3049_v44, %v17940_v26 }
 0x4db   : > { %4443 = vmatprep.subr.bf16.mxu0 %v15392_v6  ;;  %4484 = vmatprep.subr.bf16.mxu1 %v15395_v7 }
 0x4de   : > { %4444 = vmatpush1.bf16.msra.mxu0 %v15390_v8  ;;  %4485 = vmatpush1.bf16.msra.mxu1 %v15393_v9 }
 0x4df   : > { %4445 = vmatprep.subr.bf16.mxu0 %v15398_v10  ;;  %4486 = vmatprep.subr.bf16.mxu1 %v15401_v11 }
 0x4e2   : > { %4446 = vmatpush1.bf16.msra.mxu0 %v15396_v14  ;;  %4487 = vmatpush1.bf16.msra.mxu1 %v15399_v15 }
 0x4e3   : > { %4447 = vmatprep.subr.bf16.mxu0 %v15404_v16  ;;  %4488 = vmatprep.subr.bf16.mxu1 %v15407_v17 }
 0x4e6   : > { %4448 = vmatpush2.bf16.msra.mxu0 %v15402_v18  ;;  %4489 = vmatpush2.bf16.msra.mxu1 %v15405_v19  ;;  %v3492_v18 = vld [vmem:[#allocation3 + $0x10] sm:$0xff] }
 0x4e7   : > { %4449 = vmatprep.subr.bf16.mxu0 %v15410_v20  ;;  %4490 = vmatprep.subr.bf16.mxu1 %v15413_v21 }
 0x4ea   : > { %4450 = vmatpush2.bf16.msra.mxu0 %v15408_v23  ;;  %4491 = vmatpush2.bf16.msra.mxu1 %v15411_v24 }
 0x4eb   : > { %4451 = vmatprep.subr.bf16.mxu0 %v15416_v25  ;;  %4492 = vmatprep.subr.bf16.mxu1 %v15419_v27 }
 0x4ee   : > { %4452 = vmatpush2.bf16.msra.mxu0 %v15414_v28  ;;  %4493 = vmatpush2.bf16.msra.mxu1 %v15417_v29  ;;  %v3571_v28 = vld [vmem:[%s22466_s2] sm:$0xf] }
 0x4ef   : > { %4453 = vmatprep.subr.bf16.mxu0 %v15422_v30  ;;  %4494 = vmatprep.subr.bf16.mxu1 %v15425_v31  ;;  %v3576_v29 = vrot.slane %v3571_v28, %v17932_v12  ;;  %v3580_v30 = vrot.slane %v3571_v28, %v17934_v13 }
 0x4f2   : > { %4454 = vmatpush2.bf16.msra.mxu0 %v15420_v32  ;;  %4495 = vmatpush2.bf16.msra.mxu1 %v15423_v33 }
 0x4f3   : > { %4455 = vmatprep.subr.bf16.mxu0 %v15428_v35  ;;  %4496 = vmatprep.subr.bf16.mxu1 %v15431_v37 }
 0x4f6   : > { %4456 = vmatpush2.bf16.msra.mxu0 %v15426_v34  ;;  %4497 = vmatpush2.bf16.msra.mxu1 %v15429_v36 }
 0x4f7   : > { %4457 = vmatprep.subr.bf16.mxu0 %v15434_v38  ;;  %4498 = vmatprep.subr.bf16.mxu1 %v15437_v40 }
 0x4fa   : > { %4458 = vmatpush2.bf16.msra.mxu0 %v15432_v41  ;;  %4499 = vmatpush2.bf16.msra.mxu1 %v15435_v42 }
 0x4fb   : > { %4459 = vmatprep.subr.bf16.mxu0 %v15440_v43  ;;  %4500 = vmatprep.subr.bf16.mxu1 %v15443_v39  ;;  %v3588_v39 = vrot.slane %v3571_v28, %v17938_v22 }
 0x4fe   : > { %4460 = vmatpush2.bf16.msra.mxu0 %v15438_v45  ;;  %4501 = vmatpush2.bf16.msra.mxu1 %v15441_v46  ;;  %v3584_v45 = vrot.slane %v3571_v28, %v17940_v26  ;;  %v15488_v28 = vld [vmem:[%s22469_s5 + $0x24] ss:$16 sps:$4 sm:$0xff]  }
 0x4ff   : > { %4461 = vmatprep.subr.bf16.mxu0 %v15446_v47  ;;  %4502 = vmatprep.subr.bf16.mxu1 %v15449_v55 }
 0x502   : > { %4462 = vmatpush2.bf16.msra.mxu0 %v15444_v48  ;;  %4503 = vmatpush2.bf16.msra.mxu1 %v15447_v49 }
 0x503   : > { %4949 = vmatprep.subr.bf16.mxu0 %v15452_v58  ;;  %4990 = vmatprep.subr.bf16.mxu1 %v15455_v51 }
 0x544   : > { %v3425_v53 = vpop.f32.mrf.mxu0  ;;  %v3466_v54 = vpop.f32.mrf.mxu1 }
 0x545   : > { %v3426_v56 = vadd.f32 %v3425_v53, %v3054_v50  ;;  %v3467_v8 = vadd.f32 %v3466_v54, %v3062_v5  ;;  %v4014_v54 = vld [vmem:[#allocation3 + $0x8] sm:$0xff]  ;;  %v15461_v5 = vld [vmem:[%s22469_s5 + $0xcc] ss:$16 sps:$4 sm:$0xff]  }
 0x546   : > { %v3427_v57 = vpop.f32.mrf.mxu0  ;;  %v3468_v59 = vpop.f32.mrf.mxu1 }
 0x547   : > { %v13412_v60 = vmul.f32 -1.442695, %v3426_v56  ;;  %v3428_v61 = vadd.f32 %v3427_v57, %v3058_v52  ;;  %v3469_v4 = vadd.f32 %v3468_v59, %v3066_v3 }
 0x548   : > { %v3429_v62 = vpop.f32.mrf.mxu0  ;;  %v3470_v63 = vpop.f32.mrf.mxu1 }
 0x549   : > { %17066 = vpow2.f32 %v13412_v60  ;;  %v13413_v0 = vmul.f32 -1.442695, %v3428_v61  ;;  %v13414_v6 = vmul.f32 -1.442695, %v3469_v4  ;;  %v15458_v4 = vld [vmem:[%s22469_s5 + $0xc4] ss:$16 sps:$4 sm:$0xff]  }
 0x54a   : > { %v3430_v1 = vpop.f32.mrf.mxu0  ;;  %v3471_v2 = vpop.f32.mrf.mxu1 }
 0x54b   : > { %17068 = vpow2.f32 %v13413_v0  ;;  %v15450_v1 = vld [vmem:[%s22469_s5 + $0xe0] ss:$16 sps:$4 sm:$0xff]   ;;  %v15453_v2 = vld [vmem:[%s22469_s5 + $0xe8] ss:$16 sps:$4 sm:$0xff]  }
 0x54c   : > { %17070 = vpow2.f32 %v13414_v6  ;;  %v15456_v6 = vld [vmem:[%s22469_s5 + $0xc0] ss:$16 sps:$4 sm:$0xff]  }
 0x556   : > { %v17067_v7 = vpop.eup %17066 }
 0x557   : > { %v3476_v9 = vadd.f32 1.0, %v17067_v7  ;;  %v15459_v7 = vld [vmem:[%s22469_s5 + $0xc8] ss:$16 sps:$4 sm:$0xff]  }
 0x558   : > { %v17069_v10 = vpop.eup %17068 }
 0x559   : > { %17072 = vrcp.f32 %v3476_v9  ;;  %v3482_v11 = vadd.f32 1.0, %v17069_v10  ;;  %v17071_v14 = vpop.eup %17070  ;;  %v15467_v9 = vld [vmem:[%s22469_s5 + $0xac] ss:$16 sps:$4 sm:$0xff]   ;;  %v15462_v10 = vld [vmem:[%s22469_s5 + $0xa0] ss:$16 sps:$4 sm:$0xff]  }
 0x55a   : > { %17074 = vtanh.f32 %v3467_v8  ;;  %v3489_v19 = vadd.f32 1.0, %v17071_v14  ;;  %v15464_v8 = vld [vmem:[%s22469_s5 + $0xa4] ss:$16 sps:$4 sm:$0xff]  }
 0x55b   : > { %17076 = vrcp.f32 %v3482_v11  ;;  %v15465_v11 = vld [vmem:[%s22469_s5 + $0xa8] ss:$16 sps:$4 sm:$0xff]   ;;  %v15470_v14 = vld [vmem:[%s22469_s5 + $0x84] ss:$16 sps:$4 sm:$0xff]  }
 0x55c   : > { %17078 = vrcp.f32 %v3489_v19  ;;  %v15479_v19 = vld [vmem:[%s22469_s5 + $0x6c] ss:$16 sps:$4 sm:$0xff]  }
 0x566   : > { %v17073_v15 = vpop.eup %17072 }
 0x567   : > { %v17075_v16 = vpop.eup %17074 }
 0x568   : > { %v17077_v17 = vpop.eup %17076  ;;  %v3494_v20 = vmul.f32 %v17075_v16, %v17073_v15  ;;  %v15473_v15 = vld [vmem:[%s22469_s5 + $0x8c] ss:$16 sps:$4 sm:$0xff]   ;;  %v15468_v16 = vld [vmem:[%s22469_s5 + $0x80] ss:$16 sps:$4 sm:$0xff]  }
 0x569   : > { %v3493_v21 = vmul.f32 %v17077_v17, %v3492_v18  ;;  %v17079_v24 = vpop.eup %17078  ;;  %v15471_v17 = vld [vmem:[%s22469_s5 + $0x88] ss:$16 sps:$4 sm:$0xff]   ;;  %v15476_v18 = vld [vmem:[%s22469_s5 + $0x64] ss:$16 sps:$4 sm:$0xff]  }
 0x56b   : > { %v3495_v23 = vadd.f32 %v3494_v20, %v3493_v21  ;;  %v15474_v20 = vld [vmem:[%s22469_s5 + $0x60] ss:$16 sps:$4 sm:$0xff]   ;;  %v15477_v21 = vld [vmem:[%s22469_s5 + $0x68] ss:$16 sps:$4 sm:$0xff]  }
 0x56d   : > { %17080 = vtanh.f32 %v3495_v23  ;;  %3499 = vst [vmem:[#allocation3 + $0x10] sm:$0xff] %v3495_v23  ;;  %v15482_v23 = vld [vmem:[%s22469_s5 + $0x44] ss:$16 sps:$4 sm:$0xff]  }
 0x57a   : > { %v17081_v25 = vpop.eup %17080 }
 0x57b   : > { %v3497_v27 = vmul.f32 %v17081_v25, %v17079_v24  ;;  %v15485_v24 = vld [vmem:[%s22469_s5 + $0x4c] ss:$16 sps:$4 sm:$0xff]   ;;  %v15480_v25 = vld [vmem:[%s22469_s5 + $0x40] ss:$16 sps:$4 sm:$0xff]  }
 0x57d   : > { %13415 = vst [vmem:[%s17535_s21 + $0x8] sm:$0xff] %v3497_v27  ;;  %v4542_v3 = vpack.c.bf16 %v3497_v27, %v3497_v27  ;;  %v15483_v27 = vld [vmem:[%s22469_s5 + $0x48] ss:$16 sps:$4 sm:$0xff]  }
 0x584   : > { %v3947_v31 = vpop.f32.mrf.mxu0  ;;  %v3988_v32 = vpop.f32.mrf.mxu1 }
 0x585   : > { %v3948_v33 = vadd.f32 %v3947_v31, %v3576_v29  ;;  %v3989_v47 = vadd.f32 %v3988_v32, %v3584_v45  ;;  %v15491_v29 = vld [vmem:[%s22469_s5 + $0x2c] ss:$16 sps:$4 sm:$0xff]   ;;  %v15489_v31 = vld [vmem:[%s22469_s5 + $0x28] ss:$16 sps:$4 sm:$0xff]   ;;  %v15494_v32 = vld [vmem:[%s22469_s5 + $0x4] ss:$16 sps:$4 sm:$0xff]  }
 0x586   : > { %v3949_v34 = vpop.f32.mrf.mxu0  ;;  %v3990_v35 = vpop.f32.mrf.mxu1  ;;  %v15512_v45 = vld [vmem:[%s22469_s5 + $0x1a4] ss:$16 sps:$4 sm:$0xff]  }
 0x587   : > { %v13481_v36 = vmul.f32 -1.442695, %v3948_v33  ;;  %v3950_v37 = vadd.f32 %v3949_v34, %v3580_v30  ;;  %v3991_v46 = vadd.f32 %v3990_v35, %v3588_v39  ;;  %v15486_v30 = vld [vmem:[%s22469_s5 + $0x20] ss:$16 sps:$4 sm:$0xff]   ;;  %v15497_v33 = vld [vmem:[%s22469_s5 + $0xc] ss:$16 sps:$4 sm:$0xff]  }
 0x588   : > { %v3951_v38 = vpop.f32.mrf.mxu0  ;;  %v3992_v40 = vpop.f32.mrf.mxu1  ;;  %v15492_v34 = vld [vmem:[%s22469_s5] ss:$16 sps:$4 sm:$0xff]   ;;  %v15495_v35 = vld [vmem:[%s22469_s5 + $0x8] ss:$16 sps:$4 sm:$0xff]  }
 0x589   : > { %17082 = vpow2.f32 %v13481_v36  ;;  %v13482_v41 = vmul.f32 -1.442695, %v3950_v37  ;;  %v13483_v55 = vmul.f32 -1.442695, %v3991_v46  ;;  %v15500_v36 = vld [vmem:[%s22469_s5 + $0x1e4] ss:$16 sps:$4 sm:$0xff]  }
 0x58a   : > { %v3952_v42 = vpop.f32.mrf.mxu0  ;;  %v3993_v43 = vpop.f32.mrf.mxu1  ;;  %v15503_v37 = vld [vmem:[%s22469_s5 + $0x1ec] ss:$16 sps:$4 sm:$0xff]   ;;  %v15498_v38 = vld [vmem:[%s22469_s5 + $0x1e0] ss:$16 sps:$4 sm:$0xff]   ;;  %v15501_v40 = vld [vmem:[%s22469_s5 + $0x1e8] ss:$16 sps:$4 sm:$0xff]  }
 0x58b   : > { %17084 = vpow2.f32 %v13482_v41  ;;  %v15506_v41 = vld [vmem:[%s22469_s5 + $0x1c4] ss:$16 sps:$4 sm:$0xff]   ;;  %v15509_v42 = vld [vmem:[%s22469_s5 + $0x1cc] ss:$16 sps:$4 sm:$0xff]   ;;  %v15504_v43 = vld [vmem:[%s22469_s5 + $0x1c0] ss:$16 sps:$4 sm:$0xff]  }
 0x58c   : > { %17086 = vtanh.f32 %v3989_v47  ;;  %v15507_v39 = vld [vmem:[%s22469_s5 + $0x1c8] ss:$16 sps:$4 sm:$0xff]   ;;  %v15515_v46 = vld [vmem:[%s22469_s5 + $0x1ac] ss:$16 sps:$4 sm:$0xff]   ;;  %v15510_v47 = vld [vmem:[%s22469_s5 + $0x1a0] ss:$16 sps:$4 sm:$0xff]  }
 0x58d   : > { %17088 = vpow2.f32 %v13483_v55  ;;  %v15513_v55 = vld [vmem:[%s22469_s5 + $0x1a8] ss:$16 sps:$4 sm:$0xff]  }
 0x596   : > { %v17083_v48 = vpop.eup %17082 }
 0x597   : > { %v3998_v49 = vadd.f32 1.0, %v17083_v48  ;;  %v15518_v48 = vld [vmem:[%s22469_s5 + $0x184] ss:$16 sps:$4 sm:$0xff]  }
 0x598   : > { %v17085_v44 = vpop.eup %17084 }
 0x599   : > { %17090 = vrcp.f32 %v3998_v49  ;;  %v4004_v58 = vadd.f32 1.0, %v17085_v44  ;;  %v17087_v50 = vpop.eup %17086  ;;  %v15521_v49 = vld [vmem:[%s22469_s5 + $0x18c] ss:$16 sps:$4 sm:$0xff]   ;;  %v15516_v44 = vld [vmem:[%s22469_s5 + $0x180] ss:$16 sps:$4 sm:$0xff]  }
 0x59a   : > { %v17089_v51 = vpop.eup %17088 }
 0x59b   : > { %17092 = vrcp.f32 %v4004_v58  ;;  %v4011_v56 = vadd.f32 1.0, %v17089_v51  ;;  %v15519_v58 = vld [vmem:[%s22469_s5 + $0x188] ss:$16 sps:$4 sm:$0xff]   ;;  %v15524_v51 = vld [vmem:[%s22469_s5 + $0x164] ss:$16 sps:$4 sm:$0xff]  }
 0x59d   : > { %17094 = vrcp.f32 %v4011_v56  ;;  %v15533_v56 = vld [vmem:[%s22469_s5 + $0x14c] ss:$16 sps:$4 sm:$0xff]  }
 0x5a6   : > { %v17091_v52 = vpop.eup %17090 }
 0x5a7   : > { %v4016_v59 = vmul.f32 %v17091_v52, %v17087_v50  ;;  %v15522_v50 = vld [vmem:[%s22469_s5 + $0x160] ss:$16 sps:$4 sm:$0xff]   ;;  %v15525_v52 = vld [vmem:[%s22469_s5 + $0x168] ss:$16 sps:$4 sm:$0xff]  }
 0x5a8   : > { %v17093_v53 = vpop.eup %17092 }
 0x5a9   : > { %v4015_v57 = vmul.f32 %v17093_v53, %v4014_v54  ;;  %v15527_v53 = vld [vmem:[%s22469_s5 + $0x16c] ss:$16 sps:$4 sm:$0xff]   ;;  %v15530_v54 = vld [vmem:[%s22469_s5 + $0x144] ss:$16 sps:$4 sm:$0xff]  }
 0x5aa   : > { %v17095_v61 = vpop.eup %17094 }
 0x5ab   : > { %v4017_v60 = vadd.f32 %v4016_v59, %v4015_v57  ;;  %v15528_v57 = vld [vmem:[%s22469_s5 + $0x140] ss:$16 sps:$4 sm:$0xff]   ;;  %v15531_v59 = vld [vmem:[%s22469_s5 + $0x148] ss:$16 sps:$4 sm:$0xff]  }
 0x5ad   : > { %17096 = vtanh.f32 %v4017_v60  ;;  %4021 = vst [vmem:[#allocation3 + $0x8] sm:$0xff] %v4017_v60  ;;  %v15536_v60 = vld [vmem:[%s22469_s5 + $0x124] ss:$16 sps:$4 sm:$0xff]  }
 0x5ba   : > { %v17097_v62 = vpop.eup %17096 }
 0x5bb   : > { %v4019_v63 = vmul.f32 %v17097_v62, %v17095_v61  ;;  %v15539_v61 = vld [vmem:[%s22469_s5 + $0x12c] ss:$16 sps:$4 sm:$0xff]   ;;  %v15534_v62 = vld [vmem:[%s22469_s5 + $0x120] ss:$16 sps:$4 sm:$0xff]  }
 0x5bd   : > { %v19166_v0 = vpack.c.bf16 %v4019_v63, %v4019_v63  ;;  %v15537_v63 = vld [vmem:[%s22469_s5 + $0x128] ss:$16 sps:$4 sm:$0xff]  }
 0x5bf   : > { %4464 = vmatmul.mubr.bf16.vlgmr.msra.gmra.mxu0 %v19166_v0  ;;  %4505 = vmatmul.mubr.bf16.vlgmr.msra.gmra.mxu1 %v19166_v0 }
 0x5c0   : > { %4981 = vmatprep.mubr.bf16.mxu0 %v4542_v3  ;;  %5022 = vmatprep.mubr.bf16.mxu1 %v4542_v3  ;;  %v15540_v3 = vld [vmem:[%s22469_s5 + $0x100] ss:$16 sps:$4 sm:$0xff]  }
 0x5c1   : > { %4950 = vmatpush1.bf16.msra.mxu0 %v15450_v1  ;;  %4991 = vmatpush1.bf16.msra.mxu1 %v15453_v2  ;;  %v15542_v1 = vld [vmem:[%s22469_s5 + $0x104] ss:$16 sps:$4 sm:$0xff]   ;;  %v15545_v2 = vld [vmem:[%s22469_s5 + $0x10c] ss:$16 sps:$4 sm:$0xff]  }
 0x5c2   : > { %4951 = vmatprep.subr.bf16.mxu0 %v15458_v4  ;;  %4992 = vmatprep.subr.bf16.mxu1 %v15461_v5  ;;  %v15543_v4 = vld [vmem:[%s22469_s5 + $0x108] ss:$16 sps:$4 sm:$0xff]   ;;  %v15548_v5 = vld [vmem:[%s22465_s1 + $0xe4] ss:$16 sps:$4 sm:$0xff]  }
 0x5c5   : > { %4952 = vmatpush1.bf16.msra.mxu0 %v15456_v6  ;;  %4993 = vmatpush1.bf16.msra.mxu1 %v15459_v7  ;;  %v15551_v6 = vld [vmem:[%s22465_s1 + $0xec] ss:$16 sps:$4 sm:$0xff]   ;;  %v4089_v7 = vld [vmem:[%s22468_s4] sm:$0xf] }
 0x5c6   : > { %4953 = vmatprep.subr.bf16.mxu0 %v15464_v8  ;;  %4994 = vmatprep.subr.bf16.mxu1 %v15467_v9  ;;  %v4094_v8 = vrot.slane %v4089_v7, %v17932_v12  ;;  %v4098_v9 = vrot.slane %v4089_v7, %v17934_v13 }
 0x5c9   : > { %4954 = vmatpush1.bf16.msra.mxu0 %v15462_v10  ;;  %4995 = vmatpush1.bf16.msra.mxu1 %v15465_v11 }
 0x5ca   : > { %4955 = vmatprep.subr.bf16.mxu0 %v15470_v14  ;;  %4996 = vmatprep.subr.bf16.mxu1 %v15473_v15 }
 0x5cd   : > { %4956 = vmatpush1.bf16.msra.mxu0 %v15468_v16  ;;  %4997 = vmatpush1.bf16.msra.mxu1 %v15471_v17 }
 0x5ce   : > { %4957 = vmatprep.subr.bf16.mxu0 %v15476_v18  ;;  %4998 = vmatprep.subr.bf16.mxu1 %v15479_v19 }
 0x5d1   : > { %4958 = vmatpush1.bf16.msra.mxu0 %v15474_v20  ;;  %4999 = vmatpush1.bf16.msra.mxu1 %v15477_v21 }
 0x5d2   : > { %4959 = vmatprep.subr.bf16.mxu0 %v15482_v23  ;;  %5000 = vmatprep.subr.bf16.mxu1 %v15485_v24 }
 0x5d5   : > { %4960 = vmatpush1.bf16.msra.mxu0 %v15480_v25  ;;  %5001 = vmatpush1.bf16.msra.mxu1 %v15483_v27  ;;  %v4106_v25 = vrot.slane %v4089_v7, %v17938_v22 }
 0x5d6   : > { %4961 = vmatprep.subr.bf16.mxu0 %v15488_v28  ;;  %5002 = vmatprep.subr.bf16.mxu1 %v15491_v29  ;;  %v4102_v28 = vrot.slane %v4089_v7, %v17940_v26  ;;  %v15587_v7 = vld [vmem:[%s22465_s1 + $0x2c] ss:$16 sps:$4 sm:$0xff]  }
 0x5d9   : > { %4962 = vmatpush1.bf16.msra.mxu0 %v15486_v30  ;;  %5003 = vmatpush1.bf16.msra.mxu1 %v15489_v31 }
 0x5da   : > { %4963 = vmatprep.subr.bf16.mxu0 %v15494_v32  ;;  %5004 = vmatprep.subr.bf16.mxu1 %v15497_v33 }
 0x5dd   : > { %4964 = vmatpush1.bf16.msra.mxu0 %v15492_v34  ;;  %5005 = vmatpush1.bf16.msra.mxu1 %v15495_v35 }
 0x5de   : > { %4965 = vmatprep.subr.bf16.mxu0 %v15500_v36  ;;  %5006 = vmatprep.subr.bf16.mxu1 %v15503_v37 }
 0x5e1   : > { %4966 = vmatpush2.bf16.msra.mxu0 %v15498_v38  ;;  %5007 = vmatpush2.bf16.msra.mxu1 %v15501_v40  ;;  %v4532_v40 = vld [vmem:[#allocation3] sm:$0xff] }
 0x5e2   : > { %4967 = vmatprep.subr.bf16.mxu0 %v15506_v41  ;;  %5008 = vmatprep.subr.bf16.mxu1 %v15509_v42 }
 0x5e5   : > { %4968 = vmatpush2.bf16.msra.mxu0 %v15504_v43  ;;  %5009 = vmatpush2.bf16.msra.mxu1 %v15507_v39 }
 0x5e6   : > { %4969 = vmatprep.subr.bf16.mxu0 %v15512_v45  ;;  %5010 = vmatprep.subr.bf16.mxu1 %v15515_v46 }
 0x5e9   : > { %4970 = vmatpush2.bf16.msra.mxu0 %v15510_v47  ;;  %5011 = vmatpush2.bf16.msra.mxu1 %v15513_v55  ;;  %v15546_v55 = vld [vmem:[%s22465_s1 + $0xe0] ss:$16 sps:$4 sm:$0xff]  }
 0x5ea   : > { %4971 = vmatprep.subr.bf16.mxu0 %v15518_v48  ;;  %5012 = vmatprep.subr.bf16.mxu1 %v15521_v49  ;;  %v15549_v48 = vld [vmem:[%s22465_s1 + $0xe8] ss:$16 sps:$4 sm:$0xff]  }
 0x5ed   : > { %4972 = vmatpush2.bf16.msra.mxu0 %v15516_v44  ;;  %5013 = vmatpush2.bf16.msra.mxu1 %v15519_v58  ;;  %v15554_v44 = vld [vmem:[%s22465_s1 + $0xc4] ss:$16 sps:$4 sm:$0xff]   ;;  %v15557_v58 = vld [vmem:[%s22465_s1 + $0xcc] ss:$16 sps:$4 sm:$0xff]  }
 0x5ee   : > { %4973 = vmatprep.subr.bf16.mxu0 %v15524_v51  ;;  %5014 = vmatprep.subr.bf16.mxu1 %v15527_v53  ;;  %v15555_v51 = vld [vmem:[%s22465_s1 + $0xc8] ss:$16 sps:$4 sm:$0xff]   ;;  %v15563_v53 = vld [vmem:[%s22465_s1 + $0xac] ss:$16 sps:$4 sm:$0xff]  }
 0x5f1   : > { %4974 = vmatpush2.bf16.msra.mxu0 %v15522_v50  ;;  %5015 = vmatpush2.bf16.msra.mxu1 %v15525_v52  ;;  %v15552_v50 = vld [vmem:[%s22465_s1 + $0xc0] ss:$16 sps:$4 sm:$0xff]   ;;  %v15560_v52 = vld [vmem:[%s22465_s1 + $0xa4] ss:$16 sps:$4 sm:$0xff]  }
 0x5f2   : > { %4975 = vmatprep.subr.bf16.mxu0 %v15530_v54  ;;  %5016 = vmatprep.subr.bf16.mxu1 %v15533_v56  ;;  %v15558_v54 = vld [vmem:[%s22465_s1 + $0xa0] ss:$16 sps:$4 sm:$0xff]   ;;  %v15566_v56 = vld [vmem:[%s22465_s1 + $0x84] ss:$16 sps:$4 sm:$0xff]  }
 0x5f5   : > { %4976 = vmatpush2.bf16.msra.mxu0 %v15528_v57  ;;  %5017 = vmatpush2.bf16.msra.mxu1 %v15531_v59  ;;  %v15569_v57 = vld [vmem:[%s22465_s1 + $0x8c] ss:$16 sps:$4 sm:$0xff]   ;;  %v15564_v59 = vld [vmem:[%s22465_s1 + $0x80] ss:$16 sps:$4 sm:$0xff]  }
 0x5f6   : > { %4977 = vmatprep.subr.bf16.mxu0 %v15536_v60  ;;  %5018 = vmatprep.subr.bf16.mxu1 %v15539_v61  ;;  %v15567_v60 = vld [vmem:[%s22465_s1 + $0x88] ss:$16 sps:$4 sm:$0xff]   ;;  %v15572_v61 = vld [vmem:[%s22465_s1 + $0x64] ss:$16 sps:$4 sm:$0xff]  }
 0x5f9   : > { %4978 = vmatpush2.bf16.msra.mxu0 %v15534_v62  ;;  %5019 = vmatpush2.bf16.msra.mxu1 %v15537_v63  ;;  %v15575_v62 = vld [vmem:[%s22465_s1 + $0x6c] ss:$16 sps:$4 sm:$0xff]   ;;  %v15570_v63 = vld [vmem:[%s22465_s1 + $0x60] ss:$16 sps:$4 sm:$0xff]  }
 0x5fa   : > { %4979 = vmatprep.subr.bf16.mxu0 %v15542_v1  ;;  %5020 = vmatprep.subr.bf16.mxu1 %v15545_v2  ;;  %v15573_v1 = vld [vmem:[%s22465_s1 + $0x68] ss:$16 sps:$4 sm:$0xff]   ;;  %v15578_v2 = vld [vmem:[%s22465_s1 + $0x44] ss:$16 sps:$4 sm:$0xff]  }
 0x5fd   : > { %4980 = vmatpush2.bf16.msra.mxu0 %v15540_v3  ;;  %5021 = vmatpush2.bf16.msra.mxu1 %v15543_v4  ;;  %v15581_v3 = vld [vmem:[%s22465_s1 + $0x4c] ss:$16 sps:$4 sm:$0xff]   ;;  %v15576_v4 = vld [vmem:[%s22465_s1 + $0x40] ss:$16 sps:$4 sm:$0xff]  }
 0x5fe   : > { %5471 = vmatprep.subr.bf16.mxu0 %v15548_v5  ;;  %5512 = vmatprep.subr.bf16.mxu1 %v15551_v6  ;;  %v15579_v5 = vld [vmem:[%s22465_s1 + $0x48] ss:$16 sps:$4 sm:$0xff]   ;;  %v15584_v6 = vld [vmem:[%s22465_s1 + $0x24] ss:$16 sps:$4 sm:$0xff]  }
 0x67f   : > { %v4465_v10 = vpop.f32.mrf.mxu0  ;;  %v4506_v11 = vpop.f32.mrf.mxu1 }
 0x680   : > { %v4466_v14 = vadd.f32 %v4465_v10, %v4094_v8  ;;  %v4507_v31 = vadd.f32 %v4506_v11, %v4102_v28  ;;  %v15582_v8 = vld [vmem:[%s22465_s1 + $0x20] ss:$16 sps:$4 sm:$0xff]   ;;  %v15590_v10 = vld [vmem:[%s22465_s1 + $0x4] ss:$16 sps:$4 sm:$0xff]   ;;  %v15593_v11 = vld [vmem:[%s22465_s1 + $0xc] ss:$16 sps:$4 sm:$0xff]  }
 0x681   : > { %v4467_v15 = vpop.f32.mrf.mxu0  ;;  %v4508_v16 = vpop.f32.mrf.mxu1  ;;  %v15606_v28 = vld [vmem:[%s22465_s1 + $0x1a0] ss:$16 sps:$4 sm:$0xff]  }
 0x682   : > { %v13548_v17 = vmul.f32 -1.442695, %v4466_v14  ;;  %v4468_v18 = vadd.f32 %v4467_v15, %v4098_v9  ;;  %v4509_v27 = vadd.f32 %v4508_v16, %v4106_v25  ;;  %v15585_v9 = vld [vmem:[%s22465_s1 + $0x28] ss:$16 sps:$4 sm:$0xff]   ;;  %v15588_v14 = vld [vmem:[%s22465_s1] ss:$16 sps:$4 sm:$0xff]  }
 0x683   : > { %v4469_v19 = vpop.f32.mrf.mxu0  ;;  %v4510_v20 = vpop.f32.mrf.mxu1  ;;  %v15591_v15 = vld [vmem:[%s22465_s1 + $0x8] ss:$16 sps:$4 sm:$0xff]   ;;  %v15596_v16 = vld [vmem:[%s22465_s1 + $0x1e4] ss:$16 sps:$4 sm:$0xff]  }
 0x684   : > { %17098 = vpow2.f32 %v13548_v17  ;;  %v13549_v21 = vmul.f32 -1.442695, %v4468_v18  ;;  %v13550_v29 = vmul.f32 -1.442695, %v4509_v27  ;;  %v15599_v17 = vld [vmem:[%s22465_s1 + $0x1ec] ss:$16 sps:$4 sm:$0xff]  }
 0x685   : > { %v4470_v23 = vpop.f32.mrf.mxu0  ;;  %v4511_v24 = vpop.f32.mrf.mxu1  ;;  %v15594_v18 = vld [vmem:[%s22465_s1 + $0x1e0] ss:$16 sps:$4 sm:$0xff]   ;;  %v15597_v19 = vld [vmem:[%s22465_s1 + $0x1e8] ss:$16 sps:$4 sm:$0xff]   ;;  %v15602_v20 = vld [vmem:[%s22465_s1 + $0x1c4] ss:$16 sps:$4 sm:$0xff]  }
 0x686   : > { %17100 = vpow2.f32 %v13549_v21  ;;  %v15605_v21 = vld [vmem:[%s22465_s1 + $0x1cc] ss:$16 sps:$4 sm:$0xff]   ;;  %v15600_v23 = vld [vmem:[%s22465_s1 + $0x1c0] ss:$16 sps:$4 sm:$0xff]   ;;  %v15603_v24 = vld [vmem:[%s22465_s1 + $0x1c8] ss:$16 sps:$4 sm:$0xff]  }
 0x687   : > { %17102 = vpow2.f32 %v13550_v29  ;;  %v15608_v25 = vld [vmem:[%s22465_s1 + $0x1a4] ss:$16 sps:$4 sm:$0xff]   ;;  %v15611_v27 = vld [vmem:[%s22465_s1 + $0x1ac] ss:$16 sps:$4 sm:$0xff]   ;;  %v15609_v29 = vld [vmem:[%s22465_s1 + $0x1a8] ss:$16 sps:$4 sm:$0xff]  }
 0x691   : > { %v17099_v30 = vpop.eup %17098 }
 0x692   : > { %v4516_v32 = vadd.f32 1.0, %v17099_v30  ;;  %v15614_v30 = vld [vmem:[%s22465_s1 + $0x184] ss:$16 sps:$4 sm:$0xff]  }
 0x693   : > { %v17101_v33 = vpop.eup %17100 }
 0x694   : > { %17104 = vrcp.f32 %v4516_v32  ;;  %v4522_v34 = vadd.f32 1.0, %v17101_v33  ;;  %v17103_v35 = vpop.eup %17102  ;;  %v15612_v32 = vld [vmem:[%s22465_s1 + $0x180] ss:$16 sps:$4 sm:$0xff]   ;;  %v15615_v33 = vld [vmem:[%s22465_s1 + $0x188] ss:$16 sps:$4 sm:$0xff]  }
 0x695   : > { %17106 = vtanh.f32 %v4507_v31  ;;  %v4529_v41 = vadd.f32 1.0, %v17103_v35  ;;  %v15617_v31 = vld [vmem:[%s22465_s1 + $0x18c] ss:$16 sps:$4 sm:$0xff]  }
 0x696   : > { %17108 = vrcp.f32 %v4522_v34  ;;  %v15620_v34 = vld [vmem:[%s22465_s1 + $0x164] ss:$16 sps:$4 sm:$0xff]   ;;  %v15623_v35 = vld [vmem:[%s22465_s1 + $0x16c] ss:$16 sps:$4 sm:$0xff]  }
 0x697   : > { %17110 = vrcp.f32 %v4529_v41  ;;  %v15624_v41 = vld [vmem:[%s22465_s1 + $0x140] ss:$16 sps:$4 sm:$0xff]  }
 0x6a1   : > { %v17105_v36 = vpop.eup %17104 }
 0x6a2   : > { %v17107_v37 = vpop.eup %17106 }
 0x6a3   : > { %v17109_v38 = vpop.eup %17108  ;;  %v4534_v42 = vmul.f32 %v17107_v37, %v17105_v36  ;;  %v15618_v36 = vld [vmem:[%s22465_s1 + $0x160] ss:$16 sps:$4 sm:$0xff]   ;;  %v15621_v37 = vld [vmem:[%s22465_s1 + $0x168] ss:$16 sps:$4 sm:$0xff]  }
 0x6a4   : > { %v4533_v43 = vmul.f32 %v17109_v38, %v4532_v40  ;;  %v17111_v45 = vpop.eup %17110  ;;  %v15626_v38 = vld [vmem:[%s22465_s1 + $0x144] ss:$16 sps:$4 sm:$0xff]   ;;  %v15629_v40 = vld [vmem:[%s22465_s1 + $0x14c] ss:$16 sps:$4 sm:$0xff]  }
 0x6a6   : > { %v4535_v39 = vadd.f32 %v4534_v42, %v4533_v43  ;;  %v15627_v42 = vld [vmem:[%s22465_s1 + $0x148] ss:$16 sps:$4 sm:$0xff]   ;;  %v15632_v43 = vld [vmem:[%s22465_s1 + $0x124] ss:$16 sps:$4 sm:$0xff]  }
 0x6a8   : > { %4539 = vst [vmem:[#allocation3] sm:$0xff] %v4535_v39  ;;  %17112 = vtanh.f32 %v4535_v39  ;;  %v15635_v39 = vld [vmem:[%s22465_s1 + $0x12c] ss:$16 sps:$4 sm:$0xff]  }
 0x6b5   : > { %v17113_v46 = vpop.eup %17112 }
 0x6b6   : > { %v4537_v47 = vmul.f32 %v17113_v46, %v17111_v45  ;;  %v15630_v45 = vld [vmem:[%s22465_s1 + $0x120] ss:$16 sps:$4 sm:$0xff]   ;;  %v15633_v46 = vld [vmem:[%s22465_s1 + $0x128] ss:$16 sps:$4 sm:$0xff]  }
 0x6b8   : > { %v19375_v49 = vpack.c.bf16 %v4537_v47, %v4537_v47  ;;  %v15638_v47 = vld [vmem:[%s22465_s1 + $0x104] ss:$16 sps:$4 sm:$0xff]  }
 0x6ba   : > { %4982 = vmatmul.mubr.bf16.vlgmr.msra.gmra.mxu0 %v19375_v49  ;;  %5023 = vmatmul.mubr.bf16.vlgmr.msra.gmra.mxu1 %v19375_v49 }
 0x6bb   : > { %5472 = vmatpush1.bf16.msra.mxu0 %v15546_v55  ;;  %5513 = vmatpush1.bf16.msra.mxu1 %v15549_v48  ;;  %v15641_v55 = vld [vmem:[%s22465_s1 + $0x10c] ss:$16 sps:$4 sm:$0xff]   ;;  %v15636_v48 = vld [vmem:[%s22465_s1 + $0x100] ss:$16 sps:$4 sm:$0xff]  }
 0x6bc   : > { %5503 = vmatprep.mubr.bf16.mxu0 %v19166_v0  ;;  %5544 = vmatprep.mubr.bf16.mxu1 %v19166_v0  ;;  %v15561_v0 = vld [vmem:[%s22465_s1 + $0xa8] ss:$16 sps:$4 sm:$0xff]  }
 0x6bd   : > { %5473 = vmatprep.subr.bf16.mxu0 %v15554_v44  ;;  %5514 = vmatprep.subr.bf16.mxu1 %v15557_v58  ;;  %v15639_v44 = vld [vmem:[%s22465_s1 + $0x108] ss:$16 sps:$4 sm:$0xff]  }
 0x6be   : > { %v13619_v58 = vld [vmem:[%s17530_s18 + $0x18] sm:$0xff] }
 0x6bf   : > { %5474 = vmatpush1.bf16.msra.mxu0 %v15552_v50  ;;  %5515 = vmatpush1.bf16.msra.mxu1 %v15555_v51  ;;  %v5063_v50 = vpack.c.bf16 %v13619_v58, %v13619_v58  ;;  %v15642_v51 = vld [vmem:[%s22467_s3 + $0xe0] ss:$16 sps:$4 sm:$0xff]  }
 0x6c0   : > { %5475 = vmatprep.subr.bf16.mxu0 %v15560_v52  ;;  %5516 = vmatprep.subr.bf16.mxu1 %v15563_v53  ;;  %v15644_v52 = vld [vmem:[%s22467_s3 + $0xe4] ss:$16 sps:$4 sm:$0xff]   ;;  %v15645_v53 = vld [vmem:[%s22467_s3 + $0xe8] ss:$16 sps:$4 sm:$0xff]   ;;  %v15726_v58 = vld [vmem:[%s22467_s3 + $0x120] ss:$16 sps:$4 sm:$0xff]  }
 0x6c3   : > { %5476 = vmatpush1.bf16.msra.mxu0 %v15558_v54  ;;  %5517 = vmatpush1.bf16.msra.mxu1 %v15561_v0  ;;  %v15647_v54 = vld [vmem:[%s22467_s3 + $0xec] ss:$16 sps:$4 sm:$0xff]  }
 0x6c4   : > { %5477 = vmatprep.subr.bf16.mxu0 %v15566_v56  ;;  %5518 = vmatprep.subr.bf16.mxu1 %v15569_v57  ;;  %v15653_v0 = vld [vmem:[%s22467_s3 + $0xcc] ss:$16 sps:$4 sm:$0xff]   ;;  %v15648_v56 = vld [vmem:[%s22467_s3 + $0xc0] ss:$16 sps:$4 sm:$0xff]   ;;  %v15651_v57 = vld [vmem:[%s22467_s3 + $0xc8] ss:$16 sps:$4 sm:$0xff]  }
 0x6c7   : > { %5478 = vmatpush1.bf16.msra.mxu0 %v15564_v59  ;;  %5519 = vmatpush1.bf16.msra.mxu1 %v15567_v60  ;;  %v15656_v59 = vld [vmem:[%s22467_s3 + $0xa4] ss:$16 sps:$4 sm:$0xff]   ;;  %v15659_v60 = vld [vmem:[%s22467_s3 + $0xac] ss:$16 sps:$4 sm:$0xff]  }
 0x6c8   : > { %5479 = vmatprep.subr.bf16.mxu0 %v15572_v61  ;;  %5520 = vmatprep.subr.bf16.mxu1 %v15575_v62  ;;  %v15654_v61 = vld [vmem:[%s22467_s3 + $0xa0] ss:$16 sps:$4 sm:$0xff]   ;;  %v15657_v62 = vld [vmem:[%s22467_s3 + $0xa8] ss:$16 sps:$4 sm:$0xff]  }
 0x6cb   : > { %5480 = vmatpush1.bf16.msra.mxu0 %v15570_v63  ;;  %5521 = vmatpush1.bf16.msra.mxu1 %v15573_v1  ;;  %v15662_v63 = vld [vmem:[%s22467_s3 + $0x84] ss:$16 sps:$4 sm:$0xff]   ;;  %v15665_v1 = vld [vmem:[%s22467_s3 + $0x8c] ss:$16 sps:$4 sm:$0xff]  }
 0x6cc   : > { %5481 = vmatprep.subr.bf16.mxu0 %v15578_v2  ;;  %5522 = vmatprep.subr.bf16.mxu1 %v15581_v3  ;;  %v15660_v2 = vld [vmem:[%s22467_s3 + $0x80] ss:$16 sps:$4 sm:$0xff]   ;;  %v15663_v3 = vld [vmem:[%s22467_s3 + $0x88] ss:$16 sps:$4 sm:$0xff]  }
 0x6cf   : > { %5482 = vmatpush1.bf16.msra.mxu0 %v15576_v4  ;;  %5523 = vmatpush1.bf16.msra.mxu1 %v15579_v5  ;;  %v15668_v4 = vld [vmem:[%s22467_s3 + $0x64] ss:$16 sps:$4 sm:$0xff]   ;;  %v15671_v5 = vld [vmem:[%s22467_s3 + $0x6c] ss:$16 sps:$4 sm:$0xff]  }
 0x6d0   : > { %5483 = vmatprep.subr.bf16.mxu0 %v15584_v6  ;;  %5524 = vmatprep.subr.bf16.mxu1 %v15587_v7  ;;  %v15666_v6 = vld [vmem:[%s22467_s3 + $0x60] ss:$16 sps:$4 sm:$0xff]   ;;  %v15669_v7 = vld [vmem:[%s22467_s3 + $0x68] ss:$16 sps:$4 sm:$0xff]  }
 0x6d3   : > { %5484 = vmatpush1.bf16.msra.mxu0 %v15582_v8  ;;  %5525 = vmatpush1.bf16.msra.mxu1 %v15585_v9  ;;  %v15674_v8 = vld [vmem:[%s22467_s3 + $0x44] ss:$16 sps:$4 sm:$0xff]   ;;  %v15677_v9 = vld [vmem:[%s22467_s3 + $0x4c] ss:$16 sps:$4 sm:$0xff]  }
 0x6d4   : > { %5485 = vmatprep.subr.bf16.mxu0 %v15590_v10  ;;  %5526 = vmatprep.subr.bf16.mxu1 %v15593_v11  ;;  %v15672_v10 = vld [vmem:[%s22467_s3 + $0x40] ss:$16 sps:$4 sm:$0xff]   ;;  %v15675_v11 = vld [vmem:[%s22467_s3 + $0x48] ss:$16 sps:$4 sm:$0xff]  }
 0x6d7   : > { %5486 = vmatpush1.bf16.msra.mxu0 %v15588_v14  ;;  %5527 = vmatpush1.bf16.msra.mxu1 %v15591_v15  ;;  %v15680_v14 = vld [vmem:[%s22467_s3 + $0x24] ss:$16 sps:$4 sm:$0xff]   ;;  %v15683_v15 = vld [vmem:[%s22467_s3 + $0x2c] ss:$16 sps:$4 sm:$0xff]  }
 0x6d8   : > { %5487 = vmatprep.subr.bf16.mxu0 %v15596_v16  ;;  %5528 = vmatprep.subr.bf16.mxu1 %v15599_v17  ;;  %v15678_v16 = vld [vmem:[%s22467_s3 + $0x20] ss:$16 sps:$4 sm:$0xff]   ;;  %v15681_v17 = vld [vmem:[%s22467_s3 + $0x28] ss:$16 sps:$4 sm:$0xff]  }
 0x6db   : > { %5488 = vmatpush2.bf16.msra.mxu0 %v15594_v18  ;;  %5529 = vmatpush2.bf16.msra.mxu1 %v15597_v19  ;;  %v15686_v18 = vld [vmem:[%s22467_s3 + $0x4] ss:$16 sps:$4 sm:$0xff]   ;;  %v15689_v19 = vld [vmem:[%s22467_s3 + $0xc] ss:$16 sps:$4 sm:$0xff]  }
 0x6dc   : > { %5489 = vmatprep.subr.bf16.mxu0 %v15602_v20  ;;  %5530 = vmatprep.subr.bf16.mxu1 %v15605_v21  ;;  %v15684_v20 = vld [vmem:[%s22467_s3] ss:$16 sps:$4 sm:$0xff]   ;;  %v15687_v21 = vld [vmem:[%s22467_s3 + $0x8] ss:$16 sps:$4 sm:$0xff]  }
 0x6df   : > { %5490 = vmatpush2.bf16.msra.mxu0 %v15600_v23  ;;  %5531 = vmatpush2.bf16.msra.mxu1 %v15603_v24  ;;  %v15692_v23 = vld [vmem:[%s22467_s3 + $0x1e4] ss:$16 sps:$4 sm:$0xff]   ;;  %v15695_v24 = vld [vmem:[%s22467_s3 + $0x1ec] ss:$16 sps:$4 sm:$0xff]  }
 0x6e0   : > { %5491 = vmatprep.subr.bf16.mxu0 %v15608_v25  ;;  %5532 = vmatprep.subr.bf16.mxu1 %v15611_v27  ;;  %v15690_v25 = vld [vmem:[%s22467_s3 + $0x1e0] ss:$16 sps:$4 sm:$0xff]   ;;  %v15693_v27 = vld [vmem:[%s22467_s3 + $0x1e8] ss:$16 sps:$4 sm:$0xff]  }
 0x6e3   : > { %5492 = vmatpush2.bf16.msra.mxu0 %v15606_v28  ;;  %5533 = vmatpush2.bf16.msra.mxu1 %v15609_v29  ;;  %v15698_v28 = vld [vmem:[%s22467_s3 + $0x1c4] ss:$16 sps:$4 sm:$0xff]   ;;  %v15701_v29 = vld [vmem:[%s22467_s3 + $0x1cc] ss:$16 sps:$4 sm:$0xff]  }
 0x6e4   : > { %5493 = vmatprep.subr.bf16.mxu0 %v15614_v30  ;;  %5534 = vmatprep.subr.bf16.mxu1 %v15617_v31  ;;  %v15696_v30 = vld [vmem:[%s22467_s3 + $0x1c0] ss:$16 sps:$4 sm:$0xff]   ;;  %v15699_v31 = vld [vmem:[%s22467_s3 + $0x1c8] ss:$16 sps:$4 sm:$0xff]  }
 0x6e7   : > { %5494 = vmatpush2.bf16.msra.mxu0 %v15612_v32  ;;  %5535 = vmatpush2.bf16.msra.mxu1 %v15615_v33  ;;  %v15704_v32 = vld [vmem:[%s22467_s3 + $0x1a4] ss:$16 sps:$4 sm:$0xff]   ;;  %v15707_v33 = vld [vmem:[%s22467_s3 + $0x1ac] ss:$16 sps:$4 sm:$0xff]  }
 0x6e8   : > { %5495 = vmatprep.subr.bf16.mxu0 %v15620_v34  ;;  %5536 = vmatprep.subr.bf16.mxu1 %v15623_v35  ;;  %v15702_v34 = vld [vmem:[%s22467_s3 + $0x1a0] ss:$16 sps:$4 sm:$0xff]   ;;  %v15705_v35 = vld [vmem:[%s22467_s3 + $0x1a8] ss:$16 sps:$4 sm:$0xff]  }
 0x6eb   : > { %5496 = vmatpush2.bf16.msra.mxu0 %v15618_v36  ;;  %5537 = vmatpush2.bf16.msra.mxu1 %v15621_v37  ;;  %v15710_v36 = vld [vmem:[%s22467_s3 + $0x184] ss:$16 sps:$4 sm:$0xff]   ;;  %v15713_v37 = vld [vmem:[%s22467_s3 + $0x18c] ss:$16 sps:$4 sm:$0xff]  }
 0x6ec   : > { %5497 = vmatprep.subr.bf16.mxu0 %v15626_v38  ;;  %5538 = vmatprep.subr.bf16.mxu1 %v15629_v40  ;;  %v15708_v38 = vld [vmem:[%s22467_s3 + $0x180] ss:$16 sps:$4 sm:$0xff]   ;;  %v15711_v40 = vld [vmem:[%s22467_s3 + $0x188] ss:$16 sps:$4 sm:$0xff]  }
 0x6ef   : > { %5498 = vmatpush2.bf16.msra.mxu0 %v15624_v41  ;;  %5539 = vmatpush2.bf16.msra.mxu1 %v15627_v42  ;;  %v15714_v41 = vld [vmem:[%s22467_s3 + $0x160] ss:$16 sps:$4 sm:$0xff]   ;;  %v15716_v42 = vld [vmem:[%s22467_s3 + $0x164] ss:$16 sps:$4 sm:$0xff]  }
 0x6f0   : > { %5499 = vmatprep.subr.bf16.mxu0 %v15632_v43  ;;  %5540 = vmatprep.subr.bf16.mxu1 %v15635_v39  ;;  %v15717_v43 = vld [vmem:[%s22467_s3 + $0x168] ss:$16 sps:$4 sm:$0xff]   ;;  %v15719_v39 = vld [vmem:[%s22467_s3 + $0x16c] ss:$16 sps:$4 sm:$0xff]  }
 0x6f3   : > { %5500 = vmatpush2.bf16.msra.mxu0 %v15630_v45  ;;  %5541 = vmatpush2.bf16.msra.mxu1 %v15633_v46  ;;  %v15722_v45 = vld [vmem:[%s22467_s3 + $0x144] ss:$16 sps:$4 sm:$0xff]   ;;  %v15725_v46 = vld [vmem:[%s22467_s3 + $0x14c] ss:$16 sps:$4 sm:$0xff]  }
 0x6f4   : > { %5501 = vmatprep.subr.bf16.mxu0 %v15638_v47  ;;  %5542 = vmatprep.subr.bf16.mxu1 %v15641_v55  ;;  %v15720_v47 = vld [vmem:[%s22467_s3 + $0x140] ss:$16 sps:$4 sm:$0xff]   ;;  %v15723_v55 = vld [vmem:[%s22467_s3 + $0x148] ss:$16 sps:$4 sm:$0xff]  }
 0x6f7   : > { %5502 = vmatpush2.bf16.msra.mxu0 %v15636_v48  ;;  %5543 = vmatpush2.bf16.msra.mxu1 %v15639_v44  ;;  %v15728_v48 = vld [vmem:[%s22467_s3 + $0x124] ss:$16 sps:$4 sm:$0xff]   ;;  %v15731_v44 = vld [vmem:[%s22467_s3 + $0x12c] ss:$16 sps:$4 sm:$0xff]  }
 0x6f8   : > { %5989 = vmatprep.subr.bf16.mxu0 %v15644_v52  ;;  %6030 = vmatprep.subr.bf16.mxu1 %v15647_v54  ;;  %v15737_v52 = vld [vmem:[%s22467_s3 + $0x10c] ss:$16 sps:$4 sm:$0xff]   ;;  %v15735_v54 = vld [vmem:[%s22467_s3 + $0x108] ss:$16 sps:$4 sm:$0xff]  }
 0x6fa   : > { %5504 = vmatmul.mubr.bf16.vlgmr.msra.gmra.mxu0 %v5063_v50  ;;  %5545 = vmatmul.mubr.bf16.vlgmr.msra.gmra.mxu1 %v5063_v50  ;;  %v15729_v50 = vld [vmem:[%s22467_s3 + $0x128] ss:$16 sps:$4 sm:$0xff]  }
 0x6fb   : > { %6021 = vmatprep.mubr.bf16.mxu0 %v19375_v49  ;;  %6062 = vmatprep.mubr.bf16.mxu1 %v19375_v49  ;;  %v15650_v49 = vld [vmem:[%s22467_s3 + $0xc4] ss:$16 sps:$4 sm:$0xff]  }
 0x6fc   : > { %5990 = vmatpush1.bf16.msra.mxu0 %v15642_v51  ;;  %6031 = vmatpush1.bf16.msra.mxu1 %v15645_v53  ;;  %v15734_v51 = vld [vmem:[%s22467_s3 + $0x104] ss:$16 sps:$4 sm:$0xff]   ;;  %v15732_v53 = vld [vmem:[%s22467_s3 + $0x100] ss:$16 sps:$4 sm:$0xff]  }
 0x6fd   : > { %5991 = vmatprep.subr.bf16.mxu0 %v15650_v49  ;;  %6032 = vmatprep.subr.bf16.mxu1 %v15653_v0  ;;  %v4607_v49 = vld [vmem:[%s22470_s6] sm:$0xf]  ;;  %v15740_v0 = vld [vmem:[%s22469_s5 + $0xe4] ss:$16 sps:$4 sm:$0xff]  }
 0x700   : > { %5992 = vmatpush1.bf16.msra.mxu0 %v15648_v56  ;;  %6033 = vmatpush1.bf16.msra.mxu1 %v15651_v57  ;;  %v4612_v56 = vrot.slane %v4607_v49, %v17932_v12  ;;  %v15743_v57 = vld [vmem:[%s22469_s5 + $0xec] ss:$16 sps:$4 sm:$0xff]  }
 0x701   : > { %5993 = vmatprep.subr.bf16.mxu0 %v15656_v59  ;;  %6034 = vmatprep.subr.bf16.mxu1 %v15659_v60  ;;  %v4616_v59 = vrot.slane %v4607_v49, %v17934_v13 }
 0x704   : > { %5994 = vmatpush1.bf16.msra.mxu0 %v15654_v61  ;;  %6035 = vmatpush1.bf16.msra.mxu1 %v15657_v62 }
 0x705   : > { %5995 = vmatprep.subr.bf16.mxu0 %v15662_v63  ;;  %6036 = vmatprep.subr.bf16.mxu1 %v15665_v1 }
 0x708   : > { %5996 = vmatpush1.bf16.msra.mxu0 %v15660_v2  ;;  %6037 = vmatpush1.bf16.msra.mxu1 %v15663_v3 }
 0x709   : > { %5997 = vmatprep.subr.bf16.mxu0 %v15668_v4  ;;  %6038 = vmatprep.subr.bf16.mxu1 %v15671_v5 }
 0x70c   : > { %5998 = vmatpush1.bf16.msra.mxu0 %v15666_v6  ;;  %6039 = vmatpush1.bf16.msra.mxu1 %v15669_v7 }
 0x70d   : > { %5999 = vmatprep.subr.bf16.mxu0 %v15674_v8  ;;  %6040 = vmatprep.subr.bf16.mxu1 %v15677_v9  ;;  %v4624_v9 = vrot.slane %v4607_v49, %v17938_v22 }
 0x710   : > { %6000 = vmatpush1.bf16.msra.mxu0 %v15672_v10  ;;  %6041 = vmatpush1.bf16.msra.mxu1 %v15675_v11  ;;  %v4620_v11 = vrot.slane %v4607_v49, %v17940_v26 }
 0x711   : > { %6001 = vmatprep.subr.bf16.mxu0 %v15680_v14  ;;  %6042 = vmatprep.subr.bf16.mxu1 %v15683_v15 }
 0x714   : > { %6002 = vmatpush1.bf16.msra.mxu0 %v15678_v16  ;;  %6043 = vmatpush1.bf16.msra.mxu1 %v15681_v17 }
 0x715   : > { %6003 = vmatprep.subr.bf16.mxu0 %v15686_v18  ;;  %6044 = vmatprep.subr.bf16.mxu1 %v15689_v19 }
 0x718   : > { %6004 = vmatpush1.bf16.msra.mxu0 %v15684_v20  ;;  %6045 = vmatpush1.bf16.msra.mxu1 %v15687_v21 }
 0x719   : > { %6005 = vmatprep.subr.bf16.mxu0 %v15692_v23  ;;  %6046 = vmatprep.subr.bf16.mxu1 %v15695_v24 }
 0x71c   : > { %6006 = vmatpush2.bf16.msra.mxu0 %v15690_v25  ;;  %6047 = vmatpush2.bf16.msra.mxu1 %v15693_v27  ;;  %v5050_v25 = vld [vmem:[#allocation3 + $0x10] sm:$0xff] }
 0x71d   : > { %6007 = vmatprep.subr.bf16.mxu0 %v15698_v28  ;;  %6048 = vmatprep.subr.bf16.mxu1 %v15701_v29 }
 0x720   : > { %6008 = vmatpush2.bf16.msra.mxu0 %v15696_v30  ;;  %6049 = vmatpush2.bf16.msra.mxu1 %v15699_v31 }
 0x721   : > { %6009 = vmatprep.subr.bf16.mxu0 %v15704_v32  ;;  %6050 = vmatprep.subr.bf16.mxu1 %v15707_v33 }
 0x724   : > { %6010 = vmatpush2.bf16.msra.mxu0 %v15702_v34  ;;  %6051 = vmatpush2.bf16.msra.mxu1 %v15705_v35  ;;  %v5129_v34 = vld [vmem:[%s22466_s2] sm:$0xf] }
 0x725   : > { %6011 = vmatprep.subr.bf16.mxu0 %v15710_v36  ;;  %6052 = vmatprep.subr.bf16.mxu1 %v15713_v37  ;;  %v5134_v35 = vrot.slane %v5129_v34, %v17932_v12  ;;  %v5138_v36 = vrot.slane %v5129_v34, %v17934_v13 }
 0x728   : > { %6012 = vmatpush2.bf16.msra.mxu0 %v15708_v38  ;;  %6053 = vmatpush2.bf16.msra.mxu1 %v15711_v40 }
 0x729   : > { %6013 = vmatprep.subr.bf16.mxu0 %v15716_v42  ;;  %6054 = vmatprep.subr.bf16.mxu1 %v15719_v39 }
 0x72c   : > { %6014 = vmatpush2.bf16.msra.mxu0 %v15714_v41  ;;  %6055 = vmatpush2.bf16.msra.mxu1 %v15717_v43 }
 0x72d   : > { %6015 = vmatprep.subr.bf16.mxu0 %v15722_v45  ;;  %6056 = vmatprep.subr.bf16.mxu1 %v15725_v46 }
 0x730   : > { %6016 = vmatpush2.bf16.msra.mxu0 %v15720_v47  ;;  %6057 = vmatpush2.bf16.msra.mxu1 %v15723_v55 }
 0x731   : > { %6017 = vmatprep.subr.bf16.mxu0 %v15728_v48  ;;  %6058 = vmatprep.subr.bf16.mxu1 %v15731_v44  ;;  %v5146_v44 = vrot.slane %v5129_v34, %v17938_v22 }
 0x734   : > { %6018 = vmatpush2.bf16.msra.mxu0 %v15726_v58  ;;  %6059 = vmatpush2.bf16.msra.mxu1 %v15729_v50  ;;  %v5142_v58 = vrot.slane %v5129_v34, %v17940_v26  ;;  %v15776_v34 = vld [vmem:[%s22469_s5 + $0x24] ss:$16 sps:$4 sm:$0xff]  }
 0x735   : > { %6019 = vmatprep.subr.bf16.mxu0 %v15734_v51  ;;  %6060 = vmatprep.subr.bf16.mxu1 %v15737_v52 }
 0x738   : > { %6020 = vmatpush2.bf16.msra.mxu0 %v15732_v53  ;;  %6061 = vmatpush2.bf16.msra.mxu1 %v15735_v54 }
 0x739   : > { %6507 = vmatprep.subr.bf16.mxu0 %v15740_v0  ;;  %6548 = vmatprep.subr.bf16.mxu1 %v15743_v57 }
 0x77a   : > { %v4983_v60 = vpop.f32.mrf.mxu0  ;;  %v5024_v61 = vpop.f32.mrf.mxu1 }
 0x77b   : > { %v4984_v62 = vadd.f32 %v4983_v60, %v4612_v56  ;;  %v5025_v16 = vadd.f32 %v5024_v61, %v4620_v11  ;;  %v5572_v61 = vld [vmem:[#allocation3 + $0x8] sm:$0xff]  ;;  %v15749_v11 = vld [vmem:[%s22469_s5 + $0xcc] ss:$16 sps:$4 sm:$0xff]  }
 0x77c   : > { %v4985_v63 = vpop.f32.mrf.mxu0  ;;  %v5026_v1 = vpop.f32.mrf.mxu1 }
 0x77d   : > { %v13615_v2 = vmul.f32 -1.442695, %v4984_v62  ;;  %v4986_v3 = vadd.f32 %v4985_v63, %v4616_v59  ;;  %v5027_v10 = vadd.f32 %v5026_v1, %v4624_v9 }
 0x77e   : > { %v4987_v4 = vpop.f32.mrf.mxu0  ;;  %v5028_v5 = vpop.f32.mrf.mxu1 }
 0x77f   : > { %17114 = vpow2.f32 %v13615_v2  ;;  %v13616_v6 = vmul.f32 -1.442695, %v4986_v3  ;;  %v13617_v14 = vmul.f32 -1.442695, %v5027_v10  ;;  %v15746_v10 = vld [vmem:[%s22469_s5 + $0xc4] ss:$16 sps:$4 sm:$0xff]  }
 0x780   : > { %v4988_v7 = vpop.f32.mrf.mxu0  ;;  %v5029_v8 = vpop.f32.mrf.mxu1 }
 0x781   : > { %17116 = vpow2.f32 %v13616_v6  ;;  %v15738_v7 = vld [vmem:[%s22469_s5 + $0xe0] ss:$16 sps:$4 sm:$0xff]   ;;  %v15741_v8 = vld [vmem:[%s22469_s5 + $0xe8] ss:$16 sps:$4 sm:$0xff]  }
 0x782   : > { %17118 = vpow2.f32 %v13617_v14  ;;  %v15744_v14 = vld [vmem:[%s22469_s5 + $0xc0] ss:$16 sps:$4 sm:$0xff]  }
 0x78c   : > { %v17115_v15 = vpop.eup %17114 }
 0x78d   : > { %v5034_v17 = vadd.f32 1.0, %v17115_v15  ;;  %v15747_v15 = vld [vmem:[%s22469_s5 + $0xc8] ss:$16 sps:$4 sm:$0xff]  }
 0x78e   : > { %v17117_v18 = vpop.eup %17116 }
 0x78f   : > { %17120 = vrcp.f32 %v5034_v17  ;;  %v5040_v19 = vadd.f32 1.0, %v17117_v18  ;;  %v17119_v20 = vpop.eup %17118  ;;  %v15755_v17 = vld [vmem:[%s22469_s5 + $0xac] ss:$16 sps:$4 sm:$0xff]   ;;  %v15750_v18 = vld [vmem:[%s22469_s5 + $0xa0] ss:$16 sps:$4 sm:$0xff]  }
 0x790   : > { %17122 = vtanh.f32 %v5025_v16  ;;  %v5047_v27 = vadd.f32 1.0, %v17119_v20  ;;  %v15752_v16 = vld [vmem:[%s22469_s5 + $0xa4] ss:$16 sps:$4 sm:$0xff]  }
 0x791   : > { %17124 = vrcp.f32 %v5040_v19  ;;  %v15753_v19 = vld [vmem:[%s22469_s5 + $0xa8] ss:$16 sps:$4 sm:$0xff]   ;;  %v15758_v20 = vld [vmem:[%s22469_s5 + $0x84] ss:$16 sps:$4 sm:$0xff]  }
 0x792   : > { %17126 = vrcp.f32 %v5047_v27  ;;  %v15767_v27 = vld [vmem:[%s22469_s5 + $0x6c] ss:$16 sps:$4 sm:$0xff]  }
 0x79c   : > { %v17121_v21 = vpop.eup %17120 }
 0x79d   : > { %v17123_v23 = vpop.eup %17122 }
 0x79e   : > { %v17125_v24 = vpop.eup %17124  ;;  %v5052_v28 = vmul.f32 %v17123_v23, %v17121_v21  ;;  %v15761_v21 = vld [vmem:[%s22469_s5 + $0x8c] ss:$16 sps:$4 sm:$0xff]   ;;  %v15756_v23 = vld [vmem:[%s22469_s5 + $0x80] ss:$16 sps:$4 sm:$0xff]  }
 0x79f   : > { %v5051_v29 = vmul.f32 %v17125_v24, %v5050_v25  ;;  %v17127_v31 = vpop.eup %17126  ;;  %v15759_v24 = vld [vmem:[%s22469_s5 + $0x88] ss:$16 sps:$4 sm:$0xff]   ;;  %v15764_v25 = vld [vmem:[%s22469_s5 + $0x64] ss:$16 sps:$4 sm:$0xff]  }
 0x7a1   : > { %v5053_v30 = vadd.f32 %v5052_v28, %v5051_v29  ;;  %v15762_v28 = vld [vmem:[%s22469_s5 + $0x60] ss:$16 sps:$4 sm:$0xff]   ;;  %v15765_v29 = vld [vmem:[%s22469_s5 + $0x68] ss:$16 sps:$4 sm:$0xff]  }
 0x7a3   : > { %17128 = vtanh.f32 %v5053_v30  ;;  %5057 = vst [vmem:[#allocation3 + $0x10] sm:$0xff] %v5053_v30  ;;  %v15770_v30 = vld [vmem:[%s22469_s5 + $0x44] ss:$16 sps:$4 sm:$0xff]  }
 0x7b0   : > { %v17129_v32 = vpop.eup %17128 }
 0x7b1   : > { %v5055_v33 = vmul.f32 %v17129_v32, %v17127_v31  ;;  %v15773_v31 = vld [vmem:[%s22469_s5 + $0x4c] ss:$16 sps:$4 sm:$0xff]   ;;  %v15768_v32 = vld [vmem:[%s22469_s5 + $0x40] ss:$16 sps:$4 sm:$0xff]  }
 0x7b3   : > { %13618 = vst [vmem:[%s17535_s21 + $0x10] sm:$0xff] %v5055_v33  ;;  %v6100_v9 = vpack.c.bf16 %v5055_v33, %v5055_v33  ;;  %v15771_v33 = vld [vmem:[%s22469_s5 + $0x48] ss:$16 sps:$4 sm:$0xff]  }
 0x7ba   : > { %v5505_v37 = vpop.f32.mrf.mxu0  ;;  %v5546_v38 = vpop.f32.mrf.mxu1 }
 0x7bb   : > { %v5506_v40 = vadd.f32 %v5505_v37, %v5134_v35  ;;  %v5547_v51 = vadd.f32 %v5546_v38, %v5142_v58  ;;  %v15779_v35 = vld [vmem:[%s22469_s5 + $0x2c] ss:$16 sps:$4 sm:$0xff]   ;;  %v15777_v37 = vld [vmem:[%s22469_s5 + $0x28] ss:$16 sps:$4 sm:$0xff]   ;;  %v15782_v38 = vld [vmem:[%s22469_s5 + $0x4] ss:$16 sps:$4 sm:$0xff]  }
 0x7bc   : > { %v5507_v41 = vpop.f32.mrf.mxu0  ;;  %v5548_v42 = vpop.f32.mrf.mxu1  ;;  %v15800_v58 = vld [vmem:[%s22469_s5 + $0x1a4] ss:$16 sps:$4 sm:$0xff]  }
 0x7bd   : > { %v13684_v43 = vmul.f32 -1.442695, %v5506_v40  ;;  %v5508_v39 = vadd.f32 %v5507_v41, %v5138_v36  ;;  %v5549_v50 = vadd.f32 %v5548_v42, %v5146_v44  ;;  %v15774_v36 = vld [vmem:[%s22469_s5 + $0x20] ss:$16 sps:$4 sm:$0xff]   ;;  %v15785_v40 = vld [vmem:[%s22469_s5 + $0xc] ss:$16 sps:$4 sm:$0xff]  }
 0x7be   : > { %v5509_v45 = vpop.f32.mrf.mxu0  ;;  %v5550_v46 = vpop.f32.mrf.mxu1  ;;  %v15780_v41 = vld [vmem:[%s22469_s5] ss:$16 sps:$4 sm:$0xff]   ;;  %v15783_v42 = vld [vmem:[%s22469_s5 + $0x8] ss:$16 sps:$4 sm:$0xff]  }
 0x7bf   : > { %17130 = vpow2.f32 %v13684_v43  ;;  %v13685_v47 = vmul.f32 -1.442695, %v5508_v39  ;;  %v13686_v52 = vmul.f32 -1.442695, %v5549_v50  ;;  %v15788_v43 = vld [vmem:[%s22469_s5 + $0x1e4] ss:$16 sps:$4 sm:$0xff]  }
 0x7c0   : > { %v5510_v55 = vpop.f32.mrf.mxu0  ;;  %v5551_v48 = vpop.f32.mrf.mxu1  ;;  %v15791_v39 = vld [vmem:[%s22469_s5 + $0x1ec] ss:$16 sps:$4 sm:$0xff]   ;;  %v15786_v45 = vld [vmem:[%s22469_s5 + $0x1e0] ss:$16 sps:$4 sm:$0xff]   ;;  %v15789_v46 = vld [vmem:[%s22469_s5 + $0x1e8] ss:$16 sps:$4 sm:$0xff]  }
 0x7c1   : > { %17132 = vpow2.f32 %v13685_v47  ;;  %v15794_v47 = vld [vmem:[%s22469_s5 + $0x1c4] ss:$16 sps:$4 sm:$0xff]   ;;  %v15797_v55 = vld [vmem:[%s22469_s5 + $0x1cc] ss:$16 sps:$4 sm:$0xff]   ;;  %v15792_v48 = vld [vmem:[%s22469_s5 + $0x1c0] ss:$16 sps:$4 sm:$0xff]  }
 0x7c2   : > { %17134 = vtanh.f32 %v5547_v51  ;;  %v15795_v44 = vld [vmem:[%s22469_s5 + $0x1c8] ss:$16 sps:$4 sm:$0xff]   ;;  %v15803_v50 = vld [vmem:[%s22469_s5 + $0x1ac] ss:$16 sps:$4 sm:$0xff]   ;;  %v15798_v51 = vld [vmem:[%s22469_s5 + $0x1a0] ss:$16 sps:$4 sm:$0xff]  }
 0x7c3   : > { %17136 = vpow2.f32 %v13686_v52  ;;  %v15801_v52 = vld [vmem:[%s22469_s5 + $0x1a8] ss:$16 sps:$4 sm:$0xff]  }
 0x7cc   : > { %v17131_v53 = vpop.eup %17130 }
 0x7cd   : > { %v5556_v54 = vadd.f32 1.0, %v17131_v53  ;;  %v15806_v53 = vld [vmem:[%s22469_s5 + $0x184] ss:$16 sps:$4 sm:$0xff]  }
 0x7ce   : > { %v17133_v49 = vpop.eup %17132 }
 0x7cf   : > { %17138 = vrcp.f32 %v5556_v54  ;;  %v5562_v0 = vadd.f32 1.0, %v17133_v49  ;;  %v17135_v56 = vpop.eup %17134  ;;  %v15809_v54 = vld [vmem:[%s22469_s5 + $0x18c] ss:$16 sps:$4 sm:$0xff]   ;;  %v15804_v49 = vld [vmem:[%s22469_s5 + $0x180] ss:$16 sps:$4 sm:$0xff]  }
 0x7d0   : > { %v17137_v57 = vpop.eup %17136 }
 0x7d1   : > { %17140 = vrcp.f32 %v5562_v0  ;;  %v5569_v62 = vadd.f32 1.0, %v17137_v57  ;;  %v15807_v0 = vld [vmem:[%s22469_s5 + $0x188] ss:$16 sps:$4 sm:$0xff]   ;;  %v15812_v57 = vld [vmem:[%s22469_s5 + $0x164] ss:$16 sps:$4 sm:$0xff]  }
 0x7d3   : > { %17142 = vrcp.f32 %v5569_v62  ;;  %v15821_v62 = vld [vmem:[%s22469_s5 + $0x14c] ss:$16 sps:$4 sm:$0xff]  }
 0x7dc   : > { %v17139_v59 = vpop.eup %17138 }
 0x7dd   : > { %v5574_v1 = vmul.f32 %v17139_v59, %v17135_v56  ;;  %v15810_v56 = vld [vmem:[%s22469_s5 + $0x160] ss:$16 sps:$4 sm:$0xff]   ;;  %v15813_v59 = vld [vmem:[%s22469_s5 + $0x168] ss:$16 sps:$4 sm:$0xff]  }
 0x7de   : > { %v17141_v60 = vpop.eup %17140 }
 0x7df   : > { %v5573_v63 = vmul.f32 %v17141_v60, %v5572_v61  ;;  %v15815_v60 = vld [vmem:[%s22469_s5 + $0x16c] ss:$16 sps:$4 sm:$0xff]   ;;  %v15818_v61 = vld [vmem:[%s22469_s5 + $0x144] ss:$16 sps:$4 sm:$0xff]  }
 0x7e0   : > { %v17143_v3 = vpop.eup %17142 }
 0x7e1   : > { %v5575_v2 = vadd.f32 %v5574_v1, %v5573_v63  ;;  %v15816_v63 = vld [vmem:[%s22469_s5 + $0x140] ss:$16 sps:$4 sm:$0xff]   ;;  %v15819_v1 = vld [vmem:[%s22469_s5 + $0x148] ss:$16 sps:$4 sm:$0xff]  }
 0x7e3   : > { %17144 = vtanh.f32 %v5575_v2  ;;  %5579 = vst [vmem:[#allocation3 + $0x8] sm:$0xff] %v5575_v2  ;;  %v15824_v2 = vld [vmem:[%s22469_s5 + $0x124] ss:$16 sps:$4 sm:$0xff]  }
 0x7f0   : > { %v17145_v4 = vpop.eup %17144 }
 0x7f1   : > { %v5577_v5 = vmul.f32 %v17145_v4, %v17143_v3  ;;  %v15827_v3 = vld [vmem:[%s22469_s5 + $0x12c] ss:$16 sps:$4 sm:$0xff]   ;;  %v15822_v4 = vld [vmem:[%s22469_s5 + $0x120] ss:$16 sps:$4 sm:$0xff]  }
 0x7f3   : > { %v19777_v6 = vpack.c.bf16 %v5577_v5, %v5577_v5  ;;  %v15825_v5 = vld [vmem:[%s22469_s5 + $0x128] ss:$16 sps:$4 sm:$0xff]  }
 0x7f5   : > { %6022 = vmatmul.mubr.bf16.vlgmr.msra.gmra.mxu0 %v19777_v6  ;;  %6063 = vmatmul.mubr.bf16.vlgmr.msra.gmra.mxu1 %v19777_v6 }
 0x7f6   : > { %6539 = vmatprep.mubr.bf16.mxu0 %v6100_v9  ;;  %6580 = vmatprep.mubr.bf16.mxu1 %v6100_v9  ;;  %v15828_v9 = vld [vmem:[%s22469_s5 + $0x100] ss:$16 sps:$4 sm:$0xff]  }
 0x7f7   : > { %6508 = vmatpush1.bf16.msra.mxu0 %v15738_v7  ;;  %6549 = vmatpush1.bf16.msra.mxu1 %v15741_v8  ;;  %v15830_v7 = vld [vmem:[%s22469_s5 + $0x104] ss:$16 sps:$4 sm:$0xff]   ;;  %v15833_v8 = vld [vmem:[%s22469_s5 + $0x10c] ss:$16 sps:$4 sm:$0xff]  }
 0x7f8   : > { %6509 = vmatprep.subr.bf16.mxu0 %v15746_v10  ;;  %6550 = vmatprep.subr.bf16.mxu1 %v15749_v11  ;;  %v15831_v10 = vld [vmem:[%s22469_s5 + $0x108] ss:$16 sps:$4 sm:$0xff]   ;;  %v15836_v11 = vld [vmem:[%s22465_s1 + $0xe4] ss:$16 sps:$4 sm:$0xff]  }
 0x7fb   : > { %6510 = vmatpush1.bf16.msra.mxu0 %v15744_v14  ;;  %6551 = vmatpush1.bf16.msra.mxu1 %v15747_v15  ;;  %v15839_v14 = vld [vmem:[%s22465_s1 + $0xec] ss:$16 sps:$4 sm:$0xff]   ;;  %v5647_v15 = vld [vmem:[%s22468_s4] sm:$0xf] }
 0x7fc   : > { %6511 = vmatprep.subr.bf16.mxu0 %v15752_v16  ;;  %6552 = vmatprep.subr.bf16.mxu1 %v15755_v17  ;;  %v5652_v16 = vrot.slane %v5647_v15, %v17932_v12  ;;  %v5656_v17 = vrot.slane %v5647_v15, %v17934_v13 }
 0x7ff   : > { %6512 = vmatpush1.bf16.msra.mxu0 %v15750_v18  ;;  %6553 = vmatpush1.bf16.msra.mxu1 %v15753_v19 }
 0x800   : > { %6513 = vmatprep.subr.bf16.mxu0 %v15758_v20  ;;  %6554 = vmatprep.subr.bf16.mxu1 %v15761_v21 }
 0x803   : > { %6514 = vmatpush1.bf16.msra.mxu0 %v15756_v23  ;;  %6555 = vmatpush1.bf16.msra.mxu1 %v15759_v24 }
 0x804   : > { %6515 = vmatprep.subr.bf16.mxu0 %v15764_v25  ;;  %6556 = vmatprep.subr.bf16.mxu1 %v15767_v27 }
 0x807   : > { %6516 = vmatpush1.bf16.msra.mxu0 %v15762_v28  ;;  %6557 = vmatpush1.bf16.msra.mxu1 %v15765_v29 }
 0x808   : > { %6517 = vmatprep.subr.bf16.mxu0 %v15770_v30  ;;  %6558 = vmatprep.subr.bf16.mxu1 %v15773_v31 }
 0x80b   : > { %6518 = vmatpush1.bf16.msra.mxu0 %v15768_v32  ;;  %6559 = vmatpush1.bf16.msra.mxu1 %v15771_v33  ;;  %v5664_v32 = vrot.slane %v5647_v15, %v17938_v22 }
 0x80c   : > { %6519 = vmatprep.subr.bf16.mxu0 %v15776_v34  ;;  %6560 = vmatprep.subr.bf16.mxu1 %v15779_v35  ;;  %v5660_v34 = vrot.slane %v5647_v15, %v17940_v26  ;;  %v15875_v15 = vld [vmem:[%s22465_s1 + $0x2c] ss:$16 sps:$4 sm:$0xff]  }
 0x80f   : > { %6520 = vmatpush1.bf16.msra.mxu0 %v15774_v36  ;;  %6561 = vmatpush1.bf16.msra.mxu1 %v15777_v37 }
 0x810   : > { %6521 = vmatprep.subr.bf16.mxu0 %v15782_v38  ;;  %6562 = vmatprep.subr.bf16.mxu1 %v15785_v40 }
 0x813   : > { %6522 = vmatpush1.bf16.msra.mxu0 %v15780_v41  ;;  %6563 = vmatpush1.bf16.msra.mxu1 %v15783_v42 }
 0x814   : > { %6523 = vmatprep.subr.bf16.mxu0 %v15788_v43  ;;  %6564 = vmatprep.subr.bf16.mxu1 %v15791_v39 }
 0x817   : > { %6524 = vmatpush2.bf16.msra.mxu0 %v15786_v45  ;;  %6565 = vmatpush2.bf16.msra.mxu1 %v15789_v46  ;;  %v6090_v46 = vld [vmem:[#allocation3] sm:$0xff] }
 0x818   : > { %6525 = vmatprep.subr.bf16.mxu0 %v15794_v47  ;;  %6566 = vmatprep.subr.bf16.mxu1 %v15797_v55 }
 0x81b   : > { %6526 = vmatpush2.bf16.msra.mxu0 %v15792_v48  ;;  %6567 = vmatpush2.bf16.msra.mxu1 %v15795_v44 }
 0x81c   : > { %6527 = vmatprep.subr.bf16.mxu0 %v15800_v58  ;;  %6568 = vmatprep.subr.bf16.mxu1 %v15803_v50 }
 0x81f   : > { %6528 = vmatpush2.bf16.msra.mxu0 %v15798_v51  ;;  %6569 = vmatpush2.bf16.msra.mxu1 %v15801_v52  ;;  %v15834_v52 = vld [vmem:[%s22465_s1 + $0xe0] ss:$16 sps:$4 sm:$0xff]  }
 0x820   : > { %6529 = vmatprep.subr.bf16.mxu0 %v15806_v53  ;;  %6570 = vmatprep.subr.bf16.mxu1 %v15809_v54  ;;  %v15837_v53 = vld [vmem:[%s22465_s1 + $0xe8] ss:$16 sps:$4 sm:$0xff]  }
 0x823   : > { %6530 = vmatpush2.bf16.msra.mxu0 %v15804_v49  ;;  %6571 = vmatpush2.bf16.msra.mxu1 %v15807_v0  ;;  %v15842_v49 = vld [vmem:[%s22465_s1 + $0xc4] ss:$16 sps:$4 sm:$0xff]   ;;  %v15845_v0 = vld [vmem:[%s22465_s1 + $0xcc] ss:$16 sps:$4 sm:$0xff]  }
 0x824   : > { %6531 = vmatprep.subr.bf16.mxu0 %v15812_v57  ;;  %6572 = vmatprep.subr.bf16.mxu1 %v15815_v60  ;;  %v15843_v57 = vld [vmem:[%s22465_s1 + $0xc8] ss:$16 sps:$4 sm:$0xff]   ;;  %v15851_v60 = vld [vmem:[%s22465_s1 + $0xac] ss:$16 sps:$4 sm:$0xff]  }
 0x827   : > { %6532 = vmatpush2.bf16.msra.mxu0 %v15810_v56  ;;  %6573 = vmatpush2.bf16.msra.mxu1 %v15813_v59  ;;  %v15840_v56 = vld [vmem:[%s22465_s1 + $0xc0] ss:$16 sps:$4 sm:$0xff]   ;;  %v15848_v59 = vld [vmem:[%s22465_s1 + $0xa4] ss:$16 sps:$4 sm:$0xff]  }
 0x828   : > { %6533 = vmatprep.subr.bf16.mxu0 %v15818_v61  ;;  %6574 = vmatprep.subr.bf16.mxu1 %v15821_v62  ;;  %v15846_v61 = vld [vmem:[%s22465_s1 + $0xa0] ss:$16 sps:$4 sm:$0xff]   ;;  %v15854_v62 = vld [vmem:[%s22465_s1 + $0x84] ss:$16 sps:$4 sm:$0xff]  }
 0x82b   : > { %6534 = vmatpush2.bf16.msra.mxu0 %v15816_v63  ;;  %6575 = vmatpush2.bf16.msra.mxu1 %v15819_v1  ;;  %v15857_v63 = vld [vmem:[%s22465_s1 + $0x8c] ss:$16 sps:$4 sm:$0xff]   ;;  %v15852_v1 = vld [vmem:[%s22465_s1 + $0x80] ss:$16 sps:$4 sm:$0xff]  }
 0x82c   : > { %6535 = vmatprep.subr.bf16.mxu0 %v15824_v2  ;;  %6576 = vmatprep.subr.bf16.mxu1 %v15827_v3  ;;  %v15855_v2 = vld [vmem:[%s22465_s1 + $0x88] ss:$16 sps:$4 sm:$0xff]   ;;  %v15860_v3 = vld [vmem:[%s22465_s1 + $0x64] ss:$16 sps:$4 sm:$0xff]  }
 0x82f   : > { %6536 = vmatpush2.bf16.msra.mxu0 %v15822_v4  ;;  %6577 = vmatpush2.bf16.msra.mxu1 %v15825_v5  ;;  %v15863_v4 = vld [vmem:[%s22465_s1 + $0x6c] ss:$16 sps:$4 sm:$0xff]   ;;  %v15858_v5 = vld [vmem:[%s22465_s1 + $0x60] ss:$16 sps:$4 sm:$0xff]  }
 0x830   : > { %6537 = vmatprep.subr.bf16.mxu0 %v15830_v7  ;;  %6578 = vmatprep.subr.bf16.mxu1 %v15833_v8  ;;  %v15861_v7 = vld [vmem:[%s22465_s1 + $0x68] ss:$16 sps:$4 sm:$0xff]   ;;  %v15866_v8 = vld [vmem:[%s22465_s1 + $0x44] ss:$16 sps:$4 sm:$0xff]  }
 0x833   : > { %6538 = vmatpush2.bf16.msra.mxu0 %v15828_v9  ;;  %6579 = vmatpush2.bf16.msra.mxu1 %v15831_v10  ;;  %v15869_v9 = vld [vmem:[%s22465_s1 + $0x4c] ss:$16 sps:$4 sm:$0xff]   ;;  %v15864_v10 = vld [vmem:[%s22465_s1 + $0x40] ss:$16 sps:$4 sm:$0xff]  }
 0x834   : > { %7029 = vmatprep.subr.bf16.mxu0 %v15836_v11  ;;  %7070 = vmatprep.subr.bf16.mxu1 %v15839_v14  ;;  %v15867_v11 = vld [vmem:[%s22465_s1 + $0x48] ss:$16 sps:$4 sm:$0xff]   ;;  %v15872_v14 = vld [vmem:[%s22465_s1 + $0x24] ss:$16 sps:$4 sm:$0xff]  }
 0x8b5   : > { %v6023_v18 = vpop.f32.mrf.mxu0  ;;  %v6064_v19 = vpop.f32.mrf.mxu1 }
 0x8b6   : > { %v6024_v20 = vadd.f32 %v6023_v18, %v5652_v16  ;;  %v6065_v37 = vadd.f32 %v6064_v19, %v5660_v34  ;;  %v15870_v16 = vld [vmem:[%s22465_s1 + $0x20] ss:$16 sps:$4 sm:$0xff]   ;;  %v15878_v18 = vld [vmem:[%s22465_s1 + $0x4] ss:$16 sps:$4 sm:$0xff]   ;;  %v15881_v19 = vld [vmem:[%s22465_s1 + $0xc] ss:$16 sps:$4 sm:$0xff]  }
 0x8b7   : > { %v6025_v21 = vpop.f32.mrf.mxu0  ;;  %v6066_v23 = vpop.f32.mrf.mxu1  ;;  %v15894_v34 = vld [vmem:[%s22465_s1 + $0x1a0] ss:$16 sps:$4 sm:$0xff]  }
 0x8b8   : > { %v13751_v24 = vmul.f32 -1.442695, %v6024_v20  ;;  %v6026_v25 = vadd.f32 %v6025_v21, %v5656_v17  ;;  %v6067_v33 = vadd.f32 %v6066_v23, %v5664_v32  ;;  %v15873_v17 = vld [vmem:[%s22465_s1 + $0x28] ss:$16 sps:$4 sm:$0xff]   ;;  %v15876_v20 = vld [vmem:[%s22465_s1] ss:$16 sps:$4 sm:$0xff]  }
 0x8b9   : > { %v6027_v27 = vpop.f32.mrf.mxu0  ;;  %v6068_v28 = vpop.f32.mrf.mxu1  ;;  %v15879_v21 = vld [vmem:[%s22465_s1 + $0x8] ss:$16 sps:$4 sm:$0xff]   ;;  %v15884_v23 = vld [vmem:[%s22465_s1 + $0x1e4] ss:$16 sps:$4 sm:$0xff]  }
 0x8ba   : > { %17146 = vpow2.f32 %v13751_v24  ;;  %v13752_v29 = vmul.f32 -1.442695, %v6026_v25  ;;  %v13753_v35 = vmul.f32 -1.442695, %v6067_v33  ;;  %v15887_v24 = vld [vmem:[%s22465_s1 + $0x1ec] ss:$16 sps:$4 sm:$0xff]  }
 0x8bb   : > { %v6028_v30 = vpop.f32.mrf.mxu0  ;;  %v6069_v31 = vpop.f32.mrf.mxu1  ;;  %v15882_v25 = vld [vmem:[%s22465_s1 + $0x1e0] ss:$16 sps:$4 sm:$0xff]   ;;  %v15885_v27 = vld [vmem:[%s22465_s1 + $0x1e8] ss:$16 sps:$4 sm:$0xff]   ;;  %v15890_v28 = vld [vmem:[%s22465_s1 + $0x1c4] ss:$16 sps:$4 sm:$0xff]  }
 0x8bc   : > { %17148 = vpow2.f32 %v13752_v29  ;;  %v15893_v29 = vld [vmem:[%s22465_s1 + $0x1cc] ss:$16 sps:$4 sm:$0xff]   ;;  %v15888_v30 = vld [vmem:[%s22465_s1 + $0x1c0] ss:$16 sps:$4 sm:$0xff]   ;;  %v15891_v31 = vld [vmem:[%s22465_s1 + $0x1c8] ss:$16 sps:$4 sm:$0xff]  }
 0x8bd   : > { %17150 = vpow2.f32 %v13753_v35  ;;  %v15896_v32 = vld [vmem:[%s22465_s1 + $0x1a4] ss:$16 sps:$4 sm:$0xff]   ;;  %v15899_v33 = vld [vmem:[%s22465_s1 + $0x1ac] ss:$16 sps:$4 sm:$0xff]   ;;  %v15897_v35 = vld [vmem:[%s22465_s1 + $0x1a8] ss:$16 sps:$4 sm:$0xff]  }
 0x8c7   : > { %v17147_v36 = vpop.eup %17146 }
 0x8c8   : > { %v6074_v38 = vadd.f32 1.0, %v17147_v36  ;;  %v15902_v36 = vld [vmem:[%s22465_s1 + $0x184] ss:$16 sps:$4 sm:$0xff]  }
 0x8c9   : > { %v17149_v40 = vpop.eup %17148 }
 0x8ca   : > { %17152 = vrcp.f32 %v6074_v38  ;;  %v6080_v41 = vadd.f32 1.0, %v17149_v40  ;;  %v17151_v42 = vpop.eup %17150  ;;  %v15900_v38 = vld [vmem:[%s22465_s1 + $0x180] ss:$16 sps:$4 sm:$0xff]   ;;  %v15903_v40 = vld [vmem:[%s22465_s1 + $0x188] ss:$16 sps:$4 sm:$0xff]  }
 0x8cb   : > { %17154 = vtanh.f32 %v6065_v37  ;;  %v6087_v47 = vadd.f32 1.0, %v17151_v42  ;;  %v15905_v37 = vld [vmem:[%s22465_s1 + $0x18c] ss:$16 sps:$4 sm:$0xff]  }
 0x8cc   : > { %17156 = vrcp.f32 %v6080_v41  ;;  %v15908_v41 = vld [vmem:[%s22465_s1 + $0x164] ss:$16 sps:$4 sm:$0xff]   ;;  %v15911_v42 = vld [vmem:[%s22465_s1 + $0x16c] ss:$16 sps:$4 sm:$0xff]  }
 0x8cd   : > { %17158 = vrcp.f32 %v6087_v47  ;;  %v15912_v47 = vld [vmem:[%s22465_s1 + $0x140] ss:$16 sps:$4 sm:$0xff]  }
 0x8d7   : > { %v17153_v43 = vpop.eup %17152 }
 0x8d8   : > { %v17155_v39 = vpop.eup %17154 }
 0x8d9   : > { %v17157_v45 = vpop.eup %17156  ;;  %v6092_v55 = vmul.f32 %v17155_v39, %v17153_v43  ;;  %v15906_v43 = vld [vmem:[%s22465_s1 + $0x160] ss:$16 sps:$4 sm:$0xff]   ;;  %v15909_v39 = vld [vmem:[%s22465_s1 + $0x168] ss:$16 sps:$4 sm:$0xff]  }
 0x8da   : > { %v6091_v48 = vmul.f32 %v17157_v45, %v6090_v46  ;;  %v17159_v58 = vpop.eup %17158  ;;  %v15914_v45 = vld [vmem:[%s22465_s1 + $0x144] ss:$16 sps:$4 sm:$0xff]   ;;  %v15917_v46 = vld [vmem:[%s22465_s1 + $0x14c] ss:$16 sps:$4 sm:$0xff]  }
 0x8dc   : > { %v6093_v44 = vadd.f32 %v6092_v55, %v6091_v48  ;;  %v15915_v55 = vld [vmem:[%s22465_s1 + $0x148] ss:$16 sps:$4 sm:$0xff]   ;;  %v15920_v48 = vld [vmem:[%s22465_s1 + $0x124] ss:$16 sps:$4 sm:$0xff]  }
 0x8de   : > { %6097 = vst [vmem:[#allocation3] sm:$0xff] %v6093_v44  ;;  %17160 = vtanh.f32 %v6093_v44  ;;  %v15923_v44 = vld [vmem:[%s22465_s1 + $0x12c] ss:$16 sps:$4 sm:$0xff]  }
 0x8eb   : > { %v17161_v50 = vpop.eup %17160 }
 0x8ec   : > { %v6095_v51 = vmul.f32 %v17161_v50, %v17159_v58  ;;  %v15918_v58 = vld [vmem:[%s22465_s1 + $0x120] ss:$16 sps:$4 sm:$0xff]   ;;  %v15921_v50 = vld [vmem:[%s22465_s1 + $0x128] ss:$16 sps:$4 sm:$0xff]  }
 0x8ee   : > { %v19986_v54 = vpack.c.bf16 %v6095_v51, %v6095_v51  ;;  %v15926_v51 = vld [vmem:[%s22465_s1 + $0x104] ss:$16 sps:$4 sm:$0xff]  }
 0x8f0   : > { %6540 = vmatmul.mubr.bf16.vlgmr.msra.gmra.mxu0 %v19986_v54  ;;  %6581 = vmatmul.mubr.bf16.vlgmr.msra.gmra.mxu1 %v19986_v54 }
 0x8f1   : > { %7030 = vmatpush1.bf16.msra.mxu0 %v15834_v52  ;;  %7071 = vmatpush1.bf16.msra.mxu1 %v15837_v53  ;;  %v15929_v52 = vld [vmem:[%s22465_s1 + $0x10c] ss:$16 sps:$4 sm:$0xff]   ;;  %v15924_v53 = vld [vmem:[%s22465_s1 + $0x100] ss:$16 sps:$4 sm:$0xff]  }
 0x8f2   : > { %7061 = vmatprep.mubr.bf16.mxu0 %v19777_v6  ;;  %7102 = vmatprep.mubr.bf16.mxu1 %v19777_v6  ;;  %v15849_v6 = vld [vmem:[%s22465_s1 + $0xa8] ss:$16 sps:$4 sm:$0xff]  }
 0x8f3   : > { %7031 = vmatprep.subr.bf16.mxu0 %v15842_v49  ;;  %7072 = vmatprep.subr.bf16.mxu1 %v15845_v0  ;;  %v15927_v49 = vld [vmem:[%s22465_s1 + $0x108] ss:$16 sps:$4 sm:$0xff]   ;;  %v13822_v0 = vld [vmem:[%s17530_s18 + $0x20] sm:$0xff] }
 0x8f5   : > { %7032 = vmatpush1.bf16.msra.mxu0 %v15840_v56  ;;  %7073 = vmatpush1.bf16.msra.mxu1 %v15843_v57  ;;  %v6621_v56 = vpack.c.bf16 %v13822_v0, %v13822_v0  ;;  %v15930_v57 = vld [vmem:[%s22467_s3 + $0xe0] ss:$16 sps:$4 sm:$0xff]  }
 0x8f6   : > { %7033 = vmatprep.subr.bf16.mxu0 %v15848_v59  ;;  %7074 = vmatprep.subr.bf16.mxu1 %v15851_v60  ;;  %v15932_v59 = vld [vmem:[%s22467_s3 + $0xe4] ss:$16 sps:$4 sm:$0xff]   ;;  %v15933_v60 = vld [vmem:[%s22467_s3 + $0xe8] ss:$16 sps:$4 sm:$0xff]   ;;  %v16014_v0 = vld [vmem:[%s22467_s3 + $0x120] ss:$16 sps:$4 sm:$0xff]  }
 0x8f9   : > { %7034 = vmatpush1.bf16.msra.mxu0 %v15846_v61  ;;  %7075 = vmatpush1.bf16.msra.mxu1 %v15849_v6  ;;  %v15935_v61 = vld [vmem:[%s22467_s3 + $0xec] ss:$16 sps:$4 sm:$0xff]  }
 0x8fa   : > { %7035 = vmatprep.subr.bf16.mxu0 %v15854_v62  ;;  %7076 = vmatprep.subr.bf16.mxu1 %v15857_v63  ;;  %v15941_v6 = vld [vmem:[%s22467_s3 + $0xcc] ss:$16 sps:$4 sm:$0xff]   ;;  %v15936_v62 = vld [vmem:[%s22467_s3 + $0xc0] ss:$16 sps:$4 sm:$0xff]   ;;  %v15939_v63 = vld [vmem:[%s22467_s3 + $0xc8] ss:$16 sps:$4 sm:$0xff]  }
 0x8fd   : > { %7036 = vmatpush1.bf16.msra.mxu0 %v15852_v1  ;;  %7077 = vmatpush1.bf16.msra.mxu1 %v15855_v2  ;;  %v15944_v1 = vld [vmem:[%s22467_s3 + $0xa4] ss:$16 sps:$4 sm:$0xff]   ;;  %v15947_v2 = vld [vmem:[%s22467_s3 + $0xac] ss:$16 sps:$4 sm:$0xff]  }
 0x8fe   : > { %7037 = vmatprep.subr.bf16.mxu0 %v15860_v3  ;;  %7078 = vmatprep.subr.bf16.mxu1 %v15863_v4  ;;  %v15942_v3 = vld [vmem:[%s22467_s3 + $0xa0] ss:$16 sps:$4 sm:$0xff]   ;;  %v15945_v4 = vld [vmem:[%s22467_s3 + $0xa8] ss:$16 sps:$4 sm:$0xff]  }
 0x901   : > { %7038 = vmatpush1.bf16.msra.mxu0 %v15858_v5  ;;  %7079 = vmatpush1.bf16.msra.mxu1 %v15861_v7  ;;  %v15950_v5 = vld [vmem:[%s22467_s3 + $0x84] ss:$16 sps:$4 sm:$0xff]   ;;  %v15953_v7 = vld [vmem:[%s22467_s3 + $0x8c] ss:$16 sps:$4 sm:$0xff]  }
 0x902   : > { %7039 = vmatprep.subr.bf16.mxu0 %v15866_v8  ;;  %7080 = vmatprep.subr.bf16.mxu1 %v15869_v9  ;;  %v15948_v8 = vld [vmem:[%s22467_s3 + $0x80] ss:$16 sps:$4 sm:$0xff]   ;;  %v15951_v9 = vld [vmem:[%s22467_s3 + $0x88] ss:$16 sps:$4 sm:$0xff]  }
 0x905   : > { %7040 = vmatpush1.bf16.msra.mxu0 %v15864_v10  ;;  %7081 = vmatpush1.bf16.msra.mxu1 %v15867_v11  ;;  %v15956_v10 = vld [vmem:[%s22467_s3 + $0x64] ss:$16 sps:$4 sm:$0xff]   ;;  %v15959_v11 = vld [vmem:[%s22467_s3 + $0x6c] ss:$16 sps:$4 sm:$0xff]  }
 0x906   : > { %7041 = vmatprep.subr.bf16.mxu0 %v15872_v14  ;;  %7082 = vmatprep.subr.bf16.mxu1 %v15875_v15  ;;  %v15954_v14 = vld [vmem:[%s22467_s3 + $0x60] ss:$16 sps:$4 sm:$0xff]   ;;  %v15957_v15 = vld [vmem:[%s22467_s3 + $0x68] ss:$16 sps:$4 sm:$0xff]  }
 0x909   : > { %7042 = vmatpush1.bf16.msra.mxu0 %v15870_v16  ;;  %7083 = vmatpush1.bf16.msra.mxu1 %v15873_v17  ;;  %v15962_v16 = vld [vmem:[%s22467_s3 + $0x44] ss:$16 sps:$4 sm:$0xff]   ;;  %v15965_v17 = vld [vmem:[%s22467_s3 + $0x4c] ss:$16 sps:$4 sm:$0xff]  }
 0x90a   : > { %7043 = vmatprep.subr.bf16.mxu0 %v15878_v18  ;;  %7084 = vmatprep.subr.bf16.mxu1 %v15881_v19  ;;  %v15960_v18 = vld [vmem:[%s22467_s3 + $0x40] ss:$16 sps:$4 sm:$0xff]   ;;  %v15963_v19 = vld [vmem:[%s22467_s3 + $0x48] ss:$16 sps:$4 sm:$0xff]  }
 0x90d   : > { %7044 = vmatpush1.bf16.msra.mxu0 %v15876_v20  ;;  %7085 = vmatpush1.bf16.msra.mxu1 %v15879_v21  ;;  %v15968_v20 = vld [vmem:[%s22467_s3 + $0x24] ss:$16 sps:$4 sm:$0xff]   ;;  %v15971_v21 = vld [vmem:[%s22467_s3 + $0x2c] ss:$16 sps:$4 sm:$0xff]  }
 0x90e   : > { %7045 = vmatprep.subr.bf16.mxu0 %v15884_v23  ;;  %7086 = vmatprep.subr.bf16.mxu1 %v15887_v24  ;;  %v15966_v23 = vld [vmem:[%s22467_s3 + $0x20] ss:$16 sps:$4 sm:$0xff]   ;;  %v15969_v24 = vld [vmem:[%s22467_s3 + $0x28] ss:$16 sps:$4 sm:$0xff]  }
 0x911   : > { %7046 = vmatpush2.bf16.msra.mxu0 %v15882_v25  ;;  %7087 = vmatpush2.bf16.msra.mxu1 %v15885_v27  ;;  %v15974_v25 = vld [vmem:[%s22467_s3 + $0x4] ss:$16 sps:$4 sm:$0xff]   ;;  %v15977_v27 = vld [vmem:[%s22467_s3 + $0xc] ss:$16 sps:$4 sm:$0xff]  }
 0x912   : > { %7047 = vmatprep.subr.bf16.mxu0 %v15890_v28  ;;  %7088 = vmatprep.subr.bf16.mxu1 %v15893_v29  ;;  %v15972_v28 = vld [vmem:[%s22467_s3] ss:$16 sps:$4 sm:$0xff]   ;;  %v15975_v29 = vld [vmem:[%s22467_s3 + $0x8] ss:$16 sps:$4 sm:$0xff]  }
 0x915   : > { %7048 = vmatpush2.bf16.msra.mxu0 %v15888_v30  ;;  %7089 = vmatpush2.bf16.msra.mxu1 %v15891_v31  ;;  %v15980_v30 = vld [vmem:[%s22467_s3 + $0x1e4] ss:$16 sps:$4 sm:$0xff]   ;;  %v15983_v31 = vld [vmem:[%s22467_s3 + $0x1ec] ss:$16 sps:$4 sm:$0xff]  }
 0x916   : > { %7049 = vmatprep.subr.bf16.mxu0 %v15896_v32  ;;  %7090 = vmatprep.subr.bf16.mxu1 %v15899_v33  ;;  %v15978_v32 = vld [vmem:[%s22467_s3 + $0x1e0] ss:$16 sps:$4 sm:$0xff]   ;;  %v15981_v33 = vld [vmem:[%s22467_s3 + $0x1e8] ss:$16 sps:$4 sm:$0xff]  }
 0x919   : > { %7050 = vmatpush2.bf16.msra.mxu0 %v15894_v34  ;;  %7091 = vmatpush2.bf16.msra.mxu1 %v15897_v35  ;;  %v15986_v34 = vld [vmem:[%s22467_s3 + $0x1c4] ss:$16 sps:$4 sm:$0xff]   ;;  %v15989_v35 = vld [vmem:[%s22467_s3 + $0x1cc] ss:$16 sps:$4 sm:$0xff]  }
 0x91a   : > { %7051 = vmatprep.subr.bf16.mxu0 %v15902_v36  ;;  %7092 = vmatprep.subr.bf16.mxu1 %v15905_v37  ;;  %v15984_v36 = vld [vmem:[%s22467_s3 + $0x1c0] ss:$16 sps:$4 sm:$0xff]   ;;  %v15987_v37 = vld [vmem:[%s22467_s3 + $0x1c8] ss:$16 sps:$4 sm:$0xff]  }
 0x91d   : > { %7052 = vmatpush2.bf16.msra.mxu0 %v15900_v38  ;;  %7093 = vmatpush2.bf16.msra.mxu1 %v15903_v40  ;;  %v15992_v38 = vld [vmem:[%s22467_s3 + $0x1a4] ss:$16 sps:$4 sm:$0xff]   ;;  %v15995_v40 = vld [vmem:[%s22467_s3 + $0x1ac] ss:$16 sps:$4 sm:$0xff]  }
 0x91e   : > { %7053 = vmatprep.subr.bf16.mxu0 %v15908_v41  ;;  %7094 = vmatprep.subr.bf16.mxu1 %v15911_v42  ;;  %v15990_v41 = vld [vmem:[%s22467_s3 + $0x1a0] ss:$16 sps:$4 sm:$0xff]   ;;  %v15993_v42 = vld [vmem:[%s22467_s3 + $0x1a8] ss:$16 sps:$4 sm:$0xff]  }
 0x921   : > { %7054 = vmatpush2.bf16.msra.mxu0 %v15906_v43  ;;  %7095 = vmatpush2.bf16.msra.mxu1 %v15909_v39  ;;  %v15998_v43 = vld [vmem:[%s22467_s3 + $0x184] ss:$16 sps:$4 sm:$0xff]   ;;  %v16001_v39 = vld [vmem:[%s22467_s3 + $0x18c] ss:$16 sps:$4 sm:$0xff]  }
 0x922   : > { %7055 = vmatprep.subr.bf16.mxu0 %v15914_v45  ;;  %7096 = vmatprep.subr.bf16.mxu1 %v15917_v46  ;;  %v15996_v45 = vld [vmem:[%s22467_s3 + $0x180] ss:$16 sps:$4 sm:$0xff]   ;;  %v15999_v46 = vld [vmem:[%s22467_s3 + $0x188] ss:$16 sps:$4 sm:$0xff]  }
 0x925   : > { %7056 = vmatpush2.bf16.msra.mxu0 %v15912_v47  ;;  %7097 = vmatpush2.bf16.msra.mxu1 %v15915_v55  ;;  %v16002_v47 = vld [vmem:[%s22467_s3 + $0x160] ss:$16 sps:$4 sm:$0xff]   ;;  %v16004_v55 = vld [vmem:[%s22467_s3 + $0x164] ss:$16 sps:$4 sm:$0xff]  }
 0x926   : > { %7057 = vmatprep.subr.bf16.mxu0 %v15920_v48  ;;  %7098 = vmatprep.subr.bf16.mxu1 %v15923_v44  ;;  %v16005_v48 = vld [vmem:[%s22467_s3 + $0x168] ss:$16 sps:$4 sm:$0xff]   ;;  %v16007_v44 = vld [vmem:[%s22467_s3 + $0x16c] ss:$16 sps:$4 sm:$0xff]  }
 0x929   : > { %7058 = vmatpush2.bf16.msra.mxu0 %v15918_v58  ;;  %7099 = vmatpush2.bf16.msra.mxu1 %v15921_v50  ;;  %v16010_v58 = vld [vmem:[%s22467_s3 + $0x144] ss:$16 sps:$4 sm:$0xff]   ;;  %v16013_v50 = vld [vmem:[%s22467_s3 + $0x14c] ss:$16 sps:$4 sm:$0xff]  }
 0x92a   : > { %7059 = vmatprep.subr.bf16.mxu0 %v15926_v51  ;;  %7100 = vmatprep.subr.bf16.mxu1 %v15929_v52  ;;  %v16008_v51 = vld [vmem:[%s22467_s3 + $0x140] ss:$16 sps:$4 sm:$0xff]   ;;  %v16011_v52 = vld [vmem:[%s22467_s3 + $0x148] ss:$16 sps:$4 sm:$0xff]  }
 0x92d   : > { %7060 = vmatpush2.bf16.msra.mxu0 %v15924_v53  ;;  %7101 = vmatpush2.bf16.msra.mxu1 %v15927_v49  ;;  %v16016_v53 = vld [vmem:[%s22467_s3 + $0x124] ss:$16 sps:$4 sm:$0xff]   ;;  %v16019_v49 = vld [vmem:[%s22467_s3 + $0x12c] ss:$16 sps:$4 sm:$0xff]  }
 0x92e   : > { %7547 = vmatprep.subr.bf16.mxu0 %v15932_v59  ;;  %7588 = vmatprep.subr.bf16.mxu1 %v15935_v61  ;;  %v16025_v59 = vld [vmem:[%s22467_s3 + $0x10c] ss:$16 sps:$4 sm:$0xff]   ;;  %v16023_v61 = vld [vmem:[%s22467_s3 + $0x108] ss:$16 sps:$4 sm:$0xff]  }
 0x930   : > { %7062 = vmatmul.mubr.bf16.vlgmr.msra.gmra.mxu0 %v6621_v56  ;;  %7103 = vmatmul.mubr.bf16.vlgmr.msra.gmra.mxu1 %v6621_v56  ;;  %v16017_v56 = vld [vmem:[%s22467_s3 + $0x128] ss:$16 sps:$4 sm:$0xff]  }
 0x931   : > { %7579 = vmatprep.mubr.bf16.mxu0 %v19986_v54  ;;  %7620 = vmatprep.mubr.bf16.mxu1 %v19986_v54  ;;  %v15938_v54 = vld [vmem:[%s22467_s3 + $0xc4] ss:$16 sps:$4 sm:$0xff]  }
 0x932   : > { %7548 = vmatpush1.bf16.msra.mxu0 %v15930_v57  ;;  %7589 = vmatpush1.bf16.msra.mxu1 %v15933_v60  ;;  %v16022_v57 = vld [vmem:[%s22467_s3 + $0x104] ss:$16 sps:$4 sm:$0xff]   ;;  %v16020_v60 = vld [vmem:[%s22467_s3 + $0x100] ss:$16 sps:$4 sm:$0xff]  }
 0x933   : > { %7549 = vmatprep.subr.bf16.mxu0 %v15938_v54  ;;  %7590 = vmatprep.subr.bf16.mxu1 %v15941_v6  ;;  %v6165_v54 = vld [vmem:[%s22470_s6] sm:$0xf]  ;;  %v16028_v6 = vld [vmem:[%s22469_s5 + $0xe4] ss:$16 sps:$4 sm:$0xff]  }
 0x936   : > { %7550 = vmatpush1.bf16.msra.mxu0 %v15936_v62  ;;  %7591 = vmatpush1.bf16.msra.mxu1 %v15939_v63  ;;  %v6170_v62 = vrot.slane %v6165_v54, %v17932_v12  ;;  %v16031_v63 = vld [vmem:[%s22469_s5 + $0xec] ss:$16 sps:$4 sm:$0xff]  }
 0x937   : > { %7551 = vmatprep.subr.bf16.mxu0 %v15944_v1  ;;  %7592 = vmatprep.subr.bf16.mxu1 %v15947_v2  ;;  %v6174_v1 = vrot.slane %v6165_v54, %v17934_v13 }
 0x93a   : > { %7552 = vmatpush1.bf16.msra.mxu0 %v15942_v3  ;;  %7593 = vmatpush1.bf16.msra.mxu1 %v15945_v4 }
 0x93b   : > { %7553 = vmatprep.subr.bf16.mxu0 %v15950_v5  ;;  %7594 = vmatprep.subr.bf16.mxu1 %v15953_v7 }
 0x93e   : > { %7554 = vmatpush1.bf16.msra.mxu0 %v15948_v8  ;;  %7595 = vmatpush1.bf16.msra.mxu1 %v15951_v9 }
 0x93f   : > { %7555 = vmatprep.subr.bf16.mxu0 %v15956_v10  ;;  %7596 = vmatprep.subr.bf16.mxu1 %v15959_v11 }
 0x942   : > { %7556 = vmatpush1.bf16.msra.mxu0 %v15954_v14  ;;  %7597 = vmatpush1.bf16.msra.mxu1 %v15957_v15 }
 0x943   : > { %7557 = vmatprep.subr.bf16.mxu0 %v15962_v16  ;;  %7598 = vmatprep.subr.bf16.mxu1 %v15965_v17  ;;  %v6182_v17 = vrot.slane %v6165_v54, %v17938_v22 }
 0x946   : > { %7558 = vmatpush1.bf16.msra.mxu0 %v15960_v18  ;;  %7599 = vmatpush1.bf16.msra.mxu1 %v15963_v19  ;;  %v6178_v19 = vrot.slane %v6165_v54, %v17940_v26 }
 0x947   : > { %7559 = vmatprep.subr.bf16.mxu0 %v15968_v20  ;;  %7600 = vmatprep.subr.bf16.mxu1 %v15971_v21 }
 0x94a   : > { %7560 = vmatpush1.bf16.msra.mxu0 %v15966_v23  ;;  %7601 = vmatpush1.bf16.msra.mxu1 %v15969_v24 }
 0x94b   : > { %7561 = vmatprep.subr.bf16.mxu0 %v15974_v25  ;;  %7602 = vmatprep.subr.bf16.mxu1 %v15977_v27 }
 0x94e   : > { %7562 = vmatpush1.bf16.msra.mxu0 %v15972_v28  ;;  %7603 = vmatpush1.bf16.msra.mxu1 %v15975_v29 }
 0x94f   : > { %7563 = vmatprep.subr.bf16.mxu0 %v15980_v30  ;;  %7604 = vmatprep.subr.bf16.mxu1 %v15983_v31 }
 0x952   : > { %7564 = vmatpush2.bf16.msra.mxu0 %v15978_v32  ;;  %7605 = vmatpush2.bf16.msra.mxu1 %v15981_v33  ;;  %v6608_v32 = vld [vmem:[#allocation3 + $0x10] sm:$0xff] }
 0x953   : > { %7565 = vmatprep.subr.bf16.mxu0 %v15986_v34  ;;  %7606 = vmatprep.subr.bf16.mxu1 %v15989_v35 }
 0x956   : > { %7566 = vmatpush2.bf16.msra.mxu0 %v15984_v36  ;;  %7607 = vmatpush2.bf16.msra.mxu1 %v15987_v37 }
 0x957   : > { %7567 = vmatprep.subr.bf16.mxu0 %v15992_v38  ;;  %7608 = vmatprep.subr.bf16.mxu1 %v15995_v40 }
 0x95a   : > { %7568 = vmatpush2.bf16.msra.mxu0 %v15990_v41  ;;  %7609 = vmatpush2.bf16.msra.mxu1 %v15993_v42  ;;  %v6687_v41 = vld [vmem:[%s22466_s2] sm:$0xf] }
 0x95b   : > { %7569 = vmatprep.subr.bf16.mxu0 %v15998_v43  ;;  %7610 = vmatprep.subr.bf16.mxu1 %v16001_v39  ;;  %v6692_v42 = vrot.slane %v6687_v41, %v17932_v12  ;;  %v6696_v43 = vrot.slane %v6687_v41, %v17934_v13 }
 0x95e   : > { %7570 = vmatpush2.bf16.msra.mxu0 %v15996_v45  ;;  %7611 = vmatpush2.bf16.msra.mxu1 %v15999_v46 }
 0x95f   : > { %7571 = vmatprep.subr.bf16.mxu0 %v16004_v55  ;;  %7612 = vmatprep.subr.bf16.mxu1 %v16007_v44 }
 0x962   : > { %7572 = vmatpush2.bf16.msra.mxu0 %v16002_v47  ;;  %7613 = vmatpush2.bf16.msra.mxu1 %v16005_v48 }
 0x963   : > { %7573 = vmatprep.subr.bf16.mxu0 %v16010_v58  ;;  %7614 = vmatprep.subr.bf16.mxu1 %v16013_v50 }
 0x966   : > { %7574 = vmatpush2.bf16.msra.mxu0 %v16008_v51  ;;  %7615 = vmatpush2.bf16.msra.mxu1 %v16011_v52 }
 0x967   : > { %7575 = vmatprep.subr.bf16.mxu0 %v16016_v53  ;;  %7616 = vmatprep.subr.bf16.mxu1 %v16019_v49  ;;  %v6704_v49 = vrot.slane %v6687_v41, %v17938_v22 }
 0x96a   : > { %7576 = vmatpush2.bf16.msra.mxu0 %v16014_v0  ;;  %7617 = vmatpush2.bf16.msra.mxu1 %v16017_v56  ;;  %v6700_v0 = vrot.slane %v6687_v41, %v17940_v26  ;;  %v16064_v41 = vld [vmem:[%s22469_s5 + $0x24] ss:$16 sps:$4 sm:$0xff]  }
 0x96b   : > { %7577 = vmatprep.subr.bf16.mxu0 %v16022_v57  ;;  %7618 = vmatprep.subr.bf16.mxu1 %v16025_v59 }
 0x96e   : > { %7578 = vmatpush2.bf16.msra.mxu0 %v16020_v60  ;;  %7619 = vmatpush2.bf16.msra.mxu1 %v16023_v61 }
 0x96f   : > { %8065 = vmatprep.subr.bf16.mxu0 %v16028_v6  ;;  %8106 = vmatprep.subr.bf16.mxu1 %v16031_v63 }
 0x9b0   : > { %v6541_v2 = vpop.f32.mrf.mxu0  ;;  %v6582_v3 = vpop.f32.mrf.mxu1 }
 0x9b1   : > { %v6542_v4 = vadd.f32 %v6541_v2, %v6170_v62  ;;  %v6583_v23 = vadd.f32 %v6582_v3, %v6178_v19  ;;  %v7130_v3 = vld [vmem:[#allocation3 + $0x8] sm:$0xff]  ;;  %v16037_v19 = vld [vmem:[%s22469_s5 + $0xcc] ss:$16 sps:$4 sm:$0xff]  }
 0x9b2   : > { %v6543_v5 = vpop.f32.mrf.mxu0  ;;  %v6584_v7 = vpop.f32.mrf.mxu1 }
 0x9b3   : > { %v13818_v8 = vmul.f32 -1.442695, %v6542_v4  ;;  %v6544_v9 = vadd.f32 %v6543_v5, %v6174_v1  ;;  %v6585_v18 = vadd.f32 %v6584_v7, %v6182_v17 }
 0x9b4   : > { %v6545_v10 = vpop.f32.mrf.mxu0  ;;  %v6586_v11 = vpop.f32.mrf.mxu1 }
 0x9b5   : > { %17162 = vpow2.f32 %v13818_v8  ;;  %v13819_v14 = vmul.f32 -1.442695, %v6544_v9  ;;  %v13820_v20 = vmul.f32 -1.442695, %v6585_v18  ;;  %v16034_v18 = vld [vmem:[%s22469_s5 + $0xc4] ss:$16 sps:$4 sm:$0xff]  }
 0x9b6   : > { %v6546_v15 = vpop.f32.mrf.mxu0  ;;  %v6587_v16 = vpop.f32.mrf.mxu1 }
 0x9b7   : > { %17164 = vpow2.f32 %v13819_v14  ;;  %v16026_v15 = vld [vmem:[%s22469_s5 + $0xe0] ss:$16 sps:$4 sm:$0xff]   ;;  %v16029_v16 = vld [vmem:[%s22469_s5 + $0xe8] ss:$16 sps:$4 sm:$0xff]  }
 0x9b8   : > { %17166 = vpow2.f32 %v13820_v20  ;;  %v16032_v20 = vld [vmem:[%s22469_s5 + $0xc0] ss:$16 sps:$4 sm:$0xff]  }
 0x9c2   : > { %v17163_v21 = vpop.eup %17162 }
 0x9c3   : > { %v6592_v24 = vadd.f32 1.0, %v17163_v21  ;;  %v16035_v21 = vld [vmem:[%s22469_s5 + $0xc8] ss:$16 sps:$4 sm:$0xff]  }
 0x9c4   : > { %v17165_v25 = vpop.eup %17164 }
 0x9c5   : > { %17168 = vrcp.f32 %v6592_v24  ;;  %v6598_v27 = vadd.f32 1.0, %v17165_v25  ;;  %v17167_v28 = vpop.eup %17166  ;;  %v16043_v24 = vld [vmem:[%s22469_s5 + $0xac] ss:$16 sps:$4 sm:$0xff]   ;;  %v16038_v25 = vld [vmem:[%s22469_s5 + $0xa0] ss:$16 sps:$4 sm:$0xff]  }
 0x9c6   : > { %17170 = vtanh.f32 %v6583_v23  ;;  %v6605_v33 = vadd.f32 1.0, %v17167_v28  ;;  %v16040_v23 = vld [vmem:[%s22469_s5 + $0xa4] ss:$16 sps:$4 sm:$0xff]  }
 0x9c7   : > { %17172 = vrcp.f32 %v6598_v27  ;;  %v16041_v27 = vld [vmem:[%s22469_s5 + $0xa8] ss:$16 sps:$4 sm:$0xff]   ;;  %v16046_v28 = vld [vmem:[%s22469_s5 + $0x84] ss:$16 sps:$4 sm:$0xff]  }
 0x9c8   : > { %17174 = vrcp.f32 %v6605_v33  ;;  %v16055_v33 = vld [vmem:[%s22469_s5 + $0x6c] ss:$16 sps:$4 sm:$0xff]  }
 0x9d2   : > { %v17169_v29 = vpop.eup %17168 }
 0x9d3   : > { %v17171_v30 = vpop.eup %17170 }
 0x9d4   : > { %v17173_v31 = vpop.eup %17172  ;;  %v6610_v34 = vmul.f32 %v17171_v30, %v17169_v29  ;;  %v16049_v29 = vld [vmem:[%s22469_s5 + $0x8c] ss:$16 sps:$4 sm:$0xff]   ;;  %v16044_v30 = vld [vmem:[%s22469_s5 + $0x80] ss:$16 sps:$4 sm:$0xff]  }
 0x9d5   : > { %v6609_v35 = vmul.f32 %v17173_v31, %v6608_v32  ;;  %v17175_v37 = vpop.eup %17174  ;;  %v16047_v31 = vld [vmem:[%s22469_s5 + $0x88] ss:$16 sps:$4 sm:$0xff]   ;;  %v16052_v32 = vld [vmem:[%s22469_s5 + $0x64] ss:$16 sps:$4 sm:$0xff]  }
 0x9d7   : > { %v6611_v36 = vadd.f32 %v6610_v34, %v6609_v35  ;;  %v16050_v34 = vld [vmem:[%s22469_s5 + $0x60] ss:$16 sps:$4 sm:$0xff]   ;;  %v16053_v35 = vld [vmem:[%s22469_s5 + $0x68] ss:$16 sps:$4 sm:$0xff]  }
 0x9d9   : > { %17176 = vtanh.f32 %v6611_v36  ;;  %6615 = vst [vmem:[#allocation3 + $0x10] sm:$0xff] %v6611_v36  ;;  %v16058_v36 = vld [vmem:[%s22469_s5 + $0x44] ss:$16 sps:$4 sm:$0xff]  }
 0x9e6   : > { %v17177_v38 = vpop.eup %17176 }
 0x9e7   : > { %v6613_v40 = vmul.f32 %v17177_v38, %v17175_v37  ;;  %v16061_v37 = vld [vmem:[%s22469_s5 + $0x4c] ss:$16 sps:$4 sm:$0xff]   ;;  %v16056_v38 = vld [vmem:[%s22469_s5 + $0x40] ss:$16 sps:$4 sm:$0xff]  }
 0x9e9   : > { %13821 = vst [vmem:[%s17535_s21 + $0x18] sm:$0xff] %v6613_v40  ;;  %v7658_v17 = vpack.c.bf16 %v6613_v40, %v6613_v40  ;;  %v16059_v40 = vld [vmem:[%s22469_s5 + $0x48] ss:$16 sps:$4 sm:$0xff]  }
 0x9f0   : > { %v7063_v39 = vpop.f32.mrf.mxu0  ;;  %v7104_v45 = vpop.f32.mrf.mxu1 }
 0x9f1   : > { %v7064_v46 = vadd.f32 %v7063_v39, %v6692_v42  ;;  %v7105_v57 = vadd.f32 %v7104_v45, %v6700_v0  ;;  %v16067_v42 = vld [vmem:[%s22469_s5 + $0x2c] ss:$16 sps:$4 sm:$0xff]   ;;  %v16065_v39 = vld [vmem:[%s22469_s5 + $0x28] ss:$16 sps:$4 sm:$0xff]   ;;  %v16070_v45 = vld [vmem:[%s22469_s5 + $0x4] ss:$16 sps:$4 sm:$0xff]  }
 0x9f2   : > { %v7065_v47 = vpop.f32.mrf.mxu0  ;;  %v7106_v55 = vpop.f32.mrf.mxu1  ;;  %v16088_v0 = vld [vmem:[%s22469_s5 + $0x1a4] ss:$16 sps:$4 sm:$0xff]  }
 0x9f3   : > { %v13887_v48 = vmul.f32 -1.442695, %v7064_v46  ;;  %v7066_v44 = vadd.f32 %v7065_v47, %v6696_v43  ;;  %v7107_v56 = vadd.f32 %v7106_v55, %v6704_v49  ;;  %v16062_v43 = vld [vmem:[%s22469_s5 + $0x20] ss:$16 sps:$4 sm:$0xff]   ;;  %v16073_v46 = vld [vmem:[%s22469_s5 + $0xc] ss:$16 sps:$4 sm:$0xff]  }
 0x9f4   : > { %v7067_v58 = vpop.f32.mrf.mxu0  ;;  %v7108_v50 = vpop.f32.mrf.mxu1  ;;  %v16068_v47 = vld [vmem:[%s22469_s5] ss:$16 sps:$4 sm:$0xff]   ;;  %v16071_v55 = vld [vmem:[%s22469_s5 + $0x8] ss:$16 sps:$4 sm:$0xff]  }
 0x9f5   : > { %17178 = vpow2.f32 %v13887_v48  ;;  %v13888_v51 = vmul.f32 -1.442695, %v7066_v44  ;;  %v13889_v59 = vmul.f32 -1.442695, %v7107_v56  ;;  %v16076_v48 = vld [vmem:[%s22469_s5 + $0x1e4] ss:$16 sps:$4 sm:$0xff]  }
 0x9f6   : > { %v7068_v52 = vpop.f32.mrf.mxu0  ;;  %v7109_v53 = vpop.f32.mrf.mxu1  ;;  %v16079_v44 = vld [vmem:[%s22469_s5 + $0x1ec] ss:$16 sps:$4 sm:$0xff]   ;;  %v16074_v58 = vld [vmem:[%s22469_s5 + $0x1e0] ss:$16 sps:$4 sm:$0xff]   ;;  %v16077_v50 = vld [vmem:[%s22469_s5 + $0x1e8] ss:$16 sps:$4 sm:$0xff]  }
 0x9f7   : > { %17180 = vpow2.f32 %v13888_v51  ;;  %v16082_v51 = vld [vmem:[%s22469_s5 + $0x1c4] ss:$16 sps:$4 sm:$0xff]   ;;  %v16085_v52 = vld [vmem:[%s22469_s5 + $0x1cc] ss:$16 sps:$4 sm:$0xff]   ;;  %v16080_v53 = vld [vmem:[%s22469_s5 + $0x1c0] ss:$16 sps:$4 sm:$0xff]  }
 0x9f8   : > { %17182 = vtanh.f32 %v7105_v57  ;;  %v16083_v49 = vld [vmem:[%s22469_s5 + $0x1c8] ss:$16 sps:$4 sm:$0xff]   ;;  %v16091_v56 = vld [vmem:[%s22469_s5 + $0x1ac] ss:$16 sps:$4 sm:$0xff]   ;;  %v16086_v57 = vld [vmem:[%s22469_s5 + $0x1a0] ss:$16 sps:$4 sm:$0xff]  }
 0x9f9   : > { %17184 = vpow2.f32 %v13889_v59  ;;  %v16089_v59 = vld [vmem:[%s22469_s5 + $0x1a8] ss:$16 sps:$4 sm:$0xff]  }
 0xa02   : > { %v17179_v60 = vpop.eup %17178 }
 0xa03   : > { %v7114_v61 = vadd.f32 1.0, %v17179_v60  ;;  %v16094_v60 = vld [vmem:[%s22469_s5 + $0x184] ss:$16 sps:$4 sm:$0xff]  }
 0xa04   : > { %v17181_v54 = vpop.eup %17180 }
 0xa05   : > { %17186 = vrcp.f32 %v7114_v61  ;;  %v7120_v6 = vadd.f32 1.0, %v17181_v54  ;;  %v17183_v62 = vpop.eup %17182  ;;  %v16097_v61 = vld [vmem:[%s22469_s5 + $0x18c] ss:$16 sps:$4 sm:$0xff]   ;;  %v16092_v54 = vld [vmem:[%s22469_s5 + $0x180] ss:$16 sps:$4 sm:$0xff]  }
 0xa06   : > { %v17185_v63 = vpop.eup %17184 }
 0xa07   : > { %17188 = vrcp.f32 %v7120_v6  ;;  %v7127_v4 = vadd.f32 1.0, %v17185_v63  ;;  %v16095_v6 = vld [vmem:[%s22469_s5 + $0x188] ss:$16 sps:$4 sm:$0xff]   ;;  %v16100_v63 = vld [vmem:[%s22469_s5 + $0x164] ss:$16 sps:$4 sm:$0xff]  }
 0xa09   : > { %17190 = vrcp.f32 %v7127_v4  ;;  %v16109_v4 = vld [vmem:[%s22469_s5 + $0x14c] ss:$16 sps:$4 sm:$0xff]  }
 0xa12   : > { %v17187_v1 = vpop.eup %17186 }
 0xa13   : > { %v7132_v7 = vmul.f32 %v17187_v1, %v17183_v62  ;;  %v16098_v62 = vld [vmem:[%s22469_s5 + $0x160] ss:$16 sps:$4 sm:$0xff]   ;;  %v16101_v1 = vld [vmem:[%s22469_s5 + $0x168] ss:$16 sps:$4 sm:$0xff]  }
 0xa14   : > { %v17189_v2 = vpop.eup %17188 }
 0xa15   : > { %v7131_v5 = vmul.f32 %v17189_v2, %v7130_v3  ;;  %v16103_v2 = vld [vmem:[%s22469_s5 + $0x16c] ss:$16 sps:$4 sm:$0xff]   ;;  %v16106_v3 = vld [vmem:[%s22469_s5 + $0x144] ss:$16 sps:$4 sm:$0xff]  }
 0xa16   : > { %v17191_v9 = vpop.eup %17190 }
 0xa17   : > { %v7133_v8 = vadd.f32 %v7132_v7, %v7131_v5  ;;  %v16104_v5 = vld [vmem:[%s22469_s5 + $0x140] ss:$16 sps:$4 sm:$0xff]   ;;  %v16107_v7 = vld [vmem:[%s22469_s5 + $0x148] ss:$16 sps:$4 sm:$0xff]  }
 0xa19   : > { %17192 = vtanh.f32 %v7133_v8  ;;  %7137 = vst [vmem:[#allocation3 + $0x8] sm:$0xff] %v7133_v8  ;;  %v16112_v8 = vld [vmem:[%s22469_s5 + $0x124] ss:$16 sps:$4 sm:$0xff]  }
 0xa26   : > { %v17193_v10 = vpop.eup %17192 }
 0xa27   : > { %v7135_v11 = vmul.f32 %v17193_v10, %v17191_v9  ;;  %v16115_v9 = vld [vmem:[%s22469_s5 + $0x12c] ss:$16 sps:$4 sm:$0xff]   ;;  %v16110_v10 = vld [vmem:[%s22469_s5 + $0x120] ss:$16 sps:$4 sm:$0xff]  }
 0xa29   : > { %v20388_v14 = vpack.c.bf16 %v7135_v11, %v7135_v11  ;;  %v16113_v11 = vld [vmem:[%s22469_s5 + $0x128] ss:$16 sps:$4 sm:$0xff]  }
 0xa2b   : > { %7580 = vmatmul.mubr.bf16.vlgmr.msra.gmra.mxu0 %v20388_v14  ;;  %7621 = vmatmul.mubr.bf16.vlgmr.msra.gmra.mxu1 %v20388_v14 }
 0xa2c   : > { %8097 = vmatprep.mubr.bf16.mxu0 %v7658_v17  ;;  %8138 = vmatprep.mubr.bf16.mxu1 %v7658_v17  ;;  %v16116_v17 = vld [vmem:[%s22469_s5 + $0x100] ss:$16 sps:$4 sm:$0xff]  }
 0xa2d   : > { %8066 = vmatpush1.bf16.msra.mxu0 %v16026_v15  ;;  %8107 = vmatpush1.bf16.msra.mxu1 %v16029_v16  ;;  %v16118_v15 = vld [vmem:[%s22469_s5 + $0x104] ss:$16 sps:$4 sm:$0xff]   ;;  %v16121_v16 = vld [vmem:[%s22469_s5 + $0x10c] ss:$16 sps:$4 sm:$0xff]  }
 0xa2e   : > { %8067 = vmatprep.subr.bf16.mxu0 %v16034_v18  ;;  %8108 = vmatprep.subr.bf16.mxu1 %v16037_v19  ;;  %v16119_v18 = vld [vmem:[%s22469_s5 + $0x108] ss:$16 sps:$4 sm:$0xff]   ;;  %v16124_v19 = vld [vmem:[%s22465_s1 + $0xe4] ss:$16 sps:$4 sm:$0xff]  }
 0xa31   : > { %8068 = vmatpush1.bf16.msra.mxu0 %v16032_v20  ;;  %8109 = vmatpush1.bf16.msra.mxu1 %v16035_v21  ;;  %v16127_v20 = vld [vmem:[%s22465_s1 + $0xec] ss:$16 sps:$4 sm:$0xff]   ;;  %v7205_v21 = vld [vmem:[%s22468_s4] sm:$0xf] }
 0xa32   : > { %8069 = vmatprep.subr.bf16.mxu0 %v16040_v23  ;;  %8110 = vmatprep.subr.bf16.mxu1 %v16043_v24  ;;  %v7210_v23 = vrot.slane %v7205_v21, %v17932_v12  ;;  %v7214_v24 = vrot.slane %v7205_v21, %v17934_v13 }
 0xa35   : > { %8070 = vmatpush1.bf16.msra.mxu0 %v16038_v25  ;;  %8111 = vmatpush1.bf16.msra.mxu1 %v16041_v27 }
 0xa36   : > { %8071 = vmatprep.subr.bf16.mxu0 %v16046_v28  ;;  %8112 = vmatprep.subr.bf16.mxu1 %v16049_v29 }
 0xa39   : > { %8072 = vmatpush1.bf16.msra.mxu0 %v16044_v30  ;;  %8113 = vmatpush1.bf16.msra.mxu1 %v16047_v31 }
 0xa3a   : > { %8073 = vmatprep.subr.bf16.mxu0 %v16052_v32  ;;  %8114 = vmatprep.subr.bf16.mxu1 %v16055_v33 }
 0xa3d   : > { %8074 = vmatpush1.bf16.msra.mxu0 %v16050_v34  ;;  %8115 = vmatpush1.bf16.msra.mxu1 %v16053_v35 }
 0xa3e   : > { %8075 = vmatprep.subr.bf16.mxu0 %v16058_v36  ;;  %8116 = vmatprep.subr.bf16.mxu1 %v16061_v37 }
 0xa41   : > { %8076 = vmatpush1.bf16.msra.mxu0 %v16056_v38  ;;  %8117 = vmatpush1.bf16.msra.mxu1 %v16059_v40  ;;  %v7222_v38 = vrot.slane %v7205_v21, %v17938_v22 }
 0xa42   : > { %8077 = vmatprep.subr.bf16.mxu0 %v16064_v41  ;;  %8118 = vmatprep.subr.bf16.mxu1 %v16067_v42  ;;  %v7218_v41 = vrot.slane %v7205_v21, %v17940_v26  ;;  %v16163_v21 = vld [vmem:[%s22465_s1 + $0x2c] ss:$16 sps:$4 sm:$0xff]  }
 0xa45   : > { %8078 = vmatpush1.bf16.msra.mxu0 %v16062_v43  ;;  %8119 = vmatpush1.bf16.msra.mxu1 %v16065_v39 }
 0xa46   : > { %8079 = vmatprep.subr.bf16.mxu0 %v16070_v45  ;;  %8120 = vmatprep.subr.bf16.mxu1 %v16073_v46 }
 0xa49   : > { %8080 = vmatpush1.bf16.msra.mxu0 %v16068_v47  ;;  %8121 = vmatpush1.bf16.msra.mxu1 %v16071_v55 }
 0xa4a   : > { %8081 = vmatprep.subr.bf16.mxu0 %v16076_v48  ;;  %8122 = vmatprep.subr.bf16.mxu1 %v16079_v44 }
 0xa4d   : > { %8082 = vmatpush2.bf16.msra.mxu0 %v16074_v58  ;;  %8123 = vmatpush2.bf16.msra.mxu1 %v16077_v50  ;;  %v7648_v50 = vld [vmem:[#allocation3] sm:$0xff] }
 0xa4e   : > { %8083 = vmatprep.subr.bf16.mxu0 %v16082_v51  ;;  %8124 = vmatprep.subr.bf16.mxu1 %v16085_v52 }
 0xa51   : > { %8084 = vmatpush2.bf16.msra.mxu0 %v16080_v53  ;;  %8125 = vmatpush2.bf16.msra.mxu1 %v16083_v49 }
 0xa52   : > { %8085 = vmatprep.subr.bf16.mxu0 %v16088_v0  ;;  %8126 = vmatprep.subr.bf16.mxu1 %v16091_v56 }
 0xa55   : > { %8086 = vmatpush2.bf16.msra.mxu0 %v16086_v57  ;;  %8127 = vmatpush2.bf16.msra.mxu1 %v16089_v59  ;;  %v16122_v59 = vld [vmem:[%s22465_s1 + $0xe0] ss:$16 sps:$4 sm:$0xff]  }
 0xa56   : > { %8087 = vmatprep.subr.bf16.mxu0 %v16094_v60  ;;  %8128 = vmatprep.subr.bf16.mxu1 %v16097_v61  ;;  %v16125_v60 = vld [vmem:[%s22465_s1 + $0xe8] ss:$16 sps:$4 sm:$0xff]  }
 0xa59   : > { %8088 = vmatpush2.bf16.msra.mxu0 %v16092_v54  ;;  %8129 = vmatpush2.bf16.msra.mxu1 %v16095_v6  ;;  %v16130_v54 = vld [vmem:[%s22465_s1 + $0xc4] ss:$16 sps:$4 sm:$0xff]   ;;  %v16133_v6 = vld [vmem:[%s22465_s1 + $0xcc] ss:$16 sps:$4 sm:$0xff]  }
 0xa5a   : > { %8089 = vmatprep.subr.bf16.mxu0 %v16100_v63  ;;  %8130 = vmatprep.subr.bf16.mxu1 %v16103_v2  ;;  %v16131_v63 = vld [vmem:[%s22465_s1 + $0xc8] ss:$16 sps:$4 sm:$0xff]   ;;  %v16139_v2 = vld [vmem:[%s22465_s1 + $0xac] ss:$16 sps:$4 sm:$0xff]  }
 0xa5d   : > { %8090 = vmatpush2.bf16.msra.mxu0 %v16098_v62  ;;  %8131 = vmatpush2.bf16.msra.mxu1 %v16101_v1  ;;  %v16128_v62 = vld [vmem:[%s22465_s1 + $0xc0] ss:$16 sps:$4 sm:$0xff]   ;;  %v16136_v1 = vld [vmem:[%s22465_s1 + $0xa4] ss:$16 sps:$4 sm:$0xff]  }
 0xa5e   : > { %8091 = vmatprep.subr.bf16.mxu0 %v16106_v3  ;;  %8132 = vmatprep.subr.bf16.mxu1 %v16109_v4  ;;  %v16134_v3 = vld [vmem:[%s22465_s1 + $0xa0] ss:$16 sps:$4 sm:$0xff]   ;;  %v16142_v4 = vld [vmem:[%s22465_s1 + $0x84] ss:$16 sps:$4 sm:$0xff]  }
 0xa61   : > { %8092 = vmatpush2.bf16.msra.mxu0 %v16104_v5  ;;  %8133 = vmatpush2.bf16.msra.mxu1 %v16107_v7  ;;  %v16145_v5 = vld [vmem:[%s22465_s1 + $0x8c] ss:$16 sps:$4 sm:$0xff]   ;;  %v16140_v7 = vld [vmem:[%s22465_s1 + $0x80] ss:$16 sps:$4 sm:$0xff]  }
 0xa62   : > { %8093 = vmatprep.subr.bf16.mxu0 %v16112_v8  ;;  %8134 = vmatprep.subr.bf16.mxu1 %v16115_v9  ;;  %v16143_v8 = vld [vmem:[%s22465_s1 + $0x88] ss:$16 sps:$4 sm:$0xff]   ;;  %v16148_v9 = vld [vmem:[%s22465_s1 + $0x64] ss:$16 sps:$4 sm:$0xff]  }
 0xa65   : > { %8094 = vmatpush2.bf16.msra.mxu0 %v16110_v10  ;;  %8135 = vmatpush2.bf16.msra.mxu1 %v16113_v11  ;;  %v16151_v10 = vld [vmem:[%s22465_s1 + $0x6c] ss:$16 sps:$4 sm:$0xff]   ;;  %v16146_v11 = vld [vmem:[%s22465_s1 + $0x60] ss:$16 sps:$4 sm:$0xff]  }
 0xa66   : > { %8095 = vmatprep.subr.bf16.mxu0 %v16118_v15  ;;  %8136 = vmatprep.subr.bf16.mxu1 %v16121_v16  ;;  %v16149_v15 = vld [vmem:[%s22465_s1 + $0x68] ss:$16 sps:$4 sm:$0xff]   ;;  %v16154_v16 = vld [vmem:[%s22465_s1 + $0x44] ss:$16 sps:$4 sm:$0xff]  }
 0xa69   : > { %8096 = vmatpush2.bf16.msra.mxu0 %v16116_v17  ;;  %8137 = vmatpush2.bf16.msra.mxu1 %v16119_v18  ;;  %v16157_v17 = vld [vmem:[%s22465_s1 + $0x4c] ss:$16 sps:$4 sm:$0xff]   ;;  %v16152_v18 = vld [vmem:[%s22465_s1 + $0x40] ss:$16 sps:$4 sm:$0xff]  }
 0xa6a   : > { %8587 = vmatprep.subr.bf16.mxu0 %v16124_v19  ;;  %8628 = vmatprep.subr.bf16.mxu1 %v16127_v20  ;;  %v16155_v19 = vld [vmem:[%s22465_s1 + $0x48] ss:$16 sps:$4 sm:$0xff]   ;;  %v16160_v20 = vld [vmem:[%s22465_s1 + $0x24] ss:$16 sps:$4 sm:$0xff]  }
 0xaeb   : > { %v7581_v25 = vpop.f32.mrf.mxu0  ;;  %v7622_v27 = vpop.f32.mrf.mxu1 }
 0xaec   : > { %v7582_v28 = vadd.f32 %v7581_v25, %v7210_v23  ;;  %v7623_v39 = vadd.f32 %v7622_v27, %v7218_v41  ;;  %v16158_v23 = vld [vmem:[%s22465_s1 + $0x20] ss:$16 sps:$4 sm:$0xff]   ;;  %v16166_v25 = vld [vmem:[%s22465_s1 + $0x4] ss:$16 sps:$4 sm:$0xff]   ;;  %v16169_v27 = vld [vmem:[%s22465_s1 + $0xc] ss:$16 sps:$4 sm:$0xff]  }
 0xaed   : > { %v7583_v29 = vpop.f32.mrf.mxu0  ;;  %v7624_v30 = vpop.f32.mrf.mxu1  ;;  %v16182_v41 = vld [vmem:[%s22465_s1 + $0x1a0] ss:$16 sps:$4 sm:$0xff]  }
 0xaee   : > { %v13954_v31 = vmul.f32 -1.442695, %v7582_v28  ;;  %v7584_v32 = vadd.f32 %v7583_v29, %v7214_v24  ;;  %v7625_v40 = vadd.f32 %v7624_v30, %v7222_v38  ;;  %v16161_v24 = vld [vmem:[%s22465_s1 + $0x28] ss:$16 sps:$4 sm:$0xff]   ;;  %v16164_v28 = vld [vmem:[%s22465_s1] ss:$16 sps:$4 sm:$0xff]  }
 0xaef   : > { %v7585_v33 = vpop.f32.mrf.mxu0  ;;  %v7626_v34 = vpop.f32.mrf.mxu1  ;;  %v16167_v29 = vld [vmem:[%s22465_s1 + $0x8] ss:$16 sps:$4 sm:$0xff]   ;;  %v16172_v30 = vld [vmem:[%s22465_s1 + $0x1e4] ss:$16 sps:$4 sm:$0xff]  }
 0xaf0   : > { %17194 = vpow2.f32 %v13954_v31  ;;  %v13955_v35 = vmul.f32 -1.442695, %v7584_v32  ;;  %v13956_v42 = vmul.f32 -1.442695, %v7625_v40  ;;  %v16175_v31 = vld [vmem:[%s22465_s1 + $0x1ec] ss:$16 sps:$4 sm:$0xff]  }
 0xaf1   : > { %v7586_v36 = vpop.f32.mrf.mxu0  ;;  %v7627_v37 = vpop.f32.mrf.mxu1  ;;  %v16170_v32 = vld [vmem:[%s22465_s1 + $0x1e0] ss:$16 sps:$4 sm:$0xff]   ;;  %v16173_v33 = vld [vmem:[%s22465_s1 + $0x1e8] ss:$16 sps:$4 sm:$0xff]   ;;  %v16178_v34 = vld [vmem:[%s22465_s1 + $0x1c4] ss:$16 sps:$4 sm:$0xff]  }
 0xaf2   : > { %17196 = vpow2.f32 %v13955_v35  ;;  %v16181_v35 = vld [vmem:[%s22465_s1 + $0x1cc] ss:$16 sps:$4 sm:$0xff]   ;;  %v16176_v36 = vld [vmem:[%s22465_s1 + $0x1c0] ss:$16 sps:$4 sm:$0xff]   ;;  %v16179_v37 = vld [vmem:[%s22465_s1 + $0x1c8] ss:$16 sps:$4 sm:$0xff]  }
 0xaf3   : > { %17198 = vpow2.f32 %v13956_v42  ;;  %v16184_v38 = vld [vmem:[%s22465_s1 + $0x1a4] ss:$16 sps:$4 sm:$0xff]   ;;  %v16187_v40 = vld [vmem:[%s22465_s1 + $0x1ac] ss:$16 sps:$4 sm:$0xff]   ;;  %v16185_v42 = vld [vmem:[%s22465_s1 + $0x1a8] ss:$16 sps:$4 sm:$0xff]  }
 0xafd   : > { %v17195_v43 = vpop.eup %17194 }
 0xafe   : > { %v7632_v45 = vadd.f32 1.0, %v17195_v43  ;;  %v16190_v43 = vld [vmem:[%s22465_s1 + $0x184] ss:$16 sps:$4 sm:$0xff]  }
 0xaff   : > { %v17197_v46 = vpop.eup %17196 }
 0xb00   : > { %17200 = vrcp.f32 %v7632_v45  ;;  %v7638_v47 = vadd.f32 1.0, %v17197_v46  ;;  %v17199_v55 = vpop.eup %17198  ;;  %v16188_v45 = vld [vmem:[%s22465_s1 + $0x180] ss:$16 sps:$4 sm:$0xff]   ;;  %v16191_v46 = vld [vmem:[%s22465_s1 + $0x188] ss:$16 sps:$4 sm:$0xff]  }
 0xb01   : > { %17202 = vtanh.f32 %v7623_v39  ;;  %v7645_v51 = vadd.f32 1.0, %v17199_v55  ;;  %v16193_v39 = vld [vmem:[%s22465_s1 + $0x18c] ss:$16 sps:$4 sm:$0xff]  }
 0xb02   : > { %17204 = vrcp.f32 %v7638_v47  ;;  %v16196_v47 = vld [vmem:[%s22465_s1 + $0x164] ss:$16 sps:$4 sm:$0xff]   ;;  %v16199_v55 = vld [vmem:[%s22465_s1 + $0x16c] ss:$16 sps:$4 sm:$0xff]  }
 0xb03   : > { %17206 = vrcp.f32 %v7645_v51  ;;  %v16200_v51 = vld [vmem:[%s22465_s1 + $0x140] ss:$16 sps:$4 sm:$0xff]  }
 0xb0d   : > { %v17201_v48 = vpop.eup %17200 }
 0xb0e   : > { %v17203_v44 = vpop.eup %17202 }
 0xb0f   : > { %v17205_v58 = vpop.eup %17204  ;;  %v7650_v52 = vmul.f32 %v17203_v44, %v17201_v48  ;;  %v16194_v48 = vld [vmem:[%s22465_s1 + $0x160] ss:$16 sps:$4 sm:$0xff]   ;;  %v16197_v44 = vld [vmem:[%s22465_s1 + $0x168] ss:$16 sps:$4 sm:$0xff]  }
 0xb10   : > { %v7649_v53 = vmul.f32 %v17205_v58, %v7648_v50  ;;  %v17207_v0 = vpop.eup %17206  ;;  %v16202_v58 = vld [vmem:[%s22465_s1 + $0x144] ss:$16 sps:$4 sm:$0xff]   ;;  %v16205_v50 = vld [vmem:[%s22465_s1 + $0x14c] ss:$16 sps:$4 sm:$0xff]  }
 0xb12   : > { %v7651_v49 = vadd.f32 %v7650_v52, %v7649_v53  ;;  %v16203_v52 = vld [vmem:[%s22465_s1 + $0x148] ss:$16 sps:$4 sm:$0xff]   ;;  %v16208_v53 = vld [vmem:[%s22465_s1 + $0x124] ss:$16 sps:$4 sm:$0xff]  }
 0xb14   : > { %7655 = vst [vmem:[#allocation3] sm:$0xff] %v7651_v49  ;;  %17208 = vtanh.f32 %v7651_v49  ;;  %v16211_v49 = vld [vmem:[%s22465_s1 + $0x12c] ss:$16 sps:$4 sm:$0xff]  }
 0xb21   : > { %v17209_v56 = vpop.eup %17208 }
 0xb22   : > { %v7653_v57 = vmul.f32 %v17209_v56, %v17207_v0  ;;  %v16206_v0 = vld [vmem:[%s22465_s1 + $0x120] ss:$16 sps:$4 sm:$0xff]   ;;  %v16209_v56 = vld [vmem:[%s22465_s1 + $0x128] ss:$16 sps:$4 sm:$0xff]  }
 0xb24   : > { %v20597_v61 = vpack.c.bf16 %v7653_v57, %v7653_v57  ;;  %v16214_v57 = vld [vmem:[%s22465_s1 + $0x104] ss:$16 sps:$4 sm:$0xff]  }
 0xb26   : > { %8098 = vmatmul.mubr.bf16.vlgmr.msra.gmra.mxu0 %v20597_v61  ;;  %8139 = vmatmul.mubr.bf16.vlgmr.msra.gmra.mxu1 %v20597_v61 }
 0xb27   : > { %8588 = vmatpush1.bf16.msra.mxu0 %v16122_v59  ;;  %8629 = vmatpush1.bf16.msra.mxu1 %v16125_v60  ;;  %v16217_v59 = vld [vmem:[%s22465_s1 + $0x10c] ss:$16 sps:$4 sm:$0xff]   ;;  %v16212_v60 = vld [vmem:[%s22465_s1 + $0x100] ss:$16 sps:$4 sm:$0xff]  }
 0xb28   : > { %8619 = vmatprep.mubr.bf16.mxu0 %v20388_v14  ;;  %8660 = vmatprep.mubr.bf16.mxu1 %v20388_v14  ;;  %v16137_v14 = vld [vmem:[%s22465_s1 + $0xa8] ss:$16 sps:$4 sm:$0xff]  }
 0xb29   : > { %8589 = vmatprep.subr.bf16.mxu0 %v16130_v54  ;;  %8630 = vmatprep.subr.bf16.mxu1 %v16133_v6  ;;  %v16215_v54 = vld [vmem:[%s22465_s1 + $0x108] ss:$16 sps:$4 sm:$0xff]  }
 0xb2a   : > { %v14025_v6 = vld [vmem:[%s17530_s18 + $0x28] sm:$0xff] }
 0xb2b   : > { %8590 = vmatpush1.bf16.msra.mxu0 %v16128_v62  ;;  %8631 = vmatpush1.bf16.msra.mxu1 %v16131_v63  ;;  %v8179_v62 = vpack.c.bf16 %v14025_v6, %v14025_v6  ;;  %v16218_v63 = vld [vmem:[%s22467_s3 + $0xe0] ss:$16 sps:$4 sm:$0xff]  }
 0xb2c   : > { %8591 = vmatprep.subr.bf16.mxu0 %v16136_v1  ;;  %8632 = vmatprep.subr.bf16.mxu1 %v16139_v2  ;;  %v16220_v1 = vld [vmem:[%s22467_s3 + $0xe4] ss:$16 sps:$4 sm:$0xff]   ;;  %v16221_v2 = vld [vmem:[%s22467_s3 + $0xe8] ss:$16 sps:$4 sm:$0xff]   ;;  %v16302_v6 = vld [vmem:[%s22467_s3 + $0x120] ss:$16 sps:$4 sm:$0xff]  }
 0xb2f   : > { %8592 = vmatpush1.bf16.msra.mxu0 %v16134_v3  ;;  %8633 = vmatpush1.bf16.msra.mxu1 %v16137_v14  ;;  %v16223_v3 = vld [vmem:[%s22467_s3 + $0xec] ss:$16 sps:$4 sm:$0xff]  }
 0xb30   : > { %8593 = vmatprep.subr.bf16.mxu0 %v16142_v4  ;;  %8634 = vmatprep.subr.bf16.mxu1 %v16145_v5  ;;  %v16229_v14 = vld [vmem:[%s22467_s3 + $0xcc] ss:$16 sps:$4 sm:$0xff]   ;;  %v16224_v4 = vld [vmem:[%s22467_s3 + $0xc0] ss:$16 sps:$4 sm:$0xff]   ;;  %v16227_v5 = vld [vmem:[%s22467_s3 + $0xc8] ss:$16 sps:$4 sm:$0xff]  }
 0xb33   : > { %8594 = vmatpush1.bf16.msra.mxu0 %v16140_v7  ;;  %8635 = vmatpush1.bf16.msra.mxu1 %v16143_v8  ;;  %v16232_v7 = vld [vmem:[%s22467_s3 + $0xa4] ss:$16 sps:$4 sm:$0xff]   ;;  %v16235_v8 = vld [vmem:[%s22467_s3 + $0xac] ss:$16 sps:$4 sm:$0xff]  }
 0xb34   : > { %8595 = vmatprep.subr.bf16.mxu0 %v16148_v9  ;;  %8636 = vmatprep.subr.bf16.mxu1 %v16151_v10  ;;  %v16230_v9 = vld [vmem:[%s22467_s3 + $0xa0] ss:$16 sps:$4 sm:$0xff]   ;;  %v16233_v10 = vld [vmem:[%s22467_s3 + $0xa8] ss:$16 sps:$4 sm:$0xff]  }
 0xb37   : > { %8596 = vmatpush1.bf16.msra.mxu0 %v16146_v11  ;;  %8637 = vmatpush1.bf16.msra.mxu1 %v16149_v15  ;;  %v16238_v11 = vld [vmem:[%s22467_s3 + $0x84] ss:$16 sps:$4 sm:$0xff]   ;;  %v16241_v15 = vld [vmem:[%s22467_s3 + $0x8c] ss:$16 sps:$4 sm:$0xff]  }
 0xb38   : > { %8597 = vmatprep.subr.bf16.mxu0 %v16154_v16  ;;  %8638 = vmatprep.subr.bf16.mxu1 %v16157_v17  ;;  %v16236_v16 = vld [vmem:[%s22467_s3 + $0x80] ss:$16 sps:$4 sm:$0xff]   ;;  %v16239_v17 = vld [vmem:[%s22467_s3 + $0x88] ss:$16 sps:$4 sm:$0xff]  }
 0xb3b   : > { %8598 = vmatpush1.bf16.msra.mxu0 %v16152_v18  ;;  %8639 = vmatpush1.bf16.msra.mxu1 %v16155_v19  ;;  %v16244_v18 = vld [vmem:[%s22467_s3 + $0x64] ss:$16 sps:$4 sm:$0xff]   ;;  %v16247_v19 = vld [vmem:[%s22467_s3 + $0x6c] ss:$16 sps:$4 sm:$0xff]  }
 0xb3c   : > { %8599 = vmatprep.subr.bf16.mxu0 %v16160_v20  ;;  %8640 = vmatprep.subr.bf16.mxu1 %v16163_v21  ;;  %v16242_v20 = vld [vmem:[%s22467_s3 + $0x60] ss:$16 sps:$4 sm:$0xff]   ;;  %v16245_v21 = vld [vmem:[%s22467_s3 + $0x68] ss:$16 sps:$4 sm:$0xff]  }
 0xb3f   : > { %8600 = vmatpush1.bf16.msra.mxu0 %v16158_v23  ;;  %8641 = vmatpush1.bf16.msra.mxu1 %v16161_v24  ;;  %v16250_v23 = vld [vmem:[%s22467_s3 + $0x44] ss:$16 sps:$4 sm:$0xff]   ;;  %v16253_v24 = vld [vmem:[%s22467_s3 + $0x4c] ss:$16 sps:$4 sm:$0xff]  }
 0xb40   : > { %8601 = vmatprep.subr.bf16.mxu0 %v16166_v25  ;;  %8642 = vmatprep.subr.bf16.mxu1 %v16169_v27  ;;  %v16248_v25 = vld [vmem:[%s22467_s3 + $0x40] ss:$16 sps:$4 sm:$0xff]   ;;  %v16251_v27 = vld [vmem:[%s22467_s3 + $0x48] ss:$16 sps:$4 sm:$0xff]  }
 0xb43   : > { %8602 = vmatpush1.bf16.msra.mxu0 %v16164_v28  ;;  %8643 = vmatpush1.bf16.msra.mxu1 %v16167_v29  ;;  %v16256_v28 = vld [vmem:[%s22467_s3 + $0x24] ss:$16 sps:$4 sm:$0xff]   ;;  %v16259_v29 = vld [vmem:[%s22467_s3 + $0x2c] ss:$16 sps:$4 sm:$0xff]  }
 0xb44   : > { %8603 = vmatprep.subr.bf16.mxu0 %v16172_v30  ;;  %8644 = vmatprep.subr.bf16.mxu1 %v16175_v31  ;;  %v16254_v30 = vld [vmem:[%s22467_s3 + $0x20] ss:$16 sps:$4 sm:$0xff]   ;;  %v16257_v31 = vld [vmem:[%s22467_s3 + $0x28] ss:$16 sps:$4 sm:$0xff]  }
 0xb47   : > { %8604 = vmatpush2.bf16.msra.mxu0 %v16170_v32  ;;  %8645 = vmatpush2.bf16.msra.mxu1 %v16173_v33  ;;  %v16262_v32 = vld [vmem:[%s22467_s3 + $0x4] ss:$16 sps:$4 sm:$0xff]   ;;  %v16265_v33 = vld [vmem:[%s22467_s3 + $0xc] ss:$16 sps:$4 sm:$0xff]  }
 0xb48   : > { %8605 = vmatprep.subr.bf16.mxu0 %v16178_v34  ;;  %8646 = vmatprep.subr.bf16.mxu1 %v16181_v35  ;;  %v16260_v34 = vld [vmem:[%s22467_s3] ss:$16 sps:$4 sm:$0xff]   ;;  %v16263_v35 = vld [vmem:[%s22467_s3 + $0x8] ss:$16 sps:$4 sm:$0xff]  }
 0xb4b   : > { %8606 = vmatpush2.bf16.msra.mxu0 %v16176_v36  ;;  %8647 = vmatpush2.bf16.msra.mxu1 %v16179_v37  ;;  %v16268_v36 = vld [vmem:[%s22467_s3 + $0x1e4] ss:$16 sps:$4 sm:$0xff]   ;;  %v16271_v37 = vld [vmem:[%s22467_s3 + $0x1ec] ss:$16 sps:$4 sm:$0xff]  }
 0xb4c   : > { %8607 = vmatprep.subr.bf16.mxu0 %v16184_v38  ;;  %8648 = vmatprep.subr.bf16.mxu1 %v16187_v40  ;;  %v16266_v38 = vld [vmem:[%s22467_s3 + $0x1e0] ss:$16 sps:$4 sm:$0xff]   ;;  %v16269_v40 = vld [vmem:[%s22467_s3 + $0x1e8] ss:$16 sps:$4 sm:$0xff]  }
 0xb4f   : > { %8608 = vmatpush2.bf16.msra.mxu0 %v16182_v41  ;;  %8649 = vmatpush2.bf16.msra.mxu1 %v16185_v42  ;;  %v16274_v41 = vld [vmem:[%s22467_s3 + $0x1c4] ss:$16 sps:$4 sm:$0xff]   ;;  %v16277_v42 = vld [vmem:[%s22467_s3 + $0x1cc] ss:$16 sps:$4 sm:$0xff]  }
 0xb50   : > { %8609 = vmatprep.subr.bf16.mxu0 %v16190_v43  ;;  %8650 = vmatprep.subr.bf16.mxu1 %v16193_v39  ;;  %v16272_v43 = vld [vmem:[%s22467_s3 + $0x1c0] ss:$16 sps:$4 sm:$0xff]   ;;  %v16275_v39 = vld [vmem:[%s22467_s3 + $0x1c8] ss:$16 sps:$4 sm:$0xff]  }
 0xb53   : > { %8610 = vmatpush2.bf16.msra.mxu0 %v16188_v45  ;;  %8651 = vmatpush2.bf16.msra.mxu1 %v16191_v46  ;;  %v16280_v45 = vld [vmem:[%s22467_s3 + $0x1a4] ss:$16 sps:$4 sm:$0xff]   ;;  %v16283_v46 = vld [vmem:[%s22467_s3 + $0x1ac] ss:$16 sps:$4 sm:$0xff]  }
 0xb54   : > { %8611 = vmatprep.subr.bf16.mxu0 %v16196_v47  ;;  %8652 = vmatprep.subr.bf16.mxu1 %v16199_v55  ;;  %v16278_v47 = vld [vmem:[%s22467_s3 + $0x1a0] ss:$16 sps:$4 sm:$0xff]   ;;  %v16281_v55 = vld [vmem:[%s22467_s3 + $0x1a8] ss:$16 sps:$4 sm:$0xff]  }
 0xb57   : > { %8612 = vmatpush2.bf16.msra.mxu0 %v16194_v48  ;;  %8653 = vmatpush2.bf16.msra.mxu1 %v16197_v44  ;;  %v16286_v48 = vld [vmem:[%s22467_s3 + $0x184] ss:$16 sps:$4 sm:$0xff]   ;;  %v16289_v44 = vld [vmem:[%s22467_s3 + $0x18c] ss:$16 sps:$4 sm:$0xff]  }
 0xb58   : > { %8613 = vmatprep.subr.bf16.mxu0 %v16202_v58  ;;  %8654 = vmatprep.subr.bf16.mxu1 %v16205_v50  ;;  %v16284_v58 = vld [vmem:[%s22467_s3 + $0x180] ss:$16 sps:$4 sm:$0xff]   ;;  %v16287_v50 = vld [vmem:[%s22467_s3 + $0x188] ss:$16 sps:$4 sm:$0xff]  }
 0xb5b   : > { %8614 = vmatpush2.bf16.msra.mxu0 %v16200_v51  ;;  %8655 = vmatpush2.bf16.msra.mxu1 %v16203_v52  ;;  %v16290_v51 = vld [vmem:[%s22467_s3 + $0x160] ss:$16 sps:$4 sm:$0xff]   ;;  %v16292_v52 = vld [vmem:[%s22467_s3 + $0x164] ss:$16 sps:$4 sm:$0xff]  }
 0xb5c   : > { %8615 = vmatprep.subr.bf16.mxu0 %v16208_v53  ;;  %8656 = vmatprep.subr.bf16.mxu1 %v16211_v49  ;;  %v16293_v53 = vld [vmem:[%s22467_s3 + $0x168] ss:$16 sps:$4 sm:$0xff]   ;;  %v16295_v49 = vld [vmem:[%s22467_s3 + $0x16c] ss:$16 sps:$4 sm:$0xff]  }
 0xb5f   : > { %8616 = vmatpush2.bf16.msra.mxu0 %v16206_v0  ;;  %8657 = vmatpush2.bf16.msra.mxu1 %v16209_v56  ;;  %v16298_v0 = vld [vmem:[%s22467_s3 + $0x144] ss:$16 sps:$4 sm:$0xff]   ;;  %v16301_v56 = vld [vmem:[%s22467_s3 + $0x14c] ss:$16 sps:$4 sm:$0xff]  }
 0xb60   : > { %8617 = vmatprep.subr.bf16.mxu0 %v16214_v57  ;;  %8658 = vmatprep.subr.bf16.mxu1 %v16217_v59  ;;  %v16296_v57 = vld [vmem:[%s22467_s3 + $0x140] ss:$16 sps:$4 sm:$0xff]   ;;  %v16299_v59 = vld [vmem:[%s22467_s3 + $0x148] ss:$16 sps:$4 sm:$0xff]  }
 0xb63   : > { %8618 = vmatpush2.bf16.msra.mxu0 %v16212_v60  ;;  %8659 = vmatpush2.bf16.msra.mxu1 %v16215_v54  ;;  %v16304_v60 = vld [vmem:[%s22467_s3 + $0x124] ss:$16 sps:$4 sm:$0xff]   ;;  %v16307_v54 = vld [vmem:[%s22467_s3 + $0x12c] ss:$16 sps:$4 sm:$0xff]  }
 0xb64   : > { %9105 = vmatprep.subr.bf16.mxu0 %v16220_v1  ;;  %9146 = vmatprep.subr.bf16.mxu1 %v16223_v3  ;;  %v16313_v1 = vld [vmem:[%s22467_s3 + $0x10c] ss:$16 sps:$4 sm:$0xff]   ;;  %v16311_v3 = vld [vmem:[%s22467_s3 + $0x108] ss:$16 sps:$4 sm:$0xff]  }
 0xb66   : > { %8620 = vmatmul.mubr.bf16.vlgmr.msra.gmra.mxu0 %v8179_v62  ;;  %8661 = vmatmul.mubr.bf16.vlgmr.msra.gmra.mxu1 %v8179_v62  ;;  %v16305_v62 = vld [vmem:[%s22467_s3 + $0x128] ss:$16 sps:$4 sm:$0xff]  }
 0xb67   : > { %9137 = vmatprep.mubr.bf16.mxu0 %v20597_v61  ;;  %9178 = vmatprep.mubr.bf16.mxu1 %v20597_v61  ;;  %v16226_v61 = vld [vmem:[%s22467_s3 + $0xc4] ss:$16 sps:$4 sm:$0xff]  }
 0xb68   : > { %9106 = vmatpush1.bf16.msra.mxu0 %v16218_v63  ;;  %9147 = vmatpush1.bf16.msra.mxu1 %v16221_v2  ;;  %v16310_v63 = vld [vmem:[%s22467_s3 + $0x104] ss:$16 sps:$4 sm:$0xff]   ;;  %v16308_v2 = vld [vmem:[%s22467_s3 + $0x100] ss:$16 sps:$4 sm:$0xff]  }
 0xb69   : > { %9107 = vmatprep.subr.bf16.mxu0 %v16226_v61  ;;  %9148 = vmatprep.subr.bf16.mxu1 %v16229_v14  ;;  %v7723_v61 = vld [vmem:[%s22470_s6] sm:$0xf]  ;;  %v16316_v14 = vld [vmem:[%s22469_s5 + $0xe4] ss:$16 sps:$4 sm:$0xff]  }
 0xb6c   : > { %9108 = vmatpush1.bf16.msra.mxu0 %v16224_v4  ;;  %9149 = vmatpush1.bf16.msra.mxu1 %v16227_v5  ;;  %v7728_v4 = vrot.slane %v7723_v61, %v17932_v12  ;;  %v16319_v5 = vld [vmem:[%s22469_s5 + $0xec] ss:$16 sps:$4 sm:$0xff]  }
 0xb6d   : > { %9109 = vmatprep.subr.bf16.mxu0 %v16232_v7  ;;  %9150 = vmatprep.subr.bf16.mxu1 %v16235_v8  ;;  %v7732_v7 = vrot.slane %v7723_v61, %v17934_v13 }
 0xb70   : > { %9110 = vmatpush1.bf16.msra.mxu0 %v16230_v9  ;;  %9151 = vmatpush1.bf16.msra.mxu1 %v16233_v10 }
 0xb71   : > { %9111 = vmatprep.subr.bf16.mxu0 %v16238_v11  ;;  %9152 = vmatprep.subr.bf16.mxu1 %v16241_v15 }
 0xb74   : > { %9112 = vmatpush1.bf16.msra.mxu0 %v16236_v16  ;;  %9153 = vmatpush1.bf16.msra.mxu1 %v16239_v17 }
 0xb75   : > { %9113 = vmatprep.subr.bf16.mxu0 %v16244_v18  ;;  %9154 = vmatprep.subr.bf16.mxu1 %v16247_v19 }
 0xb78   : > { %9114 = vmatpush1.bf16.msra.mxu0 %v16242_v20  ;;  %9155 = vmatpush1.bf16.msra.mxu1 %v16245_v21 }
 0xb79   : > { %9115 = vmatprep.subr.bf16.mxu0 %v16250_v23  ;;  %9156 = vmatprep.subr.bf16.mxu1 %v16253_v24  ;;  %v7740_v24 = vrot.slane %v7723_v61, %v17938_v22 }
 0xb7c   : > { %9116 = vmatpush1.bf16.msra.mxu0 %v16248_v25  ;;  %9157 = vmatpush1.bf16.msra.mxu1 %v16251_v27  ;;  %v7736_v27 = vrot.slane %v7723_v61, %v17940_v26 }
 0xb7d   : > { %9117 = vmatprep.subr.bf16.mxu0 %v16256_v28  ;;  %9158 = vmatprep.subr.bf16.mxu1 %v16259_v29 }
 0xb80   : > { %9118 = vmatpush1.bf16.msra.mxu0 %v16254_v30  ;;  %9159 = vmatpush1.bf16.msra.mxu1 %v16257_v31 }
 0xb81   : > { %9119 = vmatprep.subr.bf16.mxu0 %v16262_v32  ;;  %9160 = vmatprep.subr.bf16.mxu1 %v16265_v33 }
 0xb84   : > { %9120 = vmatpush1.bf16.msra.mxu0 %v16260_v34  ;;  %9161 = vmatpush1.bf16.msra.mxu1 %v16263_v35 }
 0xb85   : > { %9121 = vmatprep.subr.bf16.mxu0 %v16268_v36  ;;  %9162 = vmatprep.subr.bf16.mxu1 %v16271_v37 }
 0xb88   : > { %9122 = vmatpush2.bf16.msra.mxu0 %v16266_v38  ;;  %9163 = vmatpush2.bf16.msra.mxu1 %v16269_v40  ;;  %v8166_v38 = vld [vmem:[#allocation3 + $0x10] sm:$0xff] }
 0xb89   : > { %9123 = vmatprep.subr.bf16.mxu0 %v16274_v41  ;;  %9164 = vmatprep.subr.bf16.mxu1 %v16277_v42 }
 0xb8c   : > { %9124 = vmatpush2.bf16.msra.mxu0 %v16272_v43  ;;  %9165 = vmatpush2.bf16.msra.mxu1 %v16275_v39 }
 0xb8d   : > { %9125 = vmatprep.subr.bf16.mxu0 %v16280_v45  ;;  %9166 = vmatprep.subr.bf16.mxu1 %v16283_v46 }
 0xb90   : > { %9126 = vmatpush2.bf16.msra.mxu0 %v16278_v47  ;;  %9167 = vmatpush2.bf16.msra.mxu1 %v16281_v55  ;;  %v8245_v47 = vld [vmem:[%s22466_s2] sm:$0xf] }
 0xb91   : > { %9127 = vmatprep.subr.bf16.mxu0 %v16286_v48  ;;  %9168 = vmatprep.subr.bf16.mxu1 %v16289_v44  ;;  %v8250_v55 = vrot.slane %v8245_v47, %v17932_v12  ;;  %v8254_v48 = vrot.slane %v8245_v47, %v17934_v13 }
 0xb94   : > { %9128 = vmatpush2.bf16.msra.mxu0 %v16284_v58  ;;  %9169 = vmatpush2.bf16.msra.mxu1 %v16287_v50 }
 0xb95   : > { %9129 = vmatprep.subr.bf16.mxu0 %v16292_v52  ;;  %9170 = vmatprep.subr.bf16.mxu1 %v16295_v49 }
 0xb98   : > { %9130 = vmatpush2.bf16.msra.mxu0 %v16290_v51  ;;  %9171 = vmatpush2.bf16.msra.mxu1 %v16293_v53 }
 0xb99   : > { %9131 = vmatprep.subr.bf16.mxu0 %v16298_v0  ;;  %9172 = vmatprep.subr.bf16.mxu1 %v16301_v56 }
 0xb9c   : > { %9132 = vmatpush2.bf16.msra.mxu0 %v16296_v57  ;;  %9173 = vmatpush2.bf16.msra.mxu1 %v16299_v59 }
 0xb9d   : > { %9133 = vmatprep.subr.bf16.mxu0 %v16304_v60  ;;  %9174 = vmatprep.subr.bf16.mxu1 %v16307_v54  ;;  %v8262_v54 = vrot.slane %v8245_v47, %v17938_v22 }
 0xba0   : > { %9134 = vmatpush2.bf16.msra.mxu0 %v16302_v6  ;;  %9175 = vmatpush2.bf16.msra.mxu1 %v16305_v62  ;;  %v8258_v6 = vrot.slane %v8245_v47, %v17940_v26  ;;  %v16352_v47 = vld [vmem:[%s22469_s5 + $0x24] ss:$16 sps:$4 sm:$0xff]  }
 0xba1   : > { %9135 = vmatprep.subr.bf16.mxu0 %v16310_v63  ;;  %9176 = vmatprep.subr.bf16.mxu1 %v16313_v1 }
 0xba4   : > { %9136 = vmatpush2.bf16.msra.mxu0 %v16308_v2  ;;  %9177 = vmatpush2.bf16.msra.mxu1 %v16311_v3 }
 0xba5   : > { %9623 = vmatprep.subr.bf16.mxu0 %v16316_v14  ;;  %9664 = vmatprep.subr.bf16.mxu1 %v16319_v5 }
 0xbe6   : > { %v8099_v8 = vpop.f32.mrf.mxu0  ;;  %v8140_v9 = vpop.f32.mrf.mxu1 }
 0xbe7   : > { %v8100_v10 = vadd.f32 %v8099_v8, %v7728_v4  ;;  %v8141_v30 = vadd.f32 %v8140_v9, %v7736_v27  ;;  %v8688_v9 = vld [vmem:[#allocation3 + $0x8] sm:$0xff]  ;;  %v16325_v27 = vld [vmem:[%s22469_s5 + $0xcc] ss:$16 sps:$4 sm:$0xff]  }
 0xbe8   : > { %v8101_v11 = vpop.f32.mrf.mxu0  ;;  %v8142_v15 = vpop.f32.mrf.mxu1 }
 0xbe9   : > { %v14021_v16 = vmul.f32 -1.442695, %v8100_v10  ;;  %v8102_v17 = vadd.f32 %v8101_v11, %v7732_v7  ;;  %v8143_v25 = vadd.f32 %v8142_v15, %v7740_v24 }
 0xbea   : > { %v8103_v18 = vpop.f32.mrf.mxu0  ;;  %v8144_v19 = vpop.f32.mrf.mxu1 }
 0xbeb   : > { %17210 = vpow2.f32 %v14021_v16  ;;  %v14022_v20 = vmul.f32 -1.442695, %v8102_v17  ;;  %v14023_v28 = vmul.f32 -1.442695, %v8143_v25  ;;  %v16322_v25 = vld [vmem:[%s22469_s5 + $0xc4] ss:$16 sps:$4 sm:$0xff]  }
 0xbec   : > { %v8104_v21 = vpop.f32.mrf.mxu0  ;;  %v8145_v23 = vpop.f32.mrf.mxu1 }
 0xbed   : > { %17212 = vpow2.f32 %v14022_v20  ;;  %v16314_v21 = vld [vmem:[%s22469_s5 + $0xe0] ss:$16 sps:$4 sm:$0xff]   ;;  %v16317_v23 = vld [vmem:[%s22469_s5 + $0xe8] ss:$16 sps:$4 sm:$0xff]  }
 0xbee   : > { %17214 = vpow2.f32 %v14023_v28  ;;  %v16320_v28 = vld [vmem:[%s22469_s5 + $0xc0] ss:$16 sps:$4 sm:$0xff]  }
 0xbf8   : > { %v17211_v29 = vpop.eup %17210 }
 0xbf9   : > { %v8150_v31 = vadd.f32 1.0, %v17211_v29  ;;  %v16323_v29 = vld [vmem:[%s22469_s5 + $0xc8] ss:$16 sps:$4 sm:$0xff]  }
 0xbfa   : > { %v17213_v32 = vpop.eup %17212 }
 0xbfb   : > { %17216 = vrcp.f32 %v8150_v31  ;;  %v8156_v33 = vadd.f32 1.0, %v17213_v32  ;;  %v17215_v34 = vpop.eup %17214  ;;  %v16331_v31 = vld [vmem:[%s22469_s5 + $0xac] ss:$16 sps:$4 sm:$0xff]   ;;  %v16326_v32 = vld [vmem:[%s22469_s5 + $0xa0] ss:$16 sps:$4 sm:$0xff]  }
 0xbfc   : > { %17218 = vtanh.f32 %v8141_v30  ;;  %v8163_v40 = vadd.f32 1.0, %v17215_v34  ;;  %v16328_v30 = vld [vmem:[%s22469_s5 + $0xa4] ss:$16 sps:$4 sm:$0xff]  }
 0xbfd   : > { %17220 = vrcp.f32 %v8156_v33  ;;  %v16329_v33 = vld [vmem:[%s22469_s5 + $0xa8] ss:$16 sps:$4 sm:$0xff]   ;;  %v16334_v34 = vld [vmem:[%s22469_s5 + $0x84] ss:$16 sps:$4 sm:$0xff]  }
 0xbfe   : > { %17222 = vrcp.f32 %v8163_v40  ;;  %v16343_v40 = vld [vmem:[%s22469_s5 + $0x6c] ss:$16 sps:$4 sm:$0xff]  }
 0xc08   : > { %v17217_v35 = vpop.eup %17216 }
 0xc09   : > { %v17219_v36 = vpop.eup %17218 }
 0xc0a   : > { %v17221_v37 = vpop.eup %17220  ;;  %v8168_v41 = vmul.f32 %v17219_v36, %v17217_v35  ;;  %v16337_v35 = vld [vmem:[%s22469_s5 + $0x8c] ss:$16 sps:$4 sm:$0xff]   ;;  %v16332_v36 = vld [vmem:[%s22469_s5 + $0x80] ss:$16 sps:$4 sm:$0xff]  }
 0xc0b   : > { %v8167_v42 = vmul.f32 %v17221_v37, %v8166_v38  ;;  %v17223_v39 = vpop.eup %17222  ;;  %v16335_v37 = vld [vmem:[%s22469_s5 + $0x88] ss:$16 sps:$4 sm:$0xff]   ;;  %v16340_v38 = vld [vmem:[%s22469_s5 + $0x64] ss:$16 sps:$4 sm:$0xff]  }
 0xc0d   : > { %v8169_v43 = vadd.f32 %v8168_v41, %v8167_v42  ;;  %v16338_v41 = vld [vmem:[%s22469_s5 + $0x60] ss:$16 sps:$4 sm:$0xff]   ;;  %v16341_v42 = vld [vmem:[%s22469_s5 + $0x68] ss:$16 sps:$4 sm:$0xff]  }
 0xc0f   : > { %17224 = vtanh.f32 %v8169_v43  ;;  %8173 = vst [vmem:[#allocation3 + $0x10] sm:$0xff] %v8169_v43  ;;  %v16346_v43 = vld [vmem:[%s22469_s5 + $0x44] ss:$16 sps:$4 sm:$0xff]  }
 0xc1c   : > { %v17225_v45 = vpop.eup %17224 }
 0xc1d   : > { %v8171_v46 = vmul.f32 %v17225_v45, %v17223_v39  ;;  %v16349_v39 = vld [vmem:[%s22469_s5 + $0x4c] ss:$16 sps:$4 sm:$0xff]   ;;  %v16344_v45 = vld [vmem:[%s22469_s5 + $0x40] ss:$16 sps:$4 sm:$0xff]  }
 0xc1f   : > { %14024 = vst [vmem:[%s17535_s21 + $0x20] sm:$0xff] %v8171_v46  ;;  %v9216_v24 = vpack.c.bf16 %v8171_v46, %v8171_v46  ;;  %v16347_v46 = vld [vmem:[%s22469_s5 + $0x48] ss:$16 sps:$4 sm:$0xff]  }
 0xc26   : > { %v8621_v44 = vpop.f32.mrf.mxu0  ;;  %v8662_v58 = vpop.f32.mrf.mxu1 }
 0xc27   : > { %v8622_v50 = vadd.f32 %v8621_v44, %v8250_v55  ;;  %v8663_v63 = vadd.f32 %v8662_v58, %v8258_v6  ;;  %v16355_v55 = vld [vmem:[%s22469_s5 + $0x2c] ss:$16 sps:$4 sm:$0xff]   ;;  %v16353_v44 = vld [vmem:[%s22469_s5 + $0x28] ss:$16 sps:$4 sm:$0xff]   ;;  %v16358_v58 = vld [vmem:[%s22469_s5 + $0x4] ss:$16 sps:$4 sm:$0xff]  }
 0xc28   : > { %v8623_v51 = vpop.f32.mrf.mxu0  ;;  %v8664_v52 = vpop.f32.mrf.mxu1  ;;  %v16376_v6 = vld [vmem:[%s22469_s5 + $0x1a4] ss:$16 sps:$4 sm:$0xff]  }
 0xc29   : > { %v14090_v53 = vmul.f32 -1.442695, %v8622_v50  ;;  %v8624_v49 = vadd.f32 %v8623_v51, %v8254_v48  ;;  %v8665_v62 = vadd.f32 %v8664_v52, %v8262_v54  ;;  %v16350_v48 = vld [vmem:[%s22469_s5 + $0x20] ss:$16 sps:$4 sm:$0xff]   ;;  %v16361_v50 = vld [vmem:[%s22469_s5 + $0xc] ss:$16 sps:$4 sm:$0xff]  }
 0xc2a   : > { %v8625_v0 = vpop.f32.mrf.mxu0  ;;  %v8666_v56 = vpop.f32.mrf.mxu1  ;;  %v16356_v51 = vld [vmem:[%s22469_s5] ss:$16 sps:$4 sm:$0xff]   ;;  %v16359_v52 = vld [vmem:[%s22469_s5 + $0x8] ss:$16 sps:$4 sm:$0xff]  }
 0xc2b   : > { %17226 = vpow2.f32 %v14090_v53  ;;  %v14091_v57 = vmul.f32 -1.442695, %v8624_v49  ;;  %v14092_v1 = vmul.f32 -1.442695, %v8665_v62  ;;  %v16364_v53 = vld [vmem:[%s22469_s5 + $0x1e4] ss:$16 sps:$4 sm:$0xff]  }
 0xc2c   : > { %v8626_v59 = vpop.f32.mrf.mxu0  ;;  %v8667_v60 = vpop.f32.mrf.mxu1  ;;  %v16367_v49 = vld [vmem:[%s22469_s5 + $0x1ec] ss:$16 sps:$4 sm:$0xff]   ;;  %v16362_v0 = vld [vmem:[%s22469_s5 + $0x1e0] ss:$16 sps:$4 sm:$0xff]   ;;  %v16365_v56 = vld [vmem:[%s22469_s5 + $0x1e8] ss:$16 sps:$4 sm:$0xff]  }
 0xc2d   : > { %17228 = vpow2.f32 %v14091_v57  ;;  %v16370_v57 = vld [vmem:[%s22469_s5 + $0x1c4] ss:$16 sps:$4 sm:$0xff]   ;;  %v16373_v59 = vld [vmem:[%s22469_s5 + $0x1cc] ss:$16 sps:$4 sm:$0xff]   ;;  %v16368_v60 = vld [vmem:[%s22469_s5 + $0x1c0] ss:$16 sps:$4 sm:$0xff]  }
 0xc2e   : > { %17230 = vtanh.f32 %v8663_v63  ;;  %v16371_v54 = vld [vmem:[%s22469_s5 + $0x1c8] ss:$16 sps:$4 sm:$0xff]   ;;  %v16379_v62 = vld [vmem:[%s22469_s5 + $0x1ac] ss:$16 sps:$4 sm:$0xff]   ;;  %v16374_v63 = vld [vmem:[%s22469_s5 + $0x1a0] ss:$16 sps:$4 sm:$0xff]  }
 0xc2f   : > { %17232 = vpow2.f32 %v14092_v1  ;;  %v16377_v1 = vld [vmem:[%s22469_s5 + $0x1a8] ss:$16 sps:$4 sm:$0xff]  }
 0xc38   : > { %v17227_v2 = vpop.eup %17226 }
 0xc39   : > { %v8672_v3 = vadd.f32 1.0, %v17227_v2  ;;  %v16382_v2 = vld [vmem:[%s22469_s5 + $0x184] ss:$16 sps:$4 sm:$0xff]  }
 0xc3a   : > { %v17229_v61 = vpop.eup %17228 }
 0xc3b   : > { %17234 = vrcp.f32 %v8672_v3  ;;  %v8678_v14 = vadd.f32 1.0, %v17229_v61  ;;  %v17231_v4 = vpop.eup %17230  ;;  %v16385_v3 = vld [vmem:[%s22469_s5 + $0x18c] ss:$16 sps:$4 sm:$0xff]   ;;  %v16380_v61 = vld [vmem:[%s22469_s5 + $0x180] ss:$16 sps:$4 sm:$0xff]  }
 0xc3c   : > { %v17233_v5 = vpop.eup %17232 }
 0xc3d   : > { %17236 = vrcp.f32 %v8678_v14  ;;  %v8685_v10 = vadd.f32 1.0, %v17233_v5  ;;  %v16383_v14 = vld [vmem:[%s22469_s5 + $0x188] ss:$16 sps:$4 sm:$0xff]   ;;  %v16388_v5 = vld [vmem:[%s22469_s5 + $0x164] ss:$16 sps:$4 sm:$0xff]  }
 0xc3f   : > { %17238 = vrcp.f32 %v8685_v10  ;;  %v16397_v10 = vld [vmem:[%s22469_s5 + $0x14c] ss:$16 sps:$4 sm:$0xff]  }
 0xc48   : > { %v17235_v7 = vpop.eup %17234 }
 0xc49   : > { %v8690_v15 = vmul.f32 %v17235_v7, %v17231_v4  ;;  %v16386_v4 = vld [vmem:[%s22469_s5 + $0x160] ss:$16 sps:$4 sm:$0xff]   ;;  %v16389_v7 = vld [vmem:[%s22469_s5 + $0x168] ss:$16 sps:$4 sm:$0xff]  }
 0xc4a   : > { %v17237_v8 = vpop.eup %17236 }
 0xc4b   : > { %v8689_v11 = vmul.f32 %v17237_v8, %v8688_v9  ;;  %v16391_v8 = vld [vmem:[%s22469_s5 + $0x16c] ss:$16 sps:$4 sm:$0xff]   ;;  %v16394_v9 = vld [vmem:[%s22469_s5 + $0x144] ss:$16 sps:$4 sm:$0xff]  }
 0xc4c   : > { %v17239_v17 = vpop.eup %17238 }
 0xc4d   : > { %v8691_v16 = vadd.f32 %v8690_v15, %v8689_v11  ;;  %v16392_v11 = vld [vmem:[%s22469_s5 + $0x140] ss:$16 sps:$4 sm:$0xff]   ;;  %v16395_v15 = vld [vmem:[%s22469_s5 + $0x148] ss:$16 sps:$4 sm:$0xff]  }
 0xc4f   : > { %17240 = vtanh.f32 %v8691_v16  ;;  %8695 = vst [vmem:[#allocation3 + $0x8] sm:$0xff] %v8691_v16  ;;  %v16400_v16 = vld [vmem:[%s22469_s5 + $0x124] ss:$16 sps:$4 sm:$0xff]  }
 0xc5c   : > { %v17241_v18 = vpop.eup %17240 }
 0xc5d   : > { %v8693_v19 = vmul.f32 %v17241_v18, %v17239_v17  ;;  %v16403_v17 = vld [vmem:[%s22469_s5 + $0x12c] ss:$16 sps:$4 sm:$0xff]   ;;  %v16398_v18 = vld [vmem:[%s22469_s5 + $0x120] ss:$16 sps:$4 sm:$0xff]  }
 0xc5f   : > { %v20999_v20 = vpack.c.bf16 %v8693_v19, %v8693_v19  ;;  %v16401_v19 = vld [vmem:[%s22469_s5 + $0x128] ss:$16 sps:$4 sm:$0xff]  }
 0xc61   : > { %9138 = vmatmul.mubr.bf16.vlgmr.msra.gmra.mxu0 %v20999_v20  ;;  %9179 = vmatmul.mubr.bf16.vlgmr.msra.gmra.mxu1 %v20999_v20 }
 0xc62   : > { %9655 = vmatprep.mubr.bf16.mxu0 %v9216_v24  ;;  %9696 = vmatprep.mubr.bf16.mxu1 %v9216_v24  ;;  %v16404_v24 = vld [vmem:[%s22469_s5 + $0x100] ss:$16 sps:$4 sm:$0xff]  }
 0xc63   : > { %9624 = vmatpush1.bf16.msra.mxu0 %v16314_v21  ;;  %9665 = vmatpush1.bf16.msra.mxu1 %v16317_v23  ;;  %v16406_v21 = vld [vmem:[%s22469_s5 + $0x104] ss:$16 sps:$4 sm:$0xff]   ;;  %v16409_v23 = vld [vmem:[%s22469_s5 + $0x10c] ss:$16 sps:$4 sm:$0xff]  }
 0xc64   : > { %9625 = vmatprep.subr.bf16.mxu0 %v16322_v25  ;;  %9666 = vmatprep.subr.bf16.mxu1 %v16325_v27  ;;  %v16407_v25 = vld [vmem:[%s22469_s5 + $0x108] ss:$16 sps:$4 sm:$0xff]   ;;  %v16412_v27 = vld [vmem:[%s22465_s1 + $0xe4] ss:$16 sps:$4 sm:$0xff]  }
 0xc67   : > { %9626 = vmatpush1.bf16.msra.mxu0 %v16320_v28  ;;  %9667 = vmatpush1.bf16.msra.mxu1 %v16323_v29  ;;  %v16415_v28 = vld [vmem:[%s22465_s1 + $0xec] ss:$16 sps:$4 sm:$0xff]   ;;  %v8763_v29 = vld [vmem:[%s22468_s4] sm:$0xf] }
 0xc68   : > { %9627 = vmatprep.subr.bf16.mxu0 %v16328_v30  ;;  %9668 = vmatprep.subr.bf16.mxu1 %v16331_v31  ;;  %v8768_v30 = vrot.slane %v8763_v29, %v17932_v12  ;;  %v8772_v31 = vrot.slane %v8763_v29, %v17934_v13 }
 0xc6b   : > { %9628 = vmatpush1.bf16.msra.mxu0 %v16326_v32  ;;  %9669 = vmatpush1.bf16.msra.mxu1 %v16329_v33 }
 0xc6c   : > { %9629 = vmatprep.subr.bf16.mxu0 %v16334_v34  ;;  %9670 = vmatprep.subr.bf16.mxu1 %v16337_v35 }
 0xc6f   : > { %9630 = vmatpush1.bf16.msra.mxu0 %v16332_v36  ;;  %9671 = vmatpush1.bf16.msra.mxu1 %v16335_v37 }
 0xc70   : > { %9631 = vmatprep.subr.bf16.mxu0 %v16340_v38  ;;  %9672 = vmatprep.subr.bf16.mxu1 %v16343_v40 }
 0xc73   : > { %9632 = vmatpush1.bf16.msra.mxu0 %v16338_v41  ;;  %9673 = vmatpush1.bf16.msra.mxu1 %v16341_v42 }
 0xc74   : > { %9633 = vmatprep.subr.bf16.mxu0 %v16346_v43  ;;  %9674 = vmatprep.subr.bf16.mxu1 %v16349_v39 }
 0xc77   : > { %9634 = vmatpush1.bf16.msra.mxu0 %v16344_v45  ;;  %9675 = vmatpush1.bf16.msra.mxu1 %v16347_v46  ;;  %v8780_v45 = vrot.slane %v8763_v29, %v17938_v22 }
 0xc78   : > { %9635 = vmatprep.subr.bf16.mxu0 %v16352_v47  ;;  %9676 = vmatprep.subr.bf16.mxu1 %v16355_v55  ;;  %v8776_v47 = vrot.slane %v8763_v29, %v17940_v26  ;;  %v16451_v29 = vld [vmem:[%s22465_s1 + $0x2c] ss:$16 sps:$4 sm:$0xff]  }
 0xc7b   : > { %9636 = vmatpush1.bf16.msra.mxu0 %v16350_v48  ;;  %9677 = vmatpush1.bf16.msra.mxu1 %v16353_v44 }
 0xc7c   : > { %9637 = vmatprep.subr.bf16.mxu0 %v16358_v58  ;;  %9678 = vmatprep.subr.bf16.mxu1 %v16361_v50 }
 0xc7f   : > { %9638 = vmatpush1.bf16.msra.mxu0 %v16356_v51  ;;  %9679 = vmatpush1.bf16.msra.mxu1 %v16359_v52 }
 0xc80   : > { %9639 = vmatprep.subr.bf16.mxu0 %v16364_v53  ;;  %9680 = vmatprep.subr.bf16.mxu1 %v16367_v49 }
 0xc83   : > { %9640 = vmatpush2.bf16.msra.mxu0 %v16362_v0  ;;  %9681 = vmatpush2.bf16.msra.mxu1 %v16365_v56  ;;  %v9206_v56 = vld [vmem:[#allocation3] sm:$0xff] }
 0xc84   : > { %9641 = vmatprep.subr.bf16.mxu0 %v16370_v57  ;;  %9682 = vmatprep.subr.bf16.mxu1 %v16373_v59 }
 0xc87   : > { %9642 = vmatpush2.bf16.msra.mxu0 %v16368_v60  ;;  %9683 = vmatpush2.bf16.msra.mxu1 %v16371_v54 }
 0xc88   : > { %9643 = vmatprep.subr.bf16.mxu0 %v16376_v6  ;;  %9684 = vmatprep.subr.bf16.mxu1 %v16379_v62 }
 0xc8b   : > { %9644 = vmatpush2.bf16.msra.mxu0 %v16374_v63  ;;  %9685 = vmatpush2.bf16.msra.mxu1 %v16377_v1  ;;  %v16410_v1 = vld [vmem:[%s22465_s1 + $0xe0] ss:$16 sps:$4 sm:$0xff]  }
 0xc8c   : > { %9645 = vmatprep.subr.bf16.mxu0 %v16382_v2  ;;  %9686 = vmatprep.subr.bf16.mxu1 %v16385_v3  ;;  %v16413_v2 = vld [vmem:[%s22465_s1 + $0xe8] ss:$16 sps:$4 sm:$0xff]  }
 0xc8f   : > { %9646 = vmatpush2.bf16.msra.mxu0 %v16380_v61  ;;  %9687 = vmatpush2.bf16.msra.mxu1 %v16383_v14  ;;  %v16418_v61 = vld [vmem:[%s22465_s1 + $0xc4] ss:$16 sps:$4 sm:$0xff]   ;;  %v16421_v14 = vld [vmem:[%s22465_s1 + $0xcc] ss:$16 sps:$4 sm:$0xff]  }
 0xc90   : > { %9647 = vmatprep.subr.bf16.mxu0 %v16388_v5  ;;  %9688 = vmatprep.subr.bf16.mxu1 %v16391_v8  ;;  %v16419_v5 = vld [vmem:[%s22465_s1 + $0xc8] ss:$16 sps:$4 sm:$0xff]   ;;  %v16427_v8 = vld [vmem:[%s22465_s1 + $0xac] ss:$16 sps:$4 sm:$0xff]  }
 0xc93   : > { %9648 = vmatpush2.bf16.msra.mxu0 %v16386_v4  ;;  %9689 = vmatpush2.bf16.msra.mxu1 %v16389_v7  ;;  %v16416_v4 = vld [vmem:[%s22465_s1 + $0xc0] ss:$16 sps:$4 sm:$0xff]   ;;  %v16424_v7 = vld [vmem:[%s22465_s1 + $0xa4] ss:$16 sps:$4 sm:$0xff]  }
 0xc94   : > { %9649 = vmatprep.subr.bf16.mxu0 %v16394_v9  ;;  %9690 = vmatprep.subr.bf16.mxu1 %v16397_v10  ;;  %v16422_v9 = vld [vmem:[%s22465_s1 + $0xa0] ss:$16 sps:$4 sm:$0xff]   ;;  %v16430_v10 = vld [vmem:[%s22465_s1 + $0x84] ss:$16 sps:$4 sm:$0xff]  }
 0xc97   : > { %9650 = vmatpush2.bf16.msra.mxu0 %v16392_v11  ;;  %9691 = vmatpush2.bf16.msra.mxu1 %v16395_v15  ;;  %v16433_v11 = vld [vmem:[%s22465_s1 + $0x8c] ss:$16 sps:$4 sm:$0xff]   ;;  %v16428_v15 = vld [vmem:[%s22465_s1 + $0x80] ss:$16 sps:$4 sm:$0xff]  }
 0xc98   : > { %9651 = vmatprep.subr.bf16.mxu0 %v16400_v16  ;;  %9692 = vmatprep.subr.bf16.mxu1 %v16403_v17  ;;  %v16431_v16 = vld [vmem:[%s22465_s1 + $0x88] ss:$16 sps:$4 sm:$0xff]   ;;  %v16436_v17 = vld [vmem:[%s22465_s1 + $0x64] ss:$16 sps:$4 sm:$0xff]  }
 0xc9b   : > { %9652 = vmatpush2.bf16.msra.mxu0 %v16398_v18  ;;  %9693 = vmatpush2.bf16.msra.mxu1 %v16401_v19  ;;  %v16439_v18 = vld [vmem:[%s22465_s1 + $0x6c] ss:$16 sps:$4 sm:$0xff]   ;;  %v16434_v19 = vld [vmem:[%s22465_s1 + $0x60] ss:$16 sps:$4 sm:$0xff]  }
 0xc9c   : > { %9653 = vmatprep.subr.bf16.mxu0 %v16406_v21  ;;  %9694 = vmatprep.subr.bf16.mxu1 %v16409_v23  ;;  %v16437_v21 = vld [vmem:[%s22465_s1 + $0x68] ss:$16 sps:$4 sm:$0xff]   ;;  %v16442_v23 = vld [vmem:[%s22465_s1 + $0x44] ss:$16 sps:$4 sm:$0xff]  }
 0xc9f   : > { %9654 = vmatpush2.bf16.msra.mxu0 %v16404_v24  ;;  %9695 = vmatpush2.bf16.msra.mxu1 %v16407_v25  ;;  %v16445_v24 = vld [vmem:[%s22465_s1 + $0x4c] ss:$16 sps:$4 sm:$0xff]   ;;  %v16440_v25 = vld [vmem:[%s22465_s1 + $0x40] ss:$16 sps:$4 sm:$0xff]  }
 0xca0   : > { %10145 = vmatprep.subr.bf16.mxu0 %v16412_v27  ;;  %10186 = vmatprep.subr.bf16.mxu1 %v16415_v28  ;;  %v16443_v27 = vld [vmem:[%s22465_s1 + $0x48] ss:$16 sps:$4 sm:$0xff]   ;;  %v16448_v28 = vld [vmem:[%s22465_s1 + $0x24] ss:$16 sps:$4 sm:$0xff]  }
 0xd21   : > { %v9139_v32 = vpop.f32.mrf.mxu0  ;;  %v9180_v33 = vpop.f32.mrf.mxu1 }
 0xd22   : > { %v9140_v34 = vadd.f32 %v9139_v32, %v8768_v30  ;;  %v9181_v44 = vadd.f32 %v9180_v33, %v8776_v47  ;;  %v16446_v30 = vld [vmem:[%s22465_s1 + $0x20] ss:$16 sps:$4 sm:$0xff]   ;;  %v16454_v32 = vld [vmem:[%s22465_s1 + $0x4] ss:$16 sps:$4 sm:$0xff]   ;;  %v16457_v33 = vld [vmem:[%s22465_s1 + $0xc] ss:$16 sps:$4 sm:$0xff]  }
 0xd23   : > { %v9141_v35 = vpop.f32.mrf.mxu0  ;;  %v9182_v36 = vpop.f32.mrf.mxu1  ;;  %v16470_v47 = vld [vmem:[%s22465_s1 + $0x1a0] ss:$16 sps:$4 sm:$0xff]  }
 0xd24   : > { %v14157_v37 = vmul.f32 -1.442695, %v9140_v34  ;;  %v9142_v38 = vadd.f32 %v9141_v35, %v8772_v31  ;;  %v9183_v46 = vadd.f32 %v9182_v36, %v8780_v45  ;;  %v16449_v31 = vld [vmem:[%s22465_s1 + $0x28] ss:$16 sps:$4 sm:$0xff]   ;;  %v16452_v34 = vld [vmem:[%s22465_s1] ss:$16 sps:$4 sm:$0xff]  }
 0xd25   : > { %v9143_v40 = vpop.f32.mrf.mxu0  ;;  %v9184_v41 = vpop.f32.mrf.mxu1  ;;  %v16455_v35 = vld [vmem:[%s22465_s1 + $0x8] ss:$16 sps:$4 sm:$0xff]   ;;  %v16460_v36 = vld [vmem:[%s22465_s1 + $0x1e4] ss:$16 sps:$4 sm:$0xff]  }
 0xd26   : > { %17242 = vpow2.f32 %v14157_v37  ;;  %v14158_v42 = vmul.f32 -1.442695, %v9142_v38  ;;  %v14159_v55 = vmul.f32 -1.442695, %v9183_v46  ;;  %v16463_v37 = vld [vmem:[%s22465_s1 + $0x1ec] ss:$16 sps:$4 sm:$0xff]  }
 0xd27   : > { %v9144_v43 = vpop.f32.mrf.mxu0  ;;  %v9185_v39 = vpop.f32.mrf.mxu1  ;;  %v16458_v38 = vld [vmem:[%s22465_s1 + $0x1e0] ss:$16 sps:$4 sm:$0xff]   ;;  %v16461_v40 = vld [vmem:[%s22465_s1 + $0x1e8] ss:$16 sps:$4 sm:$0xff]   ;;  %v16466_v41 = vld [vmem:[%s22465_s1 + $0x1c4] ss:$16 sps:$4 sm:$0xff]  }
 0xd28   : > { %17244 = vpow2.f32 %v14158_v42  ;;  %v16469_v42 = vld [vmem:[%s22465_s1 + $0x1cc] ss:$16 sps:$4 sm:$0xff]   ;;  %v16464_v43 = vld [vmem:[%s22465_s1 + $0x1c0] ss:$16 sps:$4 sm:$0xff]   ;;  %v16467_v39 = vld [vmem:[%s22465_s1 + $0x1c8] ss:$16 sps:$4 sm:$0xff]  }
 0xd29   : > { %17246 = vpow2.f32 %v14159_v55  ;;  %v16472_v45 = vld [vmem:[%s22465_s1 + $0x1a4] ss:$16 sps:$4 sm:$0xff]   ;;  %v16475_v46 = vld [vmem:[%s22465_s1 + $0x1ac] ss:$16 sps:$4 sm:$0xff]   ;;  %v16473_v55 = vld [vmem:[%s22465_s1 + $0x1a8] ss:$16 sps:$4 sm:$0xff]  }
 0xd33   : > { %v17243_v48 = vpop.eup %17242 }
 0xd34   : > { %v9190_v58 = vadd.f32 1.0, %v17243_v48  ;;  %v16478_v48 = vld [vmem:[%s22465_s1 + $0x184] ss:$16 sps:$4 sm:$0xff]  }
 0xd35   : > { %v17245_v50 = vpop.eup %17244 }
 0xd36   : > { %17248 = vrcp.f32 %v9190_v58  ;;  %v9196_v51 = vadd.f32 1.0, %v17245_v50  ;;  %v17247_v52 = vpop.eup %17246  ;;  %v16476_v58 = vld [vmem:[%s22465_s1 + $0x180] ss:$16 sps:$4 sm:$0xff]   ;;  %v16479_v50 = vld [vmem:[%s22465_s1 + $0x188] ss:$16 sps:$4 sm:$0xff]  }
 0xd37   : > { %17250 = vtanh.f32 %v9181_v44  ;;  %v9203_v57 = vadd.f32 1.0, %v17247_v52  ;;  %v16481_v44 = vld [vmem:[%s22465_s1 + $0x18c] ss:$16 sps:$4 sm:$0xff]  }
 0xd38   : > { %17252 = vrcp.f32 %v9196_v51  ;;  %v16484_v51 = vld [vmem:[%s22465_s1 + $0x164] ss:$16 sps:$4 sm:$0xff]   ;;  %v16487_v52 = vld [vmem:[%s22465_s1 + $0x16c] ss:$16 sps:$4 sm:$0xff]  }
 0xd39   : > { %17254 = vrcp.f32 %v9203_v57  ;;  %v16488_v57 = vld [vmem:[%s22465_s1 + $0x140] ss:$16 sps:$4 sm:$0xff]  }
 0xd43   : > { %v17249_v53 = vpop.eup %17248 }
 0xd44   : > { %v17251_v49 = vpop.eup %17250 }
 0xd45   : > { %v17253_v0 = vpop.eup %17252  ;;  %v9208_v59 = vmul.f32 %v17251_v49, %v17249_v53  ;;  %v16482_v53 = vld [vmem:[%s22465_s1 + $0x160] ss:$16 sps:$4 sm:$0xff]   ;;  %v16485_v49 = vld [vmem:[%s22465_s1 + $0x168] ss:$16 sps:$4 sm:$0xff]  }
 0xd46   : > { %v9207_v60 = vmul.f32 %v17253_v0, %v9206_v56  ;;  %v17255_v6 = vpop.eup %17254  ;;  %v16490_v0 = vld [vmem:[%s22465_s1 + $0x144] ss:$16 sps:$4 sm:$0xff]   ;;  %v16493_v56 = vld [vmem:[%s22465_s1 + $0x14c] ss:$16 sps:$4 sm:$0xff]  }
 0xd48   : > { %v9209_v54 = vadd.f32 %v9208_v59, %v9207_v60  ;;  %v16491_v59 = vld [vmem:[%s22465_s1 + $0x148] ss:$16 sps:$4 sm:$0xff]   ;;  %v16496_v60 = vld [vmem:[%s22465_s1 + $0x124] ss:$16 sps:$4 sm:$0xff]  }
 0xd4a   : > { %9213 = vst [vmem:[#allocation3] sm:$0xff] %v9209_v54  ;;  %17256 = vtanh.f32 %v9209_v54  ;;  %v16499_v54 = vld [vmem:[%s22465_s1 + $0x12c] ss:$16 sps:$4 sm:$0xff]  }
 0xd57   : > { %v17257_v62 = vpop.eup %17256 }
 0xd58   : > { %v9211_v63 = vmul.f32 %v17257_v62, %v17255_v6  ;;  %v16494_v6 = vld [vmem:[%s22465_s1 + $0x120] ss:$16 sps:$4 sm:$0xff]   ;;  %v16497_v62 = vld [vmem:[%s22465_s1 + $0x128] ss:$16 sps:$4 sm:$0xff]  }
 0xd5a   : > { %v21208_v3 = vpack.c.bf16 %v9211_v63, %v9211_v63  ;;  %v16502_v63 = vld [vmem:[%s22465_s1 + $0x104] ss:$16 sps:$4 sm:$0xff]  }
 0xd5c   : > { %9656 = vmatmul.mubr.bf16.vlgmr.msra.gmra.mxu0 %v21208_v3  ;;  %9697 = vmatmul.mubr.bf16.vlgmr.msra.gmra.mxu1 %v21208_v3 }
 0xd5d   : > { %10146 = vmatpush1.bf16.msra.mxu0 %v16410_v1  ;;  %10187 = vmatpush1.bf16.msra.mxu1 %v16413_v2  ;;  %v16505_v1 = vld [vmem:[%s22465_s1 + $0x10c] ss:$16 sps:$4 sm:$0xff]   ;;  %v16500_v2 = vld [vmem:[%s22465_s1 + $0x100] ss:$16 sps:$4 sm:$0xff]  }
 0xd5e   : > { %10177 = vmatprep.mubr.bf16.mxu0 %v20999_v20  ;;  %10218 = vmatprep.mubr.bf16.mxu1 %v20999_v20  ;;  %v16425_v20 = vld [vmem:[%s22465_s1 + $0xa8] ss:$16 sps:$4 sm:$0xff]  }
 0xd5f   : > { %10147 = vmatprep.subr.bf16.mxu0 %v16418_v61  ;;  %10188 = vmatprep.subr.bf16.mxu1 %v16421_v14  ;;  %v16503_v61 = vld [vmem:[%s22465_s1 + $0x108] ss:$16 sps:$4 sm:$0xff]   ;;  %v14228_v14 = vld [vmem:[%s17530_s18 + $0x30] sm:$0xff] }
 0xd61   : > { %10148 = vmatpush1.bf16.msra.mxu0 %v16416_v4  ;;  %10189 = vmatpush1.bf16.msra.mxu1 %v16419_v5  ;;  %v9737_v4 = vpack.c.bf16 %v14228_v14, %v14228_v14  ;;  %v16506_v5 = vld [vmem:[%s22467_s3 + $0xe0] ss:$16 sps:$4 sm:$0xff]  }
 0xd62   : > { %10149 = vmatprep.subr.bf16.mxu0 %v16424_v7  ;;  %10190 = vmatprep.subr.bf16.mxu1 %v16427_v8  ;;  %v16508_v7 = vld [vmem:[%s22467_s3 + $0xe4] ss:$16 sps:$4 sm:$0xff]   ;;  %v16509_v8 = vld [vmem:[%s22467_s3 + $0xe8] ss:$16 sps:$4 sm:$0xff]   ;;  %v16590_v14 = vld [vmem:[%s22467_s3 + $0x120] ss:$16 sps:$4 sm:$0xff]  }
 0xd65   : > { %10150 = vmatpush1.bf16.msra.mxu0 %v16422_v9  ;;  %10191 = vmatpush1.bf16.msra.mxu1 %v16425_v20  ;;  %v16511_v9 = vld [vmem:[%s22467_s3 + $0xec] ss:$16 sps:$4 sm:$0xff]  }
 0xd66   : > { %10151 = vmatprep.subr.bf16.mxu0 %v16430_v10  ;;  %10192 = vmatprep.subr.bf16.mxu1 %v16433_v11  ;;  %v16517_v20 = vld [vmem:[%s22467_s3 + $0xcc] ss:$16 sps:$4 sm:$0xff]   ;;  %v16512_v10 = vld [vmem:[%s22467_s3 + $0xc0] ss:$16 sps:$4 sm:$0xff]   ;;  %v16515_v11 = vld [vmem:[%s22467_s3 + $0xc8] ss:$16 sps:$4 sm:$0xff]  }
 0xd69   : > { %10152 = vmatpush1.bf16.msra.mxu0 %v16428_v15  ;;  %10193 = vmatpush1.bf16.msra.mxu1 %v16431_v16  ;;  %v16520_v15 = vld [vmem:[%s22467_s3 + $0xa4] ss:$16 sps:$4 sm:$0xff]   ;;  %v16523_v16 = vld [vmem:[%s22467_s3 + $0xac] ss:$16 sps:$4 sm:$0xff]  }
 0xd6a   : > { %10153 = vmatprep.subr.bf16.mxu0 %v16436_v17  ;;  %10194 = vmatprep.subr.bf16.mxu1 %v16439_v18  ;;  %v16518_v17 = vld [vmem:[%s22467_s3 + $0xa0] ss:$16 sps:$4 sm:$0xff]   ;;  %v16521_v18 = vld [vmem:[%s22467_s3 + $0xa8] ss:$16 sps:$4 sm:$0xff]  }
 0xd6d   : > { %10154 = vmatpush1.bf16.msra.mxu0 %v16434_v19  ;;  %10195 = vmatpush1.bf16.msra.mxu1 %v16437_v21  ;;  %v16526_v19 = vld [vmem:[%s22467_s3 + $0x84] ss:$16 sps:$4 sm:$0xff]   ;;  %v16529_v21 = vld [vmem:[%s22467_s3 + $0x8c] ss:$16 sps:$4 sm:$0xff]  }
 0xd6e   : > { %10155 = vmatprep.subr.bf16.mxu0 %v16442_v23  ;;  %10196 = vmatprep.subr.bf16.mxu1 %v16445_v24  ;;  %v16524_v23 = vld [vmem:[%s22467_s3 + $0x80] ss:$16 sps:$4 sm:$0xff]   ;;  %v16527_v24 = vld [vmem:[%s22467_s3 + $0x88] ss:$16 sps:$4 sm:$0xff]  }
 0xd71   : > { %10156 = vmatpush1.bf16.msra.mxu0 %v16440_v25  ;;  %10197 = vmatpush1.bf16.msra.mxu1 %v16443_v27  ;;  %v16532_v25 = vld [vmem:[%s22467_s3 + $0x64] ss:$16 sps:$4 sm:$0xff]   ;;  %v16535_v27 = vld [vmem:[%s22467_s3 + $0x6c] ss:$16 sps:$4 sm:$0xff]  }
 0xd72   : > { %10157 = vmatprep.subr.bf16.mxu0 %v16448_v28  ;;  %10198 = vmatprep.subr.bf16.mxu1 %v16451_v29  ;;  %v16530_v28 = vld [vmem:[%s22467_s3 + $0x60] ss:$16 sps:$4 sm:$0xff]   ;;  %v16533_v29 = vld [vmem:[%s22467_s3 + $0x68] ss:$16 sps:$4 sm:$0xff]  }
 0xd75   : > { %10158 = vmatpush1.bf16.msra.mxu0 %v16446_v30  ;;  %10199 = vmatpush1.bf16.msra.mxu1 %v16449_v31  ;;  %v16538_v30 = vld [vmem:[%s22467_s3 + $0x44] ss:$16 sps:$4 sm:$0xff]   ;;  %v16541_v31 = vld [vmem:[%s22467_s3 + $0x4c] ss:$16 sps:$4 sm:$0xff]  }
 0xd76   : > { %10159 = vmatprep.subr.bf16.mxu0 %v16454_v32  ;;  %10200 = vmatprep.subr.bf16.mxu1 %v16457_v33  ;;  %v16536_v32 = vld [vmem:[%s22467_s3 + $0x40] ss:$16 sps:$4 sm:$0xff]   ;;  %v16539_v33 = vld [vmem:[%s22467_s3 + $0x48] ss:$16 sps:$4 sm:$0xff]  }
 0xd79   : > { %10160 = vmatpush1.bf16.msra.mxu0 %v16452_v34  ;;  %10201 = vmatpush1.bf16.msra.mxu1 %v16455_v35  ;;  %v16544_v34 = vld [vmem:[%s22467_s3 + $0x24] ss:$16 sps:$4 sm:$0xff]   ;;  %v16547_v35 = vld [vmem:[%s22467_s3 + $0x2c] ss:$16 sps:$4 sm:$0xff]  }
 0xd7a   : > { %10161 = vmatprep.subr.bf16.mxu0 %v16460_v36  ;;  %10202 = vmatprep.subr.bf16.mxu1 %v16463_v37  ;;  %v16542_v36 = vld [vmem:[%s22467_s3 + $0x20] ss:$16 sps:$4 sm:$0xff]   ;;  %v16545_v37 = vld [vmem:[%s22467_s3 + $0x28] ss:$16 sps:$4 sm:$0xff]  }
 0xd7d   : > { %10162 = vmatpush2.bf16.msra.mxu0 %v16458_v38  ;;  %10203 = vmatpush2.bf16.msra.mxu1 %v16461_v40  ;;  %v16550_v38 = vld [vmem:[%s22467_s3 + $0x4] ss:$16 sps:$4 sm:$0xff]   ;;  %v16553_v40 = vld [vmem:[%s22467_s3 + $0xc] ss:$16 sps:$4 sm:$0xff]  }
 0xd7e   : > { %10163 = vmatprep.subr.bf16.mxu0 %v16466_v41  ;;  %10204 = vmatprep.subr.bf16.mxu1 %v16469_v42  ;;  %v16548_v41 = vld [vmem:[%s22467_s3] ss:$16 sps:$4 sm:$0xff]   ;;  %v16551_v42 = vld [vmem:[%s22467_s3 + $0x8] ss:$16 sps:$4 sm:$0xff]  }
 0xd81   : > { %10164 = vmatpush2.bf16.msra.mxu0 %v16464_v43  ;;  %10205 = vmatpush2.bf16.msra.mxu1 %v16467_v39  ;;  %v16556_v43 = vld [vmem:[%s22467_s3 + $0x1e4] ss:$16 sps:$4 sm:$0xff]   ;;  %v16559_v39 = vld [vmem:[%s22467_s3 + $0x1ec] ss:$16 sps:$4 sm:$0xff]  }
 0xd82   : > { %10165 = vmatprep.subr.bf16.mxu0 %v16472_v45  ;;  %10206 = vmatprep.subr.bf16.mxu1 %v16475_v46  ;;  %v16554_v45 = vld [vmem:[%s22467_s3 + $0x1e0] ss:$16 sps:$4 sm:$0xff]   ;;  %v16557_v46 = vld [vmem:[%s22467_s3 + $0x1e8] ss:$16 sps:$4 sm:$0xff]  }
 0xd85   : > { %10166 = vmatpush2.bf16.msra.mxu0 %v16470_v47  ;;  %10207 = vmatpush2.bf16.msra.mxu1 %v16473_v55  ;;  %v16562_v47 = vld [vmem:[%s22467_s3 + $0x1c4] ss:$16 sps:$4 sm:$0xff]   ;;  %v16565_v55 = vld [vmem:[%s22467_s3 + $0x1cc] ss:$16 sps:$4 sm:$0xff]  }
 0xd86   : > { %10167 = vmatprep.subr.bf16.mxu0 %v16478_v48  ;;  %10208 = vmatprep.subr.bf16.mxu1 %v16481_v44  ;;  %v16560_v48 = vld [vmem:[%s22467_s3 + $0x1c0] ss:$16 sps:$4 sm:$0xff]   ;;  %v16563_v44 = vld [vmem:[%s22467_s3 + $0x1c8] ss:$16 sps:$4 sm:$0xff]  }
 0xd89   : > { %10168 = vmatpush2.bf16.msra.mxu0 %v16476_v58  ;;  %10209 = vmatpush2.bf16.msra.mxu1 %v16479_v50  ;;  %v16568_v58 = vld [vmem:[%s22467_s3 + $0x1a4] ss:$16 sps:$4 sm:$0xff]   ;;  %v16571_v50 = vld [vmem:[%s22467_s3 + $0x1ac] ss:$16 sps:$4 sm:$0xff]  }
 0xd8a   : > { %10169 = vmatprep.subr.bf16.mxu0 %v16484_v51  ;;  %10210 = vmatprep.subr.bf16.mxu1 %v16487_v52  ;;  %v16566_v51 = vld [vmem:[%s22467_s3 + $0x1a0] ss:$16 sps:$4 sm:$0xff]   ;;  %v16569_v52 = vld [vmem:[%s22467_s3 + $0x1a8] ss:$16 sps:$4 sm:$0xff]  }
 0xd8d   : > { %10170 = vmatpush2.bf16.msra.mxu0 %v16482_v53  ;;  %10211 = vmatpush2.bf16.msra.mxu1 %v16485_v49  ;;  %v16574_v53 = vld [vmem:[%s22467_s3 + $0x184] ss:$16 sps:$4 sm:$0xff]   ;;  %v16577_v49 = vld [vmem:[%s22467_s3 + $0x18c] ss:$16 sps:$4 sm:$0xff]  }
 0xd8e   : > { %10171 = vmatprep.subr.bf16.mxu0 %v16490_v0  ;;  %10212 = vmatprep.subr.bf16.mxu1 %v16493_v56  ;;  %v16572_v0 = vld [vmem:[%s22467_s3 + $0x180] ss:$16 sps:$4 sm:$0xff]   ;;  %v16575_v56 = vld [vmem:[%s22467_s3 + $0x188] ss:$16 sps:$4 sm:$0xff]  }
 0xd91   : > { %10172 = vmatpush2.bf16.msra.mxu0 %v16488_v57  ;;  %10213 = vmatpush2.bf16.msra.mxu1 %v16491_v59  ;;  %v16578_v57 = vld [vmem:[%s22467_s3 + $0x160] ss:$16 sps:$4 sm:$0xff]   ;;  %v16580_v59 = vld [vmem:[%s22467_s3 + $0x164] ss:$16 sps:$4 sm:$0xff]  }
 0xd92   : > { %10173 = vmatprep.subr.bf16.mxu0 %v16496_v60  ;;  %10214 = vmatprep.subr.bf16.mxu1 %v16499_v54  ;;  %v16581_v60 = vld [vmem:[%s22467_s3 + $0x168] ss:$16 sps:$4 sm:$0xff]   ;;  %v16583_v54 = vld [vmem:[%s22467_s3 + $0x16c] ss:$16 sps:$4 sm:$0xff]  }
 0xd95   : > { %10174 = vmatpush2.bf16.msra.mxu0 %v16494_v6  ;;  %10215 = vmatpush2.bf16.msra.mxu1 %v16497_v62  ;;  %v16586_v6 = vld [vmem:[%s22467_s3 + $0x144] ss:$16 sps:$4 sm:$0xff]   ;;  %v16589_v62 = vld [vmem:[%s22467_s3 + $0x14c] ss:$16 sps:$4 sm:$0xff]  }
 0xd96   : > { %10175 = vmatprep.subr.bf16.mxu0 %v16502_v63  ;;  %10216 = vmatprep.subr.bf16.mxu1 %v16505_v1  ;;  %v16584_v63 = vld [vmem:[%s22467_s3 + $0x140] ss:$16 sps:$4 sm:$0xff]   ;;  %v16587_v1 = vld [vmem:[%s22467_s3 + $0x148] ss:$16 sps:$4 sm:$0xff]  }
 0xd99   : > { %10176 = vmatpush2.bf16.msra.mxu0 %v16500_v2  ;;  %10217 = vmatpush2.bf16.msra.mxu1 %v16503_v61  ;;  %v16592_v2 = vld [vmem:[%s22467_s3 + $0x124] ss:$16 sps:$4 sm:$0xff]   ;;  %v16595_v61 = vld [vmem:[%s22467_s3 + $0x12c] ss:$16 sps:$4 sm:$0xff]  }
 0xd9a   : > { %10663 = vmatprep.subr.bf16.mxu0 %v16508_v7  ;;  %10704 = vmatprep.subr.bf16.mxu1 %v16511_v9  ;;  %v16601_v7 = vld [vmem:[%s22467_s3 + $0x10c] ss:$16 sps:$4 sm:$0xff]   ;;  %v16599_v9 = vld [vmem:[%s22467_s3 + $0x108] ss:$16 sps:$4 sm:$0xff]  }
 0xd9c   : > { %10178 = vmatmul.mubr.bf16.vlgmr.msra.gmra.mxu0 %v9737_v4  ;;  %10219 = vmatmul.mubr.bf16.vlgmr.msra.gmra.mxu1 %v9737_v4  ;;  %v16593_v4 = vld [vmem:[%s22467_s3 + $0x128] ss:$16 sps:$4 sm:$0xff]  }
 0xd9d   : > { %10695 = vmatprep.mubr.bf16.mxu0 %v21208_v3  ;;  %10736 = vmatprep.mubr.bf16.mxu1 %v21208_v3  ;;  %v16514_v3 = vld [vmem:[%s22467_s3 + $0xc4] ss:$16 sps:$4 sm:$0xff]  }
 0xd9e   : > { %10664 = vmatpush1.bf16.msra.mxu0 %v16506_v5  ;;  %10705 = vmatpush1.bf16.msra.mxu1 %v16509_v8  ;;  %v16598_v5 = vld [vmem:[%s22467_s3 + $0x104] ss:$16 sps:$4 sm:$0xff]   ;;  %v16596_v8 = vld [vmem:[%s22467_s3 + $0x100] ss:$16 sps:$4 sm:$0xff]  }
 0xd9f   : > { %10665 = vmatprep.subr.bf16.mxu0 %v16514_v3  ;;  %10706 = vmatprep.subr.bf16.mxu1 %v16517_v20  ;;  %v9281_v3 = vld [vmem:[%s22470_s6] sm:$0xf]  ;;  %v16604_v20 = vld [vmem:[%s22469_s5 + $0xe4] ss:$16 sps:$4 sm:$0xff]  }
 0xda2   : > { %10666 = vmatpush1.bf16.msra.mxu0 %v16512_v10  ;;  %10707 = vmatpush1.bf16.msra.mxu1 %v16515_v11  ;;  %v9286_v10 = vrot.slane %v9281_v3, %v17932_v12  ;;  %v16607_v11 = vld [vmem:[%s22469_s5 + $0xec] ss:$16 sps:$4 sm:$0xff]  }
 0xda3   : > { %10667 = vmatprep.subr.bf16.mxu0 %v16520_v15  ;;  %10708 = vmatprep.subr.bf16.mxu1 %v16523_v16  ;;  %v9290_v15 = vrot.slane %v9281_v3, %v17934_v13 }
 0xda6   : > { %10668 = vmatpush1.bf16.msra.mxu0 %v16518_v17  ;;  %10709 = vmatpush1.bf16.msra.mxu1 %v16521_v18 }
 0xda7   : > { %10669 = vmatprep.subr.bf16.mxu0 %v16526_v19  ;;  %10710 = vmatprep.subr.bf16.mxu1 %v16529_v21 }
 0xdaa   : > { %10670 = vmatpush1.bf16.msra.mxu0 %v16524_v23  ;;  %10711 = vmatpush1.bf16.msra.mxu1 %v16527_v24 }
 0xdab   : > { %10671 = vmatprep.subr.bf16.mxu0 %v16532_v25  ;;  %10712 = vmatprep.subr.bf16.mxu1 %v16535_v27 }
 0xdae   : > { %10672 = vmatpush1.bf16.msra.mxu0 %v16530_v28  ;;  %10713 = vmatpush1.bf16.msra.mxu1 %v16533_v29 }
 0xdaf   : > { %10673 = vmatprep.subr.bf16.mxu0 %v16538_v30  ;;  %10714 = vmatprep.subr.bf16.mxu1 %v16541_v31  ;;  %v9298_v31 = vrot.slane %v9281_v3, %v17938_v22 }
 0xdb2   : > { %10674 = vmatpush1.bf16.msra.mxu0 %v16536_v32  ;;  %10715 = vmatpush1.bf16.msra.mxu1 %v16539_v33  ;;  %v9294_v33 = vrot.slane %v9281_v3, %v17940_v26 }
 0xdb3   : > { %10675 = vmatprep.subr.bf16.mxu0 %v16544_v34  ;;  %10716 = vmatprep.subr.bf16.mxu1 %v16547_v35 }
 0xdb6   : > { %10676 = vmatpush1.bf16.msra.mxu0 %v16542_v36  ;;  %10717 = vmatpush1.bf16.msra.mxu1 %v16545_v37 }
 0xdb7   : > { %10677 = vmatprep.subr.bf16.mxu0 %v16550_v38  ;;  %10718 = vmatprep.subr.bf16.mxu1 %v16553_v40 }
 0xdba   : > { %10678 = vmatpush1.bf16.msra.mxu0 %v16548_v41  ;;  %10719 = vmatpush1.bf16.msra.mxu1 %v16551_v42 }
 0xdbb   : > { %10679 = vmatprep.subr.bf16.mxu0 %v16556_v43  ;;  %10720 = vmatprep.subr.bf16.mxu1 %v16559_v39 }
 0xdbe   : > { %10680 = vmatpush2.bf16.msra.mxu0 %v16554_v45  ;;  %10721 = vmatpush2.bf16.msra.mxu1 %v16557_v46  ;;  %v9724_v45 = vld [vmem:[#allocation3 + $0x10] sm:$0xff] }
 0xdbf   : > { %10681 = vmatprep.subr.bf16.mxu0 %v16562_v47  ;;  %10722 = vmatprep.subr.bf16.mxu1 %v16565_v55 }
 0xdc2   : > { %10682 = vmatpush2.bf16.msra.mxu0 %v16560_v48  ;;  %10723 = vmatpush2.bf16.msra.mxu1 %v16563_v44 }
 0xdc3   : > { %10683 = vmatprep.subr.bf16.mxu0 %v16568_v58  ;;  %10724 = vmatprep.subr.bf16.mxu1 %v16571_v50 }
 0xdc6   : > { %10684 = vmatpush2.bf16.msra.mxu0 %v16566_v51  ;;  %10725 = vmatpush2.bf16.msra.mxu1 %v16569_v52  ;;  %v9803_v51 = vld [vmem:[%s22466_s2] sm:$0xf] }
 0xdc7   : > { %10685 = vmatprep.subr.bf16.mxu0 %v16574_v53  ;;  %10726 = vmatprep.subr.bf16.mxu1 %v16577_v49  ;;  %v9808_v52 = vrot.slane %v9803_v51, %v17932_v12  ;;  %v9812_v53 = vrot.slane %v9803_v51, %v17934_v13 }
 0xdca   : > { %10686 = vmatpush2.bf16.msra.mxu0 %v16572_v0  ;;  %10727 = vmatpush2.bf16.msra.mxu1 %v16575_v56 }
 0xdcb   : > { %10687 = vmatprep.subr.bf16.mxu0 %v16580_v59  ;;  %10728 = vmatprep.subr.bf16.mxu1 %v16583_v54 }
 0xdce   : > { %10688 = vmatpush2.bf16.msra.mxu0 %v16578_v57  ;;  %10729 = vmatpush2.bf16.msra.mxu1 %v16581_v60 }
 0xdcf   : > { %10689 = vmatprep.subr.bf16.mxu0 %v16586_v6  ;;  %10730 = vmatprep.subr.bf16.mxu1 %v16589_v62 }
 0xdd2   : > { %10690 = vmatpush2.bf16.msra.mxu0 %v16584_v63  ;;  %10731 = vmatpush2.bf16.msra.mxu1 %v16587_v1 }
 0xdd3   : > { %10691 = vmatprep.subr.bf16.mxu0 %v16592_v2  ;;  %10732 = vmatprep.subr.bf16.mxu1 %v16595_v61  ;;  %v9820_v61 = vrot.slane %v9803_v51, %v17938_v22 }
 0xdd6   : > { %10692 = vmatpush2.bf16.msra.mxu0 %v16590_v14  ;;  %10733 = vmatpush2.bf16.msra.mxu1 %v16593_v4  ;;  %v9816_v14 = vrot.slane %v9803_v51, %v17940_v26  ;;  %v16640_v51 = vld [vmem:[%s22469_s5 + $0x24] ss:$16 sps:$4 sm:$0xff]  }
 0xdd7   : > { %10693 = vmatprep.subr.bf16.mxu0 %v16598_v5  ;;  %10734 = vmatprep.subr.bf16.mxu1 %v16601_v7 }
 0xdda   : > { %10694 = vmatpush2.bf16.msra.mxu0 %v16596_v8  ;;  %10735 = vmatpush2.bf16.msra.mxu1 %v16599_v9 }
 0xddb   : > { %11181 = vmatprep.subr.bf16.mxu0 %v16604_v20  ;;  %11222 = vmatprep.subr.bf16.mxu1 %v16607_v11 }
 0xe1c   : > { %v9657_v16 = vpop.f32.mrf.mxu0  ;;  %v9698_v17 = vpop.f32.mrf.mxu1 }
 0xe1d   : > { %v9658_v18 = vadd.f32 %v9657_v16, %v9286_v10  ;;  %v9699_v36 = vadd.f32 %v9698_v17, %v9294_v33  ;;  %v10246_v17 = vld [vmem:[#allocation3 + $0x8] sm:$0xff]  ;;  %v16613_v33 = vld [vmem:[%s22469_s5 + $0xcc] ss:$16 sps:$4 sm:$0xff]  }
 0xe1e   : > { %v9659_v19 = vpop.f32.mrf.mxu0  ;;  %v9700_v21 = vpop.f32.mrf.mxu1 }
 0xe1f   : > { %v14224_v23 = vmul.f32 -1.442695, %v9658_v18  ;;  %v9660_v24 = vadd.f32 %v9659_v19, %v9290_v15  ;;  %v9701_v32 = vadd.f32 %v9700_v21, %v9298_v31 }
 0xe20   : > { %v9661_v25 = vpop.f32.mrf.mxu0  ;;  %v9702_v27 = vpop.f32.mrf.mxu1 }
 0xe21   : > { %17258 = vpow2.f32 %v14224_v23  ;;  %v14225_v28 = vmul.f32 -1.442695, %v9660_v24  ;;  %v14226_v34 = vmul.f32 -1.442695, %v9701_v32  ;;  %v16610_v32 = vld [vmem:[%s22469_s5 + $0xc4] ss:$16 sps:$4 sm:$0xff]  }
 0xe22   : > { %v9662_v29 = vpop.f32.mrf.mxu0  ;;  %v9703_v30 = vpop.f32.mrf.mxu1 }
 0xe23   : > { %17260 = vpow2.f32 %v14225_v28  ;;  %v16602_v29 = vld [vmem:[%s22469_s5 + $0xe0] ss:$16 sps:$4 sm:$0xff]   ;;  %v16605_v30 = vld [vmem:[%s22469_s5 + $0xe8] ss:$16 sps:$4 sm:$0xff]  }
 0xe24   : > { %17262 = vpow2.f32 %v14226_v34  ;;  %v16608_v34 = vld [vmem:[%s22469_s5 + $0xc0] ss:$16 sps:$4 sm:$0xff]  }
 0xe2e   : > { %v17259_v35 = vpop.eup %17258 }
 0xe2f   : > { %v9708_v37 = vadd.f32 1.0, %v17259_v35  ;;  %v16611_v35 = vld [vmem:[%s22469_s5 + $0xc8] ss:$16 sps:$4 sm:$0xff]  }
 0xe30   : > { %v17261_v38 = vpop.eup %17260 }
 0xe31   : > { %17264 = vrcp.f32 %v9708_v37  ;;  %v9714_v40 = vadd.f32 1.0, %v17261_v38  ;;  %v17263_v41 = vpop.eup %17262  ;;  %v16619_v37 = vld [vmem:[%s22469_s5 + $0xac] ss:$16 sps:$4 sm:$0xff]   ;;  %v16614_v38 = vld [vmem:[%s22469_s5 + $0xa0] ss:$16 sps:$4 sm:$0xff]  }
 0xe32   : > { %17266 = vtanh.f32 %v9699_v36  ;;  %v9721_v46 = vadd.f32 1.0, %v17263_v41  ;;  %v16616_v36 = vld [vmem:[%s22469_s5 + $0xa4] ss:$16 sps:$4 sm:$0xff]  }
 0xe33   : > { %17268 = vrcp.f32 %v9714_v40  ;;  %v16617_v40 = vld [vmem:[%s22469_s5 + $0xa8] ss:$16 sps:$4 sm:$0xff]   ;;  %v16622_v41 = vld [vmem:[%s22469_s5 + $0x84] ss:$16 sps:$4 sm:$0xff]  }
 0xe34   : > { %17270 = vrcp.f32 %v9721_v46  ;;  %v16631_v46 = vld [vmem:[%s22469_s5 + $0x6c] ss:$16 sps:$4 sm:$0xff]  }
 0xe3e   : > { %v17265_v42 = vpop.eup %17264 }
 0xe3f   : > { %v17267_v43 = vpop.eup %17266 }
 0xe40   : > { %v17269_v39 = vpop.eup %17268  ;;  %v9726_v47 = vmul.f32 %v17267_v43, %v17265_v42  ;;  %v16625_v42 = vld [vmem:[%s22469_s5 + $0x8c] ss:$16 sps:$4 sm:$0xff]   ;;  %v16620_v43 = vld [vmem:[%s22469_s5 + $0x80] ss:$16 sps:$4 sm:$0xff]  }
 0xe41   : > { %v9725_v55 = vmul.f32 %v17269_v39, %v9724_v45  ;;  %v17271_v44 = vpop.eup %17270  ;;  %v16623_v39 = vld [vmem:[%s22469_s5 + $0x88] ss:$16 sps:$4 sm:$0xff]   ;;  %v16628_v45 = vld [vmem:[%s22469_s5 + $0x64] ss:$16 sps:$4 sm:$0xff]  }
 0xe43   : > { %v9727_v48 = vadd.f32 %v9726_v47, %v9725_v55  ;;  %v16626_v47 = vld [vmem:[%s22469_s5 + $0x60] ss:$16 sps:$4 sm:$0xff]   ;;  %v16629_v55 = vld [vmem:[%s22469_s5 + $0x68] ss:$16 sps:$4 sm:$0xff]  }
 0xe45   : > { %17272 = vtanh.f32 %v9727_v48  ;;  %9731 = vst [vmem:[#allocation3 + $0x10] sm:$0xff] %v9727_v48  ;;  %v16634_v48 = vld [vmem:[%s22469_s5 + $0x44] ss:$16 sps:$4 sm:$0xff]  }
 0xe52   : > { %v17273_v58 = vpop.eup %17272 }
 0xe53   : > { %v9729_v50 = vmul.f32 %v17273_v58, %v17271_v44  ;;  %v16637_v44 = vld [vmem:[%s22469_s5 + $0x4c] ss:$16 sps:$4 sm:$0xff]   ;;  %v16632_v58 = vld [vmem:[%s22469_s5 + $0x40] ss:$16 sps:$4 sm:$0xff]  }
 0xe55   : > { %14227 = vst [vmem:[%s17535_s21 + $0x28] sm:$0xff] %v9729_v50  ;;  %v10774_v31 = vpack.c.bf16 %v9729_v50, %v9729_v50  ;;  %v16635_v50 = vld [vmem:[%s22469_s5 + $0x48] ss:$16 sps:$4 sm:$0xff]  }
 0xe5c   : > { %v10179_v49 = vpop.f32.mrf.mxu0  ;;  %v10220_v0 = vpop.f32.mrf.mxu1 }
 0xe5d   : > { %v10180_v56 = vadd.f32 %v10179_v49, %v9808_v52  ;;  %v10221_v5 = vadd.f32 %v10220_v0, %v9816_v14  ;;  %v16643_v52 = vld [vmem:[%s22469_s5 + $0x2c] ss:$16 sps:$4 sm:$0xff]   ;;  %v16641_v49 = vld [vmem:[%s22469_s5 + $0x28] ss:$16 sps:$4 sm:$0xff]   ;;  %v16646_v0 = vld [vmem:[%s22469_s5 + $0x4] ss:$16 sps:$4 sm:$0xff]  }
 0xe5e   : > { %v10181_v57 = vpop.f32.mrf.mxu0  ;;  %v10222_v59 = vpop.f32.mrf.mxu1  ;;  %v16664_v14 = vld [vmem:[%s22469_s5 + $0x1a4] ss:$16 sps:$4 sm:$0xff]  }
 0xe5f   : > { %v14293_v60 = vmul.f32 -1.442695, %v10180_v56  ;;  %v10182_v54 = vadd.f32 %v10181_v57, %v9812_v53  ;;  %v10223_v4 = vadd.f32 %v10222_v59, %v9820_v61  ;;  %v16638_v53 = vld [vmem:[%s22469_s5 + $0x20] ss:$16 sps:$4 sm:$0xff]   ;;  %v16649_v56 = vld [vmem:[%s22469_s5 + $0xc] ss:$16 sps:$4 sm:$0xff]  }
 0xe60   : > { %v10183_v6 = vpop.f32.mrf.mxu0  ;;  %v10224_v62 = vpop.f32.mrf.mxu1  ;;  %v16644_v57 = vld [vmem:[%s22469_s5] ss:$16 sps:$4 sm:$0xff]   ;;  %v16647_v59 = vld [vmem:[%s22469_s5 + $0x8] ss:$16 sps:$4 sm:$0xff]  }
 0xe61   : > { %17274 = vpow2.f32 %v14293_v60  ;;  %v14294_v63 = vmul.f32 -1.442695, %v10182_v54  ;;  %v14295_v7 = vmul.f32 -1.442695, %v10223_v4  ;;  %v16652_v60 = vld [vmem:[%s22469_s5 + $0x1e4] ss:$16 sps:$4 sm:$0xff]  }
 0xe62   : > { %v10184_v1 = vpop.f32.mrf.mxu0  ;;  %v10225_v2 = vpop.f32.mrf.mxu1  ;;  %v16655_v54 = vld [vmem:[%s22469_s5 + $0x1ec] ss:$16 sps:$4 sm:$0xff]   ;;  %v16650_v6 = vld [vmem:[%s22469_s5 + $0x1e0] ss:$16 sps:$4 sm:$0xff]   ;;  %v16653_v62 = vld [vmem:[%s22469_s5 + $0x1e8] ss:$16 sps:$4 sm:$0xff]  }
 0xe63   : > { %17276 = vpow2.f32 %v14294_v63  ;;  %v16658_v63 = vld [vmem:[%s22469_s5 + $0x1c4] ss:$16 sps:$4 sm:$0xff]   ;;  %v16661_v1 = vld [vmem:[%s22469_s5 + $0x1cc] ss:$16 sps:$4 sm:$0xff]   ;;  %v16656_v2 = vld [vmem:[%s22469_s5 + $0x1c0] ss:$16 sps:$4 sm:$0xff]  }
 0xe64   : > { %17278 = vtanh.f32 %v10221_v5  ;;  %v16659_v61 = vld [vmem:[%s22469_s5 + $0x1c8] ss:$16 sps:$4 sm:$0xff]   ;;  %v16667_v4 = vld [vmem:[%s22469_s5 + $0x1ac] ss:$16 sps:$4 sm:$0xff]   ;;  %v16662_v5 = vld [vmem:[%s22469_s5 + $0x1a0] ss:$16 sps:$4 sm:$0xff]  }
 0xe65   : > { %17280 = vpow2.f32 %v14295_v7  ;;  %v16665_v7 = vld [vmem:[%s22469_s5 + $0x1a8] ss:$16 sps:$4 sm:$0xff]  }
 0xe6e   : > { %v17275_v8 = vpop.eup %17274 }
 0xe6f   : > { %v10230_v9 = vadd.f32 1.0, %v17275_v8  ;;  %v16670_v8 = vld [vmem:[%s22469_s5 + $0x184] ss:$16 sps:$4 sm:$0xff]  }
 0xe70   : > { %v17277_v3 = vpop.eup %17276 }
 0xe71   : > { %17282 = vrcp.f32 %v10230_v9  ;;  %v10236_v20 = vadd.f32 1.0, %v17277_v3  ;;  %v17279_v10 = vpop.eup %17278  ;;  %v16673_v9 = vld [vmem:[%s22469_s5 + $0x18c] ss:$16 sps:$4 sm:$0xff]   ;;  %v16668_v3 = vld [vmem:[%s22469_s5 + $0x180] ss:$16 sps:$4 sm:$0xff]  }
 0xe72   : > { %v17281_v11 = vpop.eup %17280 }
 0xe73   : > { %17284 = vrcp.f32 %v10236_v20  ;;  %v10243_v18 = vadd.f32 1.0, %v17281_v11  ;;  %v16671_v20 = vld [vmem:[%s22469_s5 + $0x188] ss:$16 sps:$4 sm:$0xff]   ;;  %v16676_v11 = vld [vmem:[%s22469_s5 + $0x164] ss:$16 sps:$4 sm:$0xff]  }
 0xe75   : > { %17286 = vrcp.f32 %v10243_v18  ;;  %v16685_v18 = vld [vmem:[%s22469_s5 + $0x14c] ss:$16 sps:$4 sm:$0xff]  }
 0xe7e   : > { %v17283_v15 = vpop.eup %17282 }
 0xe7f   : > { %v10248_v21 = vmul.f32 %v17283_v15, %v17279_v10  ;;  %v16674_v10 = vld [vmem:[%s22469_s5 + $0x160] ss:$16 sps:$4 sm:$0xff]   ;;  %v16677_v15 = vld [vmem:[%s22469_s5 + $0x168] ss:$16 sps:$4 sm:$0xff]  }
 0xe80   : > { %v17285_v16 = vpop.eup %17284 }
 0xe81   : > { %v10247_v19 = vmul.f32 %v17285_v16, %v10246_v17  ;;  %v16679_v16 = vld [vmem:[%s22469_s5 + $0x16c] ss:$16 sps:$4 sm:$0xff]   ;;  %v16682_v17 = vld [vmem:[%s22469_s5 + $0x144] ss:$16 sps:$4 sm:$0xff]  }
 0xe82   : > { %v17287_v24 = vpop.eup %17286 }
 0xe83   : > { %v10249_v23 = vadd.f32 %v10248_v21, %v10247_v19  ;;  %v16680_v19 = vld [vmem:[%s22469_s5 + $0x140] ss:$16 sps:$4 sm:$0xff]   ;;  %v16683_v21 = vld [vmem:[%s22469_s5 + $0x148] ss:$16 sps:$4 sm:$0xff]  }
 0xe85   : > { %17288 = vtanh.f32 %v10249_v23  ;;  %10253 = vst [vmem:[#allocation3 + $0x8] sm:$0xff] %v10249_v23  ;;  %v16688_v23 = vld [vmem:[%s22469_s5 + $0x124] ss:$16 sps:$4 sm:$0xff]  }
 0xe92   : > { %v17289_v25 = vpop.eup %17288 }
 0xe93   : > { %v10251_v27 = vmul.f32 %v17289_v25, %v17287_v24  ;;  %v16691_v24 = vld [vmem:[%s22469_s5 + $0x12c] ss:$16 sps:$4 sm:$0xff]   ;;  %v16686_v25 = vld [vmem:[%s22469_s5 + $0x120] ss:$16 sps:$4 sm:$0xff]  }
 0xe95   : > { %v21610_v28 = vpack.c.bf16 %v10251_v27, %v10251_v27  ;;  %v16689_v27 = vld [vmem:[%s22469_s5 + $0x128] ss:$16 sps:$4 sm:$0xff]  }
 0xe97   : > { %10696 = vmatmul.mubr.bf16.vlgmr.msra.gmra.mxu0 %v21610_v28  ;;  %10737 = vmatmul.mubr.bf16.vlgmr.msra.gmra.mxu1 %v21610_v28 }
 0xe98   : > { %11213 = vmatprep.mubr.bf16.mxu0 %v10774_v31  ;;  %11254 = vmatprep.mubr.bf16.mxu1 %v10774_v31  ;;  %v16692_v31 = vld [vmem:[%s22469_s5 + $0x100] ss:$16 sps:$4 sm:$0xff]  }
 0xe99   : > { %11182 = vmatpush1.bf16.msra.mxu0 %v16602_v29  ;;  %11223 = vmatpush1.bf16.msra.mxu1 %v16605_v30  ;;  %v16694_v29 = vld [vmem:[%s22469_s5 + $0x104] ss:$16 sps:$4 sm:$0xff]   ;;  %v16697_v30 = vld [vmem:[%s22469_s5 + $0x10c] ss:$16 sps:$4 sm:$0xff]  }
 0xe9a   : > { %11183 = vmatprep.subr.bf16.mxu0 %v16610_v32  ;;  %11224 = vmatprep.subr.bf16.mxu1 %v16613_v33  ;;  %v16695_v32 = vld [vmem:[%s22469_s5 + $0x108] ss:$16 sps:$4 sm:$0xff]   ;;  %v16700_v33 = vld [vmem:[%s22465_s1 + $0xe4] ss:$16 sps:$4 sm:$0xff]  }
 0xe9d   : > { %11184 = vmatpush1.bf16.msra.mxu0 %v16608_v34  ;;  %11225 = vmatpush1.bf16.msra.mxu1 %v16611_v35  ;;  %v16703_v34 = vld [vmem:[%s22465_s1 + $0xec] ss:$16 sps:$4 sm:$0xff]   ;;  %v10321_v35 = vld [vmem:[%s22468_s4] sm:$0xf] }
 0xe9e   : > { %11185 = vmatprep.subr.bf16.mxu0 %v16616_v36  ;;  %11226 = vmatprep.subr.bf16.mxu1 %v16619_v37  ;;  %v10326_v36 = vrot.slane %v10321_v35, %v17932_v12  ;;  %v10330_v37 = vrot.slane %v10321_v35, %v17934_v13 }
 0xea1   : > { %11186 = vmatpush1.bf16.msra.mxu0 %v16614_v38  ;;  %11227 = vmatpush1.bf16.msra.mxu1 %v16617_v40 }
 0xea2   : > { %11187 = vmatprep.subr.bf16.mxu0 %v16622_v41  ;;  %11228 = vmatprep.subr.bf16.mxu1 %v16625_v42 }
 0xea5   : > { %11188 = vmatpush1.bf16.msra.mxu0 %v16620_v43  ;;  %11229 = vmatpush1.bf16.msra.mxu1 %v16623_v39 }
 0xea6   : > { %11189 = vmatprep.subr.bf16.mxu0 %v16628_v45  ;;  %11230 = vmatprep.subr.bf16.mxu1 %v16631_v46 }
 0xea9   : > { %11190 = vmatpush1.bf16.msra.mxu0 %v16626_v47  ;;  %11231 = vmatpush1.bf16.msra.mxu1 %v16629_v55 }
 0xeaa   : > { %11191 = vmatprep.subr.bf16.mxu0 %v16634_v48  ;;  %11232 = vmatprep.subr.bf16.mxu1 %v16637_v44 }
 0xead   : > { %11192 = vmatpush1.bf16.msra.mxu0 %v16632_v58  ;;  %11233 = vmatpush1.bf16.msra.mxu1 %v16635_v50  ;;  %v10338_v58 = vrot.slane %v10321_v35, %v17938_v22 }
 0xeae   : > { %11193 = vmatprep.subr.bf16.mxu0 %v16640_v51  ;;  %11234 = vmatprep.subr.bf16.mxu1 %v16643_v52  ;;  %v10334_v51 = vrot.slane %v10321_v35, %v17940_v26  ;;  %v16739_v35 = vld [vmem:[%s22465_s1 + $0x2c] ss:$16 sps:$4 sm:$0xff]  }
 0xeb1   : > { %11194 = vmatpush1.bf16.msra.mxu0 %v16638_v53  ;;  %11235 = vmatpush1.bf16.msra.mxu1 %v16641_v49 }
 0xeb2   : > { %11195 = vmatprep.subr.bf16.mxu0 %v16646_v0  ;;  %11236 = vmatprep.subr.bf16.mxu1 %v16649_v56 }
 0xeb5   : > { %11196 = vmatpush1.bf16.msra.mxu0 %v16644_v57  ;;  %11237 = vmatpush1.bf16.msra.mxu1 %v16647_v59 }
 0xeb6   : > { %11197 = vmatprep.subr.bf16.mxu0 %v16652_v60  ;;  %11238 = vmatprep.subr.bf16.mxu1 %v16655_v54 }
 0xeb9   : > { %11198 = vmatpush2.bf16.msra.mxu0 %v16650_v6  ;;  %11239 = vmatpush2.bf16.msra.mxu1 %v16653_v62  ;;  %v10764_v62 = vld [vmem:[#allocation3] sm:$0xff] }
 0xeba   : > { %11199 = vmatprep.subr.bf16.mxu0 %v16658_v63  ;;  %11240 = vmatprep.subr.bf16.mxu1 %v16661_v1 }
 0xebd   : > { %11200 = vmatpush2.bf16.msra.mxu0 %v16656_v2  ;;  %11241 = vmatpush2.bf16.msra.mxu1 %v16659_v61 }
 0xebe   : > { %11201 = vmatprep.subr.bf16.mxu0 %v16664_v14  ;;  %11242 = vmatprep.subr.bf16.mxu1 %v16667_v4 }
 0xec1   : > { %11202 = vmatpush2.bf16.msra.mxu0 %v16662_v5  ;;  %11243 = vmatpush2.bf16.msra.mxu1 %v16665_v7  ;;  %v16698_v7 = vld [vmem:[%s22465_s1 + $0xe0] ss:$16 sps:$4 sm:$0xff]  }
 0xec2   : > { %11203 = vmatprep.subr.bf16.mxu0 %v16670_v8  ;;  %11244 = vmatprep.subr.bf16.mxu1 %v16673_v9  ;;  %v16701_v8 = vld [vmem:[%s22465_s1 + $0xe8] ss:$16 sps:$4 sm:$0xff]  }
 0xec5   : > { %11204 = vmatpush2.bf16.msra.mxu0 %v16668_v3  ;;  %11245 = vmatpush2.bf16.msra.mxu1 %v16671_v20  ;;  %v16706_v3 = vld [vmem:[%s22465_s1 + $0xc4] ss:$16 sps:$4 sm:$0xff]   ;;  %v16709_v20 = vld [vmem:[%s22465_s1 + $0xcc] ss:$16 sps:$4 sm:$0xff]  }
 0xec6   : > { %11205 = vmatprep.subr.bf16.mxu0 %v16676_v11  ;;  %11246 = vmatprep.subr.bf16.mxu1 %v16679_v16  ;;  %v16707_v11 = vld [vmem:[%s22465_s1 + $0xc8] ss:$16 sps:$4 sm:$0xff]   ;;  %v16715_v16 = vld [vmem:[%s22465_s1 + $0xac] ss:$16 sps:$4 sm:$0xff]  }
 0xec9   : > { %11206 = vmatpush2.bf16.msra.mxu0 %v16674_v10  ;;  %11247 = vmatpush2.bf16.msra.mxu1 %v16677_v15  ;;  %v16704_v10 = vld [vmem:[%s22465_s1 + $0xc0] ss:$16 sps:$4 sm:$0xff]   ;;  %v16712_v15 = vld [vmem:[%s22465_s1 + $0xa4] ss:$16 sps:$4 sm:$0xff]  }
 0xeca   : > { %11207 = vmatprep.subr.bf16.mxu0 %v16682_v17  ;;  %11248 = vmatprep.subr.bf16.mxu1 %v16685_v18  ;;  %v16710_v17 = vld [vmem:[%s22465_s1 + $0xa0] ss:$16 sps:$4 sm:$0xff]   ;;  %v16718_v18 = vld [vmem:[%s22465_s1 + $0x84] ss:$16 sps:$4 sm:$0xff]  }
 0xecd   : > { %11208 = vmatpush2.bf16.msra.mxu0 %v16680_v19  ;;  %11249 = vmatpush2.bf16.msra.mxu1 %v16683_v21  ;;  %v16721_v19 = vld [vmem:[%s22465_s1 + $0x8c] ss:$16 sps:$4 sm:$0xff]   ;;  %v16716_v21 = vld [vmem:[%s22465_s1 + $0x80] ss:$16 sps:$4 sm:$0xff]  }
 0xece   : > { %11209 = vmatprep.subr.bf16.mxu0 %v16688_v23  ;;  %11250 = vmatprep.subr.bf16.mxu1 %v16691_v24  ;;  %v16719_v23 = vld [vmem:[%s22465_s1 + $0x88] ss:$16 sps:$4 sm:$0xff]   ;;  %v16724_v24 = vld [vmem:[%s22465_s1 + $0x64] ss:$16 sps:$4 sm:$0xff]  }
 0xed1   : > { %11210 = vmatpush2.bf16.msra.mxu0 %v16686_v25  ;;  %11251 = vmatpush2.bf16.msra.mxu1 %v16689_v27  ;;  %v16727_v25 = vld [vmem:[%s22465_s1 + $0x6c] ss:$16 sps:$4 sm:$0xff]   ;;  %v16722_v27 = vld [vmem:[%s22465_s1 + $0x60] ss:$16 sps:$4 sm:$0xff]  }
 0xed2   : > { %11211 = vmatprep.subr.bf16.mxu0 %v16694_v29  ;;  %11252 = vmatprep.subr.bf16.mxu1 %v16697_v30  ;;  %v16725_v29 = vld [vmem:[%s22465_s1 + $0x68] ss:$16 sps:$4 sm:$0xff]   ;;  %v16730_v30 = vld [vmem:[%s22465_s1 + $0x44] ss:$16 sps:$4 sm:$0xff]  }
 0xed5   : > { %11212 = vmatpush2.bf16.msra.mxu0 %v16692_v31  ;;  %11253 = vmatpush2.bf16.msra.mxu1 %v16695_v32  ;;  %v16733_v31 = vld [vmem:[%s22465_s1 + $0x4c] ss:$16 sps:$4 sm:$0xff]   ;;  %v16728_v32 = vld [vmem:[%s22465_s1 + $0x40] ss:$16 sps:$4 sm:$0xff]  }
 0xed6   : > { %11703 = vmatprep.subr.bf16.mxu0 %v16700_v33  ;;  %11744 = vmatprep.subr.bf16.mxu1 %v16703_v34  ;;  %v16731_v33 = vld [vmem:[%s22465_s1 + $0x48] ss:$16 sps:$4 sm:$0xff]   ;;  %v16736_v34 = vld [vmem:[%s22465_s1 + $0x24] ss:$16 sps:$4 sm:$0xff]  }
 0xf57   : > { %v10697_v38 = vpop.f32.mrf.mxu0  ;;  %v10738_v40 = vpop.f32.mrf.mxu1 }
 0xf58   : > { %v10698_v41 = vadd.f32 %v10697_v38, %v10326_v36  ;;  %v10739_v49 = vadd.f32 %v10738_v40, %v10334_v51  ;;  %v16734_v36 = vld [vmem:[%s22465_s1 + $0x20] ss:$16 sps:$4 sm:$0xff]   ;;  %v16742_v38 = vld [vmem:[%s22465_s1 + $0x4] ss:$16 sps:$4 sm:$0xff]   ;;  %v16745_v40 = vld [vmem:[%s22465_s1 + $0xc] ss:$16 sps:$4 sm:$0xff]  }
 0xf59   : > { %v10699_v42 = vpop.f32.mrf.mxu0  ;;  %v10740_v43 = vpop.f32.mrf.mxu1  ;;  %v16758_v51 = vld [vmem:[%s22465_s1 + $0x1a0] ss:$16 sps:$4 sm:$0xff]  }
 0xf5a   : > { %v14360_v39 = vmul.f32 -1.442695, %v10698_v41  ;;  %v10700_v45 = vadd.f32 %v10699_v42, %v10330_v37  ;;  %v10741_v50 = vadd.f32 %v10740_v43, %v10338_v58  ;;  %v16737_v37 = vld [vmem:[%s22465_s1 + $0x28] ss:$16 sps:$4 sm:$0xff]   ;;  %v16740_v41 = vld [vmem:[%s22465_s1] ss:$16 sps:$4 sm:$0xff]  }
 0xf5b   : > { %v10701_v46 = vpop.f32.mrf.mxu0  ;;  %v10742_v47 = vpop.f32.mrf.mxu1  ;;  %v16743_v42 = vld [vmem:[%s22465_s1 + $0x8] ss:$16 sps:$4 sm:$0xff]   ;;  %v16748_v43 = vld [vmem:[%s22465_s1 + $0x1e4] ss:$16 sps:$4 sm:$0xff]  }
 0xf5c   : > { %17290 = vpow2.f32 %v14360_v39  ;;  %v14361_v55 = vmul.f32 -1.442695, %v10700_v45  ;;  %v14362_v52 = vmul.f32 -1.442695, %v10741_v50  ;;  %v16751_v39 = vld [vmem:[%s22465_s1 + $0x1ec] ss:$16 sps:$4 sm:$0xff]  }
 0xf5d   : > { %v10702_v48 = vpop.f32.mrf.mxu0  ;;  %v10743_v44 = vpop.f32.mrf.mxu1  ;;  %v16746_v45 = vld [vmem:[%s22465_s1 + $0x1e0] ss:$16 sps:$4 sm:$0xff]   ;;  %v16749_v46 = vld [vmem:[%s22465_s1 + $0x1e8] ss:$16 sps:$4 sm:$0xff]   ;;  %v16754_v47 = vld [vmem:[%s22465_s1 + $0x1c4] ss:$16 sps:$4 sm:$0xff]  }
 0xf5e   : > { %17292 = vpow2.f32 %v14361_v55  ;;  %v16757_v55 = vld [vmem:[%s22465_s1 + $0x1cc] ss:$16 sps:$4 sm:$0xff]   ;;  %v16752_v48 = vld [vmem:[%s22465_s1 + $0x1c0] ss:$16 sps:$4 sm:$0xff]   ;;  %v16755_v44 = vld [vmem:[%s22465_s1 + $0x1c8] ss:$16 sps:$4 sm:$0xff]  }
 0xf5f   : > { %17294 = vpow2.f32 %v14362_v52  ;;  %v16760_v58 = vld [vmem:[%s22465_s1 + $0x1a4] ss:$16 sps:$4 sm:$0xff]   ;;  %v16763_v50 = vld [vmem:[%s22465_s1 + $0x1ac] ss:$16 sps:$4 sm:$0xff]   ;;  %v16761_v52 = vld [vmem:[%s22465_s1 + $0x1a8] ss:$16 sps:$4 sm:$0xff]  }
 0xf69   : > { %v17291_v53 = vpop.eup %17290 }
 0xf6a   : > { %v10748_v0 = vadd.f32 1.0, %v17291_v53  ;;  %v16766_v53 = vld [vmem:[%s22465_s1 + $0x184] ss:$16 sps:$4 sm:$0xff]  }
 0xf6b   : > { %v17293_v56 = vpop.eup %17292 }
 0xf6c   : > { %17296 = vrcp.f32 %v10748_v0  ;;  %v10754_v57 = vadd.f32 1.0, %v17293_v56  ;;  %v17295_v59 = vpop.eup %17294  ;;  %v16764_v0 = vld [vmem:[%s22465_s1 + $0x180] ss:$16 sps:$4 sm:$0xff]   ;;  %v16767_v56 = vld [vmem:[%s22465_s1 + $0x188] ss:$16 sps:$4 sm:$0xff]  }
 0xf6d   : > { %17298 = vtanh.f32 %v10739_v49  ;;  %v10761_v63 = vadd.f32 1.0, %v17295_v59  ;;  %v16769_v49 = vld [vmem:[%s22465_s1 + $0x18c] ss:$16 sps:$4 sm:$0xff]  }
 0xf6e   : > { %17300 = vrcp.f32 %v10754_v57  ;;  %v16772_v57 = vld [vmem:[%s22465_s1 + $0x164] ss:$16 sps:$4 sm:$0xff]   ;;  %v16775_v59 = vld [vmem:[%s22465_s1 + $0x16c] ss:$16 sps:$4 sm:$0xff]  }
 0xf6f   : > { %17302 = vrcp.f32 %v10761_v63  ;;  %v16776_v63 = vld [vmem:[%s22465_s1 + $0x140] ss:$16 sps:$4 sm:$0xff]  }
 0xf79   : > { %v17297_v60 = vpop.eup %17296 }
 0xf7a   : > { %v17299_v54 = vpop.eup %17298 }
 0xf7b   : > { %v17301_v6 = vpop.eup %17300  ;;  %v10766_v1 = vmul.f32 %v17299_v54, %v17297_v60  ;;  %v16770_v60 = vld [vmem:[%s22465_s1 + $0x160] ss:$16 sps:$4 sm:$0xff]   ;;  %v16773_v54 = vld [vmem:[%s22465_s1 + $0x168] ss:$16 sps:$4 sm:$0xff]  }
 0xf7c   : > { %v10765_v2 = vmul.f32 %v17301_v6, %v10764_v62  ;;  %v17303_v14 = vpop.eup %17302  ;;  %v16778_v6 = vld [vmem:[%s22465_s1 + $0x144] ss:$16 sps:$4 sm:$0xff]   ;;  %v16781_v62 = vld [vmem:[%s22465_s1 + $0x14c] ss:$16 sps:$4 sm:$0xff]  }
 0xf7e   : > { %v10767_v61 = vadd.f32 %v10766_v1, %v10765_v2  ;;  %v16779_v1 = vld [vmem:[%s22465_s1 + $0x148] ss:$16 sps:$4 sm:$0xff]   ;;  %v16784_v2 = vld [vmem:[%s22465_s1 + $0x124] ss:$16 sps:$4 sm:$0xff]  }
 0xf80   : > { %10771 = vst [vmem:[#allocation3] sm:$0xff] %v10767_v61  ;;  %17304 = vtanh.f32 %v10767_v61  ;;  %v16787_v61 = vld [vmem:[%s22465_s1 + $0x12c] ss:$16 sps:$4 sm:$0xff]  }
 0xf8d   : > { %v17305_v4 = vpop.eup %17304 }
 0xf8e   : > { %v10769_v5 = vmul.f32 %v17305_v4, %v17303_v14  ;;  %v16782_v14 = vld [vmem:[%s22465_s1 + $0x120] ss:$16 sps:$4 sm:$0xff]   ;;  %v16785_v4 = vld [vmem:[%s22465_s1 + $0x128] ss:$16 sps:$4 sm:$0xff]  }
 0xf90   : > { %v21819_v9 = vpack.c.bf16 %v10769_v5, %v10769_v5  ;;  %v16790_v5 = vld [vmem:[%s22465_s1 + $0x104] ss:$16 sps:$4 sm:$0xff]  }
 0xf92   : > { %11214 = vmatmul.mubr.bf16.vlgmr.msra.gmra.mxu0 %v21819_v9  ;;  %11255 = vmatmul.mubr.bf16.vlgmr.msra.gmra.mxu1 %v21819_v9 }
 0xf93   : > { %11704 = vmatpush1.bf16.msra.mxu0 %v16698_v7  ;;  %11745 = vmatpush1.bf16.msra.mxu1 %v16701_v8  ;;  %v16793_v7 = vld [vmem:[%s22465_s1 + $0x10c] ss:$16 sps:$4 sm:$0xff]   ;;  %v16788_v8 = vld [vmem:[%s22465_s1 + $0x100] ss:$16 sps:$4 sm:$0xff]  }
 0xf94   : > { %11735 = vmatprep.mubr.bf16.mxu0 %v21610_v28  ;;  %11776 = vmatprep.mubr.bf16.mxu1 %v21610_v28  ;;  %v16713_v28 = vld [vmem:[%s22465_s1 + $0xa8] ss:$16 sps:$4 sm:$0xff]  }
 0xf95   : > { %11705 = vmatprep.subr.bf16.mxu0 %v16706_v3  ;;  %11746 = vmatprep.subr.bf16.mxu1 %v16709_v20  ;;  %v16791_v3 = vld [vmem:[%s22465_s1 + $0x108] ss:$16 sps:$4 sm:$0xff]  }
 0xf96   : > { %v14431_v20 = vld [vmem:[%s17530_s18 + $0x38] sm:$0xff] }
 0xf97   : > { %11706 = vmatpush1.bf16.msra.mxu0 %v16704_v10  ;;  %11747 = vmatpush1.bf16.msra.mxu1 %v16707_v11  ;;  %v11295_v10 = vpack.c.bf16 %v14431_v20, %v14431_v20  ;;  %v16794_v11 = vld [vmem:[%s22467_s3 + $0xe0] ss:$16 sps:$4 sm:$0xff]  }
 0xf98   : > { %11707 = vmatprep.subr.bf16.mxu0 %v16712_v15  ;;  %11748 = vmatprep.subr.bf16.mxu1 %v16715_v16  ;;  %v16796_v15 = vld [vmem:[%s22467_s3 + $0xe4] ss:$16 sps:$4 sm:$0xff]   ;;  %v16797_v16 = vld [vmem:[%s22467_s3 + $0xe8] ss:$16 sps:$4 sm:$0xff]   ;;  %v16878_v20 = vld [vmem:[%s22467_s3 + $0x120] ss:$16 sps:$4 sm:$0xff]  }
 0xf9b   : > { %11708 = vmatpush1.bf16.msra.mxu0 %v16710_v17  ;;  %11749 = vmatpush1.bf16.msra.mxu1 %v16713_v28  ;;  %v16799_v17 = vld [vmem:[%s22467_s3 + $0xec] ss:$16 sps:$4 sm:$0xff]  }
 0xf9c   : > { %11709 = vmatprep.subr.bf16.mxu0 %v16718_v18  ;;  %11750 = vmatprep.subr.bf16.mxu1 %v16721_v19  ;;  %v16805_v28 = vld [vmem:[%s22467_s3 + $0xcc] ss:$16 sps:$4 sm:$0xff]   ;;  %v16800_v18 = vld [vmem:[%s22467_s3 + $0xc0] ss:$16 sps:$4 sm:$0xff]   ;;  %v16803_v19 = vld [vmem:[%s22467_s3 + $0xc8] ss:$16 sps:$4 sm:$0xff]  }
 0xf9f   : > { %11710 = vmatpush1.bf16.msra.mxu0 %v16716_v21  ;;  %11751 = vmatpush1.bf16.msra.mxu1 %v16719_v23  ;;  %v16808_v21 = vld [vmem:[%s22467_s3 + $0xa4] ss:$16 sps:$4 sm:$0xff]   ;;  %v16811_v23 = vld [vmem:[%s22467_s3 + $0xac] ss:$16 sps:$4 sm:$0xff]  }
 0xfa0   : > { %11711 = vmatprep.subr.bf16.mxu0 %v16724_v24  ;;  %11752 = vmatprep.subr.bf16.mxu1 %v16727_v25  ;;  %v16806_v24 = vld [vmem:[%s22467_s3 + $0xa0] ss:$16 sps:$4 sm:$0xff]   ;;  %v16809_v25 = vld [vmem:[%s22467_s3 + $0xa8] ss:$16 sps:$4 sm:$0xff]  }
 0xfa3   : > { %11712 = vmatpush1.bf16.msra.mxu0 %v16722_v27  ;;  %11753 = vmatpush1.bf16.msra.mxu1 %v16725_v29  ;;  %v16814_v27 = vld [vmem:[%s22467_s3 + $0x84] ss:$16 sps:$4 sm:$0xff]   ;;  %v16817_v29 = vld [vmem:[%s22467_s3 + $0x8c] ss:$16 sps:$4 sm:$0xff]  }
 0xfa4   : > { %11713 = vmatprep.subr.bf16.mxu0 %v16730_v30  ;;  %11754 = vmatprep.subr.bf16.mxu1 %v16733_v31  ;;  %v16812_v30 = vld [vmem:[%s22467_s3 + $0x80] ss:$16 sps:$4 sm:$0xff]   ;;  %v16815_v31 = vld [vmem:[%s22467_s3 + $0x88] ss:$16 sps:$4 sm:$0xff]  }
 0xfa7   : > { %11714 = vmatpush1.bf16.msra.mxu0 %v16728_v32  ;;  %11755 = vmatpush1.bf16.msra.mxu1 %v16731_v33  ;;  %v16820_v32 = vld [vmem:[%s22467_s3 + $0x64] ss:$16 sps:$4 sm:$0xff]   ;;  %v16823_v33 = vld [vmem:[%s22467_s3 + $0x6c] ss:$16 sps:$4 sm:$0xff]  }
 0xfa8   : > { %11715 = vmatprep.subr.bf16.mxu0 %v16736_v34  ;;  %11756 = vmatprep.subr.bf16.mxu1 %v16739_v35  ;;  %v16818_v34 = vld [vmem:[%s22467_s3 + $0x60] ss:$16 sps:$4 sm:$0xff]   ;;  %v16821_v35 = vld [vmem:[%s22467_s3 + $0x68] ss:$16 sps:$4 sm:$0xff]  }
 0xfab   : > { %11716 = vmatpush1.bf16.msra.mxu0 %v16734_v36  ;;  %11757 = vmatpush1.bf16.msra.mxu1 %v16737_v37  ;;  %v16826_v36 = vld [vmem:[%s22467_s3 + $0x44] ss:$16 sps:$4 sm:$0xff]   ;;  %v16829_v37 = vld [vmem:[%s22467_s3 + $0x4c] ss:$16 sps:$4 sm:$0xff]  }
 0xfac   : > { %11717 = vmatprep.subr.bf16.mxu0 %v16742_v38  ;;  %11758 = vmatprep.subr.bf16.mxu1 %v16745_v40  ;;  %v16824_v38 = vld [vmem:[%s22467_s3 + $0x40] ss:$16 sps:$4 sm:$0xff]   ;;  %v16827_v40 = vld [vmem:[%s22467_s3 + $0x48] ss:$16 sps:$4 sm:$0xff]  }
 0xfaf   : > { %11718 = vmatpush1.bf16.msra.mxu0 %v16740_v41  ;;  %11759 = vmatpush1.bf16.msra.mxu1 %v16743_v42  ;;  %v16832_v41 = vld [vmem:[%s22467_s3 + $0x24] ss:$16 sps:$4 sm:$0xff]   ;;  %v16835_v42 = vld [vmem:[%s22467_s3 + $0x2c] ss:$16 sps:$4 sm:$0xff]  }
 0xfb0   : > { %11719 = vmatprep.subr.bf16.mxu0 %v16748_v43  ;;  %11760 = vmatprep.subr.bf16.mxu1 %v16751_v39  ;;  %v16830_v43 = vld [vmem:[%s22467_s3 + $0x20] ss:$16 sps:$4 sm:$0xff]   ;;  %v16833_v39 = vld [vmem:[%s22467_s3 + $0x28] ss:$16 sps:$4 sm:$0xff]  }
 0xfb3   : > { %11720 = vmatpush2.bf16.msra.mxu0 %v16746_v45  ;;  %11761 = vmatpush2.bf16.msra.mxu1 %v16749_v46  ;;  %v16838_v45 = vld [vmem:[%s22467_s3 + $0x4] ss:$16 sps:$4 sm:$0xff]   ;;  %v16841_v46 = vld [vmem:[%s22467_s3 + $0xc] ss:$16 sps:$4 sm:$0xff]  }
 0xfb4   : > { %11721 = vmatprep.subr.bf16.mxu0 %v16754_v47  ;;  %11762 = vmatprep.subr.bf16.mxu1 %v16757_v55  ;;  %v16836_v47 = vld [vmem:[%s22467_s3] ss:$16 sps:$4 sm:$0xff]   ;;  %v16839_v55 = vld [vmem:[%s22467_s3 + $0x8] ss:$16 sps:$4 sm:$0xff]  }
 0xfb7   : > { %11722 = vmatpush2.bf16.msra.mxu0 %v16752_v48  ;;  %11763 = vmatpush2.bf16.msra.mxu1 %v16755_v44  ;;  %v16844_v48 = vld [vmem:[%s22467_s3 + $0x1e4] ss:$16 sps:$4 sm:$0xff]   ;;  %v16847_v44 = vld [vmem:[%s22467_s3 + $0x1ec] ss:$16 sps:$4 sm:$0xff]  }
 0xfb8   : > { %11723 = vmatprep.subr.bf16.mxu0 %v16760_v58  ;;  %11764 = vmatprep.subr.bf16.mxu1 %v16763_v50  ;;  %v16842_v58 = vld [vmem:[%s22467_s3 + $0x1e0] ss:$16 sps:$4 sm:$0xff]   ;;  %v16845_v50 = vld [vmem:[%s22467_s3 + $0x1e8] ss:$16 sps:$4 sm:$0xff]  }
 0xfbb   : > { %11724 = vmatpush2.bf16.msra.mxu0 %v16758_v51  ;;  %11765 = vmatpush2.bf16.msra.mxu1 %v16761_v52  ;;  %v16850_v51 = vld [vmem:[%s22467_s3 + $0x1c4] ss:$16 sps:$4 sm:$0xff]   ;;  %v16853_v52 = vld [vmem:[%s22467_s3 + $0x1cc] ss:$16 sps:$4 sm:$0xff]  }
 0xfbc   : > { %11725 = vmatprep.subr.bf16.mxu0 %v16766_v53  ;;  %11766 = vmatprep.subr.bf16.mxu1 %v16769_v49  ;;  %v16848_v53 = vld [vmem:[%s22467_s3 + $0x1c0] ss:$16 sps:$4 sm:$0xff]   ;;  %v16851_v49 = vld [vmem:[%s22467_s3 + $0x1c8] ss:$16 sps:$4 sm:$0xff]  }
 0xfbf   : > { %11726 = vmatpush2.bf16.msra.mxu0 %v16764_v0  ;;  %11767 = vmatpush2.bf16.msra.mxu1 %v16767_v56  ;;  %v16856_v0 = vld [vmem:[%s22467_s3 + $0x1a4] ss:$16 sps:$4 sm:$0xff]   ;;  %v16859_v56 = vld [vmem:[%s22467_s3 + $0x1ac] ss:$16 sps:$4 sm:$0xff]  }
 0xfc0   : > { %11727 = vmatprep.subr.bf16.mxu0 %v16772_v57  ;;  %11768 = vmatprep.subr.bf16.mxu1 %v16775_v59  ;;  %v16854_v57 = vld [vmem:[%s22467_s3 + $0x1a0] ss:$16 sps:$4 sm:$0xff]   ;;  %v16857_v59 = vld [vmem:[%s22467_s3 + $0x1a8] ss:$16 sps:$4 sm:$0xff]  }
 0xfc3   : > { %11728 = vmatpush2.bf16.msra.mxu0 %v16770_v60  ;;  %11769 = vmatpush2.bf16.msra.mxu1 %v16773_v54  ;;  %v16862_v60 = vld [vmem:[%s22467_s3 + $0x184] ss:$16 sps:$4 sm:$0xff]   ;;  %v16865_v54 = vld [vmem:[%s22467_s3 + $0x18c] ss:$16 sps:$4 sm:$0xff]  }
 0xfc4   : > { %11729 = vmatprep.subr.bf16.mxu0 %v16778_v6  ;;  %11770 = vmatprep.subr.bf16.mxu1 %v16781_v62  ;;  %v16860_v6 = vld [vmem:[%s22467_s3 + $0x180] ss:$16 sps:$4 sm:$0xff]   ;;  %v16863_v62 = vld [vmem:[%s22467_s3 + $0x188] ss:$16 sps:$4 sm:$0xff]  }
 0xfc7   : > { %11730 = vmatpush2.bf16.msra.mxu0 %v16776_v63  ;;  %11771 = vmatpush2.bf16.msra.mxu1 %v16779_v1  ;;  %v16866_v63 = vld [vmem:[%s22467_s3 + $0x160] ss:$16 sps:$4 sm:$0xff]   ;;  %v16868_v1 = vld [vmem:[%s22467_s3 + $0x164] ss:$16 sps:$4 sm:$0xff]  }
 0xfc8   : > { %11731 = vmatprep.subr.bf16.mxu0 %v16784_v2  ;;  %11772 = vmatprep.subr.bf16.mxu1 %v16787_v61  ;;  %v16869_v2 = vld [vmem:[%s22467_s3 + $0x168] ss:$16 sps:$4 sm:$0xff]   ;;  %v16871_v61 = vld [vmem:[%s22467_s3 + $0x16c] ss:$16 sps:$4 sm:$0xff]  }
 0xfcb   : > { %11732 = vmatpush2.bf16.msra.mxu0 %v16782_v14  ;;  %11773 = vmatpush2.bf16.msra.mxu1 %v16785_v4  ;;  %v16874_v14 = vld [vmem:[%s22467_s3 + $0x144] ss:$16 sps:$4 sm:$0xff]   ;;  %v16877_v4 = vld [vmem:[%s22467_s3 + $0x14c] ss:$16 sps:$4 sm:$0xff]  }
 0xfcc   : > { %11733 = vmatprep.subr.bf16.mxu0 %v16790_v5  ;;  %11774 = vmatprep.subr.bf16.mxu1 %v16793_v7  ;;  %v16872_v5 = vld [vmem:[%s22467_s3 + $0x140] ss:$16 sps:$4 sm:$0xff]   ;;  %v16875_v7 = vld [vmem:[%s22467_s3 + $0x148] ss:$16 sps:$4 sm:$0xff]  }
 0xfcf   : > { %11734 = vmatpush2.bf16.msra.mxu0 %v16788_v8  ;;  %11775 = vmatpush2.bf16.msra.mxu1 %v16791_v3  ;;  %v16880_v8 = vld [vmem:[%s22467_s3 + $0x124] ss:$16 sps:$4 sm:$0xff]   ;;  %v16883_v3 = vld [vmem:[%s22467_s3 + $0x12c] ss:$16 sps:$4 sm:$0xff]  }
 0xfd0   : > { %12221 = vmatprep.subr.bf16.mxu0 %v16796_v15  ;;  %12262 = vmatprep.subr.bf16.mxu1 %v16799_v17  ;;  %v16889_v15 = vld [vmem:[%s22467_s3 + $0x10c] ss:$16 sps:$4 sm:$0xff]   ;;  %v16887_v17 = vld [vmem:[%s22467_s3 + $0x108] ss:$16 sps:$4 sm:$0xff]  }
 0xfd2   : > { %11736 = vmatmul.mubr.bf16.vlgmr.msra.gmra.mxu0 %v11295_v10  ;;  %11777 = vmatmul.mubr.bf16.vlgmr.msra.gmra.mxu1 %v11295_v10  ;;  %v16881_v10 = vld [vmem:[%s22467_s3 + $0x128] ss:$16 sps:$4 sm:$0xff]  }
 0xfd3   : > { %12253 = vmatprep.mubr.bf16.mxu0 %v21819_v9  ;;  %12294 = vmatprep.mubr.bf16.mxu1 %v21819_v9  ;;  %v16802_v9 = vld [vmem:[%s22467_s3 + $0xc4] ss:$16 sps:$4 sm:$0xff]  }
 0xfd4   : > { %12222 = vmatpush1.bf16.msra.mxu0 %v16794_v11  ;;  %12263 = vmatpush1.bf16.msra.mxu1 %v16797_v16  ;;  %v16886_v11 = vld [vmem:[%s22467_s3 + $0x104] ss:$16 sps:$4 sm:$0xff]   ;;  %v16884_v16 = vld [vmem:[%s22467_s3 + $0x100] ss:$16 sps:$4 sm:$0xff]  }
 0xfd5   : > { %12223 = vmatprep.subr.bf16.mxu0 %v16802_v9  ;;  %12264 = vmatprep.subr.bf16.mxu1 %v16805_v28  ;;  %v10839_v9 = vld [vmem:[%s22470_s6] sm:$0xf]  ;;  %v16892_v28 = vld [vmem:[%s22469_s5 + $0xe4] ss:$16 sps:$4 sm:$0xff]  }
 0xfd8   : > { %12224 = vmatpush1.bf16.msra.mxu0 %v16800_v18  ;;  %12265 = vmatpush1.bf16.msra.mxu1 %v16803_v19  ;;  %v10844_v18 = vrot.slane %v10839_v9, %v17932_v12  ;;  %v16895_v19 = vld [vmem:[%s22469_s5 + $0xec] ss:$16 sps:$4 sm:$0xff]  }
 0xfd9   : > { %12225 = vmatprep.subr.bf16.mxu0 %v16808_v21  ;;  %12266 = vmatprep.subr.bf16.mxu1 %v16811_v23  ;;  %v10848_v21 = vrot.slane %v10839_v9, %v17934_v13 }
 0xfdc   : > { %12226 = vmatpush1.bf16.msra.mxu0 %v16806_v24  ;;  %12267 = vmatpush1.bf16.msra.mxu1 %v16809_v25 }
 0xfdd   : > { %12227 = vmatprep.subr.bf16.mxu0 %v16814_v27  ;;  %12268 = vmatprep.subr.bf16.mxu1 %v16817_v29 }
 0xfe0   : > { %12228 = vmatpush1.bf16.msra.mxu0 %v16812_v30  ;;  %12269 = vmatpush1.bf16.msra.mxu1 %v16815_v31 }
 0xfe1   : > { %12229 = vmatprep.subr.bf16.mxu0 %v16820_v32  ;;  %12270 = vmatprep.subr.bf16.mxu1 %v16823_v33 }
 0xfe4   : > { %12230 = vmatpush1.bf16.msra.mxu0 %v16818_v34  ;;  %12271 = vmatpush1.bf16.msra.mxu1 %v16821_v35 }
 0xfe5   : > { %12231 = vmatprep.subr.bf16.mxu0 %v16826_v36  ;;  %12272 = vmatprep.subr.bf16.mxu1 %v16829_v37  ;;  %v10856_v37 = vrot.slane %v10839_v9, %v17938_v22 }
 0xfe8   : > { %12232 = vmatpush1.bf16.msra.mxu0 %v16824_v38  ;;  %12273 = vmatpush1.bf16.msra.mxu1 %v16827_v40  ;;  %v10852_v40 = vrot.slane %v10839_v9, %v17940_v26 }
 0xfe9   : > { %12233 = vmatprep.subr.bf16.mxu0 %v16832_v41  ;;  %12274 = vmatprep.subr.bf16.mxu1 %v16835_v42 }
 0xfec   : > { %12234 = vmatpush1.bf16.msra.mxu0 %v16830_v43  ;;  %12275 = vmatpush1.bf16.msra.mxu1 %v16833_v39 }
 0xfed   : > { %12235 = vmatprep.subr.bf16.mxu0 %v16838_v45  ;;  %12276 = vmatprep.subr.bf16.mxu1 %v16841_v46 }
 0xff0   : > { %12236 = vmatpush1.bf16.msra.mxu0 %v16836_v47  ;;  %12277 = vmatpush1.bf16.msra.mxu1 %v16839_v55 }
 0xff1   : > { %12237 = vmatprep.subr.bf16.mxu0 %v16844_v48  ;;  %12278 = vmatprep.subr.bf16.mxu1 %v16847_v44 }
 0xff4   : > { %12238 = vmatpush2.bf16.msra.mxu0 %v16842_v58  ;;  %12279 = vmatpush2.bf16.msra.mxu1 %v16845_v50  ;;  %v11282_v58 = vld [vmem:[#allocation3 + $0x10] sm:$0xff] }
 0xff5   : > { %12239 = vmatprep.subr.bf16.mxu0 %v16850_v51  ;;  %12280 = vmatprep.subr.bf16.mxu1 %v16853_v52 }
 0xff8   : > { %12240 = vmatpush2.bf16.msra.mxu0 %v16848_v53  ;;  %12281 = vmatpush2.bf16.msra.mxu1 %v16851_v49 }
 0xff9   : > { %12241 = vmatprep.subr.bf16.mxu0 %v16856_v0  ;;  %12282 = vmatprep.subr.bf16.mxu1 %v16859_v56 }
 0xffc   : > { %12242 = vmatpush2.bf16.msra.mxu0 %v16854_v57  ;;  %12283 = vmatpush2.bf16.msra.mxu1 %v16857_v59  ;;  %v11361_v57 = vld [vmem:[%s22466_s2] sm:$0xf] }
 0xffd   : > { %12243 = vmatprep.subr.bf16.mxu0 %v16862_v60  ;;  %12284 = vmatprep.subr.bf16.mxu1 %v16865_v54  ;;  %v11366_v59 = vrot.slane %v11361_v57, %v17932_v12  ;;  %v11370_v60 = vrot.slane %v11361_v57, %v17934_v13 }
0x1000   : > { %12244 = vmatpush2.bf16.msra.mxu0 %v16860_v6  ;;  %12285 = vmatpush2.bf16.msra.mxu1 %v16863_v62 }
0x1001   : > { %12245 = vmatprep.subr.bf16.mxu0 %v16868_v1  ;;  %12286 = vmatprep.subr.bf16.mxu1 %v16871_v61 }
0x1004   : > { %12246 = vmatpush2.bf16.msra.mxu0 %v16866_v63  ;;  %12287 = vmatpush2.bf16.msra.mxu1 %v16869_v2 }
0x1005   : > { %12247 = vmatprep.subr.bf16.mxu0 %v16874_v14  ;;  %12288 = vmatprep.subr.bf16.mxu1 %v16877_v4 }
0x1008   : > { %12248 = vmatpush2.bf16.msra.mxu0 %v16872_v5  ;;  %12289 = vmatpush2.bf16.msra.mxu1 %v16875_v7 }
0x1009   : > { %12249 = vmatprep.subr.bf16.mxu0 %v16880_v8  ;;  %12290 = vmatprep.subr.bf16.mxu1 %v16883_v3  ;;  %v11378_v3 = vrot.slane %v11361_v57, %v17938_v22 }
0x100c   : > { %12250 = vmatpush2.bf16.msra.mxu0 %v16878_v20  ;;  %12291 = vmatpush2.bf16.msra.mxu1 %v16881_v10  ;;  %v11374_v20 = vrot.slane %v11361_v57, %v17940_v26  ;;  %v16923_v57 = vld [vmem:[%s22469_s5 + $0x48] ss:$16 sps:$4 sm:$0xff]  }
0x100d   : > { %12251 = vmatprep.subr.bf16.mxu0 %v16886_v11  ;;  %12292 = vmatprep.subr.bf16.mxu1 %v16889_v15 }
0x1010   : > { %12252 = vmatpush2.bf16.msra.mxu0 %v16884_v16  ;;  %12293 = vmatpush2.bf16.msra.mxu1 %v16887_v17 }
0x1011   : > { %12739 = vmatprep.subr.bf16.mxu0 %v16892_v28  ;;  %12780 = vmatprep.subr.bf16.mxu1 %v16895_v19 }
0x1052   : > { %v11215_v23 = vpop.f32.mrf.mxu0  ;;  %v11256_v24 = vpop.f32.mrf.mxu1 }
0x1053   : > { %v11216_v25 = vadd.f32 %v11215_v23, %v10844_v18  ;;  %v11257_v43 = vadd.f32 %v11256_v24, %v10852_v40  ;;  %v11804_v24 = vld [vmem:[#allocation3 + $0x8] sm:$0xff]  ;;  %v16901_v40 = vld [vmem:[%s22469_s5 + $0xcc] ss:$16 sps:$4 sm:$0xff]  }
0x1054   : > { %v11217_v27 = vpop.f32.mrf.mxu0  ;;  %v11258_v29 = vpop.f32.mrf.mxu1 }
0x1055   : > { %v14427_v30 = vmul.f32 -1.442695, %v11216_v25  ;;  %v11218_v31 = vadd.f32 %v11217_v27, %v10848_v21  ;;  %v11259_v38 = vadd.f32 %v11258_v29, %v10856_v37 }
0x1056   : > { %v11219_v32 = vpop.f32.mrf.mxu0  ;;  %v11260_v33 = vpop.f32.mrf.mxu1 }
0x1057   : > { %17306 = vpow2.f32 %v14427_v30  ;;  %v14428_v34 = vmul.f32 -1.442695, %v11218_v31  ;;  %v14429_v41 = vmul.f32 -1.442695, %v11259_v38  ;;  %v16898_v38 = vld [vmem:[%s22469_s5 + $0xc4] ss:$16 sps:$4 sm:$0xff]  }
0x1058   : > { %v11220_v35 = vpop.f32.mrf.mxu0  ;;  %v11261_v36 = vpop.f32.mrf.mxu1 }
0x1059   : > { %17308 = vpow2.f32 %v14428_v34  ;;  %v16890_v35 = vld [vmem:[%s22469_s5 + $0xe0] ss:$16 sps:$4 sm:$0xff]   ;;  %v16893_v36 = vld [vmem:[%s22469_s5 + $0xe8] ss:$16 sps:$4 sm:$0xff]  }
0x105a   : > { %17310 = vpow2.f32 %v14429_v41  ;;  %v16896_v41 = vld [vmem:[%s22469_s5 + $0xc0] ss:$16 sps:$4 sm:$0xff]  }
0x1064   : > { %v17307_v42 = vpop.eup %17306 }
0x1065   : > { %v11266_v39 = vadd.f32 1.0, %v17307_v42  ;;  %v16899_v42 = vld [vmem:[%s22469_s5 + $0xc8] ss:$16 sps:$4 sm:$0xff]  }
0x1066   : > { %v17309_v45 = vpop.eup %17308 }
0x1067   : > { %17312 = vrcp.f32 %v11266_v39  ;;  %v11272_v46 = vadd.f32 1.0, %v17309_v45  ;;  %v17311_v47 = vpop.eup %17310  ;;  %v16907_v39 = vld [vmem:[%s22469_s5 + $0xac] ss:$16 sps:$4 sm:$0xff]   ;;  %v16902_v45 = vld [vmem:[%s22469_s5 + $0xa0] ss:$16 sps:$4 sm:$0xff]  }
0x1068   : > { %17314 = vtanh.f32 %v11257_v43  ;;  %v11279_v50 = vadd.f32 1.0, %v17311_v47  ;;  %v16904_v43 = vld [vmem:[%s22469_s5 + $0xa4] ss:$16 sps:$4 sm:$0xff]  }
0x1069   : > { %17316 = vrcp.f32 %v11272_v46  ;;  %v16905_v46 = vld [vmem:[%s22469_s5 + $0xa8] ss:$16 sps:$4 sm:$0xff]   ;;  %v16910_v47 = vld [vmem:[%s22469_s5 + $0x84] ss:$16 sps:$4 sm:$0xff]  }
0x106a   : > { %17318 = vrcp.f32 %v11279_v50  ;;  %v16919_v50 = vld [vmem:[%s22469_s5 + $0x6c] ss:$16 sps:$4 sm:$0xff]  }
0x1074   : > { %v17313_v55 = vpop.eup %17312 }
0x1075   : > { %v17315_v48 = vpop.eup %17314 }
0x1076   : > { %v17317_v44 = vpop.eup %17316  ;;  %v11284_v51 = vmul.f32 %v17315_v48, %v17313_v55  ;;  %v16913_v55 = vld [vmem:[%s22469_s5 + $0x8c] ss:$16 sps:$4 sm:$0xff]   ;;  %v16908_v48 = vld [vmem:[%s22469_s5 + $0x80] ss:$16 sps:$4 sm:$0xff]  }
0x1077   : > { %v11283_v52 = vmul.f32 %v17317_v44, %v11282_v58  ;;  %v17319_v49 = vpop.eup %17318  ;;  %v16911_v44 = vld [vmem:[%s22469_s5 + $0x88] ss:$16 sps:$4 sm:$0xff]   ;;  %v16916_v58 = vld [vmem:[%s22469_s5 + $0x64] ss:$16 sps:$4 sm:$0xff]  }
0x1079   : > { %v22213_v53 = vadd.f32 %v11284_v51, %v11283_v52  ;;  %v16914_v51 = vld [vmem:[%s22469_s5 + $0x60] ss:$16 sps:$4 sm:$0xff]   ;;  %v16917_v52 = vld [vmem:[%s22469_s5 + $0x68] ss:$16 sps:$4 sm:$0xff]  }
0x107b   : > { %17320 = vtanh.f32 %v22213_v53 }
0x1088   : > { %v17321_v0 = vpop.eup %17320 }
0x1089   : > { %v11287_v56 = vmul.f32 %v17321_v0, %v17319_v49  ;;  %v16922_v49 = vld [vmem:[%s22469_s5 + $0x44] ss:$16 sps:$4 sm:$0xff]   ;;  %v16925_v0 = vld [vmem:[%s22469_s5 + $0x4c] ss:$16 sps:$4 sm:$0xff]  }
0x108b   : > { %14430 = vst [vmem:[%s17535_s21 + $0x30] sm:$0xff] %v11287_v56  ;;  %v12332_v37 = vpack.c.bf16 %v11287_v56, %v11287_v56  ;;  %v16920_v56 = vld [vmem:[%s22469_s5 + $0x40] ss:$16 sps:$4 sm:$0xff]  }
0x1092   : > { %v11737_v54 = vpop.f32.mrf.mxu0  ;;  %v11778_v6 = vpop.f32.mrf.mxu1 }
0x1093   : > { %v11738_v62 = vadd.f32 %v11737_v54, %v11366_v59  ;;  %v11779_v11 = vadd.f32 %v11778_v6, %v11374_v20  ;;  %v16928_v59 = vld [vmem:[%s22469_s5 + $0x24] ss:$16 sps:$4 sm:$0xff]   ;;  %v16926_v54 = vld [vmem:[%s22469_s5 + $0x20] ss:$16 sps:$4 sm:$0xff]   ;;  %v16929_v6 = vld [vmem:[%s22469_s5 + $0x28] ss:$16 sps:$4 sm:$0xff]  }
0x1094   : > { %v11739_v63 = vpop.f32.mrf.mxu0  ;;  %v11780_v1 = vpop.f32.mrf.mxu1  ;;  %v16947_v20 = vld [vmem:[%s22469_s5 + $0x1c8] ss:$16 sps:$4 sm:$0xff]  }
0x1095   : > { %v14496_v2 = vmul.f32 -1.442695, %v11738_v62  ;;  %v11740_v61 = vadd.f32 %v11739_v63, %v11370_v60  ;;  %v11781_v10 = vadd.f32 %v11780_v1, %v11378_v3  ;;  %v16931_v60 = vld [vmem:[%s22469_s5 + $0x2c] ss:$16 sps:$4 sm:$0xff]   ;;  %v16934_v62 = vld [vmem:[%s22469_s5 + $0x4] ss:$16 sps:$4 sm:$0xff]  }
0x1096   : > { %v11741_v14 = vpop.f32.mrf.mxu0  ;;  %v11782_v4 = vpop.f32.mrf.mxu1  ;;  %v16937_v63 = vld [vmem:[%s22469_s5 + $0xc] ss:$16 sps:$4 sm:$0xff]   ;;  %v16932_v1 = vld [vmem:[%s22469_s5] ss:$16 sps:$4 sm:$0xff]  }
0x1097   : > { %17322 = vpow2.f32 %v14496_v2  ;;  %v14497_v5 = vmul.f32 -1.442695, %v11740_v61  ;;  %v14498_v15 = vmul.f32 -1.442695, %v11781_v10  ;;  %v16935_v2 = vld [vmem:[%s22469_s5 + $0x8] ss:$16 sps:$4 sm:$0xff]  }
0x1098   : > { %v11742_v7 = vpop.f32.mrf.mxu0  ;;  %v11783_v8 = vpop.f32.mrf.mxu1  ;;  %v16940_v61 = vld [vmem:[%s22469_s5 + $0x1e4] ss:$16 sps:$4 sm:$0xff]   ;;  %v16943_v14 = vld [vmem:[%s22469_s5 + $0x1ec] ss:$16 sps:$4 sm:$0xff]   ;;  %v16938_v4 = vld [vmem:[%s22469_s5 + $0x1e0] ss:$16 sps:$4 sm:$0xff]  }
0x1099   : > { %17324 = vpow2.f32 %v14497_v5  ;;  %v16941_v5 = vld [vmem:[%s22469_s5 + $0x1e8] ss:$16 sps:$4 sm:$0xff]   ;;  %v16946_v7 = vld [vmem:[%s22469_s5 + $0x1c4] ss:$16 sps:$4 sm:$0xff]   ;;  %v16949_v8 = vld [vmem:[%s22469_s5 + $0x1cc] ss:$16 sps:$4 sm:$0xff]  }
0x109a   : > { %17326 = vtanh.f32 %v11779_v11  ;;  %v16944_v3 = vld [vmem:[%s22469_s5 + $0x1c0] ss:$16 sps:$4 sm:$0xff]   ;;  %v16952_v10 = vld [vmem:[%s22469_s5 + $0x1a4] ss:$16 sps:$4 sm:$0xff]   ;;  %v16955_v11 = vld [vmem:[%s22469_s5 + $0x1ac] ss:$16 sps:$4 sm:$0xff]  }
0x109b   : > { %17328 = vpow2.f32 %v14498_v15  ;;  %v16950_v15 = vld [vmem:[%s22469_s5 + $0x1a0] ss:$16 sps:$4 sm:$0xff]  }
0x10a4   : > { %v17323_v16 = vpop.eup %17322 }
0x10a5   : > { %v11788_v17 = vadd.f32 1.0, %v17323_v16  ;;  %v16953_v16 = vld [vmem:[%s22469_s5 + $0x1a8] ss:$16 sps:$4 sm:$0xff]  }
0x10a6   : > { %v17325_v9 = vpop.eup %17324 }
0x10a7   : > { %17330 = vrcp.f32 %v11788_v17  ;;  %v11794_v28 = vadd.f32 1.0, %v17325_v9  ;;  %v17327_v18 = vpop.eup %17326  ;;  %v16958_v17 = vld [vmem:[%s22469_s5 + $0x184] ss:$16 sps:$4 sm:$0xff]   ;;  %v16961_v9 = vld [vmem:[%s22469_s5 + $0x18c] ss:$16 sps:$4 sm:$0xff]  }
0x10a8   : > { %v17329_v19 = vpop.eup %17328 }
0x10a9   : > { %17332 = vrcp.f32 %v11794_v28  ;;  %v11801_v25 = vadd.f32 1.0, %v17329_v19  ;;  %v16956_v28 = vld [vmem:[%s22469_s5 + $0x180] ss:$16 sps:$4 sm:$0xff]  }
0x10aa   : > { %v16962_v19 = vld [vmem:[%s22469_s5 + $0x160] ss:$16 sps:$4 sm:$0xff]  }
0x10ab   : > { %17334 = vrcp.f32 %v11801_v25  ;;  %v16970_v25 = vld [vmem:[%s22469_s5 + $0x144] ss:$16 sps:$4 sm:$0xff]  }
0x10b4   : > { %v17331_v21 = vpop.eup %17330 }
0x10b5   : > { %v11806_v29 = vmul.f32 %v17331_v21, %v17327_v18  ;;  %v16959_v18 = vld [vmem:[%s22469_s5 + $0x188] ss:$16 sps:$4 sm:$0xff]   ;;  %v16964_v21 = vld [vmem:[%s22469_s5 + $0x164] ss:$16 sps:$4 sm:$0xff]  }
0x10b6   : > { %v17333_v23 = vpop.eup %17332 }
0x10b7   : > { %v11805_v27 = vmul.f32 %v17333_v23, %v11804_v24  ;;  %v16965_v23 = vld [vmem:[%s22469_s5 + $0x168] ss:$16 sps:$4 sm:$0xff]   ;;  %v16967_v24 = vld [vmem:[%s22469_s5 + $0x16c] ss:$16 sps:$4 sm:$0xff]  }
0x10b8   : > { %v17335_v31 = vpop.eup %17334 }
0x10b9   : > { %v11807_v30 = vadd.f32 %v11806_v29, %v11805_v27  ;;  %v16973_v27 = vld [vmem:[%s22469_s5 + $0x14c] ss:$16 sps:$4 sm:$0xff]   ;;  %v16968_v29 = vld [vmem:[%s22469_s5 + $0x140] ss:$16 sps:$4 sm:$0xff]  }
0x10bb   : > { %17336 = vtanh.f32 %v11807_v30  ;;  %11811 = vst [vmem:[#allocation3 + $0x8] sm:$0xff] %v11807_v30  ;;  %v16971_v30 = vld [vmem:[%s22469_s5 + $0x148] ss:$16 sps:$4 sm:$0xff]  }
0x10c8   : > { %v17337_v32 = vpop.eup %17336 }
0x10c9   : > { %v11809_v33 = vmul.f32 %v17337_v32, %v17335_v31  ;;  %v16976_v31 = vld [vmem:[%s22469_s5 + $0x124] ss:$16 sps:$4 sm:$0xff]   ;;  %v16979_v32 = vld [vmem:[%s22469_s5 + $0x12c] ss:$16 sps:$4 sm:$0xff]  }
0x10cb   : > { %11810 = vst [vmem:[#allocation2 + $0x10] sm:$0xff] %v11809_v33  ;;  %v11813_v34 = vpack.c.bf16 %v11809_v33, %v11809_v33  ;;  %v16974_v33 = vld [vmem:[%s22469_s5 + $0x120] ss:$16 sps:$4 sm:$0xff]  }
0x10cd   : > { %12254 = vmatmul.mubr.bf16.vlgmr.msra.gmra.mxu0 %v11813_v34  ;;  %12295 = vmatmul.mubr.bf16.vlgmr.msra.gmra.mxu1 %v11813_v34  ;;  %v16977_v34 = vld [vmem:[%s22469_s5 + $0x128] ss:$16 sps:$4 sm:$0xff]  }
0x10ce   : > { %12771 = vmatprep.mubr.bf16.mxu0 %v12332_v37  ;;  %12812 = vmatprep.mubr.bf16.mxu1 %v12332_v37  ;;  %v16980_v37 = vld [vmem:[%s22469_s5 + $0x100] ss:$16 sps:$4 sm:$0xff]  }
0x10cf   : > { %12740 = vmatpush1.bf16.msra.mxu0 %v16890_v35  ;;  %12781 = vmatpush1.bf16.msra.mxu1 %v16893_v36  ;;  %v16982_v35 = vld [vmem:[%s22469_s5 + $0x104] ss:$16 sps:$4 sm:$0xff]   ;;  %v16985_v36 = vld [vmem:[%s22469_s5 + $0x10c] ss:$16 sps:$4 sm:$0xff]  }
0x10d0   : > { %12741 = vmatprep.subr.bf16.mxu0 %v16898_v38  ;;  %12782 = vmatprep.subr.bf16.mxu1 %v16901_v40  ;;  %v16983_v38 = vld [vmem:[%s22469_s5 + $0x108] ss:$16 sps:$4 sm:$0xff]   ;;  %v11879_v40 = vld [vmem:[%s22468_s4] sm:$0xf] }
0x10d3   : > { %12742 = vmatpush1.bf16.msra.mxu0 %v16896_v41  ;;  %12783 = vmatpush1.bf16.msra.mxu1 %v16899_v42  ;;  %v11884_v41 = vrot.slane %v11879_v40, %v17932_v12  ;;  %v11888_v42 = vrot.slane %v11879_v40, %v17934_v13 }
0x10d4   : > { %12743 = vmatprep.subr.bf16.mxu0 %v16904_v43  ;;  %12784 = vmatprep.subr.bf16.mxu1 %v16907_v39 }
0x10d7   : > { %12744 = vmatpush1.bf16.msra.mxu0 %v16902_v45  ;;  %12785 = vmatpush1.bf16.msra.mxu1 %v16905_v46 }
0x10d8   : > { %12745 = vmatprep.subr.bf16.mxu0 %v16910_v47  ;;  %12786 = vmatprep.subr.bf16.mxu1 %v16913_v55 }
0x10db   : > { %12746 = vmatpush1.bf16.msra.mxu0 %v16908_v48  ;;  %12787 = vmatpush1.bf16.msra.mxu1 %v16911_v44 }
0x10dc   : > { %12747 = vmatprep.subr.bf16.mxu0 %v16916_v58  ;;  %12788 = vmatprep.subr.bf16.mxu1 %v16919_v50 }
0x10df   : > { %12748 = vmatpush1.bf16.msra.mxu0 %v16914_v51  ;;  %12789 = vmatpush1.bf16.msra.mxu1 %v16917_v52 }
0x10e0   : > { %12749 = vmatprep.subr.bf16.mxu0 %v16922_v49  ;;  %12790 = vmatprep.subr.bf16.mxu1 %v16925_v0  ;;  %v11896_v49 = vrot.slane %v11879_v40, %v17938_v22 }
0x10e3   : > { %12750 = vmatpush1.bf16.msra.mxu0 %v16920_v56  ;;  %12791 = vmatpush1.bf16.msra.mxu1 %v16923_v57  ;;  %v11892_v56 = vrot.slane %v11879_v40, %v17940_v26 }
0x10e4   : > { %12751 = vmatprep.subr.bf16.mxu0 %v16928_v59  ;;  %12792 = vmatprep.subr.bf16.mxu1 %v16931_v60 }
0x10e7   : > { %12752 = vmatpush1.bf16.msra.mxu0 %v16926_v54  ;;  %12793 = vmatpush1.bf16.msra.mxu1 %v16929_v6 }
0x10e8   : > { %12753 = vmatprep.subr.bf16.mxu0 %v16934_v62  ;;  %12794 = vmatprep.subr.bf16.mxu1 %v16937_v63 }
0x10eb   : > { %12754 = vmatpush1.bf16.msra.mxu0 %v16932_v1  ;;  %12795 = vmatpush1.bf16.msra.mxu1 %v16935_v2 }
0x10ec   : > { %12755 = vmatprep.subr.bf16.mxu0 %v16940_v61  ;;  %12796 = vmatprep.subr.bf16.mxu1 %v16943_v14  ;;  %v12322_v14 = vld [vmem:[#allocation3] sm:$0xff] }
0x10ef   : > { %12756 = vmatpush2.bf16.msra.mxu0 %v16938_v4  ;;  %12797 = vmatpush2.bf16.msra.mxu1 %v16941_v5 }
0x10f0   : > { %12757 = vmatprep.subr.bf16.mxu0 %v16946_v7  ;;  %12798 = vmatprep.subr.bf16.mxu1 %v16949_v8 }
0x10f3   : > { %12758 = vmatpush2.bf16.msra.mxu0 %v16944_v3  ;;  %12799 = vmatpush2.bf16.msra.mxu1 %v16947_v20 }
0x10f4   : > { %12759 = vmatprep.subr.bf16.mxu0 %v16952_v10  ;;  %12800 = vmatprep.subr.bf16.mxu1 %v16955_v11 }
0x10f7   : > { %12760 = vmatpush2.bf16.msra.mxu0 %v16950_v15  ;;  %12801 = vmatpush2.bf16.msra.mxu1 %v16953_v16  ;;  %v12397_v15 = vld [vmem:[%s22470_s6] sm:$0xf] }
0x10f8   : > { %12761 = vmatprep.subr.bf16.mxu0 %v16958_v17  ;;  %12802 = vmatprep.subr.bf16.mxu1 %v16961_v9  ;;  %v12402_v16 = vrot.slane %v12397_v15, %v17932_v12  ;;  %v12406_v17 = vrot.slane %v12397_v15, %v17934_v13  ;;  %v12410_v12 = vrot.slane %v12397_v15, %v17940_v26 }
0x10fb   : > { %12762 = vmatpush2.bf16.msra.mxu0 %v16956_v28  ;;  %12803 = vmatpush2.bf16.msra.mxu1 %v16959_v18 }
0x10fc   : > { %12763 = vmatprep.subr.bf16.mxu0 %v16964_v21  ;;  %12804 = vmatprep.subr.bf16.mxu1 %v16967_v24 }
0x10ff   : > { %12764 = vmatpush2.bf16.msra.mxu0 %v16962_v19  ;;  %12805 = vmatpush2.bf16.msra.mxu1 %v16965_v23 }
0x1100   : > { %12765 = vmatprep.subr.bf16.mxu0 %v16970_v25  ;;  %12806 = vmatprep.subr.bf16.mxu1 %v16973_v27 }
0x1103   : > { %12766 = vmatpush2.bf16.msra.mxu0 %v16968_v29  ;;  %12807 = vmatpush2.bf16.msra.mxu1 %v16971_v30 }
0x1104   : > { %12767 = vmatprep.subr.bf16.mxu0 %v16976_v31  ;;  %12808 = vmatprep.subr.bf16.mxu1 %v16979_v32  ;;  %v12414_v32 = vrot.slane %v12397_v15, %v17938_v22 }
0x1107   : > { %12768 = vmatpush2.bf16.msra.mxu0 %v16974_v33  ;;  %12809 = vmatpush2.bf16.msra.mxu1 %v16977_v34 }
0x1108   : > { %12769 = vmatprep.subr.bf16.mxu0 %v16982_v35  ;;  %12810 = vmatprep.subr.bf16.mxu1 %v16985_v36 }
0x110b   : > { %12770 = vmatpush2.bf16.msra.mxu0 %v16980_v37  ;;  %12811 = vmatpush2.bf16.msra.mxu1 %v16983_v38 }
0x118d   : > { %v12255_v43 = vpop.f32.mrf.mxu0  ;;  %v12296_v39 = vpop.f32.mrf.mxu1 }
0x118e   : > { %v12256_v45 = vadd.f32 %v12255_v43, %v11884_v41  ;;  %v12297_v60 = vadd.f32 %v12296_v39, %v11892_v56 }
0x118f   : > { %v12257_v46 = vpop.f32.mrf.mxu0  ;;  %v12298_v47 = vpop.f32.mrf.mxu1 }
0x1190   : > { %v14563_v55 = vmul.f32 -1.442695, %v12256_v45  ;;  %v12258_v48 = vadd.f32 %v12257_v46, %v11888_v42  ;;  %v12299_v0 = vadd.f32 %v12298_v47, %v11896_v49 }
0x1191   : > { %v12259_v44 = vpop.f32.mrf.mxu0  ;;  %v12300_v58 = vpop.f32.mrf.mxu1 }
0x1192   : > { %17338 = vpow2.f32 %v14563_v55  ;;  %v14564_v50 = vmul.f32 -1.442695, %v12258_v48  ;;  %v14565_v57 = vmul.f32 -1.442695, %v12299_v0 }
0x1193   : > { %v12260_v51 = vpop.f32.mrf.mxu0  ;;  %v12301_v52 = vpop.f32.mrf.mxu1 }
0x1194   : > { %17340 = vpow2.f32 %v14564_v50 }
0x1195   : > { %17342 = vpow2.f32 %v14565_v57 }
0x119f   : > { %v17339_v59 = vpop.eup %17338 }
0x11a0   : > { %v12306_v54 = vadd.f32 1.0, %v17339_v59 }
0x11a1   : > { %v17341_v6 = vpop.eup %17340 }
0x11a2   : > { %17344 = vrcp.f32 %v12306_v54  ;;  %v12312_v62 = vadd.f32 1.0, %v17341_v6  ;;  %v17343_v63 = vpop.eup %17342 }
0x11a3   : > { %17346 = vtanh.f32 %v12297_v60  ;;  %v12319_v4 = vadd.f32 1.0, %v17343_v63 }
0x11a4   : > { %17348 = vrcp.f32 %v12312_v62 }
0x11a5   : > { %17350 = vrcp.f32 %v12319_v4 }
0x11af   : > { %v17345_v1 = vpop.eup %17344 }
0x11b0   : > { %v17347_v2 = vpop.eup %17346 }
0x11b1   : > { %v17349_v61 = vpop.eup %17348  ;;  %v12324_v5 = vmul.f32 %v17347_v2, %v17345_v1 }
0x11b2   : > { %v12323_v7 = vmul.f32 %v17349_v61, %v12322_v14  ;;  %v17351_v3 = vpop.eup %17350 }
0x11b4   : > { %v12325_v8 = vadd.f32 %v12324_v5, %v12323_v7 }
0x11b6   : > { %12329 = vst [vmem:[#allocation3] sm:$0xff] %v12325_v8  ;;  %17352 = vtanh.f32 %v12325_v8 }
0x11c3   : > { %v17353_v20 = vpop.eup %17352 }
0x11c4   : > { %v12327_v10 = vmul.f32 %v17353_v20, %v17351_v3 }
0x11c6   : > { %12328 = vst [vmem:[#allocation2] sm:$0xff] %v12327_v10  ;;  %v12331_v11 = vpack.c.bf16 %v12327_v10, %v12327_v10 }
0x11c8   : > { %12772 = vmatmul.mubr.bf16.vlgmr.msra.gmra.mxu0 %v12331_v11  ;;  %12813 = vmatmul.mubr.bf16.vlgmr.msra.gmra.mxu1 %v12331_v11 }
0x1288   : > { %v12773_v9 = vpop.f32.mrf.mxu0  ;;  %v12814_v28 = vpop.f32.mrf.mxu1 }
0x1289   : > { %v12774_v18 = vadd.f32 %v12773_v9, %v12402_v16  ;;  %v12815_v35 = vadd.f32 %v12814_v28, %v12410_v12 }
0x128a   : > { %v12775_v19 = vpop.f32.mrf.mxu0  ;;  %v12816_v21 = vpop.f32.mrf.mxu1 }
0x128b   : > { %v14630_v23 = vmul.f32 -1.442695, %v12774_v18  ;;  %v12776_v24 = vadd.f32 %v12775_v19, %v12406_v17  ;;  %v12817_v33 = vadd.f32 %v12816_v21, %v12414_v32 }
0x128c   : > { %v12777_v25 = vpop.f32.mrf.mxu0  ;;  %v12818_v27 = vpop.f32.mrf.mxu1 }
0x128d   : > { %17354 = vpow2.f32 %v14630_v23  ;;  %v14631_v29 = vmul.f32 -1.442695, %v12776_v24  ;;  %v14632_v13 = vmul.f32 -1.442695, %v12817_v33 }
0x128e   : > { %v12778_v30 = vpop.f32.mrf.mxu0  ;;  %v12819_v31 = vpop.f32.mrf.mxu1 }
0x128f   : > { %17356 = vpow2.f32 %v14631_v29 }
0x1290   : > { %17358 = vpow2.f32 %v14632_v13 }
0x129a   : > { %v17355_v34 = vpop.eup %17354 }
0x129b   : > { %v12824_v36 = vadd.f32 1.0, %v17355_v34 }
0x129c   : > { %v17357_v37 = vpop.eup %17356 }
0x129d   : > { %17360 = vrcp.f32 %v12824_v36  ;;  %v12830_v38 = vadd.f32 1.0, %v17357_v37  ;;  %v17359_v40 = vpop.eup %17358 }
0x129e   : > { %17362 = vtanh.f32 %v12815_v35  ;;  %v12837_v39 = vadd.f32 1.0, %v17359_v40 }
0x129f   : > { %17364 = vrcp.f32 %v12830_v38 }
0x12a0   : > { %17366 = vrcp.f32 %v12837_v39 }
0x12aa   : > { %v17361_v41 = vpop.eup %17360 }
0x12ab   : > { %v17363_v42 = vpop.eup %17362 }
0x12ac   : > { %v17365_v43 = vpop.eup %17364  ;;  %v12842_v22 = vmul.f32 %v17363_v42, %v17361_v41 }
0x12ad   : > { %v12841_v45 = vmul.f32 %v17365_v43, %v22213_v53  ;;  %v17367_v46 = vpop.eup %17366 }
0x12af   : > { %v12843_v26 = vadd.f32 %v12842_v22, %v12841_v45 }
0x12b1   : > { %17368 = vtanh.f32 %v12843_v26  ;;  %12847 = vst [vmem:[#allocation3 + $0x10] sm:$0xff] %v12843_v26 }
0x12bd   : > { %12853 = sbr.rel (%p14634_p6) target bundleno = 4810 (0x12ca), region = 56 }
0x12be   : > { %v17369_v47 = vpop.eup %17368 }
0x12bf   : > { %v12845_v55 = vmul.f32 %v17369_v47, %v17367_v46 }
0x12c1   : > { %12846 = vst [vmem:[#allocation2 + $0x8] sm:$0xff] %v12845_v55  ;;  %14633 = vst [vmem:[%s17535_s21 + $0x38] sm:$0xff] %v12845_v55 }
0x12c2   : > { %v12854_v48 = vld [vmem:[#allocation2 + $0x10] sm:$0xff]  ;;  %v12855_v44 = vld [vmem:[#allocation2] sm:$0xff]  ;;  %v12861_v53 = vld [vmem:[#allocation3] sm:$0xff] }
0x12c3   : > { %12857 = vst [vmem:[#allocation4] sm:$0xff] %v12854_v48  ;;  %12858 = vst [vmem:[#allocation4 + $0x8] sm:$0xff] %v12855_v44  ;;  %v12860_v50 = vld [vmem:[#allocation3 + $0x8] sm:$0xff]  ;;  %v12862_v51 = vld [vmem:[#allocation3 + $0x10] sm:$0xff] }
0x12c4   : > { %12863 = vst [vmem:[#allocation6] sm:$0xff] %v12860_v50  ;;  %12864 = vst [vmem:[#allocation6 + $0x8] sm:$0xff] %v12861_v53 }
0x12c5   : > { %12865 = vst [vmem:[#allocation6 + $0x10] sm:$0xff] %v12862_v51 }
0x12c8   : > { %v12856_v58 = vld [vmem:[#allocation2 + $0x8] sm:$0xff] }
0x12c9   : > { %12859 = vst [vmem:[#allocation4 + $0x10] sm:$0xff] %v12856_v58 }
0x12ca PF: > { %p22429_p7 = scmp.eq.s32.totalorder %s13002_s12, 1  ;;  %s17451_s30 = smov [#allocation4]  }
0x12cb   : > { %s12886_s14 = sshll.u32 %s17451_s30, 4  ;;  %s12887_s14 = int_to_ptr.vmem [resolvable:$true] %s12886_s14 }
0x12cc   : > { %s17370_s15 = scalar_lea.vmem %s12887_s14, 384  ;;  %p17377_p11 = scmp.lt.s32.totalorder %s12887_s14, %s12887_s14 }
0x12cd   : > { %p17371_p8 = scmp.ne.s32.totalorder %s12887_s14, %s17370_s15  ;;  %p17378_p12 = scmp.lt.s32.totalorder %s17370_s15, %s17370_s15 }
0x12cf   : > { %p17372_p9 = pnand %p17371_p8, %p22429_p7  ;;  %p17379_p13 = por %p17378_p12, %p17377_p11 }
0x12d1   : > { %p17373_p10 = pneg %p17372_p9 }
0x12d3   : > { %p17380_p0 = pnand %p17379_p13, %p17373_p10 }
0x12d5   : > { %17383 = shalt.err (!%p17380_p0)
}
0x12d6   : > { %s17452_s16 = smov 128   ;;  %s17453_s12 = smov 8  }
0x12d7   : > { %14642 = dma.vmem_to_hbm [thread:$0]  (%p22429_p7), %s12887_s14, 384, %s22472_s8, [#allocation5], %s17452_s16, %s17452_s16, %s17453_s12  }
0x12d8   : > { %s17454_s20 = smov [#allocation6]  }
0x12d9   : > { %s12901_s22 = sshll.u32 %s17454_s20, 4  ;;  %s12902_s22 = int_to_ptr.vmem [resolvable:$true] %s12901_s22 }
0x12da   : > { %s17394_s23 = scalar_lea.vmem %s12902_s22, 384  ;;  %p17401_p4 = scmp.lt.s32.totalorder %s12902_s22, %s12902_s22 }
0x12db   : > { %p17395_p1 = scmp.ne.s32.totalorder %s12902_s22, %s17394_s23  ;;  %p17402_p5 = scmp.lt.s32.totalorder %s17394_s23, %s17394_s23 }
0x12dd   : > { %p17396_p2 = pnand %p17395_p1, %p22429_p7  ;;  %p17403_p6 = por %p17402_p5, %p17401_p4 }
0x12df   : > { %p17397_p3 = pneg %p17396_p2 }
0x12e1   : > { %p17404_p8 = pnand %p17403_p6, %p17397_p3 }
0x12e3   : > { %17407 = shalt.err (!%p17404_p8)
}
0x12e4   : > { %14644 = dma.vmem_to_hbm [thread:$0]  (%p22429_p7), %s12902_s22, 384, %s22473_s9, [#allocation7], %s17452_s16, %s17452_s16, %s17453_s12  }
0x12e5   : > { %17431 = dma.done.wait (%p22429_p7), [#allocation5], 384  }
0x12e6   : > { %17433 = vsyncadd (%p22429_p7), [#allocation5], 4294966912 }
0x12e7   : > { %17435 = dma.done.wait (%p22429_p7), [#allocation7], 384  }
0x12e8   : > { %17437 = vsyncadd (%p22429_p7), [#allocation7], 4294966912 }
0x12e9 PF: > { %s22_s11 = sadd.s32 1, %s17448_s11   ;;  %s22475_s30 = smov %s17444_s10 }
0x12ea   : > { %p19_p9 = scmp.ge.s32.totalorder %s22_s11, 4   ;;  %s22476_s10 = smov %s22478_s13 }
0x12ec   :  { %21 = sbr.rel (!%p19_p9) target bundleno = 3 (0x3), region = 123 }
0x12f1   :  { %12932 = vsyncpa [#allocation5], 1 }
0x12f2   :  { %12934 = vsyncpa [#allocation5 + $0x1], 1 }
0x12f3   :  { %12935 = vsyncpa [#allocation7], 1 }

</bundles_post_ra>
